<compile_context>
chip_gen: v5e
topology: v5e:2x2
jax: 0.10.0
libtpu: 0.0.40
codegen_flags: <defaults>
</compile_context>

<pallas_src>
import jax
import jax.numpy as jnp
from jax.experimental import pallas as pl
from jax.experimental.pallas import tpu as pltpu

# ---------------- configuration (small synthetic shapes) ----------------
B, T, S = 2, 8, 8          # batch, decoder length, encoder length
C = 32                     # embed dim
H = 4                      # attention heads
DH = C // H                # head dim
FFN = 64                   # ffn hidden dim
NUM_LAYERS = 2
MAX_REL = 4                # relative position window
NUM_REL = 2 * MAX_REL + 1  # number of relative-position buckets
EPS = 1e-5                 # LayerNorm eps (torch default)


# ---------------- fused Pallas kernel (whole layer stack) ----------------

def _dep_encoder_kernel(
        x_ref, enc_ref, dmask_ref, emask_ref, relk_t_ref, relv_ref, onehot_ref,
        sa_qkv_w, sa_qkv_b, sa_o_w, sa_o_b,
        ca_q_w, ca_q_b, ca_kv_w, ca_kv_b, ca_o_w, ca_o_b,
        fc1_w, fc1_b, fc2_w, fc2_b,
        ln1_g, ln1_b, ln2_g, ln2_b, ln3_g, ln3_b,
        o_ref):
    bb = x_ref.shape[0]                 # batch elements in this grid block (1)
    scale = DH ** -0.5

    x = x_ref[...].reshape(bb * T, C)       # rows ordered (b, t)
    enc = enc_ref[...].reshape(bb * S, C)   # rows ordered (b, s)
    dmask = dmask_ref[...]                  # (bb, 1, T) additive (-1e9 on pads)
    emask = emask_ref[...]                  # (bb, 1, S) additive
    relk_t = relk_t_ref[...]                # (DH, NUM_REL)
    relv = relv_ref[...]                    # (NUM_REL, DH)
    onehot = onehot_ref[...]                # (NUM_REL, T, T) one-hot of rel offsets

    def layer_norm(z, g, b):
        mean = jnp.mean(z, axis=-1, keepdims=True)
        var = jnp.mean((z - mean) ** 2, axis=-1, keepdims=True)
        return (z - mean) * jax.lax.rsqrt(var + EPS) * g + b

    def softmax(s):
        m = jnp.max(s, axis=-1, keepdims=True)
        p = jnp.exp(s - m)
        denom = jnp.sum(p, axis=-1, keepdims=True)
        return p * pl.reciprocal(denom, approx=True)

    for l in range(NUM_LAYERS):         # trace-time unrolled (NUM_LAYERS = 2)
        # ---------------- self attention (shared relative positions) --------
        residual = x
        qkv = jnp.dot(x, sa_qkv_w[l],
                      preferred_element_type=jnp.float32) + sa_qkv_b[l]
        q3 = (qkv[:, 0 * C:1 * C] * scale).reshape(bb, T, C)
        k3 = qkv[:, 1 * C:2 * C].reshape(bb, T, C)
        v3 = qkv[:, 2 * C:3 * C].reshape(bb, T, C)

        head_outs = []
        for h in range(H):              # heads are contiguous lane slices of C
            sl = slice(h * DH, (h + 1) * DH)
            qh, kh, vh = q3[..., sl], k3[..., sl], v3[..., sl]   # (bb, T, DH)
            s = jnp.einsum('bqd,bkd->bqk', qh, kh,
                           preferred_element_type=jnp.float32)   # (bb, T, T)
            # Shaw rel-key term: q @ rel_k_emb^T, scattered by relative offset.
            a = jnp.dot(qh.reshape(bb * T, DH), relk_t,
                        preferred_element_type=jnp.float32).reshape(bb, T, NUM_REL)
            for r in range(NUM_REL):
                s = s + a[:, :, r:r + 1] * onehot[r:r + 1, :, :]
            p = softmax(s + dmask)
            oh = jnp.einsum('bqk,bkd->bqd', p, vh,
                            preferred_element_type=jnp.float32)  # (bb, T, DH)
            # Shaw rel-value term: bin probabilities by offset, matmul with table.
            pr = jnp.concatenate(
                [jnp.sum(p * onehot[r:r + 1, :, :], axis=-1, keepdims=True)
                 for r in range(NUM_REL)], axis=-1)              # (bb, T, NUM_REL)
            oh = oh + jnp.dot(pr.reshape(bb * T, NUM_REL), relv,
                              preferred_element_type=jnp.float32).reshape(bb, T, DH)
            head_outs.append(oh)
        attn = jnp.concatenate(head_outs, axis=-1).reshape(bb * T, C)
        attn = jnp.dot(attn, sa_o_w[l],
                       preferred_element_type=jnp.float32) + sa_o_b[l]
        x = layer_norm(attn + residual, ln1_g[l], ln1_b[l])      # post-norm

        # ---------------- encoder-decoder cross attention --------------------
        residual = x
        q = jnp.dot(x, ca_q_w[l],
                    preferred_element_type=jnp.float32) + ca_q_b[l]
        kv = jnp.dot(enc, ca_kv_w[l],
                     preferred_element_type=jnp.float32) + ca_kv_b[l]
        q3 = (q * scale).reshape(bb, T, C)
        k3 = kv[:, 0:C].reshape(bb, S, C)
        v3 = kv[:, C:2 * C].reshape(bb, S, C)
        head_outs = []
        for h in range(H):
            sl = slice(h * DH, (h + 1) * DH)
            qh, kh, vh = q3[..., sl], k3[..., sl], v3[..., sl]
            s = jnp.einsum('bqd,bkd->bqk', qh, kh,
                           preferred_element_type=jnp.float32)   # (bb, T, S)
            p = softmax(s + emask)
            head_outs.append(jnp.einsum('bqk,bkd->bqd', p, vh,
                                        preferred_element_type=jnp.float32))
        attn = jnp.concatenate(head_outs, axis=-1).reshape(bb * T, C)
        attn = jnp.dot(attn, ca_o_w[l],
                       preferred_element_type=jnp.float32) + ca_o_b[l]
        x = layer_norm(attn + residual, ln2_g[l], ln2_b[l])

        # ---------------- feed forward (ReLU) --------------------------------
        residual = x
        hdn = jnp.maximum(jnp.dot(x, fc1_w[l],
                                  preferred_element_type=jnp.float32) + fc1_b[l], 0.0)
        y = jnp.dot(hdn, fc2_w[l],
                    preferred_element_type=jnp.float32) + fc2_b[l]
        x = layer_norm(y + residual, ln3_g[l], ln3_b[l])

    o_ref[...] = x.reshape(bb, T, C)


# ---------------- wrapper ----------------

def dep_encoder_forward(encoder_out, encoder_padding_mask,
                        hidden_state, decoder_padding_mask, params):
    # Layout glue done once outside the kernel: time-major -> batch-major.
    x = jnp.transpose(hidden_state, (1, 0, 2))     # (B, T, C)
    enc = jnp.transpose(encoder_out, (1, 0, 2))    # (B, S, C)

    # Additive padding masks, precomputed (-1e9 on padded keys).
    # TODO(synk): fairseq uses masked_fill(-inf); -1e9 keeps fully-padded rows finite.
    dmask = (decoder_padding_mask.astype(jnp.float32) * -1e9).reshape(B, 1, T)
    emask = (encoder_padding_mask.astype(jnp.float32) * -1e9).reshape(B, 1, S)

    # Relative-position constants: transposed key table and a one-hot offset mask.
    pos = jnp.arange(T)
    rel_idx = jnp.clip(pos[None, :] - pos[:, None], -MAX_REL, MAX_REL) + MAX_REL
    onehot = (rel_idx[None, :, :] ==
              jnp.arange(NUM_REL)[:, None, None]).astype(jnp.float32)  # (NUM_REL,T,T)
    relk_t = params["rel_k_emb"].T                 # (DH, NUM_REL)
    relv = params["rel_v_emb"]                     # (NUM_REL, DH)

    weight_names = ["sa_qkv_w", "sa_qkv_b", "sa_o_w", "sa_o_b",
                    "ca_q_w", "ca_q_b", "ca_kv_w", "ca_kv_b", "ca_o_w", "ca_o_b",
                    "fc1_w", "fc1_b", "fc2_w", "fc2_b",
                    "ln1_g", "ln1_b", "ln2_g", "ln2_b", "ln3_g", "ln3_b"]
    weights = [params[n] for n in weight_names]

    batch_args = [x, enc, dmask, emask]
    shared_args = [relk_t, relv, onehot] + weights

    def batch_spec(a):
        return pl.BlockSpec((1,) + a.shape[1:],
                            lambda b, nd=a.ndim: (b,) + (0,) * (nd - 1))

    def shared_spec(a):
        return pl.BlockSpec(a.shape, lambda b, nd=a.ndim: (0,) * nd)

    in_specs = ([batch_spec(a) for a in batch_args] +
                [shared_spec(a) for a in shared_args])

    return pl.pallas_call(
        _dep_encoder_kernel,
        grid=(B,),
        in_specs=in_specs,
        out_specs=pl.BlockSpec((1, T, C), lambda b: (b, 0, 0)),
        out_shape=jax.ShapeDtypeStruct((B, T, C), jnp.float32),
        compiler_params=pltpu.CompilerParams(dimension_semantics=("parallel",)),
    )(*batch_args, *shared_args)


# ---------------- deterministic parameter init ----------------

def init_params(key):
    scale = 0.02
    total = NUM_LAYERS * 7 + 2
    keys = iter(jax.random.split(key, total))

    def dense_stack(din, dout):
        ws = [scale * jax.random.normal(next(keys), (din, dout), jnp.float32)
              for _ in range(NUM_LAYERS)]
        bs = [jnp.zeros((1, dout), jnp.float32) for _ in range(NUM_LAYERS)]
        return jnp.stack(ws), jnp.stack(bs)

    params = {}
    for name, din, dout in [("sa_qkv", C, 3 * C), ("sa_o", C, C),
                            ("ca_q", C, C), ("ca_kv", C, 2 * C), ("ca_o", C, C),
                            ("fc1", C, FFN), ("fc2", FFN, C)]:
        w, b = dense_stack(din, dout)
        params[name + "_w"], params[name + "_b"] = w, b
    for ln in ["ln1", "ln2", "ln3"]:
        params[ln + "_g"] = jnp.ones((NUM_LAYERS, 1, C), jnp.float32)
        params[ln + "_b"] = jnp.zeros((NUM_LAYERS, 1, C), jnp.float32)
    params["rel_k_emb"] = scale * jax.random.normal(next(keys), (NUM_REL, DH), jnp.float32)
    params["rel_v_emb"] = scale * jax.random.normal(next(keys), (NUM_REL, DH), jnp.float32)
    return params


# ---------------- main ----------------

if __name__ == "__main__":
    root = jax.random.PRNGKey(0)
    k_hid, k_enc, k_par = jax.random.split(root, 3)

    hidden_state = jax.random.normal(k_hid, (T, B, C), jnp.float32)   # (T, B, C)
    encoder_out = jax.random.normal(k_enc, (S, B, C), jnp.float32)    # (S, B, C)

    decoder_padding_mask = jnp.zeros((B, T), jnp.bool_).at[1, T - 2:].set(True)
    encoder_padding_mask = jnp.zeros((B, S), jnp.bool_).at[0, S - 1:].set(True)

    params = init_params(k_par)

    out = dep_encoder_forward(encoder_out, encoder_padding_mask,
                              hidden_state, decoder_padding_mask, params)
    out = jax.block_until_ready(out)
    assert out.shape == (B, T, C) and out.dtype == jnp.float32
    assert bool(jnp.all(jnp.isfinite(out)))
    print("KERNEL_OK")
</pallas_src>

<mosaic_0001>
module attributes {stable_mosaic.version = 11 : i64} {
  func.func @_dep_encoder_kernel(%arg0: i32, %arg1: memref<1x8x32xf32, #tpu.memory_space<vmem>>, %arg2: memref<1x8x32xf32, #tpu.memory_space<vmem>>, %arg3: memref<1x1x8xf32, #tpu.memory_space<vmem>>, %arg4: memref<1x1x8xf32, #tpu.memory_space<vmem>>, %arg5: memref<8x9xf32, #tpu.memory_space<vmem>>, %arg6: memref<9x8xf32, #tpu.memory_space<vmem>>, %arg7: memref<9x8x8xf32, #tpu.memory_space<vmem>>, %arg8: memref<2x32x96xf32, #tpu.memory_space<vmem>>, %arg9: memref<2x1x96xf32, #tpu.memory_space<vmem>>, %arg10: memref<2x32x32xf32, #tpu.memory_space<vmem>>, %arg11: memref<2x1x32xf32, #tpu.memory_space<vmem>>, %arg12: memref<2x32x32xf32, #tpu.memory_space<vmem>>, %arg13: memref<2x1x32xf32, #tpu.memory_space<vmem>>, %arg14: memref<2x32x64xf32, #tpu.memory_space<vmem>>, %arg15: memref<2x1x64xf32, #tpu.memory_space<vmem>>, %arg16: memref<2x32x32xf32, #tpu.memory_space<vmem>>, %arg17: memref<2x1x32xf32, #tpu.memory_space<vmem>>, %arg18: memref<2x32x64xf32, #tpu.memory_space<vmem>>, %arg19: memref<2x1x64xf32, #tpu.memory_space<vmem>>, %arg20: memref<2x64x32xf32, #tpu.memory_space<vmem>>, %arg21: memref<2x1x32xf32, #tpu.memory_space<vmem>>, %arg22: memref<2x1x32xf32, #tpu.memory_space<vmem>>, %arg23: memref<2x1x32xf32, #tpu.memory_space<vmem>>, %arg24: memref<2x1x32xf32, #tpu.memory_space<vmem>>, %arg25: memref<2x1x32xf32, #tpu.memory_space<vmem>>, %arg26: memref<2x1x32xf32, #tpu.memory_space<vmem>>, %arg27: memref<2x1x32xf32, #tpu.memory_space<vmem>>, %arg28: memref<1x8x32xf32, #tpu.memory_space<vmem>>) attributes {dimension_semantics = [#tpu.dimension_semantics<parallel>], iteration_bounds = array<i64: 2>, scalar_prefetch = 0 : i64, scratch_operands = 0 : i64, tpu.core_type = #tpu.core_type<tc>, window_params = [{transform_indices = @transform_0, window_bounds = array<i64: 1, 8, 32>}, {transform_indices = @transform_1, window_bounds = array<i64: 1, 8, 32>}, {transform_indices = @transform_2, window_bounds = array<i64: 1, 1, 8>}, {transform_indices = @transform_3, window_bounds = array<i64: 1, 1, 8>}, {pipeline_mode = #tpu.pipeline_mode<synchronous>, transform_indices = @transform_4, window_bounds = array<i64: 8, 9>}, {pipeline_mode = #tpu.pipeline_mode<synchronous>, transform_indices = @transform_5, window_bounds = array<i64: 9, 8>}, {pipeline_mode = #tpu.pipeline_mode<synchronous>, transform_indices = @transform_6, window_bounds = array<i64: 9, 8, 8>}, {pipeline_mode = #tpu.pipeline_mode<synchronous>, transform_indices = @transform_7, window_bounds = array<i64: 2, 32, 96>}, {pipeline_mode = #tpu.pipeline_mode<synchronous>, transform_indices = @transform_8, window_bounds = array<i64: 2, 1, 96>}, {pipeline_mode = #tpu.pipeline_mode<synchronous>, transform_indices = @transform_9, window_bounds = array<i64: 2, 32, 32>}, {pipeline_mode = #tpu.pipeline_mode<synchronous>, transform_indices = @transform_10, window_bounds = array<i64: 2, 1, 32>}, {pipeline_mode = #tpu.pipeline_mode<synchronous>, transform_indices = @transform_11, window_bounds = array<i64: 2, 32, 32>}, {pipeline_mode = #tpu.pipeline_mode<synchronous>, transform_indices = @transform_12, window_bounds = array<i64: 2, 1, 32>}, {pipeline_mode = #tpu.pipeline_mode<synchronous>, transform_indices = @transform_13, window_bounds = array<i64: 2, 32, 64>}, {pipeline_mode = #tpu.pipeline_mode<synchronous>, transform_indices = @transform_14, window_bounds = array<i64: 2, 1, 64>}, {pipeline_mode = #tpu.pipeline_mode<synchronous>, transform_indices = @transform_15, window_bounds = array<i64: 2, 32, 32>}, {pipeline_mode = #tpu.pipeline_mode<synchronous>, transform_indices = @transform_16, window_bounds = array<i64: 2, 1, 32>}, {pipeline_mode = #tpu.pipeline_mode<synchronous>, transform_indices = @transform_17, window_bounds = array<i64: 2, 32, 64>}, {pipeline_mode = #tpu.pipeline_mode<synchronous>, transform_indices = @transform_18, window_bounds = array<i64: 2, 1, 64>}, {pipeline_mode = #tpu.pipeline_mode<synchronous>, transform_indices = @transform_19, window_bounds = array<i64: 2, 64, 32>}, {pipeline_mode = #tpu.pipeline_mode<synchronous>, transform_indices = @transform_20, window_bounds = array<i64: 2, 1, 32>}, {pipeline_mode = #tpu.pipeline_mode<synchronous>, transform_indices = @transform_21, window_bounds = array<i64: 2, 1, 32>}, {pipeline_mode = #tpu.pipeline_mode<synchronous>, transform_indices = @transform_22, window_bounds = array<i64: 2, 1, 32>}, {pipeline_mode = #tpu.pipeline_mode<synchronous>, transform_indices = @transform_23, window_bounds = array<i64: 2, 1, 32>}, {pipeline_mode = #tpu.pipeline_mode<synchronous>, transform_indices = @transform_24, window_bounds = array<i64: 2, 1, 32>}, {pipeline_mode = #tpu.pipeline_mode<synchronous>, transform_indices = @transform_25, window_bounds = array<i64: 2, 1, 32>}, {pipeline_mode = #tpu.pipeline_mode<synchronous>, transform_indices = @transform_26, window_bounds = array<i64: 2, 1, 32>}, {transform_indices = @transform_27, window_bounds = array<i64: 1, 8, 32>}]} {
    %c0 = arith.constant 0 : index
    %c0_0 = arith.constant 0 : index
    %c0_1 = arith.constant 0 : index
    %0 = vector.load %arg1[%c0, %c0_0, %c0_1] : memref<1x8x32xf32, #tpu.memory_space<vmem>>, vector<1x8x32xf32>
    %1 = vector.shape_cast %0 : vector<1x8x32xf32> to vector<8x32xf32>
    %c0_2 = arith.constant 0 : index
    %c0_3 = arith.constant 0 : index
    %c0_4 = arith.constant 0 : index
    %2 = vector.load %arg2[%c0_2, %c0_3, %c0_4] : memref<1x8x32xf32, #tpu.memory_space<vmem>>, vector<1x8x32xf32>
    %3 = vector.shape_cast %2 : vector<1x8x32xf32> to vector<8x32xf32>
    %c0_5 = arith.constant 0 : index
    %c0_6 = arith.constant 0 : index
    %c0_7 = arith.constant 0 : index
    %4 = vector.load %arg3[%c0_5, %c0_6, %c0_7] : memref<1x1x8xf32, #tpu.memory_space<vmem>>, vector<1x1x8xf32>
    %c0_8 = arith.constant 0 : index
    %c0_9 = arith.constant 0 : index
    %c0_10 = arith.constant 0 : index
    %5 = vector.load %arg4[%c0_8, %c0_9, %c0_10] : memref<1x1x8xf32, #tpu.memory_space<vmem>>, vector<1x1x8xf32>
    %c0_11 = arith.constant 0 : index
    %c0_12 = arith.constant 0 : index
    %6 = vector.load %arg5[%c0_11, %c0_12] : memref<8x9xf32, #tpu.memory_space<vmem>>, vector<8x9xf32>
    %c0_13 = arith.constant 0 : index
    %c0_14 = arith.constant 0 : index
    %7 = vector.load %arg6[%c0_13, %c0_14] : memref<9x8xf32, #tpu.memory_space<vmem>>, vector<9x8xf32>
    %c0_15 = arith.constant 0 : index
    %c0_16 = arith.constant 0 : index
    %c0_17 = arith.constant 0 : index
    %8 = vector.load %arg7[%c0_15, %c0_16, %c0_17] : memref<9x8x8xf32, #tpu.memory_space<vmem>>, vector<9x8x8xf32>
    %c0_18 = arith.constant 0 : index
    %c0_19 = arith.constant 0 : index
    %c0_20 = arith.constant 0 : index
    %9 = vector.load %arg8[%c0_18, %c0_19, %c0_20] : memref<2x32x96xf32, #tpu.memory_space<vmem>>, vector<1x32x96xf32>
    %10 = vector.shape_cast %9 : vector<1x32x96xf32> to vector<32x96xf32>
    %cst = arith.constant dense<0.000000e+00> : vector<8x96xf32>
    %11 = tpu.matmul %1, %10, %cst {dimension_numbers = #tpu.dot_dimension_numbers<[1], [0], [0], [1], [0, 0, 1, 1], [], []>} : vector<8x32xf32>, vector<32x96xf32>, vector<8x96xf32> -> vector<8x96xf32>
    %c0_21 = arith.constant 0 : index
    %c0_22 = arith.constant 0 : index
    %c0_23 = arith.constant 0 : index
    %12 = vector.load %arg9[%c0_21, %c0_22, %c0_23] : memref<2x1x96xf32, #tpu.memory_space<vmem>>, vector<1x1x96xf32>
    %13 = vector.shape_cast %12 : vector<1x1x96xf32> to vector<1x96xf32>
    %14 = vector.broadcast %13 : vector<1x96xf32> to vector<8x96xf32>
    %15 = arith.addf %11, %14 : vector<8x96xf32>
    %16 = vector.extract_strided_slice %15 {offsets = [0, 0], sizes = [8, 32], strides = [1, 1]} : vector<8x96xf32> to vector<8x32xf32>
    %cst_24 = arith.constant 0.353553385 : f32
    %17 = vector.broadcast %cst_24 : f32 to vector<8x32xf32>
    %18 = arith.mulf %16, %17 : vector<8x32xf32>
    %19 = vector.shape_cast %18 : vector<8x32xf32> to vector<1x8x32xf32>
    %20 = vector.extract_strided_slice %15 {offsets = [0, 32], sizes = [8, 32], strides = [1, 1]} : vector<8x96xf32> to vector<8x32xf32>
    %21 = vector.shape_cast %20 : vector<8x32xf32> to vector<1x8x32xf32>
    %22 = vector.extract_strided_slice %15 {offsets = [0, 64], sizes = [8, 32], strides = [1, 1]} : vector<8x96xf32> to vector<8x32xf32>
    %23 = vector.shape_cast %22 : vector<8x32xf32> to vector<1x8x32xf32>
    %24 = vector.extract_strided_slice %19 {offsets = [0, 0, 0], sizes = [1, 8, 8], strides = [1, 1, 1]} : vector<1x8x32xf32> to vector<1x8x8xf32>
    %25 = vector.extract_strided_slice %21 {offsets = [0, 0, 0], sizes = [1, 8, 8], strides = [1, 1, 1]} : vector<1x8x32xf32> to vector<1x8x8xf32>
    %26 = vector.extract_strided_slice %23 {offsets = [0, 0, 0], sizes = [1, 8, 8], strides = [1, 1, 1]} : vector<1x8x32xf32> to vector<1x8x8xf32>
    "tpu.trace_start"() <{level = 10 : i32, message = "bqd,bkd->bqk"}> : () -> ()
    %cst_25 = arith.constant dense<0.000000e+00> : vector<1x8x8xf32>
    %27 = tpu.matmul %24, %25, %cst_25 {dimension_numbers = #tpu.dot_dimension_numbers<[2], [2], [1], [1], [0, 0, 0, 1, 1, 1], [0], [0]>} : vector<1x8x8xf32>, vector<1x8x8xf32>, vector<1x8x8xf32> -> vector<1x8x8xf32>
    "tpu.trace_stop"() : () -> ()
    %28 = vector.shape_cast %24 : vector<1x8x8xf32> to vector<8x8xf32>
    %cst_26 = arith.constant dense<0.000000e+00> : vector<8x9xf32>
    %29 = tpu.matmul %28, %6, %cst_26 {dimension_numbers = #tpu.dot_dimension_numbers<[1], [0], [0], [1], [0, 0, 1, 1], [], []>} : vector<8x8xf32>, vector<8x9xf32>, vector<8x9xf32> -> vector<8x9xf32>
    %30 = vector.shape_cast %29 : vector<8x9xf32> to vector<1x8x9xf32>
    %31 = vector.extract_strided_slice %30 {offsets = [0, 0, 0], sizes = [1, 8, 1], strides = [1, 1, 1]} : vector<1x8x9xf32> to vector<1x8x1xf32>
    %32 = vector.extract_strided_slice %8 {offsets = [0, 0, 0], sizes = [1, 8, 8], strides = [1, 1, 1]} : vector<9x8x8xf32> to vector<1x8x8xf32>
    %33 = vector.broadcast %31 : vector<1x8x1xf32> to vector<1x8x8xf32>
    %34 = arith.mulf %33, %32 : vector<1x8x8xf32>
    %35 = arith.addf %27, %34 : vector<1x8x8xf32>
    %36 = vector.extract_strided_slice %30 {offsets = [0, 0, 1], sizes = [1, 8, 1], strides = [1, 1, 1]} : vector<1x8x9xf32> to vector<1x8x1xf32>
    %37 = vector.extract_strided_slice %8 {offsets = [1, 0, 0], sizes = [1, 8, 8], strides = [1, 1, 1]} : vector<9x8x8xf32> to vector<1x8x8xf32>
    %38 = vector.broadcast %36 : vector<1x8x1xf32> to vector<1x8x8xf32>
    %39 = arith.mulf %38, %37 : vector<1x8x8xf32>
    %40 = arith.addf %35, %39 : vector<1x8x8xf32>
    %41 = vector.extract_strided_slice %30 {offsets = [0, 0, 2], sizes = [1, 8, 1], strides = [1, 1, 1]} : vector<1x8x9xf32> to vector<1x8x1xf32>
    %42 = vector.extract_strided_slice %8 {offsets = [2, 0, 0], sizes = [1, 8, 8], strides = [1, 1, 1]} : vector<9x8x8xf32> to vector<1x8x8xf32>
    %43 = vector.broadcast %41 : vector<1x8x1xf32> to vector<1x8x8xf32>
    %44 = arith.mulf %43, %42 : vector<1x8x8xf32>
    %45 = arith.addf %40, %44 : vector<1x8x8xf32>
    %46 = vector.extract_strided_slice %30 {offsets = [0, 0, 3], sizes = [1, 8, 1], strides = [1, 1, 1]} : vector<1x8x9xf32> to vector<1x8x1xf32>
    %47 = vector.extract_strided_slice %8 {offsets = [3, 0, 0], sizes = [1, 8, 8], strides = [1, 1, 1]} : vector<9x8x8xf32> to vector<1x8x8xf32>
    %48 = vector.broadcast %46 : vector<1x8x1xf32> to vector<1x8x8xf32>
    %49 = arith.mulf %48, %47 : vector<1x8x8xf32>
    %50 = arith.addf %45, %49 : vector<1x8x8xf32>
    %51 = vector.extract_strided_slice %30 {offsets = [0, 0, 4], sizes = [1, 8, 1], strides = [1, 1, 1]} : vector<1x8x9xf32> to vector<1x8x1xf32>
    %52 = vector.extract_strided_slice %8 {offsets = [4, 0, 0], sizes = [1, 8, 8], strides = [1, 1, 1]} : vector<9x8x8xf32> to vector<1x8x8xf32>
    %53 = vector.broadcast %51 : vector<1x8x1xf32> to vector<1x8x8xf32>
    %54 = arith.mulf %53, %52 : vector<1x8x8xf32>
    %55 = arith.addf %50, %54 : vector<1x8x8xf32>
    %56 = vector.extract_strided_slice %30 {offsets = [0, 0, 5], sizes = [1, 8, 1], strides = [1, 1, 1]} : vector<1x8x9xf32> to vector<1x8x1xf32>
    %57 = vector.extract_strided_slice %8 {offsets = [5, 0, 0], sizes = [1, 8, 8], strides = [1, 1, 1]} : vector<9x8x8xf32> to vector<1x8x8xf32>
    %58 = vector.broadcast %56 : vector<1x8x1xf32> to vector<1x8x8xf32>
    %59 = arith.mulf %58, %57 : vector<1x8x8xf32>
    %60 = arith.addf %55, %59 : vector<1x8x8xf32>
    %61 = vector.extract_strided_slice %30 {offsets = [0, 0, 6], sizes = [1, 8, 1], strides = [1, 1, 1]} : vector<1x8x9xf32> to vector<1x8x1xf32>
    %62 = vector.extract_strided_slice %8 {offsets = [6, 0, 0], sizes = [1, 8, 8], strides = [1, 1, 1]} : vector<9x8x8xf32> to vector<1x8x8xf32>
    %63 = vector.broadcast %61 : vector<1x8x1xf32> to vector<1x8x8xf32>
    %64 = arith.mulf %63, %62 : vector<1x8x8xf32>
    %65 = arith.addf %60, %64 : vector<1x8x8xf32>
    %66 = vector.extract_strided_slice %30 {offsets = [0, 0, 7], sizes = [1, 8, 1], strides = [1, 1, 1]} : vector<1x8x9xf32> to vector<1x8x1xf32>
    %67 = vector.extract_strided_slice %8 {offsets = [7, 0, 0], sizes = [1, 8, 8], strides = [1, 1, 1]} : vector<9x8x8xf32> to vector<1x8x8xf32>
    %68 = vector.broadcast %66 : vector<1x8x1xf32> to vector<1x8x8xf32>
    %69 = arith.mulf %68, %67 : vector<1x8x8xf32>
    %70 = arith.addf %65, %69 : vector<1x8x8xf32>
    %71 = vector.extract_strided_slice %30 {offsets = [0, 0, 8], sizes = [1, 8, 1], strides = [1, 1, 1]} : vector<1x8x9xf32> to vector<1x8x1xf32>
    %72 = vector.extract_strided_slice %8 {offsets = [8, 0, 0], sizes = [1, 8, 8], strides = [1, 1, 1]} : vector<9x8x8xf32> to vector<1x8x8xf32>
    %73 = vector.broadcast %71 : vector<1x8x1xf32> to vector<1x8x8xf32>
    %74 = arith.mulf %73, %72 : vector<1x8x8xf32>
    %75 = arith.addf %70, %74 : vector<1x8x8xf32>
    %76 = vector.broadcast %4 : vector<1x1x8xf32> to vector<1x8x8xf32>
    %77 = arith.addf %75, %76 : vector<1x8x8xf32>
    %cst_27 = arith.constant dense<0xFF800000> : vector<1x8xf32>
    %78 = vector.multi_reduction <maximumf>, %77, %cst_27 [2] : vector<1x8x8xf32> to vector<1x8xf32>
    %79 = vector.shape_cast %78 : vector<1x8xf32> to vector<1x8x1xf32>
    %80 = vector.broadcast %79 : vector<1x8x1xf32> to vector<1x8x8xf32>
    %81 = arith.subf %77, %80 : vector<1x8x8xf32>
    %82 = math.exp %81 : vector<1x8x8xf32>
    %cst_28 = arith.constant dense<0.000000e+00> : vector<1x8xf32>
    %83 = vector.multi_reduction <add>, %82, %cst_28 [2] : vector<1x8x8xf32> to vector<1x8xf32>
    %84 = vector.shape_cast %83 : vector<1x8xf32> to vector<1x8x1xf32>
    %85 = tpu.reciprocal %84 {approx = true} : vector<1x8x1xf32> -> vector<1x8x1xf32>
    %86 = vector.broadcast %85 : vector<1x8x1xf32> to vector<1x8x8xf32>
    %87 = arith.mulf %82, %86 : vector<1x8x8xf32>
    "tpu.trace_start"() <{level = 10 : i32, message = "bqk,bkd->bqd"}> : () -> ()
    %cst_29 = arith.constant dense<0.000000e+00> : vector<1x8x8xf32>
    %88 = tpu.matmul %87, %26, %cst_29 {dimension_numbers = #tpu.dot_dimension_numbers<[2], [1], [1], [2], [0, 0, 0, 1, 1, 2], [0], [0]>} : vector<1x8x8xf32>, vector<1x8x8xf32>, vector<1x8x8xf32> -> vector<1x8x8xf32>
    "tpu.trace_stop"() : () -> ()
    %89 = vector.extract_strided_slice %8 {offsets = [0, 0, 0], sizes = [1, 8, 8], strides = [1, 1, 1]} : vector<9x8x8xf32> to vector<1x8x8xf32>
    %90 = arith.mulf %87, %89 : vector<1x8x8xf32>
    %cst_30 = arith.constant dense<0.000000e+00> : vector<1x8xf32>
    %91 = vector.multi_reduction <add>, %90, %cst_30 [2] : vector<1x8x8xf32> to vector<1x8xf32>
    %92 = vector.shape_cast %91 : vector<1x8xf32> to vector<1x8x1xf32>
    %93 = vector.extract_strided_slice %8 {offsets = [1, 0, 0], sizes = [1, 8, 8], strides = [1, 1, 1]} : vector<9x8x8xf32> to vector<1x8x8xf32>
    %94 = arith.mulf %87, %93 : vector<1x8x8xf32>
    %cst_31 = arith.constant dense<0.000000e+00> : vector<1x8xf32>
    %95 = vector.multi_reduction <add>, %94, %cst_31 [2] : vector<1x8x8xf32> to vector<1x8xf32>
    %96 = vector.shape_cast %95 : vector<1x8xf32> to vector<1x8x1xf32>
    %97 = vector.extract_strided_slice %8 {offsets = [2, 0, 0], sizes = [1, 8, 8], strides = [1, 1, 1]} : vector<9x8x8xf32> to vector<1x8x8xf32>
    %98 = arith.mulf %87, %97 : vector<1x8x8xf32>
    %cst_32 = arith.constant dense<0.000000e+00> : vector<1x8xf32>
    %99 = vector.multi_reduction <add>, %98, %cst_32 [2] : vector<1x8x8xf32> to vector<1x8xf32>
    %100 = vector.shape_cast %99 : vector<1x8xf32> to vector<1x8x1xf32>
    %101 = vector.extract_strided_slice %8 {offsets = [3, 0, 0], sizes = [1, 8, 8], strides = [1, 1, 1]} : vector<9x8x8xf32> to vector<1x8x8xf32>
    %102 = arith.mulf %87, %101 : vector<1x8x8xf32>
    %cst_33 = arith.constant dense<0.000000e+00> : vector<1x8xf32>
    %103 = vector.multi_reduction <add>, %102, %cst_33 [2] : vector<1x8x8xf32> to vector<1x8xf32>
    %104 = vector.shape_cast %103 : vector<1x8xf32> to vector<1x8x1xf32>
    %105 = vector.extract_strided_slice %8 {offsets = [4, 0, 0], sizes = [1, 8, 8], strides = [1, 1, 1]} : vector<9x8x8xf32> to vector<1x8x8xf32>
    %106 = arith.mulf %87, %105 : vector<1x8x8xf32>
    %cst_34 = arith.constant dense<0.000000e+00> : vector<1x8xf32>
    %107 = vector.multi_reduction <add>, %106, %cst_34 [2] : vector<1x8x8xf32> to vector<1x8xf32>
    %108 = vector.shape_cast %107 : vector<1x8xf32> to vector<1x8x1xf32>
    %109 = vector.extract_strided_slice %8 {offsets = [5, 0, 0], sizes = [1, 8, 8], strides = [1, 1, 1]} : vector<9x8x8xf32> to vector<1x8x8xf32>
    %110 = arith.mulf %87, %109 : vector<1x8x8xf32>
    %cst_35 = arith.constant dense<0.000000e+00> : vector<1x8xf32>
    %111 = vector.multi_reduction <add>, %110, %cst_35 [2] : vector<1x8x8xf32> to vector<1x8xf32>
    %112 = vector.shape_cast %111 : vector<1x8xf32> to vector<1x8x1xf32>
    %113 = vector.extract_strided_slice %8 {offsets = [6, 0, 0], sizes = [1, 8, 8], strides = [1, 1, 1]} : vector<9x8x8xf32> to vector<1x8x8xf32>
    %114 = arith.mulf %87, %113 : vector<1x8x8xf32>
    %cst_36 = arith.constant dense<0.000000e+00> : vector<1x8xf32>
    %115 = vector.multi_reduction <add>, %114, %cst_36 [2] : vector<1x8x8xf32> to vector<1x8xf32>
    %116 = vector.shape_cast %115 : vector<1x8xf32> to vector<1x8x1xf32>
    %117 = vector.extract_strided_slice %8 {offsets = [7, 0, 0], sizes = [1, 8, 8], strides = [1, 1, 1]} : vector<9x8x8xf32> to vector<1x8x8xf32>
    %118 = arith.mulf %87, %117 : vector<1x8x8xf32>
    %cst_37 = arith.constant dense<0.000000e+00> : vector<1x8xf32>
    %119 = vector.multi_reduction <add>, %118, %cst_37 [2] : vector<1x8x8xf32> to vector<1x8xf32>
    %120 = vector.shape_cast %119 : vector<1x8xf32> to vector<1x8x1xf32>
    %121 = vector.extract_strided_slice %8 {offsets = [8, 0, 0], sizes = [1, 8, 8], strides = [1, 1, 1]} : vector<9x8x8xf32> to vector<1x8x8xf32>
    %122 = arith.mulf %87, %121 : vector<1x8x8xf32>
    %cst_38 = arith.constant dense<0.000000e+00> : vector<1x8xf32>
    %123 = vector.multi_reduction <add>, %122, %cst_38 [2] : vector<1x8x8xf32> to vector<1x8xf32>
    %124 = vector.shape_cast %123 : vector<1x8xf32> to vector<1x8x1xf32>
    %125 = tpu.concatenate %92, %96, %100, %104, %108, %112, %116, %120, %124 in 2 : vector<1x8x1xf32>, vector<1x8x1xf32>, vector<1x8x1xf32>, vector<1x8x1xf32>, vector<1x8x1xf32>, vector<1x8x1xf32>, vector<1x8x1xf32>, vector<1x8x1xf32>, vector<1x8x1xf32> -> vector<1x8x9xf32>
    %126 = vector.shape_cast %125 : vector<1x8x9xf32> to vector<8x9xf32>
    %cst_39 = arith.constant dense<0.000000e+00> : vector<8x8xf32>
    %127 = tpu.matmul %126, %7, %cst_39 {dimension_numbers = #tpu.dot_dimension_numbers<[1], [0], [0], [1], [0, 0, 1, 1], [], []>} : vector<8x9xf32>, vector<9x8xf32>, vector<8x8xf32> -> vector<8x8xf32>
    %128 = vector.shape_cast %127 : vector<8x8xf32> to vector<1x8x8xf32>
    %129 = arith.addf %88, %128 : vector<1x8x8xf32>
    %130 = vector.extract_strided_slice %19 {offsets = [0, 0, 8], sizes = [1, 8, 8], strides = [1, 1, 1]} : vector<1x8x32xf32> to vector<1x8x8xf32>
    %131 = vector.extract_strided_slice %21 {offsets = [0, 0, 8], sizes = [1, 8, 8], strides = [1, 1, 1]} : vector<1x8x32xf32> to vector<1x8x8xf32>
    %132 = vector.extract_strided_slice %23 {offsets = [0, 0, 8], sizes = [1, 8, 8], strides = [1, 1, 1]} : vector<1x8x32xf32> to vector<1x8x8xf32>
    "tpu.trace_start"() <{level = 10 : i32, message = "bqd,bkd->bqk"}> : () -> ()
    %cst_40 = arith.constant dense<0.000000e+00> : vector<1x8x8xf32>
    %133 = tpu.matmul %130, %131, %cst_40 {dimension_numbers = #tpu.dot_dimension_numbers<[2], [2], [1], [1], [0, 0, 0, 1, 1, 1], [0], [0]>} : vector<1x8x8xf32>, vector<1x8x8xf32>, vector<1x8x8xf32> -> vector<1x8x8xf32>
    "tpu.trace_stop"() : () -> ()
    %134 = vector.shape_cast %130 : vector<1x8x8xf32> to vector<8x8xf32>
    %cst_41 = arith.constant dense<0.000000e+00> : vector<8x9xf32>
    %135 = tpu.matmul %134, %6, %cst_41 {dimension_numbers = #tpu.dot_dimension_numbers<[1], [0], [0], [1], [0, 0, 1, 1], [], []>} : vector<8x8xf32>, vector<8x9xf32>, vector<8x9xf32> -> vector<8x9xf32>
    %136 = vector.shape_cast %135 : vector<8x9xf32> to vector<1x8x9xf32>
    %137 = vector.extract_strided_slice %136 {offsets = [0, 0, 0], sizes = [1, 8, 1], strides = [1, 1, 1]} : vector<1x8x9xf32> to vector<1x8x1xf32>
    %138 = vector.extract_strided_slice %8 {offsets = [0, 0, 0], sizes = [1, 8, 8], strides = [1, 1, 1]} : vector<9x8x8xf32> to vector<1x8x8xf32>
    %139 = vector.broadcast %137 : vector<1x8x1xf32> to vector<1x8x8xf32>
    %140 = arith.mulf %139, %138 : vector<1x8x8xf32>
    %141 = arith.addf %133, %140 : vector<1x8x8xf32>
    %142 = vector.extract_strided_slice %136 {offsets = [0, 0, 1], sizes = [1, 8, 1], strides = [1, 1, 1]} : vector<1x8x9xf32> to vector<1x8x1xf32>
    %143 = vector.extract_strided_slice %8 {offsets = [1, 0, 0], sizes = [1, 8, 8], strides = [1, 1, 1]} : vector<9x8x8xf32> to vector<1x8x8xf32>
    %144 = vector.broadcast %142 : vector<1x8x1xf32> to vector<1x8x8xf32>
    %145 = arith.mulf %144, %143 : vector<1x8x8xf32>
    %146 = arith.addf %141, %145 : vector<1x8x8xf32>
    %147 = vector.extract_strided_slice %136 {offsets = [0, 0, 2], sizes = [1, 8, 1], strides = [1, 1, 1]} : vector<1x8x9xf32> to vector<1x8x1xf32>
    %148 = vector.extract_strided_slice %8 {offsets = [2, 0, 0], sizes = [1, 8, 8], strides = [1, 1, 1]} : vector<9x8x8xf32> to vector<1x8x8xf32>
    %149 = vector.broadcast %147 : vector<1x8x1xf32> to vector<1x8x8xf32>
    %150 = arith.mulf %149, %148 : vector<1x8x8xf32>
    %151 = arith.addf %146, %150 : vector<1x8x8xf32>
    %152 = vector.extract_strided_slice %136 {offsets = [0, 0, 3], sizes = [1, 8, 1], strides = [1, 1, 1]} : vector<1x8x9xf32> to vector<1x8x1xf32>
    %153 = vector.extract_strided_slice %8 {offsets = [3, 0, 0], sizes = [1, 8, 8], strides = [1, 1, 1]} : vector<9x8x8xf32> to vector<1x8x8xf32>
    %154 = vector.broadcast %152 : vector<1x8x1xf32> to vector<1x8x8xf32>
    %155 = arith.mulf %154, %153 : vector<1x8x8xf32>
    %156 = arith.addf %151, %155 : vector<1x8x8xf32>
    %157 = vector.extract_strided_slice %136 {offsets = [0, 0, 4], sizes = [1, 8, 1], strides = [1, 1, 1]} : vector<1x8x9xf32> to vector<1x8x1xf32>
    %158 = vector.extract_strided_slice %8 {offsets = [4, 0, 0], sizes = [1, 8, 8], strides = [1, 1, 1]} : vector<9x8x8xf32> to vector<1x8x8xf32>
    %159 = vector.broadcast %157 : vector<1x8x1xf32> to vector<1x8x8xf32>
    %160 = arith.mulf %159, %158 : vector<1x8x8xf32>
    %161 = arith.addf %156, %160 : vector<1x8x8xf32>
    %162 = vector.extract_strided_slice %136 {offsets = [0, 0, 5], sizes = [1, 8, 1], strides = [1, 1, 1]} : vector<1x8x9xf32> to vector<1x8x1xf32>
    %163 = vector.extract_strided_slice %8 {offsets = [5, 0, 0], sizes = [1, 8, 8], strides = [1, 1, 1]} : vector<9x8x8xf32> to vector<1x8x8xf32>
    %164 = vector.broadcast %162 : vector<1x8x1xf32> to vector<1x8x8xf32>
    %165 = arith.mulf %164, %163 : vector<1x8x8xf32>
    %166 = arith.addf %161, %165 : vector<1x8x8xf32>
    %167 = vector.extract_strided_slice %136 {offsets = [0, 0, 6], sizes = [1, 8, 1], strides = [1, 1, 1]} : vector<1x8x9xf32> to vector<1x8x1xf32>
    %168 = vector.extract_strided_slice %8 {offsets = [6, 0, 0], sizes = [1, 8, 8], strides = [1, 1, 1]} : vector<9x8x8xf32> to vector<1x8x8xf32>
    %169 = vector.broadcast %167 : vector<1x8x1xf32> to vector<1x8x8xf32>
    %170 = arith.mulf %169, %168 : vector<1x8x8xf32>
    %171 = arith.addf %166, %170 : vector<1x8x8xf32>
    %172 = vector.extract_strided_slice %136 {offsets = [0, 0, 7], sizes = [1, 8, 1], strides = [1, 1, 1]} : vector<1x8x9xf32> to vector<1x8x1xf32>
    %173 = vector.extract_strided_slice %8 {offsets = [7, 0, 0], sizes = [1, 8, 8], strides = [1, 1, 1]} : vector<9x8x8xf32> to vector<1x8x8xf32>
    %174 = vector.broadcast %172 : vector<1x8x1xf32> to vector<1x8x8xf32>
    %175 = arith.mulf %174, %173 : vector<1x8x8xf32>
    %176 = arith.addf %171, %175 : vector<1x8x8xf32>
    %177 = vector.extract_strided_slice %136 {offsets = [0, 0, 8], sizes = [1, 8, 1], strides = [1, 1, 1]} : vector<1x8x9xf32> to vector<1x8x1xf32>
    %178 = vector.extract_strided_slice %8 {offsets = [8, 0, 0], sizes = [1, 8, 8], strides = [1, 1, 1]} : vector<9x8x8xf32> to vector<1x8x8xf32>
    %179 = vector.broadcast %177 : vector<1x8x1xf32> to vector<1x8x8xf32>
    %180 = arith.mulf %179, %178 : vector<1x8x8xf32>
    %181 = arith.addf %176, %180 : vector<1x8x8xf32>
    %182 = vector.broadcast %4 : vector<1x1x8xf32> to vector<1x8x8xf32>
    %183 = arith.addf %181, %182 : vector<1x8x8xf32>
    %cst_42 = arith.constant dense<0xFF800000> : vector<1x8xf32>
    %184 = vector.multi_reduction <maximumf>, %183, %cst_42 [2] : vector<1x8x8xf32> to vector<1x8xf32>
    %185 = vector.shape_cast %184 : vector<1x8xf32> to vector<1x8x1xf32>
    %186 = vector.broadcast %185 : vector<1x8x1xf32> to vector<1x8x8xf32>
    %187 = arith.subf %183, %186 : vector<1x8x8xf32>
    %188 = math.exp %187 : vector<1x8x8xf32>
    %cst_43 = arith.constant dense<0.000000e+00> : vector<1x8xf32>
    %189 = vector.multi_reduction <add>, %188, %cst_43 [2] : vector<1x8x8xf32> to vector<1x8xf32>
    %190 = vector.shape_cast %189 : vector<1x8xf32> to vector<1x8x1xf32>
    %191 = tpu.reciprocal %190 {approx = true} : vector<1x8x1xf32> -> vector<1x8x1xf32>
    %192 = vector.broadcast %191 : vector<1x8x1xf32> to vector<1x8x8xf32>
    %193 = arith.mulf %188, %192 : vector<1x8x8xf32>
    "tpu.trace_start"() <{level = 10 : i32, message = "bqk,bkd->bqd"}> : () -> ()
    %cst_44 = arith.constant dense<0.000000e+00> : vector<1x8x8xf32>
    %194 = tpu.matmul %193, %132, %cst_44 {dimension_numbers = #tpu.dot_dimension_numbers<[2], [1], [1], [2], [0, 0, 0, 1, 1, 2], [0], [0]>} : vector<1x8x8xf32>, vector<1x8x8xf32>, vector<1x8x8xf32> -> vector<1x8x8xf32>
    "tpu.trace_stop"() : () -> ()
    %195 = vector.extract_strided_slice %8 {offsets = [0, 0, 0], sizes = [1, 8, 8], strides = [1, 1, 1]} : vector<9x8x8xf32> to vector<1x8x8xf32>
    %196 = arith.mulf %193, %195 : vector<1x8x8xf32>
    %cst_45 = arith.constant dense<0.000000e+00> : vector<1x8xf32>
    %197 = vector.multi_reduction <add>, %196, %cst_45 [2] : vector<1x8x8xf32> to vector<1x8xf32>
    %198 = vector.shape_cast %197 : vector<1x8xf32> to vector<1x8x1xf32>
    %199 = vector.extract_strided_slice %8 {offsets = [1, 0, 0], sizes = [1, 8, 8], strides = [1, 1, 1]} : vector<9x8x8xf32> to vector<1x8x8xf32>
    %200 = arith.mulf %193, %199 : vector<1x8x8xf32>
    %cst_46 = arith.constant dense<0.000000e+00> : vector<1x8xf32>
    %201 = vector.multi_reduction <add>, %200, %cst_46 [2] : vector<1x8x8xf32> to vector<1x8xf32>
    %202 = vector.shape_cast %201 : vector<1x8xf32> to vector<1x8x1xf32>
    %203 = vector.extract_strided_slice %8 {offsets = [2, 0, 0], sizes = [1, 8, 8], strides = [1, 1, 1]} : vector<9x8x8xf32> to vector<1x8x8xf32>
    %204 = arith.mulf %193, %203 : vector<1x8x8xf32>
    %cst_47 = arith.constant dense<0.000000e+00> : vector<1x8xf32>
    %205 = vector.multi_reduction <add>, %204, %cst_47 [2] : vector<1x8x8xf32> to vector<1x8xf32>
    %206 = vector.shape_cast %205 : vector<1x8xf32> to vector<1x8x1xf32>
    %207 = vector.extract_strided_slice %8 {offsets = [3, 0, 0], sizes = [1, 8, 8], strides = [1, 1, 1]} : vector<9x8x8xf32> to vector<1x8x8xf32>
    %208 = arith.mulf %193, %207 : vector<1x8x8xf32>
    %cst_48 = arith.constant dense<0.000000e+00> : vector<1x8xf32>
    %209 = vector.multi_reduction <add>, %208, %cst_48 [2] : vector<1x8x8xf32> to vector<1x8xf32>
    %210 = vector.shape_cast %209 : vector<1x8xf32> to vector<1x8x1xf32>
    %211 = vector.extract_strided_slice %8 {offsets = [4, 0, 0], sizes = [1, 8, 8], strides = [1, 1, 1]} : vector<9x8x8xf32> to vector<1x8x8xf32>
    %212 = arith.mulf %193, %211 : vector<1x8x8xf32>
    %cst_49 = arith.constant dense<0.000000e+00> : vector<1x8xf32>
    %213 = vector.multi_reduction <add>, %212, %cst_49 [2] : vector<1x8x8xf32> to vector<1x8xf32>
    %214 = vector.shape_cast %213 : vector<1x8xf32> to vector<1x8x1xf32>
    %215 = vector.extract_strided_slice %8 {offsets = [5, 0, 0], sizes = [1, 8, 8], strides = [1, 1, 1]} : vector<9x8x8xf32> to vector<1x8x8xf32>
    %216 = arith.mulf %193, %215 : vector<1x8x8xf32>
    %cst_50 = arith.constant dense<0.000000e+00> : vector<1x8xf32>
    %217 = vector.multi_reduction <add>, %216, %cst_50 [2] : vector<1x8x8xf32> to vector<1x8xf32>
    %218 = vector.shape_cast %217 : vector<1x8xf32> to vector<1x8x1xf32>
    %219 = vector.extract_strided_slice %8 {offsets = [6, 0, 0], sizes = [1, 8, 8], strides = [1, 1, 1]} : vector<9x8x8xf32> to vector<1x8x8xf32>
    %220 = arith.mulf %193, %219 : vector<1x8x8xf32>
    %cst_51 = arith.constant dense<0.000000e+00> : vector<1x8xf32>
    %221 = vector.multi_reduction <add>, %220, %cst_51 [2] : vector<1x8x8xf32> to vector<1x8xf32>
    %222 = vector.shape_cast %221 : vector<1x8xf32> to vector<1x8x1xf32>
    %223 = vector.extract_strided_slice %8 {offsets = [7, 0, 0], sizes = [1, 8, 8], strides = [1, 1, 1]} : vector<9x8x8xf32> to vector<1x8x8xf32>
    %224 = arith.mulf %193, %223 : vector<1x8x8xf32>
    %cst_52 = arith.constant dense<0.000000e+00> : vector<1x8xf32>
    %225 = vector.multi_reduction <add>, %224, %cst_52 [2] : vector<1x8x8xf32> to vector<1x8xf32>
    %226 = vector.shape_cast %225 : vector<1x8xf32> to vector<1x8x1xf32>
    %227 = vector.extract_strided_slice %8 {offsets = [8, 0, 0], sizes = [1, 8, 8], strides = [1, 1, 1]} : vector<9x8x8xf32> to vector<1x8x8xf32>
    %228 = arith.mulf %193, %227 : vector<1x8x8xf32>
    %cst_53 = arith.constant dense<0.000000e+00> : vector<1x8xf32>
    %229 = vector.multi_reduction <add>, %228, %cst_53 [2] : vector<1x8x8xf32> to vector<1x8xf32>
    %230 = vector.shape_cast %229 : vector<1x8xf32> to vector<1x8x1xf32>
    %231 = tpu.concatenate %198, %202, %206, %210, %214, %218, %222, %226, %230 in 2 : vector<1x8x1xf32>, vector<1x8x1xf32>, vector<1x8x1xf32>, vector<1x8x1xf32>, vector<1x8x1xf32>, vector<1x8x1xf32>, vector<1x8x1xf32>, vector<1x8x1xf32>, vector<1x8x1xf32> -> vector<1x8x9xf32>
    %232 = vector.shape_cast %231 : vector<1x8x9xf32> to vector<8x9xf32>
    %cst_54 = arith.constant dense<0.000000e+00> : vector<8x8xf32>
    %233 = tpu.matmul %232, %7, %cst_54 {dimension_numbers = #tpu.dot_dimension_numbers<[1], [0], [0], [1], [0, 0, 1, 1], [], []>} : vector<8x9xf32>, vector<9x8xf32>, vector<8x8xf32> -> vector<8x8xf32>
    %234 = vector.shape_cast %233 : vector<8x8xf32> to vector<1x8x8xf32>
    %235 = arith.addf %194, %234 : vector<1x8x8xf32>
    %236 = vector.extract_strided_slice %19 {offsets = [0, 0, 16], sizes = [1, 8, 8], strides = [1, 1, 1]} : vector<1x8x32xf32> to vector<1x8x8xf32>
    %237 = vector.extract_strided_slice %21 {offsets = [0, 0, 16], sizes = [1, 8, 8], strides = [1, 1, 1]} : vector<1x8x32xf32> to vector<1x8x8xf32>
    %238 = vector.extract_strided_slice %23 {offsets = [0, 0, 16], sizes = [1, 8, 8], strides = [1, 1, 1]} : vector<1x8x32xf32> to vector<1x8x8xf32>
    "tpu.trace_start"() <{level = 10 : i32, message = "bqd,bkd->bqk"}> : () -> ()
    %cst_55 = arith.constant dense<0.000000e+00> : vector<1x8x8xf32>
    %239 = tpu.matmul %236, %237, %cst_55 {dimension_numbers = #tpu.dot_dimension_numbers<[2], [2], [1], [1], [0, 0, 0, 1, 1, 1], [0], [0]>} : vector<1x8x8xf32>, vector<1x8x8xf32>, vector<1x8x8xf32> -> vector<1x8x8xf32>
    "tpu.trace_stop"() : () -> ()
    %240 = vector.shape_cast %236 : vector<1x8x8xf32> to vector<8x8xf32>
    %cst_56 = arith.constant dense<0.000000e+00> : vector<8x9xf32>
    %241 = tpu.matmul %240, %6, %cst_56 {dimension_numbers = #tpu.dot_dimension_numbers<[1], [0], [0], [1], [0, 0, 1, 1], [], []>} : vector<8x8xf32>, vector<8x9xf32>, vector<8x9xf32> -> vector<8x9xf32>
    %242 = vector.shape_cast %241 : vector<8x9xf32> to vector<1x8x9xf32>
    %243 = vector.extract_strided_slice %242 {offsets = [0, 0, 0], sizes = [1, 8, 1], strides = [1, 1, 1]} : vector<1x8x9xf32> to vector<1x8x1xf32>
    %244 = vector.extract_strided_slice %8 {offsets = [0, 0, 0], sizes = [1, 8, 8], strides = [1, 1, 1]} : vector<9x8x8xf32> to vector<1x8x8xf32>
    %245 = vector.broadcast %243 : vector<1x8x1xf32> to vector<1x8x8xf32>
    %246 = arith.mulf %245, %244 : vector<1x8x8xf32>
    %247 = arith.addf %239, %246 : vector<1x8x8xf32>
    %248 = vector.extract_strided_slice %242 {offsets = [0, 0, 1], sizes = [1, 8, 1], strides = [1, 1, 1]} : vector<1x8x9xf32> to vector<1x8x1xf32>
    %249 = vector.extract_strided_slice %8 {offsets = [1, 0, 0], sizes = [1, 8, 8], strides = [1, 1, 1]} : vector<9x8x8xf32> to vector<1x8x8xf32>
    %250 = vector.broadcast %248 : vector<1x8x1xf32> to vector<1x8x8xf32>
    %251 = arith.mulf %250, %249 : vector<1x8x8xf32>
    %252 = arith.addf %247, %251 : vector<1x8x8xf32>
    %253 = vector.extract_strided_slice %242 {offsets = [0, 0, 2], sizes = [1, 8, 1], strides = [1, 1, 1]} : vector<1x8x9xf32> to vector<1x8x1xf32>
    %254 = vector.extract_strided_slice %8 {offsets = [2, 0, 0], sizes = [1, 8, 8], strides = [1, 1, 1]} : vector<9x8x8xf32> to vector<1x8x8xf32>
    %255 = vector.broadcast %253 : vector<1x8x1xf32> to vector<1x8x8xf32>
    %256 = arith.mulf %255, %254 : vector<1x8x8xf32>
    %257 = arith.addf %252, %256 : vector<1x8x8xf32>
    %258 = vector.extract_strided_slice %242 {offsets = [0, 0, 3], sizes = [1, 8, 1], strides = [1, 1, 1]} : vector<1x8x9xf32> to vector<1x8x1xf32>
    %259 = vector.extract_strided_slice %8 {offsets = [3, 0, 0], sizes = [1, 8, 8], strides = [1, 1, 1]} : vector<9x8x8xf32> to vector<1x8x8xf32>
    %260 = vector.broadcast %258 : vector<1x8x1xf32> to vector<1x8x8xf32>
    %261 = arith.mulf %260, %259 : vector<1x8x8xf32>
    %262 = arith.addf %257, %261 : vector<1x8x8xf32>
    %263 = vector.extract_strided_slice %242 {offsets = [0, 0, 4], sizes = [1, 8, 1], strides = [1, 1, 1]} : vector<1x8x9xf32> to vector<1x8x1xf32>
    %264 = vector.extract_strided_slice %8 {offsets = [4, 0, 0], sizes = [1, 8, 8], strides = [1, 1, 1]} : vector<9x8x8xf32> to vector<1x8x8xf32>
    %265 = vector.broadcast %263 : vector<1x8x1xf32> to vector<1x8x8xf32>
    %266 = arith.mulf %265, %264 : vector<1x8x8xf32>
    %267 = arith.addf %262, %266 : vector<1x8x8xf32>
    %268 = vector.extract_strided_slice %242 {offsets = [0, 0, 5], sizes = [1, 8, 1], strides = [1, 1, 1]} : vector<1x8x9xf32> to vector<1x8x1xf32>
    %269 = vector.extract_strided_slice %8 {offsets = [5, 0, 0], sizes = [1, 8, 8], strides = [1, 1, 1]} : vector<9x8x8xf32> to vector<1x8x8xf32>
    %270 = vector.broadcast %268 : vector<1x8x1xf32> to vector<1x8x8xf32>
    %271 = arith.mulf %270, %269 : vector<1x8x8xf32>
    %272 = arith.addf %267, %271 : vector<1x8x8xf32>
    %273 = vector.extract_strided_slice %242 {offsets = [0, 0, 6], sizes = [1, 8, 1], strides = [1, 1, 1]} : vector<1x8x9xf32> to vector<1x8x1xf32>
    %274 = vector.extract_strided_slice %8 {offsets = [6, 0, 0], sizes = [1, 8, 8], strides = [1, 1, 1]} : vector<9x8x8xf32> to vector<1x8x8xf32>
    %275 = vector.broadcast %273 : vector<1x8x1xf32> to vector<1x8x8xf32>
    %276 = arith.mulf %275, %274 : vector<1x8x8xf32>
    %277 = arith.addf %272, %276 : vector<1x8x8xf32>
    %278 = vector.extract_strided_slice %242 {offsets = [0, 0, 7], sizes = [1, 8, 1], strides = [1, 1, 1]} : vector<1x8x9xf32> to vector<1x8x1xf32>
    %279 = vector.extract_strided_slice %8 {offsets = [7, 0, 0], sizes = [1, 8, 8], strides = [1, 1, 1]} : vector<9x8x8xf32> to vector<1x8x8xf32>
    %280 = vector.broadcast %278 : vector<1x8x1xf32> to vector<1x8x8xf32>
    %281 = arith.mulf %280, %279 : vector<1x8x8xf32>
    %282 = arith.addf %277, %281 : vector<1x8x8xf32>
    %283 = vector.extract_strided_slice %242 {offsets = [0, 0, 8], sizes = [1, 8, 1], strides = [1, 1, 1]} : vector<1x8x9xf32> to vector<1x8x1xf32>
    %284 = vector.extract_strided_slice %8 {offsets = [8, 0, 0], sizes = [1, 8, 8], strides = [1, 1, 1]} : vector<9x8x8xf32> to vector<1x8x8xf32>
    %285 = vector.broadcast %283 : vector<1x8x1xf32> to vector<1x8x8xf32>
    %286 = arith.mulf %285, %284 : vector<1x8x8xf32>
    %287 = arith.addf %282, %286 : vector<1x8x8xf32>
    %288 = vector.broadcast %4 : vector<1x1x8xf32> to vector<1x8x8xf32>
    %289 = arith.addf %287, %288 : vector<1x8x8xf32>
    %cst_57 = arith.constant dense<0xFF800000> : vector<1x8xf32>
    %290 = vector.multi_reduction <maximumf>, %289, %cst_57 [2] : vector<1x8x8xf32> to vector<1x8xf32>
    %291 = vector.shape_cast %290 : vector<1x8xf32> to vector<1x8x1xf32>
    %292 = vector.broadcast %291 : vector<1x8x1xf32> to vector<1x8x8xf32>
    %293 = arith.subf %289, %292 : vector<1x8x8xf32>
    %294 = math.exp %293 : vector<1x8x8xf32>
    %cst_58 = arith.constant dense<0.000000e+00> : vector<1x8xf32>
    %295 = vector.multi_reduction <add>, %294, %cst_58 [2] : vector<1x8x8xf32> to vector<1x8xf32>
    %296 = vector.shape_cast %295 : vector<1x8xf32> to vector<1x8x1xf32>
    %297 = tpu.reciprocal %296 {approx = true} : vector<1x8x1xf32> -> vector<1x8x1xf32>
    %298 = vector.broadcast %297 : vector<1x8x1xf32> to vector<1x8x8xf32>
    %299 = arith.mulf %294, %298 : vector<1x8x8xf32>
    "tpu.trace_start"() <{level = 10 : i32, message = "bqk,bkd->bqd"}> : () -> ()
    %cst_59 = arith.constant dense<0.000000e+00> : vector<1x8x8xf32>
    %300 = tpu.matmul %299, %238, %cst_59 {dimension_numbers = #tpu.dot_dimension_numbers<[2], [1], [1], [2], [0, 0, 0, 1, 1, 2], [0], [0]>} : vector<1x8x8xf32>, vector<1x8x8xf32>, vector<1x8x8xf32> -> vector<1x8x8xf32>
    "tpu.trace_stop"() : () -> ()
    %301 = vector.extract_strided_slice %8 {offsets = [0, 0, 0], sizes = [1, 8, 8], strides = [1, 1, 1]} : vector<9x8x8xf32> to vector<1x8x8xf32>
    %302 = arith.mulf %299, %301 : vector<1x8x8xf32>
    %cst_60 = arith.constant dense<0.000000e+00> : vector<1x8xf32>
    %303 = vector.multi_reduction <add>, %302, %cst_60 [2] : vector<1x8x8xf32> to vector<1x8xf32>
    %304 = vector.shape_cast %303 : vector<1x8xf32> to vector<1x8x1xf32>
    %305 = vector.extract_strided_slice %8 {offsets = [1, 0, 0], sizes = [1, 8, 8], strides = [1, 1, 1]} : vector<9x8x8xf32> to vector<1x8x8xf32>
    %306 = arith.mulf %299, %305 : vector<1x8x8xf32>
    %cst_61 = arith.constant dense<0.000000e+00> : vector<1x8xf32>
    %307 = vector.multi_reduction <add>, %306, %cst_61 [2] : vector<1x8x8xf32> to vector<1x8xf32>
    %308 = vector.shape_cast %307 : vector<1x8xf32> to vector<1x8x1xf32>
    %309 = vector.extract_strided_slice %8 {offsets = [2, 0, 0], sizes = [1, 8, 8], strides = [1, 1, 1]} : vector<9x8x8xf32> to vector<1x8x8xf32>
    %310 = arith.mulf %299, %309 : vector<1x8x8xf32>
    %cst_62 = arith.constant dense<0.000000e+00> : vector<1x8xf32>
    %311 = vector.multi_reduction <add>, %310, %cst_62 [2] : vector<1x8x8xf32> to vector<1x8xf32>
    %312 = vector.shape_cast %311 : vector<1x8xf32> to vector<1x8x1xf32>
    %313 = vector.extract_strided_slice %8 {offsets = [3, 0, 0], sizes = [1, 8, 8], strides = [1, 1, 1]} : vector<9x8x8xf32> to vector<1x8x8xf32>
    %314 = arith.mulf %299, %313 : vector<1x8x8xf32>
    %cst_63 = arith.constant dense<0.000000e+00> : vector<1x8xf32>
    %315 = vector.multi_reduction <add>, %314, %cst_63 [2] : vector<1x8x8xf32> to vector<1x8xf32>
    %316 = vector.shape_cast %315 : vector<1x8xf32> to vector<1x8x1xf32>
    %317 = vector.extract_strided_slice %8 {offsets = [4, 0, 0], sizes = [1, 8, 8], strides = [1, 1, 1]} : vector<9x8x8xf32> to vector<1x8x8xf32>
    %318 = arith.mulf %299, %317 : vector<1x8x8xf32>
    %cst_64 = arith.constant dense<0.000000e+00> : vector<1x8xf32>
    %319 = vector.multi_reduction <add>, %318, %cst_64 [2] : vector<1x8x8xf32> to vector<1x8xf32>
    %320 = vector.shape_cast %319 : vector<1x8xf32> to vector<1x8x1xf32>
    %321 = vector.extract_strided_slice %8 {offsets = [5, 0, 0], sizes = [1, 8, 8], strides = [1, 1, 1]} : vector<9x8x8xf32> to vector<1x8x8xf32>
    %322 = arith.mulf %299, %321 : vector<1x8x8xf32>
    %cst_65 = arith.constant dense<0.000000e+00> : vector<1x8xf32>
    %323 = vector.multi_reduction <add>, %322, %cst_65 [2] : vector<1x8x8xf32> to vector<1x8xf32>
    %324 = vector.shape_cast %323 : vector<1x8xf32> to vector<1x8x1xf32>
    %325 = vector.extract_strided_slice %8 {offsets = [6, 0, 0], sizes = [1, 8, 8], strides = [1, 1, 1]} : vector<9x8x8xf32> to vector<1x8x8xf32>
    %326 = arith.mulf %299, %325 : vector<1x8x8xf32>
    %cst_66 = arith.constant dense<0.000000e+00> : vector<1x8xf32>
    %327 = vector.multi_reduction <add>, %326, %cst_66 [2] : vector<1x8x8xf32> to vector<1x8xf32>
    %328 = vector.shape_cast %327 : vector<1x8xf32> to vector<1x8x1xf32>
    %329 = vector.extract_strided_slice %8 {offsets = [7, 0, 0], sizes = [1, 8, 8], strides = [1, 1, 1]} : vector<9x8x8xf32> to vector<1x8x8xf32>
    %330 = arith.mulf %299, %329 : vector<1x8x8xf32>
    %cst_67 = arith.constant dense<0.000000e+00> : vector<1x8xf32>
    %331 = vector.multi_reduction <add>, %330, %cst_67 [2] : vector<1x8x8xf32> to vector<1x8xf32>
    %332 = vector.shape_cast %331 : vector<1x8xf32> to vector<1x8x1xf32>
    %333 = vector.extract_strided_slice %8 {offsets = [8, 0, 0], sizes = [1, 8, 8], strides = [1, 1, 1]} : vector<9x8x8xf32> to vector<1x8x8xf32>
    %334 = arith.mulf %299, %333 : vector<1x8x8xf32>
    %cst_68 = arith.constant dense<0.000000e+00> : vector<1x8xf32>
    %335 = vector.multi_reduction <add>, %334, %cst_68 [2] : vector<1x8x8xf32> to vector<1x8xf32>
    %336 = vector.shape_cast %335 : vector<1x8xf32> to vector<1x8x1xf32>
    %337 = tpu.concatenate %304, %308, %312, %316, %320, %324, %328, %332, %336 in 2 : vector<1x8x1xf32>, vector<1x8x1xf32>, vector<1x8x1xf32>, vector<1x8x1xf32>, vector<1x8x1xf32>, vector<1x8x1xf32>, vector<1x8x1xf32>, vector<1x8x1xf32>, vector<1x8x1xf32> -> vector<1x8x9xf32>
    %338 = vector.shape_cast %337 : vector<1x8x9xf32> to vector<8x9xf32>
    %cst_69 = arith.constant dense<0.000000e+00> : vector<8x8xf32>
    %339 = tpu.matmul %338, %7, %cst_69 {dimension_numbers = #tpu.dot_dimension_numbers<[1], [0], [0], [1], [0, 0, 1, 1], [], []>} : vector<8x9xf32>, vector<9x8xf32>, vector<8x8xf32> -> vector<8x8xf32>
    %340 = vector.shape_cast %339 : vector<8x8xf32> to vector<1x8x8xf32>
    %341 = arith.addf %300, %340 : vector<1x8x8xf32>
    %342 = vector.extract_strided_slice %19 {offsets = [0, 0, 24], sizes = [1, 8, 8], strides = [1, 1, 1]} : vector<1x8x32xf32> to vector<1x8x8xf32>
    %343 = vector.extract_strided_slice %21 {offsets = [0, 0, 24], sizes = [1, 8, 8], strides = [1, 1, 1]} : vector<1x8x32xf32> to vector<1x8x8xf32>
    %344 = vector.extract_strided_slice %23 {offsets = [0, 0, 24], sizes = [1, 8, 8], strides = [1, 1, 1]} : vector<1x8x32xf32> to vector<1x8x8xf32>
    "tpu.trace_start"() <{level = 10 : i32, message = "bqd,bkd->bqk"}> : () -> ()
    %cst_70 = arith.constant dense<0.000000e+00> : vector<1x8x8xf32>
    %345 = tpu.matmul %342, %343, %cst_70 {dimension_numbers = #tpu.dot_dimension_numbers<[2], [2], [1], [1], [0, 0, 0, 1, 1, 1], [0], [0]>} : vector<1x8x8xf32>, vector<1x8x8xf32>, vector<1x8x8xf32> -> vector<1x8x8xf32>
    "tpu.trace_stop"() : () -> ()
    %346 = vector.shape_cast %342 : vector<1x8x8xf32> to vector<8x8xf32>
    %cst_71 = arith.constant dense<0.000000e+00> : vector<8x9xf32>
    %347 = tpu.matmul %346, %6, %cst_71 {dimension_numbers = #tpu.dot_dimension_numbers<[1], [0], [0], [1], [0, 0, 1, 1], [], []>} : vector<8x8xf32>, vector<8x9xf32>, vector<8x9xf32> -> vector<8x9xf32>
    %348 = vector.shape_cast %347 : vector<8x9xf32> to vector<1x8x9xf32>
    %349 = vector.extract_strided_slice %348 {offsets = [0, 0, 0], sizes = [1, 8, 1], strides = [1, 1, 1]} : vector<1x8x9xf32> to vector<1x8x1xf32>
    %350 = vector.extract_strided_slice %8 {offsets = [0, 0, 0], sizes = [1, 8, 8], strides = [1, 1, 1]} : vector<9x8x8xf32> to vector<1x8x8xf32>
    %351 = vector.broadcast %349 : vector<1x8x1xf32> to vector<1x8x8xf32>
    %352 = arith.mulf %351, %350 : vector<1x8x8xf32>
    %353 = arith.addf %345, %352 : vector<1x8x8xf32>
    %354 = vector.extract_strided_slice %348 {offsets = [0, 0, 1], sizes = [1, 8, 1], strides = [1, 1, 1]} : vector<1x8x9xf32> to vector<1x8x1xf32>
    %355 = vector.extract_strided_slice %8 {offsets = [1, 0, 0], sizes = [1, 8, 8], strides = [1, 1, 1]} : vector<9x8x8xf32> to vector<1x8x8xf32>
    %356 = vector.broadcast %354 : vector<1x8x1xf32> to vector<1x8x8xf32>
    %357 = arith.mulf %356, %355 : vector<1x8x8xf32>
    %358 = arith.addf %353, %357 : vector<1x8x8xf32>
    %359 = vector.extract_strided_slice %348 {offsets = [0, 0, 2], sizes = [1, 8, 1], strides = [1, 1, 1]} : vector<1x8x9xf32> to vector<1x8x1xf32>
    %360 = vector.extract_strided_slice %8 {offsets = [2, 0, 0], sizes = [1, 8, 8], strides = [1, 1, 1]} : vector<9x8x8xf32> to vector<1x8x8xf32>
    %361 = vector.broadcast %359 : vector<1x8x1xf32> to vector<1x8x8xf32>
    %362 = arith.mulf %361, %360 : vector<1x8x8xf32>
    %363 = arith.addf %358, %362 : vector<1x8x8xf32>
    %364 = vector.extract_strided_slice %348 {offsets = [0, 0, 3], sizes = [1, 8, 1], strides = [1, 1, 1]} : vector<1x8x9xf32> to vector<1x8x1xf32>
    %365 = vector.extract_strided_slice %8 {offsets = [3, 0, 0], sizes = [1, 8, 8], strides = [1, 1, 1]} : vector<9x8x8xf32> to vector<1x8x8xf32>
    %366 = vector.broadcast %364 : vector<1x8x1xf32> to vector<1x8x8xf32>
    %367 = arith.mulf %366, %365 : vector<1x8x8xf32>
    %368 = arith.addf %363, %367 : vector<1x8x8xf32>
    %369 = vector.extract_strided_slice %348 {offsets = [0, 0, 4], sizes = [1, 8, 1], strides = [1, 1, 1]} : vector<1x8x9xf32> to vector<1x8x1xf32>
    %370 = vector.extract_strided_slice %8 {offsets = [4, 0, 0], sizes = [1, 8, 8], strides = [1, 1, 1]} : vector<9x8x8xf32> to vector<1x8x8xf32>
    %371 = vector.broadcast %369 : vector<1x8x1xf32> to vector<1x8x8xf32>
    %372 = arith.mulf %371, %370 : vector<1x8x8xf32>
    %373 = arith.addf %368, %372 : vector<1x8x8xf32>
    %374 = vector.extract_strided_slice %348 {offsets = [0, 0, 5], sizes = [1, 8, 1], strides = [1, 1, 1]} : vector<1x8x9xf32> to vector<1x8x1xf32>
    %375 = vector.extract_strided_slice %8 {offsets = [5, 0, 0], sizes = [1, 8, 8], strides = [1, 1, 1]} : vector<9x8x8xf32> to vector<1x8x8xf32>
    %376 = vector.broadcast %374 : vector<1x8x1xf32> to vector<1x8x8xf32>
    %377 = arith.mulf %376, %375 : vector<1x8x8xf32>
    %378 = arith.addf %373, %377 : vector<1x8x8xf32>
    %379 = vector.extract_strided_slice %348 {offsets = [0, 0, 6], sizes = [1, 8, 1], strides = [1, 1, 1]} : vector<1x8x9xf32> to vector<1x8x1xf32>
    %380 = vector.extract_strided_slice %8 {offsets = [6, 0, 0], sizes = [1, 8, 8], strides = [1, 1, 1]} : vector<9x8x8xf32> to vector<1x8x8xf32>
    %381 = vector.broadcast %379 : vector<1x8x1xf32> to vector<1x8x8xf32>
    %382 = arith.mulf %381, %380 : vector<1x8x8xf32>
    %383 = arith.addf %378, %382 : vector<1x8x8xf32>
    %384 = vector.extract_strided_slice %348 {offsets = [0, 0, 7], sizes = [1, 8, 1], strides = [1, 1, 1]} : vector<1x8x9xf32> to vector<1x8x1xf32>
    %385 = vector.extract_strided_slice %8 {offsets = [7, 0, 0], sizes = [1, 8, 8], strides = [1, 1, 1]} : vector<9x8x8xf32> to vector<1x8x8xf32>
    %386 = vector.broadcast %384 : vector<1x8x1xf32> to vector<1x8x8xf32>
    %387 = arith.mulf %386, %385 : vector<1x8x8xf32>
    %388 = arith.addf %383, %387 : vector<1x8x8xf32>
    %389 = vector.extract_strided_slice %348 {offsets = [0, 0, 8], sizes = [1, 8, 1], strides = [1, 1, 1]} : vector<1x8x9xf32> to vector<1x8x1xf32>
    %390 = vector.extract_strided_slice %8 {offsets = [8, 0, 0], sizes = [1, 8, 8], strides = [1, 1, 1]} : vector<9x8x8xf32> to vector<1x8x8xf32>
    %391 = vector.broadcast %389 : vector<1x8x1xf32> to vector<1x8x8xf32>
    %392 = arith.mulf %391, %390 : vector<1x8x8xf32>
    %393 = arith.addf %388, %392 : vector<1x8x8xf32>
    %394 = vector.broadcast %4 : vector<1x1x8xf32> to vector<1x8x8xf32>
    %395 = arith.addf %393, %394 : vector<1x8x8xf32>
    %cst_72 = arith.constant dense<0xFF800000> : vector<1x8xf32>
    %396 = vector.multi_reduction <maximumf>, %395, %cst_72 [2] : vector<1x8x8xf32> to vector<1x8xf32>
    %397 = vector.shape_cast %396 : vector<1x8xf32> to vector<1x8x1xf32>
    %398 = vector.broadcast %397 : vector<1x8x1xf32> to vector<1x8x8xf32>
    %399 = arith.subf %395, %398 : vector<1x8x8xf32>
    %400 = math.exp %399 : vector<1x8x8xf32>
    %cst_73 = arith.constant dense<0.000000e+00> : vector<1x8xf32>
    %401 = vector.multi_reduction <add>, %400, %cst_73 [2] : vector<1x8x8xf32> to vector<1x8xf32>
    %402 = vector.shape_cast %401 : vector<1x8xf32> to vector<1x8x1xf32>
    %403 = tpu.reciprocal %402 {approx = true} : vector<1x8x1xf32> -> vector<1x8x1xf32>
    %404 = vector.broadcast %403 : vector<1x8x1xf32> to vector<1x8x8xf32>
    %405 = arith.mulf %400, %404 : vector<1x8x8xf32>
    "tpu.trace_start"() <{level = 10 : i32, message = "bqk,bkd->bqd"}> : () -> ()
    %cst_74 = arith.constant dense<0.000000e+00> : vector<1x8x8xf32>
    %406 = tpu.matmul %405, %344, %cst_74 {dimension_numbers = #tpu.dot_dimension_numbers<[2], [1], [1], [2], [0, 0, 0, 1, 1, 2], [0], [0]>} : vector<1x8x8xf32>, vector<1x8x8xf32>, vector<1x8x8xf32> -> vector<1x8x8xf32>
    "tpu.trace_stop"() : () -> ()
    %407 = vector.extract_strided_slice %8 {offsets = [0, 0, 0], sizes = [1, 8, 8], strides = [1, 1, 1]} : vector<9x8x8xf32> to vector<1x8x8xf32>
    %408 = arith.mulf %405, %407 : vector<1x8x8xf32>
    %cst_75 = arith.constant dense<0.000000e+00> : vector<1x8xf32>
    %409 = vector.multi_reduction <add>, %408, %cst_75 [2] : vector<1x8x8xf32> to vector<1x8xf32>
    %410 = vector.shape_cast %409 : vector<1x8xf32> to vector<1x8x1xf32>
    %411 = vector.extract_strided_slice %8 {offsets = [1, 0, 0], sizes = [1, 8, 8], strides = [1, 1, 1]} : vector<9x8x8xf32> to vector<1x8x8xf32>
    %412 = arith.mulf %405, %411 : vector<1x8x8xf32>
    %cst_76 = arith.constant dense<0.000000e+00> : vector<1x8xf32>
    %413 = vector.multi_reduction <add>, %412, %cst_76 [2] : vector<1x8x8xf32> to vector<1x8xf32>
    %414 = vector.shape_cast %413 : vector<1x8xf32> to vector<1x8x1xf32>
    %415 = vector.extract_strided_slice %8 {offsets = [2, 0, 0], sizes = [1, 8, 8], strides = [1, 1, 1]} : vector<9x8x8xf32> to vector<1x8x8xf32>
    %416 = arith.mulf %405, %415 : vector<1x8x8xf32>
    %cst_77 = arith.constant dense<0.000000e+00> : vector<1x8xf32>
    %417 = vector.multi_reduction <add>, %416, %cst_77 [2] : vector<1x8x8xf32> to vector<1x8xf32>
    %418 = vector.shape_cast %417 : vector<1x8xf32> to vector<1x8x1xf32>
    %419 = vector.extract_strided_slice %8 {offsets = [3, 0, 0], sizes = [1, 8, 8], strides = [1, 1, 1]} : vector<9x8x8xf32> to vector<1x8x8xf32>
    %420 = arith.mulf %405, %419 : vector<1x8x8xf32>
    %cst_78 = arith.constant dense<0.000000e+00> : vector<1x8xf32>
    %421 = vector.multi_reduction <add>, %420, %cst_78 [2] : vector<1x8x8xf32> to vector<1x8xf32>
    %422 = vector.shape_cast %421 : vector<1x8xf32> to vector<1x8x1xf32>
    %423 = vector.extract_strided_slice %8 {offsets = [4, 0, 0], sizes = [1, 8, 8], strides = [1, 1, 1]} : vector<9x8x8xf32> to vector<1x8x8xf32>
    %424 = arith.mulf %405, %423 : vector<1x8x8xf32>
    %cst_79 = arith.constant dense<0.000000e+00> : vector<1x8xf32>
    %425 = vector.multi_reduction <add>, %424, %cst_79 [2] : vector<1x8x8xf32> to vector<1x8xf32>
    %426 = vector.shape_cast %425 : vector<1x8xf32> to vector<1x8x1xf32>
    %427 = vector.extract_strided_slice %8 {offsets = [5, 0, 0], sizes = [1, 8, 8], strides = [1, 1, 1]} : vector<9x8x8xf32> to vector<1x8x8xf32>
    %428 = arith.mulf %405, %427 : vector<1x8x8xf32>
    %cst_80 = arith.constant dense<0.000000e+00> : vector<1x8xf32>
    %429 = vector.multi_reduction <add>, %428, %cst_80 [2] : vector<1x8x8xf32> to vector<1x8xf32>
    %430 = vector.shape_cast %429 : vector<1x8xf32> to vector<1x8x1xf32>
    %431 = vector.extract_strided_slice %8 {offsets = [6, 0, 0], sizes = [1, 8, 8], strides = [1, 1, 1]} : vector<9x8x8xf32> to vector<1x8x8xf32>
    %432 = arith.mulf %405, %431 : vector<1x8x8xf32>
    %cst_81 = arith.constant dense<0.000000e+00> : vector<1x8xf32>
    %433 = vector.multi_reduction <add>, %432, %cst_81 [2] : vector<1x8x8xf32> to vector<1x8xf32>
    %434 = vector.shape_cast %433 : vector<1x8xf32> to vector<1x8x1xf32>
    %435 = vector.extract_strided_slice %8 {offsets = [7, 0, 0], sizes = [1, 8, 8], strides = [1, 1, 1]} : vector<9x8x8xf32> to vector<1x8x8xf32>
    %436 = arith.mulf %405, %435 : vector<1x8x8xf32>
    %cst_82 = arith.constant dense<0.000000e+00> : vector<1x8xf32>
    %437 = vector.multi_reduction <add>, %436, %cst_82 [2] : vector<1x8x8xf32> to vector<1x8xf32>
    %438 = vector.shape_cast %437 : vector<1x8xf32> to vector<1x8x1xf32>
    %439 = vector.extract_strided_slice %8 {offsets = [8, 0, 0], sizes = [1, 8, 8], strides = [1, 1, 1]} : vector<9x8x8xf32> to vector<1x8x8xf32>
    %440 = arith.mulf %405, %439 : vector<1x8x8xf32>
    %cst_83 = arith.constant dense<0.000000e+00> : vector<1x8xf32>
    %441 = vector.multi_reduction <add>, %440, %cst_83 [2] : vector<1x8x8xf32> to vector<1x8xf32>
    %442 = vector.shape_cast %441 : vector<1x8xf32> to vector<1x8x1xf32>
    %443 = tpu.concatenate %410, %414, %418, %422, %426, %430, %434, %438, %442 in 2 : vector<1x8x1xf32>, vector<1x8x1xf32>, vector<1x8x1xf32>, vector<1x8x1xf32>, vector<1x8x1xf32>, vector<1x8x1xf32>, vector<1x8x1xf32>, vector<1x8x1xf32>, vector<1x8x1xf32> -> vector<1x8x9xf32>
    %444 = vector.shape_cast %443 : vector<1x8x9xf32> to vector<8x9xf32>
    %cst_84 = arith.constant dense<0.000000e+00> : vector<8x8xf32>
    %445 = tpu.matmul %444, %7, %cst_84 {dimension_numbers = #tpu.dot_dimension_numbers<[1], [0], [0], [1], [0, 0, 1, 1], [], []>} : vector<8x9xf32>, vector<9x8xf32>, vector<8x8xf32> -> vector<8x8xf32>
    %446 = vector.shape_cast %445 : vector<8x8xf32> to vector<1x8x8xf32>
    %447 = arith.addf %406, %446 : vector<1x8x8xf32>
    %448 = tpu.concatenate %129, %235, %341, %447 in 2 : vector<1x8x8xf32>, vector<1x8x8xf32>, vector<1x8x8xf32>, vector<1x8x8xf32> -> vector<1x8x32xf32>
    %449 = vector.shape_cast %448 : vector<1x8x32xf32> to vector<8x32xf32>
    %c0_85 = arith.constant 0 : index
    %c0_86 = arith.constant 0 : index
    %c0_87 = arith.constant 0 : index
    %450 = vector.load %arg10[%c0_85, %c0_86, %c0_87] : memref<2x32x32xf32, #tpu.memory_space<vmem>>, vector<1x32x32xf32>
    %451 = vector.shape_cast %450 : vector<1x32x32xf32> to vector<32x32xf32>
    %cst_88 = arith.constant dense<0.000000e+00> : vector<8x32xf32>
    %452 = tpu.matmul %449, %451, %cst_88 {dimension_numbers = #tpu.dot_dimension_numbers<[1], [0], [0], [1], [0, 0, 1, 1], [], []>} : vector<8x32xf32>, vector<32x32xf32>, vector<8x32xf32> -> vector<8x32xf32>
    %c0_89 = arith.constant 0 : index
    %c0_90 = arith.constant 0 : index
    %c0_91 = arith.constant 0 : index
    %453 = vector.load %arg11[%c0_89, %c0_90, %c0_91] : memref<2x1x32xf32, #tpu.memory_space<vmem>>, vector<1x1x32xf32>
    %454 = vector.shape_cast %453 : vector<1x1x32xf32> to vector<1x32xf32>
    %455 = vector.broadcast %454 : vector<1x32xf32> to vector<8x32xf32>
    %456 = arith.addf %452, %455 : vector<8x32xf32>
    %457 = arith.addf %456, %1 : vector<8x32xf32>
    %c0_92 = arith.constant 0 : index
    %c0_93 = arith.constant 0 : index
    %c0_94 = arith.constant 0 : index
    %458 = vector.load %arg22[%c0_92, %c0_93, %c0_94] : memref<2x1x32xf32, #tpu.memory_space<vmem>>, vector<1x1x32xf32>
    %459 = vector.shape_cast %458 : vector<1x1x32xf32> to vector<1x32xf32>
    %c0_95 = arith.constant 0 : index
    %c0_96 = arith.constant 0 : index
    %c0_97 = arith.constant 0 : index
    %460 = vector.load %arg23[%c0_95, %c0_96, %c0_97] : memref<2x1x32xf32, #tpu.memory_space<vmem>>, vector<1x1x32xf32>
    %461 = vector.shape_cast %460 : vector<1x1x32xf32> to vector<1x32xf32>
    %cst_98 = arith.constant dense<0.000000e+00> : vector<8xf32>
    %462 = vector.multi_reduction <add>, %457, %cst_98 [1] : vector<8x32xf32> to vector<8xf32>
    %463 = vector.shape_cast %462 : vector<8xf32> to vector<8x1xf32>
    %cst_99 = arith.constant 3.200000e+01 : f32
    %464 = vector.broadcast %cst_99 : f32 to vector<8x1xf32>
    %465 = arith.divf %463, %464 : vector<8x1xf32>
    %466 = vector.broadcast %465 : vector<8x1xf32> to vector<8x32xf32>
    %467 = arith.subf %457, %466 : vector<8x32xf32>
    %468 = arith.mulf %467, %467 : vector<8x32xf32>
    %cst_100 = arith.constant dense<0.000000e+00> : vector<8xf32>
    %469 = vector.multi_reduction <add>, %468, %cst_100 [1] : vector<8x32xf32> to vector<8xf32>
    %470 = vector.shape_cast %469 : vector<8xf32> to vector<8x1xf32>
    %cst_101 = arith.constant 3.200000e+01 : f32
    %471 = vector.broadcast %cst_101 : f32 to vector<8x1xf32>
    %472 = arith.divf %470, %471 : vector<8x1xf32>
    %473 = vector.broadcast %465 : vector<8x1xf32> to vector<8x32xf32>
    %474 = arith.subf %457, %473 : vector<8x32xf32>
    %cst_102 = arith.constant 9.99999974E-6 : f32
    %475 = vector.broadcast %cst_102 : f32 to vector<8x1xf32>
    %476 = arith.addf %472, %475 : vector<8x1xf32>
    %477 = math.rsqrt %476 : vector<8x1xf32>
    %478 = vector.broadcast %477 : vector<8x1xf32> to vector<8x32xf32>
    %479 = arith.mulf %474, %478 : vector<8x32xf32>
    %480 = vector.broadcast %459 : vector<1x32xf32> to vector<8x32xf32>
    %481 = arith.mulf %479, %480 : vector<8x32xf32>
    %482 = vector.broadcast %461 : vector<1x32xf32> to vector<8x32xf32>
    %483 = arith.addf %481, %482 : vector<8x32xf32>
    %c0_103 = arith.constant 0 : index
    %c0_104 = arith.constant 0 : index
    %c0_105 = arith.constant 0 : index
    %484 = vector.load %arg12[%c0_103, %c0_104, %c0_105] : memref<2x32x32xf32, #tpu.memory_space<vmem>>, vector<1x32x32xf32>
    %485 = vector.shape_cast %484 : vector<1x32x32xf32> to vector<32x32xf32>
    %cst_106 = arith.constant dense<0.000000e+00> : vector<8x32xf32>
    %486 = tpu.matmul %483, %485, %cst_106 {dimension_numbers = #tpu.dot_dimension_numbers<[1], [0], [0], [1], [0, 0, 1, 1], [], []>} : vector<8x32xf32>, vector<32x32xf32>, vector<8x32xf32> -> vector<8x32xf32>
    %c0_107 = arith.constant 0 : index
    %c0_108 = arith.constant 0 : index
    %c0_109 = arith.constant 0 : index
    %487 = vector.load %arg13[%c0_107, %c0_108, %c0_109] : memref<2x1x32xf32, #tpu.memory_space<vmem>>, vector<1x1x32xf32>
    %488 = vector.shape_cast %487 : vector<1x1x32xf32> to vector<1x32xf32>
    %489 = vector.broadcast %488 : vector<1x32xf32> to vector<8x32xf32>
    %490 = arith.addf %486, %489 : vector<8x32xf32>
    %c0_110 = arith.constant 0 : index
    %c0_111 = arith.constant 0 : index
    %c0_112 = arith.constant 0 : index
    %491 = vector.load %arg14[%c0_110, %c0_111, %c0_112] : memref<2x32x64xf32, #tpu.memory_space<vmem>>, vector<1x32x64xf32>
    %492 = vector.shape_cast %491 : vector<1x32x64xf32> to vector<32x64xf32>
    %cst_113 = arith.constant dense<0.000000e+00> : vector<8x64xf32>
    %493 = tpu.matmul %3, %492, %cst_113 {dimension_numbers = #tpu.dot_dimension_numbers<[1], [0], [0], [1], [0, 0, 1, 1], [], []>} : vector<8x32xf32>, vector<32x64xf32>, vector<8x64xf32> -> vector<8x64xf32>
    %c0_114 = arith.constant 0 : index
    %c0_115 = arith.constant 0 : index
    %c0_116 = arith.constant 0 : index
    %494 = vector.load %arg15[%c0_114, %c0_115, %c0_116] : memref<2x1x64xf32, #tpu.memory_space<vmem>>, vector<1x1x64xf32>
    %495 = vector.shape_cast %494 : vector<1x1x64xf32> to vector<1x64xf32>
    %496 = vector.broadcast %495 : vector<1x64xf32> to vector<8x64xf32>
    %497 = arith.addf %493, %496 : vector<8x64xf32>
    %cst_117 = arith.constant 0.353553385 : f32
    %498 = vector.broadcast %cst_117 : f32 to vector<8x32xf32>
    %499 = arith.mulf %490, %498 : vector<8x32xf32>
    %500 = vector.shape_cast %499 : vector<8x32xf32> to vector<1x8x32xf32>
    %501 = vector.extract_strided_slice %497 {offsets = [0, 0], sizes = [8, 32], strides = [1, 1]} : vector<8x64xf32> to vector<8x32xf32>
    %502 = vector.shape_cast %501 : vector<8x32xf32> to vector<1x8x32xf32>
    %503 = vector.extract_strided_slice %497 {offsets = [0, 32], sizes = [8, 32], strides = [1, 1]} : vector<8x64xf32> to vector<8x32xf32>
    %504 = vector.shape_cast %503 : vector<8x32xf32> to vector<1x8x32xf32>
    %505 = vector.extract_strided_slice %500 {offsets = [0, 0, 0], sizes = [1, 8, 8], strides = [1, 1, 1]} : vector<1x8x32xf32> to vector<1x8x8xf32>
    %506 = vector.extract_strided_slice %502 {offsets = [0, 0, 0], sizes = [1, 8, 8], strides = [1, 1, 1]} : vector<1x8x32xf32> to vector<1x8x8xf32>
    %507 = vector.extract_strided_slice %504 {offsets = [0, 0, 0], sizes = [1, 8, 8], strides = [1, 1, 1]} : vector<1x8x32xf32> to vector<1x8x8xf32>
    "tpu.trace_start"() <{level = 10 : i32, message = "bqd,bkd->bqk"}> : () -> ()
    %cst_118 = arith.constant dense<0.000000e+00> : vector<1x8x8xf32>
    %508 = tpu.matmul %505, %506, %cst_118 {dimension_numbers = #tpu.dot_dimension_numbers<[2], [2], [1], [1], [0, 0, 0, 1, 1, 1], [0], [0]>} : vector<1x8x8xf32>, vector<1x8x8xf32>, vector<1x8x8xf32> -> vector<1x8x8xf32>
    "tpu.trace_stop"() : () -> ()
    %509 = vector.broadcast %5 : vector<1x1x8xf32> to vector<1x8x8xf32>
    %510 = arith.addf %508, %509 : vector<1x8x8xf32>
    %cst_119 = arith.constant dense<0xFF800000> : vector<1x8xf32>
    %511 = vector.multi_reduction <maximumf>, %510, %cst_119 [2] : vector<1x8x8xf32> to vector<1x8xf32>
    %512 = vector.shape_cast %511 : vector<1x8xf32> to vector<1x8x1xf32>
    %513 = vector.broadcast %512 : vector<1x8x1xf32> to vector<1x8x8xf32>
    %514 = arith.subf %510, %513 : vector<1x8x8xf32>
    %515 = math.exp %514 : vector<1x8x8xf32>
    %cst_120 = arith.constant dense<0.000000e+00> : vector<1x8xf32>
    %516 = vector.multi_reduction <add>, %515, %cst_120 [2] : vector<1x8x8xf32> to vector<1x8xf32>
    %517 = vector.shape_cast %516 : vector<1x8xf32> to vector<1x8x1xf32>
    %518 = tpu.reciprocal %517 {approx = true} : vector<1x8x1xf32> -> vector<1x8x1xf32>
    %519 = vector.broadcast %518 : vector<1x8x1xf32> to vector<1x8x8xf32>
    %520 = arith.mulf %515, %519 : vector<1x8x8xf32>
    "tpu.trace_start"() <{level = 10 : i32, message = "bqk,bkd->bqd"}> : () -> ()
    %cst_121 = arith.constant dense<0.000000e+00> : vector<1x8x8xf32>
    %521 = tpu.matmul %520, %507, %cst_121 {dimension_numbers = #tpu.dot_dimension_numbers<[2], [1], [1], [2], [0, 0, 0, 1, 1, 2], [0], [0]>} : vector<1x8x8xf32>, vector<1x8x8xf32>, vector<1x8x8xf32> -> vector<1x8x8xf32>
    "tpu.trace_stop"() : () -> ()
    %522 = vector.extract_strided_slice %500 {offsets = [0, 0, 8], sizes = [1, 8, 8], strides = [1, 1, 1]} : vector<1x8x32xf32> to vector<1x8x8xf32>
    %523 = vector.extract_strided_slice %502 {offsets = [0, 0, 8], sizes = [1, 8, 8], strides = [1, 1, 1]} : vector<1x8x32xf32> to vector<1x8x8xf32>
    %524 = vector.extract_strided_slice %504 {offsets = [0, 0, 8], sizes = [1, 8, 8], strides = [1, 1, 1]} : vector<1x8x32xf32> to vector<1x8x8xf32>
    "tpu.trace_start"() <{level = 10 : i32, message = "bqd,bkd->bqk"}> : () -> ()
    %cst_122 = arith.constant dense<0.000000e+00> : vector<1x8x8xf32>
    %525 = tpu.matmul %522, %523, %cst_122 {dimension_numbers = #tpu.dot_dimension_numbers<[2], [2], [1], [1], [0, 0, 0, 1, 1, 1], [0], [0]>} : vector<1x8x8xf32>, vector<1x8x8xf32>, vector<1x8x8xf32> -> vector<1x8x8xf32>
    "tpu.trace_stop"() : () -> ()
    %526 = vector.broadcast %5 : vector<1x1x8xf32> to vector<1x8x8xf32>
    %527 = arith.addf %525, %526 : vector<1x8x8xf32>
    %cst_123 = arith.constant dense<0xFF800000> : vector<1x8xf32>
    %528 = vector.multi_reduction <maximumf>, %527, %cst_123 [2] : vector<1x8x8xf32> to vector<1x8xf32>
    %529 = vector.shape_cast %528 : vector<1x8xf32> to vector<1x8x1xf32>
    %530 = vector.broadcast %529 : vector<1x8x1xf32> to vector<1x8x8xf32>
    %531 = arith.subf %527, %530 : vector<1x8x8xf32>
    %532 = math.exp %531 : vector<1x8x8xf32>
    %cst_124 = arith.constant dense<0.000000e+00> : vector<1x8xf32>
    %533 = vector.multi_reduction <add>, %532, %cst_124 [2] : vector<1x8x8xf32> to vector<1x8xf32>
    %534 = vector.shape_cast %533 : vector<1x8xf32> to vector<1x8x1xf32>
    %535 = tpu.reciprocal %534 {approx = true} : vector<1x8x1xf32> -> vector<1x8x1xf32>
    %536 = vector.broadcast %535 : vector<1x8x1xf32> to vector<1x8x8xf32>
    %537 = arith.mulf %532, %536 : vector<1x8x8xf32>
    "tpu.trace_start"() <{level = 10 : i32, message = "bqk,bkd->bqd"}> : () -> ()
    %cst_125 = arith.constant dense<0.000000e+00> : vector<1x8x8xf32>
    %538 = tpu.matmul %537, %524, %cst_125 {dimension_numbers = #tpu.dot_dimension_numbers<[2], [1], [1], [2], [0, 0, 0, 1, 1, 2], [0], [0]>} : vector<1x8x8xf32>, vector<1x8x8xf32>, vector<1x8x8xf32> -> vector<1x8x8xf32>
    "tpu.trace_stop"() : () -> ()
    %539 = vector.extract_strided_slice %500 {offsets = [0, 0, 16], sizes = [1, 8, 8], strides = [1, 1, 1]} : vector<1x8x32xf32> to vector<1x8x8xf32>
    %540 = vector.extract_strided_slice %502 {offsets = [0, 0, 16], sizes = [1, 8, 8], strides = [1, 1, 1]} : vector<1x8x32xf32> to vector<1x8x8xf32>
    %541 = vector.extract_strided_slice %504 {offsets = [0, 0, 16], sizes = [1, 8, 8], strides = [1, 1, 1]} : vector<1x8x32xf32> to vector<1x8x8xf32>
    "tpu.trace_start"() <{level = 10 : i32, message = "bqd,bkd->bqk"}> : () -> ()
    %cst_126 = arith.constant dense<0.000000e+00> : vector<1x8x8xf32>
    %542 = tpu.matmul %539, %540, %cst_126 {dimension_numbers = #tpu.dot_dimension_numbers<[2], [2], [1], [1], [0, 0, 0, 1, 1, 1], [0], [0]>} : vector<1x8x8xf32>, vector<1x8x8xf32>, vector<1x8x8xf32> -> vector<1x8x8xf32>
    "tpu.trace_stop"() : () -> ()
    %543 = vector.broadcast %5 : vector<1x1x8xf32> to vector<1x8x8xf32>
    %544 = arith.addf %542, %543 : vector<1x8x8xf32>
    %cst_127 = arith.constant dense<0xFF800000> : vector<1x8xf32>
    %545 = vector.multi_reduction <maximumf>, %544, %cst_127 [2] : vector<1x8x8xf32> to vector<1x8xf32>
    %546 = vector.shape_cast %545 : vector<1x8xf32> to vector<1x8x1xf32>
    %547 = vector.broadcast %546 : vector<1x8x1xf32> to vector<1x8x8xf32>
    %548 = arith.subf %544, %547 : vector<1x8x8xf32>
    %549 = math.exp %548 : vector<1x8x8xf32>
    %cst_128 = arith.constant dense<0.000000e+00> : vector<1x8xf32>
    %550 = vector.multi_reduction <add>, %549, %cst_128 [2] : vector<1x8x8xf32> to vector<1x8xf32>
    %551 = vector.shape_cast %550 : vector<1x8xf32> to vector<1x8x1xf32>
    %552 = tpu.reciprocal %551 {approx = true} : vector<1x8x1xf32> -> vector<1x8x1xf32>
    %553 = vector.broadcast %552 : vector<1x8x1xf32> to vector<1x8x8xf32>
    %554 = arith.mulf %549, %553 : vector<1x8x8xf32>
    "tpu.trace_start"() <{level = 10 : i32, message = "bqk,bkd->bqd"}> : () -> ()
    %cst_129 = arith.constant dense<0.000000e+00> : vector<1x8x8xf32>
    %555 = tpu.matmul %554, %541, %cst_129 {dimension_numbers = #tpu.dot_dimension_numbers<[2], [1], [1], [2], [0, 0, 0, 1, 1, 2], [0], [0]>} : vector<1x8x8xf32>, vector<1x8x8xf32>, vector<1x8x8xf32> -> vector<1x8x8xf32>
    "tpu.trace_stop"() : () -> ()
    %556 = vector.extract_strided_slice %500 {offsets = [0, 0, 24], sizes = [1, 8, 8], strides = [1, 1, 1]} : vector<1x8x32xf32> to vector<1x8x8xf32>
    %557 = vector.extract_strided_slice %502 {offsets = [0, 0, 24], sizes = [1, 8, 8], strides = [1, 1, 1]} : vector<1x8x32xf32> to vector<1x8x8xf32>
    %558 = vector.extract_strided_slice %504 {offsets = [0, 0, 24], sizes = [1, 8, 8], strides = [1, 1, 1]} : vector<1x8x32xf32> to vector<1x8x8xf32>
    "tpu.trace_start"() <{level = 10 : i32, message = "bqd,bkd->bqk"}> : () -> ()
    %cst_130 = arith.constant dense<0.000000e+00> : vector<1x8x8xf32>
    %559 = tpu.matmul %556, %557, %cst_130 {dimension_numbers = #tpu.dot_dimension_numbers<[2], [2], [1], [1], [0, 0, 0, 1, 1, 1], [0], [0]>} : vector<1x8x8xf32>, vector<1x8x8xf32>, vector<1x8x8xf32> -> vector<1x8x8xf32>
    "tpu.trace_stop"() : () -> ()
    %560 = vector.broadcast %5 : vector<1x1x8xf32> to vector<1x8x8xf32>
    %561 = arith.addf %559, %560 : vector<1x8x8xf32>
    %cst_131 = arith.constant dense<0xFF800000> : vector<1x8xf32>
    %562 = vector.multi_reduction <maximumf>, %561, %cst_131 [2] : vector<1x8x8xf32> to vector<1x8xf32>
    %563 = vector.shape_cast %562 : vector<1x8xf32> to vector<1x8x1xf32>
    %564 = vector.broadcast %563 : vector<1x8x1xf32> to vector<1x8x8xf32>
    %565 = arith.subf %561, %564 : vector<1x8x8xf32>
    %566 = math.exp %565 : vector<1x8x8xf32>
    %cst_132 = arith.constant dense<0.000000e+00> : vector<1x8xf32>
    %567 = vector.multi_reduction <add>, %566, %cst_132 [2] : vector<1x8x8xf32> to vector<1x8xf32>
    %568 = vector.shape_cast %567 : vector<1x8xf32> to vector<1x8x1xf32>
    %569 = tpu.reciprocal %568 {approx = true} : vector<1x8x1xf32> -> vector<1x8x1xf32>
    %570 = vector.broadcast %569 : vector<1x8x1xf32> to vector<1x8x8xf32>
    %571 = arith.mulf %566, %570 : vector<1x8x8xf32>
    "tpu.trace_start"() <{level = 10 : i32, message = "bqk,bkd->bqd"}> : () -> ()
    %cst_133 = arith.constant dense<0.000000e+00> : vector<1x8x8xf32>
    %572 = tpu.matmul %571, %558, %cst_133 {dimension_numbers = #tpu.dot_dimension_numbers<[2], [1], [1], [2], [0, 0, 0, 1, 1, 2], [0], [0]>} : vector<1x8x8xf32>, vector<1x8x8xf32>, vector<1x8x8xf32> -> vector<1x8x8xf32>
    "tpu.trace_stop"() : () -> ()
    %573 = tpu.concatenate %521, %538, %555, %572 in 2 : vector<1x8x8xf32>, vector<1x8x8xf32>, vector<1x8x8xf32>, vector<1x8x8xf32> -> vector<1x8x32xf32>
    %574 = vector.shape_cast %573 : vector<1x8x32xf32> to vector<8x32xf32>
    %c0_134 = arith.constant 0 : index
    %c0_135 = arith.constant 0 : index
    %c0_136 = arith.constant 0 : index
    %575 = vector.load %arg16[%c0_134, %c0_135, %c0_136] : memref<2x32x32xf32, #tpu.memory_space<vmem>>, vector<1x32x32xf32>
    %576 = vector.shape_cast %575 : vector<1x32x32xf32> to vector<32x32xf32>
    %cst_137 = arith.constant dense<0.000000e+00> : vector<8x32xf32>
    %577 = tpu.matmul %574, %576, %cst_137 {dimension_numbers = #tpu.dot_dimension_numbers<[1], [0], [0], [1], [0, 0, 1, 1], [], []>} : vector<8x32xf32>, vector<32x32xf32>, vector<8x32xf32> -> vector<8x32xf32>
    %c0_138 = arith.constant 0 : index
    %c0_139 = arith.constant 0 : index
    %c0_140 = arith.constant 0 : index
    %578 = vector.load %arg17[%c0_138, %c0_139, %c0_140] : memref<2x1x32xf32, #tpu.memory_space<vmem>>, vector<1x1x32xf32>
    %579 = vector.shape_cast %578 : vector<1x1x32xf32> to vector<1x32xf32>
    %580 = vector.broadcast %579 : vector<1x32xf32> to vector<8x32xf32>
    %581 = arith.addf %577, %580 : vector<8x32xf32>
    %582 = arith.addf %581, %483 : vector<8x32xf32>
    %c0_141 = arith.constant 0 : index
    %c0_142 = arith.constant 0 : index
    %c0_143 = arith.constant 0 : index
    %583 = vector.load %arg24[%c0_141, %c0_142, %c0_143] : memref<2x1x32xf32, #tpu.memory_space<vmem>>, vector<1x1x32xf32>
    %584 = vector.shape_cast %583 : vector<1x1x32xf32> to vector<1x32xf32>
    %c0_144 = arith.constant 0 : index
    %c0_145 = arith.constant 0 : index
    %c0_146 = arith.constant 0 : index
    %585 = vector.load %arg25[%c0_144, %c0_145, %c0_146] : memref<2x1x32xf32, #tpu.memory_space<vmem>>, vector<1x1x32xf32>
    %586 = vector.shape_cast %585 : vector<1x1x32xf32> to vector<1x32xf32>
    %cst_147 = arith.constant dense<0.000000e+00> : vector<8xf32>
    %587 = vector.multi_reduction <add>, %582, %cst_147 [1] : vector<8x32xf32> to vector<8xf32>
    %588 = vector.shape_cast %587 : vector<8xf32> to vector<8x1xf32>
    %cst_148 = arith.constant 3.200000e+01 : f32
    %589 = vector.broadcast %cst_148 : f32 to vector<8x1xf32>
    %590 = arith.divf %588, %589 : vector<8x1xf32>
    %591 = vector.broadcast %590 : vector<8x1xf32> to vector<8x32xf32>
    %592 = arith.subf %582, %591 : vector<8x32xf32>
    %593 = arith.mulf %592, %592 : vector<8x32xf32>
    %cst_149 = arith.constant dense<0.000000e+00> : vector<8xf32>
    %594 = vector.multi_reduction <add>, %593, %cst_149 [1] : vector<8x32xf32> to vector<8xf32>
    %595 = vector.shape_cast %594 : vector<8xf32> to vector<8x1xf32>
    %cst_150 = arith.constant 3.200000e+01 : f32
    %596 = vector.broadcast %cst_150 : f32 to vector<8x1xf32>
    %597 = arith.divf %595, %596 : vector<8x1xf32>
    %598 = vector.broadcast %590 : vector<8x1xf32> to vector<8x32xf32>
    %599 = arith.subf %582, %598 : vector<8x32xf32>
    %cst_151 = arith.constant 9.99999974E-6 : f32
    %600 = vector.broadcast %cst_151 : f32 to vector<8x1xf32>
    %601 = arith.addf %597, %600 : vector<8x1xf32>
    %602 = math.rsqrt %601 : vector<8x1xf32>
    %603 = vector.broadcast %602 : vector<8x1xf32> to vector<8x32xf32>
    %604 = arith.mulf %599, %603 : vector<8x32xf32>
    %605 = vector.broadcast %584 : vector<1x32xf32> to vector<8x32xf32>
    %606 = arith.mulf %604, %605 : vector<8x32xf32>
    %607 = vector.broadcast %586 : vector<1x32xf32> to vector<8x32xf32>
    %608 = arith.addf %606, %607 : vector<8x32xf32>
    %c0_152 = arith.constant 0 : index
    %c0_153 = arith.constant 0 : index
    %c0_154 = arith.constant 0 : index
    %609 = vector.load %arg18[%c0_152, %c0_153, %c0_154] : memref<2x32x64xf32, #tpu.memory_space<vmem>>, vector<1x32x64xf32>
    %610 = vector.shape_cast %609 : vector<1x32x64xf32> to vector<32x64xf32>
    %cst_155 = arith.constant dense<0.000000e+00> : vector<8x64xf32>
    %611 = tpu.matmul %608, %610, %cst_155 {dimension_numbers = #tpu.dot_dimension_numbers<[1], [0], [0], [1], [0, 0, 1, 1], [], []>} : vector<8x32xf32>, vector<32x64xf32>, vector<8x64xf32> -> vector<8x64xf32>
    %c0_156 = arith.constant 0 : index
    %c0_157 = arith.constant 0 : index
    %c0_158 = arith.constant 0 : index
    %612 = vector.load %arg19[%c0_156, %c0_157, %c0_158] : memref<2x1x64xf32, #tpu.memory_space<vmem>>, vector<1x1x64xf32>
    %613 = vector.shape_cast %612 : vector<1x1x64xf32> to vector<1x64xf32>
    %614 = vector.broadcast %613 : vector<1x64xf32> to vector<8x64xf32>
    %615 = arith.addf %611, %614 : vector<8x64xf32>
    %cst_159 = arith.constant 0.000000e+00 : f32
    %616 = vector.broadcast %cst_159 : f32 to vector<8x64xf32>
    %617 = arith.maximumf %615, %616 : vector<8x64xf32>
    %c0_160 = arith.constant 0 : index
    %c0_161 = arith.constant 0 : index
    %c0_162 = arith.constant 0 : index
    %618 = vector.load %arg20[%c0_160, %c0_161, %c0_162] : memref<2x64x32xf32, #tpu.memory_space<vmem>>, vector<1x64x32xf32>
    %619 = vector.shape_cast %618 : vector<1x64x32xf32> to vector<64x32xf32>
    %cst_163 = arith.constant dense<0.000000e+00> : vector<8x32xf32>
    %620 = tpu.matmul %617, %619, %cst_163 {dimension_numbers = #tpu.dot_dimension_numbers<[1], [0], [0], [1], [0, 0, 1, 1], [], []>} : vector<8x64xf32>, vector<64x32xf32>, vector<8x32xf32> -> vector<8x32xf32>
    %c0_164 = arith.constant 0 : index
    %c0_165 = arith.constant 0 : index
    %c0_166 = arith.constant 0 : index
    %621 = vector.load %arg21[%c0_164, %c0_165, %c0_166] : memref<2x1x32xf32, #tpu.memory_space<vmem>>, vector<1x1x32xf32>
    %622 = vector.shape_cast %621 : vector<1x1x32xf32> to vector<1x32xf32>
    %623 = vector.broadcast %622 : vector<1x32xf32> to vector<8x32xf32>
    %624 = arith.addf %620, %623 : vector<8x32xf32>
    %625 = arith.addf %624, %608 : vector<8x32xf32>
    %c0_167 = arith.constant 0 : index
    %c0_168 = arith.constant 0 : index
    %c0_169 = arith.constant 0 : index
    %626 = vector.load %arg26[%c0_167, %c0_168, %c0_169] : memref<2x1x32xf32, #tpu.memory_space<vmem>>, vector<1x1x32xf32>
    %627 = vector.shape_cast %626 : vector<1x1x32xf32> to vector<1x32xf32>
    %c0_170 = arith.constant 0 : index
    %c0_171 = arith.constant 0 : index
    %c0_172 = arith.constant 0 : index
    %628 = vector.load %arg27[%c0_170, %c0_171, %c0_172] : memref<2x1x32xf32, #tpu.memory_space<vmem>>, vector<1x1x32xf32>
    %629 = vector.shape_cast %628 : vector<1x1x32xf32> to vector<1x32xf32>
    %cst_173 = arith.constant dense<0.000000e+00> : vector<8xf32>
    %630 = vector.multi_reduction <add>, %625, %cst_173 [1] : vector<8x32xf32> to vector<8xf32>
    %631 = vector.shape_cast %630 : vector<8xf32> to vector<8x1xf32>
    %cst_174 = arith.constant 3.200000e+01 : f32
    %632 = vector.broadcast %cst_174 : f32 to vector<8x1xf32>
    %633 = arith.divf %631, %632 : vector<8x1xf32>
    %634 = vector.broadcast %633 : vector<8x1xf32> to vector<8x32xf32>
    %635 = arith.subf %625, %634 : vector<8x32xf32>
    %636 = arith.mulf %635, %635 : vector<8x32xf32>
    %cst_175 = arith.constant dense<0.000000e+00> : vector<8xf32>
    %637 = vector.multi_reduction <add>, %636, %cst_175 [1] : vector<8x32xf32> to vector<8xf32>
    %638 = vector.shape_cast %637 : vector<8xf32> to vector<8x1xf32>
    %cst_176 = arith.constant 3.200000e+01 : f32
    %639 = vector.broadcast %cst_176 : f32 to vector<8x1xf32>
    %640 = arith.divf %638, %639 : vector<8x1xf32>
    %641 = vector.broadcast %633 : vector<8x1xf32> to vector<8x32xf32>
    %642 = arith.subf %625, %641 : vector<8x32xf32>
    %cst_177 = arith.constant 9.99999974E-6 : f32
    %643 = vector.broadcast %cst_177 : f32 to vector<8x1xf32>
    %644 = arith.addf %640, %643 : vector<8x1xf32>
    %645 = math.rsqrt %644 : vector<8x1xf32>
    %646 = vector.broadcast %645 : vector<8x1xf32> to vector<8x32xf32>
    %647 = arith.mulf %642, %646 : vector<8x32xf32>
    %648 = vector.broadcast %627 : vector<1x32xf32> to vector<8x32xf32>
    %649 = arith.mulf %647, %648 : vector<8x32xf32>
    %650 = vector.broadcast %629 : vector<1x32xf32> to vector<8x32xf32>
    %651 = arith.addf %649, %650 : vector<8x32xf32>
    %c1 = arith.constant 1 : index
    %c0_178 = arith.constant 0 : index
    %c0_179 = arith.constant 0 : index
    %652 = vector.load %arg8[%c1, %c0_178, %c0_179] : memref<2x32x96xf32, #tpu.memory_space<vmem>>, vector<1x32x96xf32>
    %653 = vector.shape_cast %652 : vector<1x32x96xf32> to vector<32x96xf32>
    %cst_180 = arith.constant dense<0.000000e+00> : vector<8x96xf32>
    %654 = tpu.matmul %651, %653, %cst_180 {dimension_numbers = #tpu.dot_dimension_numbers<[1], [0], [0], [1], [0, 0, 1, 1], [], []>} : vector<8x32xf32>, vector<32x96xf32>, vector<8x96xf32> -> vector<8x96xf32>
    %c1_181 = arith.constant 1 : index
    %c0_182 = arith.constant 0 : index
    %c0_183 = arith.constant 0 : index
    %655 = vector.load %arg9[%c1_181, %c0_182, %c0_183] : memref<2x1x96xf32, #tpu.memory_space<vmem>>, vector<1x1x96xf32>
    %656 = vector.shape_cast %655 : vector<1x1x96xf32> to vector<1x96xf32>
    %657 = vector.broadcast %656 : vector<1x96xf32> to vector<8x96xf32>
    %658 = arith.addf %654, %657 : vector<8x96xf32>
    %659 = vector.extract_strided_slice %658 {offsets = [0, 0], sizes = [8, 32], strides = [1, 1]} : vector<8x96xf32> to vector<8x32xf32>
    %cst_184 = arith.constant 0.353553385 : f32
    %660 = vector.broadcast %cst_184 : f32 to vector<8x32xf32>
    %661 = arith.mulf %659, %660 : vector<8x32xf32>
    %662 = vector.shape_cast %661 : vector<8x32xf32> to vector<1x8x32xf32>
    %663 = vector.extract_strided_slice %658 {offsets = [0, 32], sizes = [8, 32], strides = [1, 1]} : vector<8x96xf32> to vector<8x32xf32>
    %664 = vector.shape_cast %663 : vector<8x32xf32> to vector<1x8x32xf32>
    %665 = vector.extract_strided_slice %658 {offsets = [0, 64], sizes = [8, 32], strides = [1, 1]} : vector<8x96xf32> to vector<8x32xf32>
    %666 = vector.shape_cast %665 : vector<8x32xf32> to vector<1x8x32xf32>
    %667 = vector.extract_strided_slice %662 {offsets = [0, 0, 0], sizes = [1, 8, 8], strides = [1, 1, 1]} : vector<1x8x32xf32> to vector<1x8x8xf32>
    %668 = vector.extract_strided_slice %664 {offsets = [0, 0, 0], sizes = [1, 8, 8], strides = [1, 1, 1]} : vector<1x8x32xf32> to vector<1x8x8xf32>
    %669 = vector.extract_strided_slice %666 {offsets = [0, 0, 0], sizes = [1, 8, 8], strides = [1, 1, 1]} : vector<1x8x32xf32> to vector<1x8x8xf32>
    "tpu.trace_start"() <{level = 10 : i32, message = "bqd,bkd->bqk"}> : () -> ()
    %cst_185 = arith.constant dense<0.000000e+00> : vector<1x8x8xf32>
    %670 = tpu.matmul %667, %668, %cst_185 {dimension_numbers = #tpu.dot_dimension_numbers<[2], [2], [1], [1], [0, 0, 0, 1, 1, 1], [0], [0]>} : vector<1x8x8xf32>, vector<1x8x8xf32>, vector<1x8x8xf32> -> vector<1x8x8xf32>
    "tpu.trace_stop"() : () -> ()
    %671 = vector.shape_cast %667 : vector<1x8x8xf32> to vector<8x8xf32>
    %cst_186 = arith.constant dense<0.000000e+00> : vector<8x9xf32>
    %672 = tpu.matmul %671, %6, %cst_186 {dimension_numbers = #tpu.dot_dimension_numbers<[1], [0], [0], [1], [0, 0, 1, 1], [], []>} : vector<8x8xf32>, vector<8x9xf32>, vector<8x9xf32> -> vector<8x9xf32>
    %673 = vector.shape_cast %672 : vector<8x9xf32> to vector<1x8x9xf32>
    %674 = vector.extract_strided_slice %673 {offsets = [0, 0, 0], sizes = [1, 8, 1], strides = [1, 1, 1]} : vector<1x8x9xf32> to vector<1x8x1xf32>
    %675 = vector.extract_strided_slice %8 {offsets = [0, 0, 0], sizes = [1, 8, 8], strides = [1, 1, 1]} : vector<9x8x8xf32> to vector<1x8x8xf32>
    %676 = vector.broadcast %674 : vector<1x8x1xf32> to vector<1x8x8xf32>
    %677 = arith.mulf %676, %675 : vector<1x8x8xf32>
    %678 = arith.addf %670, %677 : vector<1x8x8xf32>
    %679 = vector.extract_strided_slice %673 {offsets = [0, 0, 1], sizes = [1, 8, 1], strides = [1, 1, 1]} : vector<1x8x9xf32> to vector<1x8x1xf32>
    %680 = vector.extract_strided_slice %8 {offsets = [1, 0, 0], sizes = [1, 8, 8], strides = [1, 1, 1]} : vector<9x8x8xf32> to vector<1x8x8xf32>
    %681 = vector.broadcast %679 : vector<1x8x1xf32> to vector<1x8x8xf32>
    %682 = arith.mulf %681, %680 : vector<1x8x8xf32>
    %683 = arith.addf %678, %682 : vector<1x8x8xf32>
    %684 = vector.extract_strided_slice %673 {offsets = [0, 0, 2], sizes = [1, 8, 1], strides = [1, 1, 1]} : vector<1x8x9xf32> to vector<1x8x1xf32>
    %685 = vector.extract_strided_slice %8 {offsets = [2, 0, 0], sizes = [1, 8, 8], strides = [1, 1, 1]} : vector<9x8x8xf32> to vector<1x8x8xf32>
    %686 = vector.broadcast %684 : vector<1x8x1xf32> to vector<1x8x8xf32>
    %687 = arith.mulf %686, %685 : vector<1x8x8xf32>
    %688 = arith.addf %683, %687 : vector<1x8x8xf32>
    %689 = vector.extract_strided_slice %673 {offsets = [0, 0, 3], sizes = [1, 8, 1], strides = [1, 1, 1]} : vector<1x8x9xf32> to vector<1x8x1xf32>
    %690 = vector.extract_strided_slice %8 {offsets = [3, 0, 0], sizes = [1, 8, 8], strides = [1, 1, 1]} : vector<9x8x8xf32> to vector<1x8x8xf32>
    %691 = vector.broadcast %689 : vector<1x8x1xf32> to vector<1x8x8xf32>
    %692 = arith.mulf %691, %690 : vector<1x8x8xf32>
    %693 = arith.addf %688, %692 : vector<1x8x8xf32>
    %694 = vector.extract_strided_slice %673 {offsets = [0, 0, 4], sizes = [1, 8, 1], strides = [1, 1, 1]} : vector<1x8x9xf32> to vector<1x8x1xf32>
    %695 = vector.extract_strided_slice %8 {offsets = [4, 0, 0], sizes = [1, 8, 8], strides = [1, 1, 1]} : vector<9x8x8xf32> to vector<1x8x8xf32>
    %696 = vector.broadcast %694 : vector<1x8x1xf32> to vector<1x8x8xf32>
    %697 = arith.mulf %696, %695 : vector<1x8x8xf32>
    %698 = arith.addf %693, %697 : vector<1x8x8xf32>
    %699 = vector.extract_strided_slice %673 {offsets = [0, 0, 5], sizes = [1, 8, 1], strides = [1, 1, 1]} : vector<1x8x9xf32> to vector<1x8x1xf32>
    %700 = vector.extract_strided_slice %8 {offsets = [5, 0, 0], sizes = [1, 8, 8], strides = [1, 1, 1]} : vector<9x8x8xf32> to vector<1x8x8xf32>
    %701 = vector.broadcast %699 : vector<1x8x1xf32> to vector<1x8x8xf32>
    %702 = arith.mulf %701, %700 : vector<1x8x8xf32>
    %703 = arith.addf %698, %702 : vector<1x8x8xf32>
    %704 = vector.extract_strided_slice %673 {offsets = [0, 0, 6], sizes = [1, 8, 1], strides = [1, 1, 1]} : vector<1x8x9xf32> to vector<1x8x1xf32>
    %705 = vector.extract_strided_slice %8 {offsets = [6, 0, 0], sizes = [1, 8, 8], strides = [1, 1, 1]} : vector<9x8x8xf32> to vector<1x8x8xf32>
    %706 = vector.broadcast %704 : vector<1x8x1xf32> to vector<1x8x8xf32>
    %707 = arith.mulf %706, %705 : vector<1x8x8xf32>
    %708 = arith.addf %703, %707 : vector<1x8x8xf32>
    %709 = vector.extract_strided_slice %673 {offsets = [0, 0, 7], sizes = [1, 8, 1], strides = [1, 1, 1]} : vector<1x8x9xf32> to vector<1x8x1xf32>
    %710 = vector.extract_strided_slice %8 {offsets = [7, 0, 0], sizes = [1, 8, 8], strides = [1, 1, 1]} : vector<9x8x8xf32> to vector<1x8x8xf32>
    %711 = vector.broadcast %709 : vector<1x8x1xf32> to vector<1x8x8xf32>
    %712 = arith.mulf %711, %710 : vector<1x8x8xf32>
    %713 = arith.addf %708, %712 : vector<1x8x8xf32>
    %714 = vector.extract_strided_slice %673 {offsets = [0, 0, 8], sizes = [1, 8, 1], strides = [1, 1, 1]} : vector<1x8x9xf32> to vector<1x8x1xf32>
    %715 = vector.extract_strided_slice %8 {offsets = [8, 0, 0], sizes = [1, 8, 8], strides = [1, 1, 1]} : vector<9x8x8xf32> to vector<1x8x8xf32>
    %716 = vector.broadcast %714 : vector<1x8x1xf32> to vector<1x8x8xf32>
    %717 = arith.mulf %716, %715 : vector<1x8x8xf32>
    %718 = arith.addf %713, %717 : vector<1x8x8xf32>
    %719 = vector.broadcast %4 : vector<1x1x8xf32> to vector<1x8x8xf32>
    %720 = arith.addf %718, %719 : vector<1x8x8xf32>
    %cst_187 = arith.constant dense<0xFF800000> : vector<1x8xf32>
    %721 = vector.multi_reduction <maximumf>, %720, %cst_187 [2] : vector<1x8x8xf32> to vector<1x8xf32>
    %722 = vector.shape_cast %721 : vector<1x8xf32> to vector<1x8x1xf32>
    %723 = vector.broadcast %722 : vector<1x8x1xf32> to vector<1x8x8xf32>
    %724 = arith.subf %720, %723 : vector<1x8x8xf32>
    %725 = math.exp %724 : vector<1x8x8xf32>
    %cst_188 = arith.constant dense<0.000000e+00> : vector<1x8xf32>
    %726 = vector.multi_reduction <add>, %725, %cst_188 [2] : vector<1x8x8xf32> to vector<1x8xf32>
    %727 = vector.shape_cast %726 : vector<1x8xf32> to vector<1x8x1xf32>
    %728 = tpu.reciprocal %727 {approx = true} : vector<1x8x1xf32> -> vector<1x8x1xf32>
    %729 = vector.broadcast %728 : vector<1x8x1xf32> to vector<1x8x8xf32>
    %730 = arith.mulf %725, %729 : vector<1x8x8xf32>
    "tpu.trace_start"() <{level = 10 : i32, message = "bqk,bkd->bqd"}> : () -> ()
    %cst_189 = arith.constant dense<0.000000e+00> : vector<1x8x8xf32>
    %731 = tpu.matmul %730, %669, %cst_189 {dimension_numbers = #tpu.dot_dimension_numbers<[2], [1], [1], [2], [0, 0, 0, 1, 1, 2], [0], [0]>} : vector<1x8x8xf32>, vector<1x8x8xf32>, vector<1x8x8xf32> -> vector<1x8x8xf32>
    "tpu.trace_stop"() : () -> ()
    %732 = vector.extract_strided_slice %8 {offsets = [0, 0, 0], sizes = [1, 8, 8], strides = [1, 1, 1]} : vector<9x8x8xf32> to vector<1x8x8xf32>
    %733 = arith.mulf %730, %732 : vector<1x8x8xf32>
    %cst_190 = arith.constant dense<0.000000e+00> : vector<1x8xf32>
    %734 = vector.multi_reduction <add>, %733, %cst_190 [2] : vector<1x8x8xf32> to vector<1x8xf32>
    %735 = vector.shape_cast %734 : vector<1x8xf32> to vector<1x8x1xf32>
    %736 = vector.extract_strided_slice %8 {offsets = [1, 0, 0], sizes = [1, 8, 8], strides = [1, 1, 1]} : vector<9x8x8xf32> to vector<1x8x8xf32>
    %737 = arith.mulf %730, %736 : vector<1x8x8xf32>
    %cst_191 = arith.constant dense<0.000000e+00> : vector<1x8xf32>
    %738 = vector.multi_reduction <add>, %737, %cst_191 [2] : vector<1x8x8xf32> to vector<1x8xf32>
    %739 = vector.shape_cast %738 : vector<1x8xf32> to vector<1x8x1xf32>
    %740 = vector.extract_strided_slice %8 {offsets = [2, 0, 0], sizes = [1, 8, 8], strides = [1, 1, 1]} : vector<9x8x8xf32> to vector<1x8x8xf32>
    %741 = arith.mulf %730, %740 : vector<1x8x8xf32>
    %cst_192 = arith.constant dense<0.000000e+00> : vector<1x8xf32>
    %742 = vector.multi_reduction <add>, %741, %cst_192 [2] : vector<1x8x8xf32> to vector<1x8xf32>
    %743 = vector.shape_cast %742 : vector<1x8xf32> to vector<1x8x1xf32>
    %744 = vector.extract_strided_slice %8 {offsets = [3, 0, 0], sizes = [1, 8, 8], strides = [1, 1, 1]} : vector<9x8x8xf32> to vector<1x8x8xf32>
    %745 = arith.mulf %730, %744 : vector<1x8x8xf32>
    %cst_193 = arith.constant dense<0.000000e+00> : vector<1x8xf32>
    %746 = vector.multi_reduction <add>, %745, %cst_193 [2] : vector<1x8x8xf32> to vector<1x8xf32>
    %747 = vector.shape_cast %746 : vector<1x8xf32> to vector<1x8x1xf32>
    %748 = vector.extract_strided_slice %8 {offsets = [4, 0, 0], sizes = [1, 8, 8], strides = [1, 1, 1]} : vector<9x8x8xf32> to vector<1x8x8xf32>
    %749 = arith.mulf %730, %748 : vector<1x8x8xf32>
    %cst_194 = arith.constant dense<0.000000e+00> : vector<1x8xf32>
    %750 = vector.multi_reduction <add>, %749, %cst_194 [2] : vector<1x8x8xf32> to vector<1x8xf32>
    %751 = vector.shape_cast %750 : vector<1x8xf32> to vector<1x8x1xf32>
    %752 = vector.extract_strided_slice %8 {offsets = [5, 0, 0], sizes = [1, 8, 8], strides = [1, 1, 1]} : vector<9x8x8xf32> to vector<1x8x8xf32>
    %753 = arith.mulf %730, %752 : vector<1x8x8xf32>
    %cst_195 = arith.constant dense<0.000000e+00> : vector<1x8xf32>
    %754 = vector.multi_reduction <add>, %753, %cst_195 [2] : vector<1x8x8xf32> to vector<1x8xf32>
    %755 = vector.shape_cast %754 : vector<1x8xf32> to vector<1x8x1xf32>
    %756 = vector.extract_strided_slice %8 {offsets = [6, 0, 0], sizes = [1, 8, 8], strides = [1, 1, 1]} : vector<9x8x8xf32> to vector<1x8x8xf32>
    %757 = arith.mulf %730, %756 : vector<1x8x8xf32>
    %cst_196 = arith.constant dense<0.000000e+00> : vector<1x8xf32>
    %758 = vector.multi_reduction <add>, %757, %cst_196 [2] : vector<1x8x8xf32> to vector<1x8xf32>
    %759 = vector.shape_cast %758 : vector<1x8xf32> to vector<1x8x1xf32>
    %760 = vector.extract_strided_slice %8 {offsets = [7, 0, 0], sizes = [1, 8, 8], strides = [1, 1, 1]} : vector<9x8x8xf32> to vector<1x8x8xf32>
    %761 = arith.mulf %730, %760 : vector<1x8x8xf32>
    %cst_197 = arith.constant dense<0.000000e+00> : vector<1x8xf32>
    %762 = vector.multi_reduction <add>, %761, %cst_197 [2] : vector<1x8x8xf32> to vector<1x8xf32>
    %763 = vector.shape_cast %762 : vector<1x8xf32> to vector<1x8x1xf32>
    %764 = vector.extract_strided_slice %8 {offsets = [8, 0, 0], sizes = [1, 8, 8], strides = [1, 1, 1]} : vector<9x8x8xf32> to vector<1x8x8xf32>
    %765 = arith.mulf %730, %764 : vector<1x8x8xf32>
    %cst_198 = arith.constant dense<0.000000e+00> : vector<1x8xf32>
    %766 = vector.multi_reduction <add>, %765, %cst_198 [2] : vector<1x8x8xf32> to vector<1x8xf32>
    %767 = vector.shape_cast %766 : vector<1x8xf32> to vector<1x8x1xf32>
    %768 = tpu.concatenate %735, %739, %743, %747, %751, %755, %759, %763, %767 in 2 : vector<1x8x1xf32>, vector<1x8x1xf32>, vector<1x8x1xf32>, vector<1x8x1xf32>, vector<1x8x1xf32>, vector<1x8x1xf32>, vector<1x8x1xf32>, vector<1x8x1xf32>, vector<1x8x1xf32> -> vector<1x8x9xf32>
    %769 = vector.shape_cast %768 : vector<1x8x9xf32> to vector<8x9xf32>
    %cst_199 = arith.constant dense<0.000000e+00> : vector<8x8xf32>
    %770 = tpu.matmul %769, %7, %cst_199 {dimension_numbers = #tpu.dot_dimension_numbers<[1], [0], [0], [1], [0, 0, 1, 1], [], []>} : vector<8x9xf32>, vector<9x8xf32>, vector<8x8xf32> -> vector<8x8xf32>
    %771 = vector.shape_cast %770 : vector<8x8xf32> to vector<1x8x8xf32>
    %772 = arith.addf %731, %771 : vector<1x8x8xf32>
    %773 = vector.extract_strided_slice %662 {offsets = [0, 0, 8], sizes = [1, 8, 8], strides = [1, 1, 1]} : vector<1x8x32xf32> to vector<1x8x8xf32>
    %774 = vector.extract_strided_slice %664 {offsets = [0, 0, 8], sizes = [1, 8, 8], strides = [1, 1, 1]} : vector<1x8x32xf32> to vector<1x8x8xf32>
    %775 = vector.extract_strided_slice %666 {offsets = [0, 0, 8], sizes = [1, 8, 8], strides = [1, 1, 1]} : vector<1x8x32xf32> to vector<1x8x8xf32>
    "tpu.trace_start"() <{level = 10 : i32, message = "bqd,bkd->bqk"}> : () -> ()
    %cst_200 = arith.constant dense<0.000000e+00> : vector<1x8x8xf32>
    %776 = tpu.matmul %773, %774, %cst_200 {dimension_numbers = #tpu.dot_dimension_numbers<[2], [2], [1], [1], [0, 0, 0, 1, 1, 1], [0], [0]>} : vector<1x8x8xf32>, vector<1x8x8xf32>, vector<1x8x8xf32> -> vector<1x8x8xf32>
    "tpu.trace_stop"() : () -> ()
    %777 = vector.shape_cast %773 : vector<1x8x8xf32> to vector<8x8xf32>
    %cst_201 = arith.constant dense<0.000000e+00> : vector<8x9xf32>
    %778 = tpu.matmul %777, %6, %cst_201 {dimension_numbers = #tpu.dot_dimension_numbers<[1], [0], [0], [1], [0, 0, 1, 1], [], []>} : vector<8x8xf32>, vector<8x9xf32>, vector<8x9xf32> -> vector<8x9xf32>
    %779 = vector.shape_cast %778 : vector<8x9xf32> to vector<1x8x9xf32>
    %780 = vector.extract_strided_slice %779 {offsets = [0, 0, 0], sizes = [1, 8, 1], strides = [1, 1, 1]} : vector<1x8x9xf32> to vector<1x8x1xf32>
    %781 = vector.extract_strided_slice %8 {offsets = [0, 0, 0], sizes = [1, 8, 8], strides = [1, 1, 1]} : vector<9x8x8xf32> to vector<1x8x8xf32>
    %782 = vector.broadcast %780 : vector<1x8x1xf32> to vector<1x8x8xf32>
    %783 = arith.mulf %782, %781 : vector<1x8x8xf32>
    %784 = arith.addf %776, %783 : vector<1x8x8xf32>
    %785 = vector.extract_strided_slice %779 {offsets = [0, 0, 1], sizes = [1, 8, 1], strides = [1, 1, 1]} : vector<1x8x9xf32> to vector<1x8x1xf32>
    %786 = vector.extract_strided_slice %8 {offsets = [1, 0, 0], sizes = [1, 8, 8], strides = [1, 1, 1]} : vector<9x8x8xf32> to vector<1x8x8xf32>
    %787 = vector.broadcast %785 : vector<1x8x1xf32> to vector<1x8x8xf32>
    %788 = arith.mulf %787, %786 : vector<1x8x8xf32>
    %789 = arith.addf %784, %788 : vector<1x8x8xf32>
    %790 = vector.extract_strided_slice %779 {offsets = [0, 0, 2], sizes = [1, 8, 1], strides = [1, 1, 1]} : vector<1x8x9xf32> to vector<1x8x1xf32>
    %791 = vector.extract_strided_slice %8 {offsets = [2, 0, 0], sizes = [1, 8, 8], strides = [1, 1, 1]} : vector<9x8x8xf32> to vector<1x8x8xf32>
    %792 = vector.broadcast %790 : vector<1x8x1xf32> to vector<1x8x8xf32>
    %793 = arith.mulf %792, %791 : vector<1x8x8xf32>
    %794 = arith.addf %789, %793 : vector<1x8x8xf32>
    %795 = vector.extract_strided_slice %779 {offsets = [0, 0, 3], sizes = [1, 8, 1], strides = [1, 1, 1]} : vector<1x8x9xf32> to vector<1x8x1xf32>
    %796 = vector.extract_strided_slice %8 {offsets = [3, 0, 0], sizes = [1, 8, 8], strides = [1, 1, 1]} : vector<9x8x8xf32> to vector<1x8x8xf32>
    %797 = vector.broadcast %795 : vector<1x8x1xf32> to vector<1x8x8xf32>
    %798 = arith.mulf %797, %796 : vector<1x8x8xf32>
    %799 = arith.addf %794, %798 : vector<1x8x8xf32>
    %800 = vector.extract_strided_slice %779 {offsets = [0, 0, 4], sizes = [1, 8, 1], strides = [1, 1, 1]} : vector<1x8x9xf32> to vector<1x8x1xf32>
    %801 = vector.extract_strided_slice %8 {offsets = [4, 0, 0], sizes = [1, 8, 8], strides = [1, 1, 1]} : vector<9x8x8xf32> to vector<1x8x8xf32>
    %802 = vector.broadcast %800 : vector<1x8x1xf32> to vector<1x8x8xf32>
    %803 = arith.mulf %802, %801 : vector<1x8x8xf32>
    %804 = arith.addf %799, %803 : vector<1x8x8xf32>
    %805 = vector.extract_strided_slice %779 {offsets = [0, 0, 5], sizes = [1, 8, 1], strides = [1, 1, 1]} : vector<1x8x9xf32> to vector<1x8x1xf32>
    %806 = vector.extract_strided_slice %8 {offsets = [5, 0, 0], sizes = [1, 8, 8], strides = [1, 1, 1]} : vector<9x8x8xf32> to vector<1x8x8xf32>
    %807 = vector.broadcast %805 : vector<1x8x1xf32> to vector<1x8x8xf32>
    %808 = arith.mulf %807, %806 : vector<1x8x8xf32>
    %809 = arith.addf %804, %808 : vector<1x8x8xf32>
    %810 = vector.extract_strided_slice %779 {offsets = [0, 0, 6], sizes = [1, 8, 1], strides = [1, 1, 1]} : vector<1x8x9xf32> to vector<1x8x1xf32>
    %811 = vector.extract_strided_slice %8 {offsets = [6, 0, 0], sizes = [1, 8, 8], strides = [1, 1, 1]} : vector<9x8x8xf32> to vector<1x8x8xf32>
    %812 = vector.broadcast %810 : vector<1x8x1xf32> to vector<1x8x8xf32>
    %813 = arith.mulf %812, %811 : vector<1x8x8xf32>
    %814 = arith.addf %809, %813 : vector<1x8x8xf32>
    %815 = vector.extract_strided_slice %779 {offsets = [0, 0, 7], sizes = [1, 8, 1], strides = [1, 1, 1]} : vector<1x8x9xf32> to vector<1x8x1xf32>
    %816 = vector.extract_strided_slice %8 {offsets = [7, 0, 0], sizes = [1, 8, 8], strides = [1, 1, 1]} : vector<9x8x8xf32> to vector<1x8x8xf32>
    %817 = vector.broadcast %815 : vector<1x8x1xf32> to vector<1x8x8xf32>
    %818 = arith.mulf %817, %816 : vector<1x8x8xf32>
    %819 = arith.addf %814, %818 : vector<1x8x8xf32>
    %820 = vector.extract_strided_slice %779 {offsets = [0, 0, 8], sizes = [1, 8, 1], strides = [1, 1, 1]} : vector<1x8x9xf32> to vector<1x8x1xf32>
    %821 = vector.extract_strided_slice %8 {offsets = [8, 0, 0], sizes = [1, 8, 8], strides = [1, 1, 1]} : vector<9x8x8xf32> to vector<1x8x8xf32>
    %822 = vector.broadcast %820 : vector<1x8x1xf32> to vector<1x8x8xf32>
    %823 = arith.mulf %822, %821 : vector<1x8x8xf32>
    %824 = arith.addf %819, %823 : vector<1x8x8xf32>
    %825 = vector.broadcast %4 : vector<1x1x8xf32> to vector<1x8x8xf32>
    %826 = arith.addf %824, %825 : vector<1x8x8xf32>
    %cst_202 = arith.constant dense<0xFF800000> : vector<1x8xf32>
    %827 = vector.multi_reduction <maximumf>, %826, %cst_202 [2] : vector<1x8x8xf32> to vector<1x8xf32>
    %828 = vector.shape_cast %827 : vector<1x8xf32> to vector<1x8x1xf32>
    %829 = vector.broadcast %828 : vector<1x8x1xf32> to vector<1x8x8xf32>
    %830 = arith.subf %826, %829 : vector<1x8x8xf32>
    %831 = math.exp %830 : vector<1x8x8xf32>
    %cst_203 = arith.constant dense<0.000000e+00> : vector<1x8xf32>
    %832 = vector.multi_reduction <add>, %831, %cst_203 [2] : vector<1x8x8xf32> to vector<1x8xf32>
    %833 = vector.shape_cast %832 : vector<1x8xf32> to vector<1x8x1xf32>
    %834 = tpu.reciprocal %833 {approx = true} : vector<1x8x1xf32> -> vector<1x8x1xf32>
    %835 = vector.broadcast %834 : vector<1x8x1xf32> to vector<1x8x8xf32>
    %836 = arith.mulf %831, %835 : vector<1x8x8xf32>
    "tpu.trace_start"() <{level = 10 : i32, message = "bqk,bkd->bqd"}> : () -> ()
    %cst_204 = arith.constant dense<0.000000e+00> : vector<1x8x8xf32>
    %837 = tpu.matmul %836, %775, %cst_204 {dimension_numbers = #tpu.dot_dimension_numbers<[2], [1], [1], [2], [0, 0, 0, 1, 1, 2], [0], [0]>} : vector<1x8x8xf32>, vector<1x8x8xf32>, vector<1x8x8xf32> -> vector<1x8x8xf32>
    "tpu.trace_stop"() : () -> ()
    %838 = vector.extract_strided_slice %8 {offsets = [0, 0, 0], sizes = [1, 8, 8], strides = [1, 1, 1]} : vector<9x8x8xf32> to vector<1x8x8xf32>
    %839 = arith.mulf %836, %838 : vector<1x8x8xf32>
    %cst_205 = arith.constant dense<0.000000e+00> : vector<1x8xf32>
    %840 = vector.multi_reduction <add>, %839, %cst_205 [2] : vector<1x8x8xf32> to vector<1x8xf32>
    %841 = vector.shape_cast %840 : vector<1x8xf32> to vector<1x8x1xf32>
    %842 = vector.extract_strided_slice %8 {offsets = [1, 0, 0], sizes = [1, 8, 8], strides = [1, 1, 1]} : vector<9x8x8xf32> to vector<1x8x8xf32>
    %843 = arith.mulf %836, %842 : vector<1x8x8xf32>
    %cst_206 = arith.constant dense<0.000000e+00> : vector<1x8xf32>
    %844 = vector.multi_reduction <add>, %843, %cst_206 [2] : vector<1x8x8xf32> to vector<1x8xf32>
    %845 = vector.shape_cast %844 : vector<1x8xf32> to vector<1x8x1xf32>
    %846 = vector.extract_strided_slice %8 {offsets = [2, 0, 0], sizes = [1, 8, 8], strides = [1, 1, 1]} : vector<9x8x8xf32> to vector<1x8x8xf32>
    %847 = arith.mulf %836, %846 : vector<1x8x8xf32>
    %cst_207 = arith.constant dense<0.000000e+00> : vector<1x8xf32>
    %848 = vector.multi_reduction <add>, %847, %cst_207 [2] : vector<1x8x8xf32> to vector<1x8xf32>
    %849 = vector.shape_cast %848 : vector<1x8xf32> to vector<1x8x1xf32>
    %850 = vector.extract_strided_slice %8 {offsets = [3, 0, 0], sizes = [1, 8, 8], strides = [1, 1, 1]} : vector<9x8x8xf32> to vector<1x8x8xf32>
    %851 = arith.mulf %836, %850 : vector<1x8x8xf32>
    %cst_208 = arith.constant dense<0.000000e+00> : vector<1x8xf32>
    %852 = vector.multi_reduction <add>, %851, %cst_208 [2] : vector<1x8x8xf32> to vector<1x8xf32>
    %853 = vector.shape_cast %852 : vector<1x8xf32> to vector<1x8x1xf32>
    %854 = vector.extract_strided_slice %8 {offsets = [4, 0, 0], sizes = [1, 8, 8], strides = [1, 1, 1]} : vector<9x8x8xf32> to vector<1x8x8xf32>
    %855 = arith.mulf %836, %854 : vector<1x8x8xf32>
    %cst_209 = arith.constant dense<0.000000e+00> : vector<1x8xf32>
    %856 = vector.multi_reduction <add>, %855, %cst_209 [2] : vector<1x8x8xf32> to vector<1x8xf32>
    %857 = vector.shape_cast %856 : vector<1x8xf32> to vector<1x8x1xf32>
    %858 = vector.extract_strided_slice %8 {offsets = [5, 0, 0], sizes = [1, 8, 8], strides = [1, 1, 1]} : vector<9x8x8xf32> to vector<1x8x8xf32>
    %859 = arith.mulf %836, %858 : vector<1x8x8xf32>
    %cst_210 = arith.constant dense<0.000000e+00> : vector<1x8xf32>
    %860 = vector.multi_reduction <add>, %859, %cst_210 [2] : vector<1x8x8xf32> to vector<1x8xf32>
    %861 = vector.shape_cast %860 : vector<1x8xf32> to vector<1x8x1xf32>
    %862 = vector.extract_strided_slice %8 {offsets = [6, 0, 0], sizes = [1, 8, 8], strides = [1, 1, 1]} : vector<9x8x8xf32> to vector<1x8x8xf32>
    %863 = arith.mulf %836, %862 : vector<1x8x8xf32>
    %cst_211 = arith.constant dense<0.000000e+00> : vector<1x8xf32>
    %864 = vector.multi_reduction <add>, %863, %cst_211 [2] : vector<1x8x8xf32> to vector<1x8xf32>
    %865 = vector.shape_cast %864 : vector<1x8xf32> to vector<1x8x1xf32>
    %866 = vector.extract_strided_slice %8 {offsets = [7, 0, 0], sizes = [1, 8, 8], strides = [1, 1, 1]} : vector<9x8x8xf32> to vector<1x8x8xf32>
    %867 = arith.mulf %836, %866 : vector<1x8x8xf32>
    %cst_212 = arith.constant dense<0.000000e+00> : vector<1x8xf32>
    %868 = vector.multi_reduction <add>, %867, %cst_212 [2] : vector<1x8x8xf32> to vector<1x8xf32>
    %869 = vector.shape_cast %868 : vector<1x8xf32> to vector<1x8x1xf32>
    %870 = vector.extract_strided_slice %8 {offsets = [8, 0, 0], sizes = [1, 8, 8], strides = [1, 1, 1]} : vector<9x8x8xf32> to vector<1x8x8xf32>
    %871 = arith.mulf %836, %870 : vector<1x8x8xf32>
    %cst_213 = arith.constant dense<0.000000e+00> : vector<1x8xf32>
    %872 = vector.multi_reduction <add>, %871, %cst_213 [2] : vector<1x8x8xf32> to vector<1x8xf32>
    %873 = vector.shape_cast %872 : vector<1x8xf32> to vector<1x8x1xf32>
    %874 = tpu.concatenate %841, %845, %849, %853, %857, %861, %865, %869, %873 in 2 : vector<1x8x1xf32>, vector<1x8x1xf32>, vector<1x8x1xf32>, vector<1x8x1xf32>, vector<1x8x1xf32>, vector<1x8x1xf32>, vector<1x8x1xf32>, vector<1x8x1xf32>, vector<1x8x1xf32> -> vector<1x8x9xf32>
    %875 = vector.shape_cast %874 : vector<1x8x9xf32> to vector<8x9xf32>
    %cst_214 = arith.constant dense<0.000000e+00> : vector<8x8xf32>
    %876 = tpu.matmul %875, %7, %cst_214 {dimension_numbers = #tpu.dot_dimension_numbers<[1], [0], [0], [1], [0, 0, 1, 1], [], []>} : vector<8x9xf32>, vector<9x8xf32>, vector<8x8xf32> -> vector<8x8xf32>
    %877 = vector.shape_cast %876 : vector<8x8xf32> to vector<1x8x8xf32>
    %878 = arith.addf %837, %877 : vector<1x8x8xf32>
    %879 = vector.extract_strided_slice %662 {offsets = [0, 0, 16], sizes = [1, 8, 8], strides = [1, 1, 1]} : vector<1x8x32xf32> to vector<1x8x8xf32>
    %880 = vector.extract_strided_slice %664 {offsets = [0, 0, 16], sizes = [1, 8, 8], strides = [1, 1, 1]} : vector<1x8x32xf32> to vector<1x8x8xf32>
    %881 = vector.extract_strided_slice %666 {offsets = [0, 0, 16], sizes = [1, 8, 8], strides = [1, 1, 1]} : vector<1x8x32xf32> to vector<1x8x8xf32>
    "tpu.trace_start"() <{level = 10 : i32, message = "bqd,bkd->bqk"}> : () -> ()
    %cst_215 = arith.constant dense<0.000000e+00> : vector<1x8x8xf32>
    %882 = tpu.matmul %879, %880, %cst_215 {dimension_numbers = #tpu.dot_dimension_numbers<[2], [2], [1], [1], [0, 0, 0, 1, 1, 1], [0], [0]>} : vector<1x8x8xf32>, vector<1x8x8xf32>, vector<1x8x8xf32> -> vector<1x8x8xf32>
    "tpu.trace_stop"() : () -> ()
    %883 = vector.shape_cast %879 : vector<1x8x8xf32> to vector<8x8xf32>
    %cst_216 = arith.constant dense<0.000000e+00> : vector<8x9xf32>
    %884 = tpu.matmul %883, %6, %cst_216 {dimension_numbers = #tpu.dot_dimension_numbers<[1], [0], [0], [1], [0, 0, 1, 1], [], []>} : vector<8x8xf32>, vector<8x9xf32>, vector<8x9xf32> -> vector<8x9xf32>
    %885 = vector.shape_cast %884 : vector<8x9xf32> to vector<1x8x9xf32>
    %886 = vector.extract_strided_slice %885 {offsets = [0, 0, 0], sizes = [1, 8, 1], strides = [1, 1, 1]} : vector<1x8x9xf32> to vector<1x8x1xf32>
    %887 = vector.extract_strided_slice %8 {offsets = [0, 0, 0], sizes = [1, 8, 8], strides = [1, 1, 1]} : vector<9x8x8xf32> to vector<1x8x8xf32>
    %888 = vector.broadcast %886 : vector<1x8x1xf32> to vector<1x8x8xf32>
    %889 = arith.mulf %888, %887 : vector<1x8x8xf32>
    %890 = arith.addf %882, %889 : vector<1x8x8xf32>
    %891 = vector.extract_strided_slice %885 {offsets = [0, 0, 1], sizes = [1, 8, 1], strides = [1, 1, 1]} : vector<1x8x9xf32> to vector<1x8x1xf32>
    %892 = vector.extract_strided_slice %8 {offsets = [1, 0, 0], sizes = [1, 8, 8], strides = [1, 1, 1]} : vector<9x8x8xf32> to vector<1x8x8xf32>
    %893 = vector.broadcast %891 : vector<1x8x1xf32> to vector<1x8x8xf32>
    %894 = arith.mulf %893, %892 : vector<1x8x8xf32>
    %895 = arith.addf %890, %894 : vector<1x8x8xf32>
    %896 = vector.extract_strided_slice %885 {offsets = [0, 0, 2], sizes = [1, 8, 1], strides = [1, 1, 1]} : vector<1x8x9xf32> to vector<1x8x1xf32>
    %897 = vector.extract_strided_slice %8 {offsets = [2, 0, 0], sizes = [1, 8, 8], strides = [1, 1, 1]} : vector<9x8x8xf32> to vector<1x8x8xf32>
    %898 = vector.broadcast %896 : vector<1x8x1xf32> to vector<1x8x8xf32>
    %899 = arith.mulf %898, %897 : vector<1x8x8xf32>
    %900 = arith.addf %895, %899 : vector<1x8x8xf32>
    %901 = vector.extract_strided_slice %885 {offsets = [0, 0, 3], sizes = [1, 8, 1], strides = [1, 1, 1]} : vector<1x8x9xf32> to vector<1x8x1xf32>
    %902 = vector.extract_strided_slice %8 {offsets = [3, 0, 0], sizes = [1, 8, 8], strides = [1, 1, 1]} : vector<9x8x8xf32> to vector<1x8x8xf32>
    %903 = vector.broadcast %901 : vector<1x8x1xf32> to vector<1x8x8xf32>
    %904 = arith.mulf %903, %902 : vector<1x8x8xf32>
    %905 = arith.addf %900, %904 : vector<1x8x8xf32>
    %906 = vector.extract_strided_slice %885 {offsets = [0, 0, 4], sizes = [1, 8, 1], strides = [1, 1, 1]} : vector<1x8x9xf32> to vector<1x8x1xf32>
    %907 = vector.extract_strided_slice %8 {offsets = [4, 0, 0], sizes = [1, 8, 8], strides = [1, 1, 1]} : vector<9x8x8xf32> to vector<1x8x8xf32>
    %908 = vector.broadcast %906 : vector<1x8x1xf32> to vector<1x8x8xf32>
    %909 = arith.mulf %908, %907 : vector<1x8x8xf32>
    %910 = arith.addf %905, %909 : vector<1x8x8xf32>
    %911 = vector.extract_strided_slice %885 {offsets = [0, 0, 5], sizes = [1, 8, 1], strides = [1, 1, 1]} : vector<1x8x9xf32> to vector<1x8x1xf32>
    %912 = vector.extract_strided_slice %8 {offsets = [5, 0, 0], sizes = [1, 8, 8], strides = [1, 1, 1]} : vector<9x8x8xf32> to vector<1x8x8xf32>
    %913 = vector.broadcast %911 : vector<1x8x1xf32> to vector<1x8x8xf32>
    %914 = arith.mulf %913, %912 : vector<1x8x8xf32>
    %915 = arith.addf %910, %914 : vector<1x8x8xf32>
    %916 = vector.extract_strided_slice %885 {offsets = [0, 0, 6], sizes = [1, 8, 1], strides = [1, 1, 1]} : vector<1x8x9xf32> to vector<1x8x1xf32>
    %917 = vector.extract_strided_slice %8 {offsets = [6, 0, 0], sizes = [1, 8, 8], strides = [1, 1, 1]} : vector<9x8x8xf32> to vector<1x8x8xf32>
    %918 = vector.broadcast %916 : vector<1x8x1xf32> to vector<1x8x8xf32>
    %919 = arith.mulf %918, %917 : vector<1x8x8xf32>
    %920 = arith.addf %915, %919 : vector<1x8x8xf32>
    %921 = vector.extract_strided_slice %885 {offsets = [0, 0, 7], sizes = [1, 8, 1], strides = [1, 1, 1]} : vector<1x8x9xf32> to vector<1x8x1xf32>
    %922 = vector.extract_strided_slice %8 {offsets = [7, 0, 0], sizes = [1, 8, 8], strides = [1, 1, 1]} : vector<9x8x8xf32> to vector<1x8x8xf32>
    %923 = vector.broadcast %921 : vector<1x8x1xf32> to vector<1x8x8xf32>
    %924 = arith.mulf %923, %922 : vector<1x8x8xf32>
    %925 = arith.addf %920, %924 : vector<1x8x8xf32>
    %926 = vector.extract_strided_slice %885 {offsets = [0, 0, 8], sizes = [1, 8, 1], strides = [1, 1, 1]} : vector<1x8x9xf32> to vector<1x8x1xf32>
    %927 = vector.extract_strided_slice %8 {offsets = [8, 0, 0], sizes = [1, 8, 8], strides = [1, 1, 1]} : vector<9x8x8xf32> to vector<1x8x8xf32>
    %928 = vector.broadcast %926 : vector<1x8x1xf32> to vector<1x8x8xf32>
    %929 = arith.mulf %928, %927 : vector<1x8x8xf32>
    %930 = arith.addf %925, %929 : vector<1x8x8xf32>
    %931 = vector.broadcast %4 : vector<1x1x8xf32> to vector<1x8x8xf32>
    %932 = arith.addf %930, %931 : vector<1x8x8xf32>
    %cst_217 = arith.constant dense<0xFF800000> : vector<1x8xf32>
    %933 = vector.multi_reduction <maximumf>, %932, %cst_217 [2] : vector<1x8x8xf32> to vector<1x8xf32>
    %934 = vector.shape_cast %933 : vector<1x8xf32> to vector<1x8x1xf32>
    %935 = vector.broadcast %934 : vector<1x8x1xf32> to vector<1x8x8xf32>
    %936 = arith.subf %932, %935 : vector<1x8x8xf32>
    %937 = math.exp %936 : vector<1x8x8xf32>
    %cst_218 = arith.constant dense<0.000000e+00> : vector<1x8xf32>
    %938 = vector.multi_reduction <add>, %937, %cst_218 [2] : vector<1x8x8xf32> to vector<1x8xf32>
    %939 = vector.shape_cast %938 : vector<1x8xf32> to vector<1x8x1xf32>
    %940 = tpu.reciprocal %939 {approx = true} : vector<1x8x1xf32> -> vector<1x8x1xf32>
    %941 = vector.broadcast %940 : vector<1x8x1xf32> to vector<1x8x8xf32>
    %942 = arith.mulf %937, %941 : vector<1x8x8xf32>
    "tpu.trace_start"() <{level = 10 : i32, message = "bqk,bkd->bqd"}> : () -> ()
    %cst_219 = arith.constant dense<0.000000e+00> : vector<1x8x8xf32>
    %943 = tpu.matmul %942, %881, %cst_219 {dimension_numbers = #tpu.dot_dimension_numbers<[2], [1], [1], [2], [0, 0, 0, 1, 1, 2], [0], [0]>} : vector<1x8x8xf32>, vector<1x8x8xf32>, vector<1x8x8xf32> -> vector<1x8x8xf32>
    "tpu.trace_stop"() : () -> ()
    %944 = vector.extract_strided_slice %8 {offsets = [0, 0, 0], sizes = [1, 8, 8], strides = [1, 1, 1]} : vector<9x8x8xf32> to vector<1x8x8xf32>
    %945 = arith.mulf %942, %944 : vector<1x8x8xf32>
    %cst_220 = arith.constant dense<0.000000e+00> : vector<1x8xf32>
    %946 = vector.multi_reduction <add>, %945, %cst_220 [2] : vector<1x8x8xf32> to vector<1x8xf32>
    %947 = vector.shape_cast %946 : vector<1x8xf32> to vector<1x8x1xf32>
    %948 = vector.extract_strided_slice %8 {offsets = [1, 0, 0], sizes = [1, 8, 8], strides = [1, 1, 1]} : vector<9x8x8xf32> to vector<1x8x8xf32>
    %949 = arith.mulf %942, %948 : vector<1x8x8xf32>
    %cst_221 = arith.constant dense<0.000000e+00> : vector<1x8xf32>
    %950 = vector.multi_reduction <add>, %949, %cst_221 [2] : vector<1x8x8xf32> to vector<1x8xf32>
    %951 = vector.shape_cast %950 : vector<1x8xf32> to vector<1x8x1xf32>
    %952 = vector.extract_strided_slice %8 {offsets = [2, 0, 0], sizes = [1, 8, 8], strides = [1, 1, 1]} : vector<9x8x8xf32> to vector<1x8x8xf32>
    %953 = arith.mulf %942, %952 : vector<1x8x8xf32>
    %cst_222 = arith.constant dense<0.000000e+00> : vector<1x8xf32>
    %954 = vector.multi_reduction <add>, %953, %cst_222 [2] : vector<1x8x8xf32> to vector<1x8xf32>
    %955 = vector.shape_cast %954 : vector<1x8xf32> to vector<1x8x1xf32>
    %956 = vector.extract_strided_slice %8 {offsets = [3, 0, 0], sizes = [1, 8, 8], strides = [1, 1, 1]} : vector<9x8x8xf32> to vector<1x8x8xf32>
    %957 = arith.mulf %942, %956 : vector<1x8x8xf32>
    %cst_223 = arith.constant dense<0.000000e+00> : vector<1x8xf32>
    %958 = vector.multi_reduction <add>, %957, %cst_223 [2] : vector<1x8x8xf32> to vector<1x8xf32>
    %959 = vector.shape_cast %958 : vector<1x8xf32> to vector<1x8x1xf32>
    %960 = vector.extract_strided_slice %8 {offsets = [4, 0, 0], sizes = [1, 8, 8], strides = [1, 1, 1]} : vector<9x8x8xf32> to vector<1x8x8xf32>
    %961 = arith.mulf %942, %960 : vector<1x8x8xf32>
    %cst_224 = arith.constant dense<0.000000e+00> : vector<1x8xf32>
    %962 = vector.multi_reduction <add>, %961, %cst_224 [2] : vector<1x8x8xf32> to vector<1x8xf32>
    %963 = vector.shape_cast %962 : vector<1x8xf32> to vector<1x8x1xf32>
    %964 = vector.extract_strided_slice %8 {offsets = [5, 0, 0], sizes = [1, 8, 8], strides = [1, 1, 1]} : vector<9x8x8xf32> to vector<1x8x8xf32>
    %965 = arith.mulf %942, %964 : vector<1x8x8xf32>
    %cst_225 = arith.constant dense<0.000000e+00> : vector<1x8xf32>
    %966 = vector.multi_reduction <add>, %965, %cst_225 [2] : vector<1x8x8xf32> to vector<1x8xf32>
    %967 = vector.shape_cast %966 : vector<1x8xf32> to vector<1x8x1xf32>
    %968 = vector.extract_strided_slice %8 {offsets = [6, 0, 0], sizes = [1, 8, 8], strides = [1, 1, 1]} : vector<9x8x8xf32> to vector<1x8x8xf32>
    %969 = arith.mulf %942, %968 : vector<1x8x8xf32>
    %cst_226 = arith.constant dense<0.000000e+00> : vector<1x8xf32>
    %970 = vector.multi_reduction <add>, %969, %cst_226 [2] : vector<1x8x8xf32> to vector<1x8xf32>
    %971 = vector.shape_cast %970 : vector<1x8xf32> to vector<1x8x1xf32>
    %972 = vector.extract_strided_slice %8 {offsets = [7, 0, 0], sizes = [1, 8, 8], strides = [1, 1, 1]} : vector<9x8x8xf32> to vector<1x8x8xf32>
    %973 = arith.mulf %942, %972 : vector<1x8x8xf32>
    %cst_227 = arith.constant dense<0.000000e+00> : vector<1x8xf32>
    %974 = vector.multi_reduction <add>, %973, %cst_227 [2] : vector<1x8x8xf32> to vector<1x8xf32>
    %975 = vector.shape_cast %974 : vector<1x8xf32> to vector<1x8x1xf32>
    %976 = vector.extract_strided_slice %8 {offsets = [8, 0, 0], sizes = [1, 8, 8], strides = [1, 1, 1]} : vector<9x8x8xf32> to vector<1x8x8xf32>
    %977 = arith.mulf %942, %976 : vector<1x8x8xf32>
    %cst_228 = arith.constant dense<0.000000e+00> : vector<1x8xf32>
    %978 = vector.multi_reduction <add>, %977, %cst_228 [2] : vector<1x8x8xf32> to vector<1x8xf32>
    %979 = vector.shape_cast %978 : vector<1x8xf32> to vector<1x8x1xf32>
    %980 = tpu.concatenate %947, %951, %955, %959, %963, %967, %971, %975, %979 in 2 : vector<1x8x1xf32>, vector<1x8x1xf32>, vector<1x8x1xf32>, vector<1x8x1xf32>, vector<1x8x1xf32>, vector<1x8x1xf32>, vector<1x8x1xf32>, vector<1x8x1xf32>, vector<1x8x1xf32> -> vector<1x8x9xf32>
    %981 = vector.shape_cast %980 : vector<1x8x9xf32> to vector<8x9xf32>
    %cst_229 = arith.constant dense<0.000000e+00> : vector<8x8xf32>
    %982 = tpu.matmul %981, %7, %cst_229 {dimension_numbers = #tpu.dot_dimension_numbers<[1], [0], [0], [1], [0, 0, 1, 1], [], []>} : vector<8x9xf32>, vector<9x8xf32>, vector<8x8xf32> -> vector<8x8xf32>
    %983 = vector.shape_cast %982 : vector<8x8xf32> to vector<1x8x8xf32>
    %984 = arith.addf %943, %983 : vector<1x8x8xf32>
    %985 = vector.extract_strided_slice %662 {offsets = [0, 0, 24], sizes = [1, 8, 8], strides = [1, 1, 1]} : vector<1x8x32xf32> to vector<1x8x8xf32>
    %986 = vector.extract_strided_slice %664 {offsets = [0, 0, 24], sizes = [1, 8, 8], strides = [1, 1, 1]} : vector<1x8x32xf32> to vector<1x8x8xf32>
    %987 = vector.extract_strided_slice %666 {offsets = [0, 0, 24], sizes = [1, 8, 8], strides = [1, 1, 1]} : vector<1x8x32xf32> to vector<1x8x8xf32>
    "tpu.trace_start"() <{level = 10 : i32, message = "bqd,bkd->bqk"}> : () -> ()
    %cst_230 = arith.constant dense<0.000000e+00> : vector<1x8x8xf32>
    %988 = tpu.matmul %985, %986, %cst_230 {dimension_numbers = #tpu.dot_dimension_numbers<[2], [2], [1], [1], [0, 0, 0, 1, 1, 1], [0], [0]>} : vector<1x8x8xf32>, vector<1x8x8xf32>, vector<1x8x8xf32> -> vector<1x8x8xf32>
    "tpu.trace_stop"() : () -> ()
    %989 = vector.shape_cast %985 : vector<1x8x8xf32> to vector<8x8xf32>
    %cst_231 = arith.constant dense<0.000000e+00> : vector<8x9xf32>
    %990 = tpu.matmul %989, %6, %cst_231 {dimension_numbers = #tpu.dot_dimension_numbers<[1], [0], [0], [1], [0, 0, 1, 1], [], []>} : vector<8x8xf32>, vector<8x9xf32>, vector<8x9xf32> -> vector<8x9xf32>
    %991 = vector.shape_cast %990 : vector<8x9xf32> to vector<1x8x9xf32>
    %992 = vector.extract_strided_slice %991 {offsets = [0, 0, 0], sizes = [1, 8, 1], strides = [1, 1, 1]} : vector<1x8x9xf32> to vector<1x8x1xf32>
    %993 = vector.extract_strided_slice %8 {offsets = [0, 0, 0], sizes = [1, 8, 8], strides = [1, 1, 1]} : vector<9x8x8xf32> to vector<1x8x8xf32>
    %994 = vector.broadcast %992 : vector<1x8x1xf32> to vector<1x8x8xf32>
    %995 = arith.mulf %994, %993 : vector<1x8x8xf32>
    %996 = arith.addf %988, %995 : vector<1x8x8xf32>
    %997 = vector.extract_strided_slice %991 {offsets = [0, 0, 1], sizes = [1, 8, 1], strides = [1, 1, 1]} : vector<1x8x9xf32> to vector<1x8x1xf32>
    %998 = vector.extract_strided_slice %8 {offsets = [1, 0, 0], sizes = [1, 8, 8], strides = [1, 1, 1]} : vector<9x8x8xf32> to vector<1x8x8xf32>
    %999 = vector.broadcast %997 : vector<1x8x1xf32> to vector<1x8x8xf32>
    %1000 = arith.mulf %999, %998 : vector<1x8x8xf32>
    %1001 = arith.addf %996, %1000 : vector<1x8x8xf32>
    %1002 = vector.extract_strided_slice %991 {offsets = [0, 0, 2], sizes = [1, 8, 1], strides = [1, 1, 1]} : vector<1x8x9xf32> to vector<1x8x1xf32>
    %1003 = vector.extract_strided_slice %8 {offsets = [2, 0, 0], sizes = [1, 8, 8], strides = [1, 1, 1]} : vector<9x8x8xf32> to vector<1x8x8xf32>
    %1004 = vector.broadcast %1002 : vector<1x8x1xf32> to vector<1x8x8xf32>
    %1005 = arith.mulf %1004, %1003 : vector<1x8x8xf32>
    %1006 = arith.addf %1001, %1005 : vector<1x8x8xf32>
    %1007 = vector.extract_strided_slice %991 {offsets = [0, 0, 3], sizes = [1, 8, 1], strides = [1, 1, 1]} : vector<1x8x9xf32> to vector<1x8x1xf32>
    %1008 = vector.extract_strided_slice %8 {offsets = [3, 0, 0], sizes = [1, 8, 8], strides = [1, 1, 1]} : vector<9x8x8xf32> to vector<1x8x8xf32>
    %1009 = vector.broadcast %1007 : vector<1x8x1xf32> to vector<1x8x8xf32>
    %1010 = arith.mulf %1009, %1008 : vector<1x8x8xf32>
    %1011 = arith.addf %1006, %1010 : vector<1x8x8xf32>
    %1012 = vector.extract_strided_slice %991 {offsets = [0, 0, 4], sizes = [1, 8, 1], strides = [1, 1, 1]} : vector<1x8x9xf32> to vector<1x8x1xf32>
    %1013 = vector.extract_strided_slice %8 {offsets = [4, 0, 0], sizes = [1, 8, 8], strides = [1, 1, 1]} : vector<9x8x8xf32> to vector<1x8x8xf32>
    %1014 = vector.broadcast %1012 : vector<1x8x1xf32> to vector<1x8x8xf32>
    %1015 = arith.mulf %1014, %1013 : vector<1x8x8xf32>
    %1016 = arith.addf %1011, %1015 : vector<1x8x8xf32>
    %1017 = vector.extract_strided_slice %991 {offsets = [0, 0, 5], sizes = [1, 8, 1], strides = [1, 1, 1]} : vector<1x8x9xf32> to vector<1x8x1xf32>
    %1018 = vector.extract_strided_slice %8 {offsets = [5, 0, 0], sizes = [1, 8, 8], strides = [1, 1, 1]} : vector<9x8x8xf32> to vector<1x8x8xf32>
    %1019 = vector.broadcast %1017 : vector<1x8x1xf32> to vector<1x8x8xf32>
    %1020 = arith.mulf %1019, %1018 : vector<1x8x8xf32>
    %1021 = arith.addf %1016, %1020 : vector<1x8x8xf32>
    %1022 = vector.extract_strided_slice %991 {offsets = [0, 0, 6], sizes = [1, 8, 1], strides = [1, 1, 1]} : vector<1x8x9xf32> to vector<1x8x1xf32>
    %1023 = vector.extract_strided_slice %8 {offsets = [6, 0, 0], sizes = [1, 8, 8], strides = [1, 1, 1]} : vector<9x8x8xf32> to vector<1x8x8xf32>
    %1024 = vector.broadcast %1022 : vector<1x8x1xf32> to vector<1x8x8xf32>
    %1025 = arith.mulf %1024, %1023 : vector<1x8x8xf32>
    %1026 = arith.addf %1021, %1025 : vector<1x8x8xf32>
    %1027 = vector.extract_strided_slice %991 {offsets = [0, 0, 7], sizes = [1, 8, 1], strides = [1, 1, 1]} : vector<1x8x9xf32> to vector<1x8x1xf32>
    %1028 = vector.extract_strided_slice %8 {offsets = [7, 0, 0], sizes = [1, 8, 8], strides = [1, 1, 1]} : vector<9x8x8xf32> to vector<1x8x8xf32>
    %1029 = vector.broadcast %1027 : vector<1x8x1xf32> to vector<1x8x8xf32>
    %1030 = arith.mulf %1029, %1028 : vector<1x8x8xf32>
    %1031 = arith.addf %1026, %1030 : vector<1x8x8xf32>
    %1032 = vector.extract_strided_slice %991 {offsets = [0, 0, 8], sizes = [1, 8, 1], strides = [1, 1, 1]} : vector<1x8x9xf32> to vector<1x8x1xf32>
    %1033 = vector.extract_strided_slice %8 {offsets = [8, 0, 0], sizes = [1, 8, 8], strides = [1, 1, 1]} : vector<9x8x8xf32> to vector<1x8x8xf32>
    %1034 = vector.broadcast %1032 : vector<1x8x1xf32> to vector<1x8x8xf32>
    %1035 = arith.mulf %1034, %1033 : vector<1x8x8xf32>
    %1036 = arith.addf %1031, %1035 : vector<1x8x8xf32>
    %1037 = vector.broadcast %4 : vector<1x1x8xf32> to vector<1x8x8xf32>
    %1038 = arith.addf %1036, %1037 : vector<1x8x8xf32>
    %cst_232 = arith.constant dense<0xFF800000> : vector<1x8xf32>
    %1039 = vector.multi_reduction <maximumf>, %1038, %cst_232 [2] : vector<1x8x8xf32> to vector<1x8xf32>
    %1040 = vector.shape_cast %1039 : vector<1x8xf32> to vector<1x8x1xf32>
    %1041 = vector.broadcast %1040 : vector<1x8x1xf32> to vector<1x8x8xf32>
    %1042 = arith.subf %1038, %1041 : vector<1x8x8xf32>
    %1043 = math.exp %1042 : vector<1x8x8xf32>
    %cst_233 = arith.constant dense<0.000000e+00> : vector<1x8xf32>
    %1044 = vector.multi_reduction <add>, %1043, %cst_233 [2] : vector<1x8x8xf32> to vector<1x8xf32>
    %1045 = vector.shape_cast %1044 : vector<1x8xf32> to vector<1x8x1xf32>
    %1046 = tpu.reciprocal %1045 {approx = true} : vector<1x8x1xf32> -> vector<1x8x1xf32>
    %1047 = vector.broadcast %1046 : vector<1x8x1xf32> to vector<1x8x8xf32>
    %1048 = arith.mulf %1043, %1047 : vector<1x8x8xf32>
    "tpu.trace_start"() <{level = 10 : i32, message = "bqk,bkd->bqd"}> : () -> ()
    %cst_234 = arith.constant dense<0.000000e+00> : vector<1x8x8xf32>
    %1049 = tpu.matmul %1048, %987, %cst_234 {dimension_numbers = #tpu.dot_dimension_numbers<[2], [1], [1], [2], [0, 0, 0, 1, 1, 2], [0], [0]>} : vector<1x8x8xf32>, vector<1x8x8xf32>, vector<1x8x8xf32> -> vector<1x8x8xf32>
    "tpu.trace_stop"() : () -> ()
    %1050 = vector.extract_strided_slice %8 {offsets = [0, 0, 0], sizes = [1, 8, 8], strides = [1, 1, 1]} : vector<9x8x8xf32> to vector<1x8x8xf32>
    %1051 = arith.mulf %1048, %1050 : vector<1x8x8xf32>
    %cst_235 = arith.constant dense<0.000000e+00> : vector<1x8xf32>
    %1052 = vector.multi_reduction <add>, %1051, %cst_235 [2] : vector<1x8x8xf32> to vector<1x8xf32>
    %1053 = vector.shape_cast %1052 : vector<1x8xf32> to vector<1x8x1xf32>
    %1054 = vector.extract_strided_slice %8 {offsets = [1, 0, 0], sizes = [1, 8, 8], strides = [1, 1, 1]} : vector<9x8x8xf32> to vector<1x8x8xf32>
    %1055 = arith.mulf %1048, %1054 : vector<1x8x8xf32>
    %cst_236 = arith.constant dense<0.000000e+00> : vector<1x8xf32>
    %1056 = vector.multi_reduction <add>, %1055, %cst_236 [2] : vector<1x8x8xf32> to vector<1x8xf32>
    %1057 = vector.shape_cast %1056 : vector<1x8xf32> to vector<1x8x1xf32>
    %1058 = vector.extract_strided_slice %8 {offsets = [2, 0, 0], sizes = [1, 8, 8], strides = [1, 1, 1]} : vector<9x8x8xf32> to vector<1x8x8xf32>
    %1059 = arith.mulf %1048, %1058 : vector<1x8x8xf32>
    %cst_237 = arith.constant dense<0.000000e+00> : vector<1x8xf32>
    %1060 = vector.multi_reduction <add>, %1059, %cst_237 [2] : vector<1x8x8xf32> to vector<1x8xf32>
    %1061 = vector.shape_cast %1060 : vector<1x8xf32> to vector<1x8x1xf32>
    %1062 = vector.extract_strided_slice %8 {offsets = [3, 0, 0], sizes = [1, 8, 8], strides = [1, 1, 1]} : vector<9x8x8xf32> to vector<1x8x8xf32>
    %1063 = arith.mulf %1048, %1062 : vector<1x8x8xf32>
    %cst_238 = arith.constant dense<0.000000e+00> : vector<1x8xf32>
    %1064 = vector.multi_reduction <add>, %1063, %cst_238 [2] : vector<1x8x8xf32> to vector<1x8xf32>
    %1065 = vector.shape_cast %1064 : vector<1x8xf32> to vector<1x8x1xf32>
    %1066 = vector.extract_strided_slice %8 {offsets = [4, 0, 0], sizes = [1, 8, 8], strides = [1, 1, 1]} : vector<9x8x8xf32> to vector<1x8x8xf32>
    %1067 = arith.mulf %1048, %1066 : vector<1x8x8xf32>
    %cst_239 = arith.constant dense<0.000000e+00> : vector<1x8xf32>
    %1068 = vector.multi_reduction <add>, %1067, %cst_239 [2] : vector<1x8x8xf32> to vector<1x8xf32>
    %1069 = vector.shape_cast %1068 : vector<1x8xf32> to vector<1x8x1xf32>
    %1070 = vector.extract_strided_slice %8 {offsets = [5, 0, 0], sizes = [1, 8, 8], strides = [1, 1, 1]} : vector<9x8x8xf32> to vector<1x8x8xf32>
    %1071 = arith.mulf %1048, %1070 : vector<1x8x8xf32>
    %cst_240 = arith.constant dense<0.000000e+00> : vector<1x8xf32>
    %1072 = vector.multi_reduction <add>, %1071, %cst_240 [2] : vector<1x8x8xf32> to vector<1x8xf32>
    %1073 = vector.shape_cast %1072 : vector<1x8xf32> to vector<1x8x1xf32>
    %1074 = vector.extract_strided_slice %8 {offsets = [6, 0, 0], sizes = [1, 8, 8], strides = [1, 1, 1]} : vector<9x8x8xf32> to vector<1x8x8xf32>
    %1075 = arith.mulf %1048, %1074 : vector<1x8x8xf32>
    %cst_241 = arith.constant dense<0.000000e+00> : vector<1x8xf32>
    %1076 = vector.multi_reduction <add>, %1075, %cst_241 [2] : vector<1x8x8xf32> to vector<1x8xf32>
    %1077 = vector.shape_cast %1076 : vector<1x8xf32> to vector<1x8x1xf32>
    %1078 = vector.extract_strided_slice %8 {offsets = [7, 0, 0], sizes = [1, 8, 8], strides = [1, 1, 1]} : vector<9x8x8xf32> to vector<1x8x8xf32>
    %1079 = arith.mulf %1048, %1078 : vector<1x8x8xf32>
    %cst_242 = arith.constant dense<0.000000e+00> : vector<1x8xf32>
    %1080 = vector.multi_reduction <add>, %1079, %cst_242 [2] : vector<1x8x8xf32> to vector<1x8xf32>
    %1081 = vector.shape_cast %1080 : vector<1x8xf32> to vector<1x8x1xf32>
    %1082 = vector.extract_strided_slice %8 {offsets = [8, 0, 0], sizes = [1, 8, 8], strides = [1, 1, 1]} : vector<9x8x8xf32> to vector<1x8x8xf32>
    %1083 = arith.mulf %1048, %1082 : vector<1x8x8xf32>
    %cst_243 = arith.constant dense<0.000000e+00> : vector<1x8xf32>
    %1084 = vector.multi_reduction <add>, %1083, %cst_243 [2] : vector<1x8x8xf32> to vector<1x8xf32>
    %1085 = vector.shape_cast %1084 : vector<1x8xf32> to vector<1x8x1xf32>
    %1086 = tpu.concatenate %1053, %1057, %1061, %1065, %1069, %1073, %1077, %1081, %1085 in 2 : vector<1x8x1xf32>, vector<1x8x1xf32>, vector<1x8x1xf32>, vector<1x8x1xf32>, vector<1x8x1xf32>, vector<1x8x1xf32>, vector<1x8x1xf32>, vector<1x8x1xf32>, vector<1x8x1xf32> -> vector<1x8x9xf32>
    %1087 = vector.shape_cast %1086 : vector<1x8x9xf32> to vector<8x9xf32>
    %cst_244 = arith.constant dense<0.000000e+00> : vector<8x8xf32>
    %1088 = tpu.matmul %1087, %7, %cst_244 {dimension_numbers = #tpu.dot_dimension_numbers<[1], [0], [0], [1], [0, 0, 1, 1], [], []>} : vector<8x9xf32>, vector<9x8xf32>, vector<8x8xf32> -> vector<8x8xf32>
    %1089 = vector.shape_cast %1088 : vector<8x8xf32> to vector<1x8x8xf32>
    %1090 = arith.addf %1049, %1089 : vector<1x8x8xf32>
    %1091 = tpu.concatenate %772, %878, %984, %1090 in 2 : vector<1x8x8xf32>, vector<1x8x8xf32>, vector<1x8x8xf32>, vector<1x8x8xf32> -> vector<1x8x32xf32>
    %1092 = vector.shape_cast %1091 : vector<1x8x32xf32> to vector<8x32xf32>
    %c1_245 = arith.constant 1 : index
    %c0_246 = arith.constant 0 : index
    %c0_247 = arith.constant 0 : index
    %1093 = vector.load %arg10[%c1_245, %c0_246, %c0_247] : memref<2x32x32xf32, #tpu.memory_space<vmem>>, vector<1x32x32xf32>
    %1094 = vector.shape_cast %1093 : vector<1x32x32xf32> to vector<32x32xf32>
    %cst_248 = arith.constant dense<0.000000e+00> : vector<8x32xf32>
    %1095 = tpu.matmul %1092, %1094, %cst_248 {dimension_numbers = #tpu.dot_dimension_numbers<[1], [0], [0], [1], [0, 0, 1, 1], [], []>} : vector<8x32xf32>, vector<32x32xf32>, vector<8x32xf32> -> vector<8x32xf32>
    %c1_249 = arith.constant 1 : index
    %c0_250 = arith.constant 0 : index
    %c0_251 = arith.constant 0 : index
    %1096 = vector.load %arg11[%c1_249, %c0_250, %c0_251] : memref<2x1x32xf32, #tpu.memory_space<vmem>>, vector<1x1x32xf32>
    %1097 = vector.shape_cast %1096 : vector<1x1x32xf32> to vector<1x32xf32>
    %1098 = vector.broadcast %1097 : vector<1x32xf32> to vector<8x32xf32>
    %1099 = arith.addf %1095, %1098 : vector<8x32xf32>
    %1100 = arith.addf %1099, %651 : vector<8x32xf32>
    %c1_252 = arith.constant 1 : index
    %c0_253 = arith.constant 0 : index
    %c0_254 = arith.constant 0 : index
    %1101 = vector.load %arg22[%c1_252, %c0_253, %c0_254] : memref<2x1x32xf32, #tpu.memory_space<vmem>>, vector<1x1x32xf32>
    %1102 = vector.shape_cast %1101 : vector<1x1x32xf32> to vector<1x32xf32>
    %c1_255 = arith.constant 1 : index
    %c0_256 = arith.constant 0 : index
    %c0_257 = arith.constant 0 : index
    %1103 = vector.load %arg23[%c1_255, %c0_256, %c0_257] : memref<2x1x32xf32, #tpu.memory_space<vmem>>, vector<1x1x32xf32>
    %1104 = vector.shape_cast %1103 : vector<1x1x32xf32> to vector<1x32xf32>
    %cst_258 = arith.constant dense<0.000000e+00> : vector<8xf32>
    %1105 = vector.multi_reduction <add>, %1100, %cst_258 [1] : vector<8x32xf32> to vector<8xf32>
    %1106 = vector.shape_cast %1105 : vector<8xf32> to vector<8x1xf32>
    %cst_259 = arith.constant 3.200000e+01 : f32
    %1107 = vector.broadcast %cst_259 : f32 to vector<8x1xf32>
    %1108 = arith.divf %1106, %1107 : vector<8x1xf32>
    %1109 = vector.broadcast %1108 : vector<8x1xf32> to vector<8x32xf32>
    %1110 = arith.subf %1100, %1109 : vector<8x32xf32>
    %1111 = arith.mulf %1110, %1110 : vector<8x32xf32>
    %cst_260 = arith.constant dense<0.000000e+00> : vector<8xf32>
    %1112 = vector.multi_reduction <add>, %1111, %cst_260 [1] : vector<8x32xf32> to vector<8xf32>
    %1113 = vector.shape_cast %1112 : vector<8xf32> to vector<8x1xf32>
    %cst_261 = arith.constant 3.200000e+01 : f32
    %1114 = vector.broadcast %cst_261 : f32 to vector<8x1xf32>
    %1115 = arith.divf %1113, %1114 : vector<8x1xf32>
    %1116 = vector.broadcast %1108 : vector<8x1xf32> to vector<8x32xf32>
    %1117 = arith.subf %1100, %1116 : vector<8x32xf32>
    %cst_262 = arith.constant 9.99999974E-6 : f32
    %1118 = vector.broadcast %cst_262 : f32 to vector<8x1xf32>
    %1119 = arith.addf %1115, %1118 : vector<8x1xf32>
    %1120 = math.rsqrt %1119 : vector<8x1xf32>
    %1121 = vector.broadcast %1120 : vector<8x1xf32> to vector<8x32xf32>
    %1122 = arith.mulf %1117, %1121 : vector<8x32xf32>
    %1123 = vector.broadcast %1102 : vector<1x32xf32> to vector<8x32xf32>
    %1124 = arith.mulf %1122, %1123 : vector<8x32xf32>
    %1125 = vector.broadcast %1104 : vector<1x32xf32> to vector<8x32xf32>
    %1126 = arith.addf %1124, %1125 : vector<8x32xf32>
    %c1_263 = arith.constant 1 : index
    %c0_264 = arith.constant 0 : index
    %c0_265 = arith.constant 0 : index
    %1127 = vector.load %arg12[%c1_263, %c0_264, %c0_265] : memref<2x32x32xf32, #tpu.memory_space<vmem>>, vector<1x32x32xf32>
    %1128 = vector.shape_cast %1127 : vector<1x32x32xf32> to vector<32x32xf32>
    %cst_266 = arith.constant dense<0.000000e+00> : vector<8x32xf32>
    %1129 = tpu.matmul %1126, %1128, %cst_266 {dimension_numbers = #tpu.dot_dimension_numbers<[1], [0], [0], [1], [0, 0, 1, 1], [], []>} : vector<8x32xf32>, vector<32x32xf32>, vector<8x32xf32> -> vector<8x32xf32>
    %c1_267 = arith.constant 1 : index
    %c0_268 = arith.constant 0 : index
    %c0_269 = arith.constant 0 : index
    %1130 = vector.load %arg13[%c1_267, %c0_268, %c0_269] : memref<2x1x32xf32, #tpu.memory_space<vmem>>, vector<1x1x32xf32>
    %1131 = vector.shape_cast %1130 : vector<1x1x32xf32> to vector<1x32xf32>
    %1132 = vector.broadcast %1131 : vector<1x32xf32> to vector<8x32xf32>
    %1133 = arith.addf %1129, %1132 : vector<8x32xf32>
    %c1_270 = arith.constant 1 : index
    %c0_271 = arith.constant 0 : index
    %c0_272 = arith.constant 0 : index
    %1134 = vector.load %arg14[%c1_270, %c0_271, %c0_272] : memref<2x32x64xf32, #tpu.memory_space<vmem>>, vector<1x32x64xf32>
    %1135 = vector.shape_cast %1134 : vector<1x32x64xf32> to vector<32x64xf32>
    %cst_273 = arith.constant dense<0.000000e+00> : vector<8x64xf32>
    %1136 = tpu.matmul %3, %1135, %cst_273 {dimension_numbers = #tpu.dot_dimension_numbers<[1], [0], [0], [1], [0, 0, 1, 1], [], []>} : vector<8x32xf32>, vector<32x64xf32>, vector<8x64xf32> -> vector<8x64xf32>
    %c1_274 = arith.constant 1 : index
    %c0_275 = arith.constant 0 : index
    %c0_276 = arith.constant 0 : index
    %1137 = vector.load %arg15[%c1_274, %c0_275, %c0_276] : memref<2x1x64xf32, #tpu.memory_space<vmem>>, vector<1x1x64xf32>
    %1138 = vector.shape_cast %1137 : vector<1x1x64xf32> to vector<1x64xf32>
    %1139 = vector.broadcast %1138 : vector<1x64xf32> to vector<8x64xf32>
    %1140 = arith.addf %1136, %1139 : vector<8x64xf32>
    %cst_277 = arith.constant 0.353553385 : f32
    %1141 = vector.broadcast %cst_277 : f32 to vector<8x32xf32>
    %1142 = arith.mulf %1133, %1141 : vector<8x32xf32>
    %1143 = vector.shape_cast %1142 : vector<8x32xf32> to vector<1x8x32xf32>
    %1144 = vector.extract_strided_slice %1140 {offsets = [0, 0], sizes = [8, 32], strides = [1, 1]} : vector<8x64xf32> to vector<8x32xf32>
    %1145 = vector.shape_cast %1144 : vector<8x32xf32> to vector<1x8x32xf32>
    %1146 = vector.extract_strided_slice %1140 {offsets = [0, 32], sizes = [8, 32], strides = [1, 1]} : vector<8x64xf32> to vector<8x32xf32>
    %1147 = vector.shape_cast %1146 : vector<8x32xf32> to vector<1x8x32xf32>
    %1148 = vector.extract_strided_slice %1143 {offsets = [0, 0, 0], sizes = [1, 8, 8], strides = [1, 1, 1]} : vector<1x8x32xf32> to vector<1x8x8xf32>
    %1149 = vector.extract_strided_slice %1145 {offsets = [0, 0, 0], sizes = [1, 8, 8], strides = [1, 1, 1]} : vector<1x8x32xf32> to vector<1x8x8xf32>
    %1150 = vector.extract_strided_slice %1147 {offsets = [0, 0, 0], sizes = [1, 8, 8], strides = [1, 1, 1]} : vector<1x8x32xf32> to vector<1x8x8xf32>
    "tpu.trace_start"() <{level = 10 : i32, message = "bqd,bkd->bqk"}> : () -> ()
    %cst_278 = arith.constant dense<0.000000e+00> : vector<1x8x8xf32>
    %1151 = tpu.matmul %1148, %1149, %cst_278 {dimension_numbers = #tpu.dot_dimension_numbers<[2], [2], [1], [1], [0, 0, 0, 1, 1, 1], [0], [0]>} : vector<1x8x8xf32>, vector<1x8x8xf32>, vector<1x8x8xf32> -> vector<1x8x8xf32>
    "tpu.trace_stop"() : () -> ()
    %1152 = vector.broadcast %5 : vector<1x1x8xf32> to vector<1x8x8xf32>
    %1153 = arith.addf %1151, %1152 : vector<1x8x8xf32>
    %cst_279 = arith.constant dense<0xFF800000> : vector<1x8xf32>
    %1154 = vector.multi_reduction <maximumf>, %1153, %cst_279 [2] : vector<1x8x8xf32> to vector<1x8xf32>
    %1155 = vector.shape_cast %1154 : vector<1x8xf32> to vector<1x8x1xf32>
    %1156 = vector.broadcast %1155 : vector<1x8x1xf32> to vector<1x8x8xf32>
    %1157 = arith.subf %1153, %1156 : vector<1x8x8xf32>
    %1158 = math.exp %1157 : vector<1x8x8xf32>
    %cst_280 = arith.constant dense<0.000000e+00> : vector<1x8xf32>
    %1159 = vector.multi_reduction <add>, %1158, %cst_280 [2] : vector<1x8x8xf32> to vector<1x8xf32>
    %1160 = vector.shape_cast %1159 : vector<1x8xf32> to vector<1x8x1xf32>
    %1161 = tpu.reciprocal %1160 {approx = true} : vector<1x8x1xf32> -> vector<1x8x1xf32>
    %1162 = vector.broadcast %1161 : vector<1x8x1xf32> to vector<1x8x8xf32>
    %1163 = arith.mulf %1158, %1162 : vector<1x8x8xf32>
    "tpu.trace_start"() <{level = 10 : i32, message = "bqk,bkd->bqd"}> : () -> ()
    %cst_281 = arith.constant dense<0.000000e+00> : vector<1x8x8xf32>
    %1164 = tpu.matmul %1163, %1150, %cst_281 {dimension_numbers = #tpu.dot_dimension_numbers<[2], [1], [1], [2], [0, 0, 0, 1, 1, 2], [0], [0]>} : vector<1x8x8xf32>, vector<1x8x8xf32>, vector<1x8x8xf32> -> vector<1x8x8xf32>
    "tpu.trace_stop"() : () -> ()
    %1165 = vector.extract_strided_slice %1143 {offsets = [0, 0, 8], sizes = [1, 8, 8], strides = [1, 1, 1]} : vector<1x8x32xf32> to vector<1x8x8xf32>
    %1166 = vector.extract_strided_slice %1145 {offsets = [0, 0, 8], sizes = [1, 8, 8], strides = [1, 1, 1]} : vector<1x8x32xf32> to vector<1x8x8xf32>
    %1167 = vector.extract_strided_slice %1147 {offsets = [0, 0, 8], sizes = [1, 8, 8], strides = [1, 1, 1]} : vector<1x8x32xf32> to vector<1x8x8xf32>
    "tpu.trace_start"() <{level = 10 : i32, message = "bqd,bkd->bqk"}> : () -> ()
    %cst_282 = arith.constant dense<0.000000e+00> : vector<1x8x8xf32>
    %1168 = tpu.matmul %1165, %1166, %cst_282 {dimension_numbers = #tpu.dot_dimension_numbers<[2], [2], [1], [1], [0, 0, 0, 1, 1, 1], [0], [0]>} : vector<1x8x8xf32>, vector<1x8x8xf32>, vector<1x8x8xf32> -> vector<1x8x8xf32>
    "tpu.trace_stop"() : () -> ()
    %1169 = vector.broadcast %5 : vector<1x1x8xf32> to vector<1x8x8xf32>
    %1170 = arith.addf %1168, %1169 : vector<1x8x8xf32>
    %cst_283 = arith.constant dense<0xFF800000> : vector<1x8xf32>
    %1171 = vector.multi_reduction <maximumf>, %1170, %cst_283 [2] : vector<1x8x8xf32> to vector<1x8xf32>
    %1172 = vector.shape_cast %1171 : vector<1x8xf32> to vector<1x8x1xf32>
    %1173 = vector.broadcast %1172 : vector<1x8x1xf32> to vector<1x8x8xf32>
    %1174 = arith.subf %1170, %1173 : vector<1x8x8xf32>
    %1175 = math.exp %1174 : vector<1x8x8xf32>
    %cst_284 = arith.constant dense<0.000000e+00> : vector<1x8xf32>
    %1176 = vector.multi_reduction <add>, %1175, %cst_284 [2] : vector<1x8x8xf32> to vector<1x8xf32>
    %1177 = vector.shape_cast %1176 : vector<1x8xf32> to vector<1x8x1xf32>
    %1178 = tpu.reciprocal %1177 {approx = true} : vector<1x8x1xf32> -> vector<1x8x1xf32>
    %1179 = vector.broadcast %1178 : vector<1x8x1xf32> to vector<1x8x8xf32>
    %1180 = arith.mulf %1175, %1179 : vector<1x8x8xf32>
    "tpu.trace_start"() <{level = 10 : i32, message = "bqk,bkd->bqd"}> : () -> ()
    %cst_285 = arith.constant dense<0.000000e+00> : vector<1x8x8xf32>
    %1181 = tpu.matmul %1180, %1167, %cst_285 {dimension_numbers = #tpu.dot_dimension_numbers<[2], [1], [1], [2], [0, 0, 0, 1, 1, 2], [0], [0]>} : vector<1x8x8xf32>, vector<1x8x8xf32>, vector<1x8x8xf32> -> vector<1x8x8xf32>
    "tpu.trace_stop"() : () -> ()
    %1182 = vector.extract_strided_slice %1143 {offsets = [0, 0, 16], sizes = [1, 8, 8], strides = [1, 1, 1]} : vector<1x8x32xf32> to vector<1x8x8xf32>
    %1183 = vector.extract_strided_slice %1145 {offsets = [0, 0, 16], sizes = [1, 8, 8], strides = [1, 1, 1]} : vector<1x8x32xf32> to vector<1x8x8xf32>
    %1184 = vector.extract_strided_slice %1147 {offsets = [0, 0, 16], sizes = [1, 8, 8], strides = [1, 1, 1]} : vector<1x8x32xf32> to vector<1x8x8xf32>
    "tpu.trace_start"() <{level = 10 : i32, message = "bqd,bkd->bqk"}> : () -> ()
    %cst_286 = arith.constant dense<0.000000e+00> : vector<1x8x8xf32>
    %1185 = tpu.matmul %1182, %1183, %cst_286 {dimension_numbers = #tpu.dot_dimension_numbers<[2], [2], [1], [1], [0, 0, 0, 1, 1, 1], [0], [0]>} : vector<1x8x8xf32>, vector<1x8x8xf32>, vector<1x8x8xf32> -> vector<1x8x8xf32>
    "tpu.trace_stop"() : () -> ()
    %1186 = vector.broadcast %5 : vector<1x1x8xf32> to vector<1x8x8xf32>
    %1187 = arith.addf %1185, %1186 : vector<1x8x8xf32>
    %cst_287 = arith.constant dense<0xFF800000> : vector<1x8xf32>
    %1188 = vector.multi_reduction <maximumf>, %1187, %cst_287 [2] : vector<1x8x8xf32> to vector<1x8xf32>
    %1189 = vector.shape_cast %1188 : vector<1x8xf32> to vector<1x8x1xf32>
    %1190 = vector.broadcast %1189 : vector<1x8x1xf32> to vector<1x8x8xf32>
    %1191 = arith.subf %1187, %1190 : vector<1x8x8xf32>
    %1192 = math.exp %1191 : vector<1x8x8xf32>
    %cst_288 = arith.constant dense<0.000000e+00> : vector<1x8xf32>
    %1193 = vector.multi_reduction <add>, %1192, %cst_288 [2] : vector<1x8x8xf32> to vector<1x8xf32>
    %1194 = vector.shape_cast %1193 : vector<1x8xf32> to vector<1x8x1xf32>
    %1195 = tpu.reciprocal %1194 {approx = true} : vector<1x8x1xf32> -> vector<1x8x1xf32>
    %1196 = vector.broadcast %1195 : vector<1x8x1xf32> to vector<1x8x8xf32>
    %1197 = arith.mulf %1192, %1196 : vector<1x8x8xf32>
    "tpu.trace_start"() <{level = 10 : i32, message = "bqk,bkd->bqd"}> : () -> ()
    %cst_289 = arith.constant dense<0.000000e+00> : vector<1x8x8xf32>
    %1198 = tpu.matmul %1197, %1184, %cst_289 {dimension_numbers = #tpu.dot_dimension_numbers<[2], [1], [1], [2], [0, 0, 0, 1, 1, 2], [0], [0]>} : vector<1x8x8xf32>, vector<1x8x8xf32>, vector<1x8x8xf32> -> vector<1x8x8xf32>
    "tpu.trace_stop"() : () -> ()
    %1199 = vector.extract_strided_slice %1143 {offsets = [0, 0, 24], sizes = [1, 8, 8], strides = [1, 1, 1]} : vector<1x8x32xf32> to vector<1x8x8xf32>
    %1200 = vector.extract_strided_slice %1145 {offsets = [0, 0, 24], sizes = [1, 8, 8], strides = [1, 1, 1]} : vector<1x8x32xf32> to vector<1x8x8xf32>
    %1201 = vector.extract_strided_slice %1147 {offsets = [0, 0, 24], sizes = [1, 8, 8], strides = [1, 1, 1]} : vector<1x8x32xf32> to vector<1x8x8xf32>
    "tpu.trace_start"() <{level = 10 : i32, message = "bqd,bkd->bqk"}> : () -> ()
    %cst_290 = arith.constant dense<0.000000e+00> : vector<1x8x8xf32>
    %1202 = tpu.matmul %1199, %1200, %cst_290 {dimension_numbers = #tpu.dot_dimension_numbers<[2], [2], [1], [1], [0, 0, 0, 1, 1, 1], [0], [0]>} : vector<1x8x8xf32>, vector<1x8x8xf32>, vector<1x8x8xf32> -> vector<1x8x8xf32>
    "tpu.trace_stop"() : () -> ()
    %1203 = vector.broadcast %5 : vector<1x1x8xf32> to vector<1x8x8xf32>
    %1204 = arith.addf %1202, %1203 : vector<1x8x8xf32>
    %cst_291 = arith.constant dense<0xFF800000> : vector<1x8xf32>
    %1205 = vector.multi_reduction <maximumf>, %1204, %cst_291 [2] : vector<1x8x8xf32> to vector<1x8xf32>
    %1206 = vector.shape_cast %1205 : vector<1x8xf32> to vector<1x8x1xf32>
    %1207 = vector.broadcast %1206 : vector<1x8x1xf32> to vector<1x8x8xf32>
    %1208 = arith.subf %1204, %1207 : vector<1x8x8xf32>
    %1209 = math.exp %1208 : vector<1x8x8xf32>
    %cst_292 = arith.constant dense<0.000000e+00> : vector<1x8xf32>
    %1210 = vector.multi_reduction <add>, %1209, %cst_292 [2] : vector<1x8x8xf32> to vector<1x8xf32>
    %1211 = vector.shape_cast %1210 : vector<1x8xf32> to vector<1x8x1xf32>
    %1212 = tpu.reciprocal %1211 {approx = true} : vector<1x8x1xf32> -> vector<1x8x1xf32>
    %1213 = vector.broadcast %1212 : vector<1x8x1xf32> to vector<1x8x8xf32>
    %1214 = arith.mulf %1209, %1213 : vector<1x8x8xf32>
    "tpu.trace_start"() <{level = 10 : i32, message = "bqk,bkd->bqd"}> : () -> ()
    %cst_293 = arith.constant dense<0.000000e+00> : vector<1x8x8xf32>
    %1215 = tpu.matmul %1214, %1201, %cst_293 {dimension_numbers = #tpu.dot_dimension_numbers<[2], [1], [1], [2], [0, 0, 0, 1, 1, 2], [0], [0]>} : vector<1x8x8xf32>, vector<1x8x8xf32>, vector<1x8x8xf32> -> vector<1x8x8xf32>
    "tpu.trace_stop"() : () -> ()
    %1216 = tpu.concatenate %1164, %1181, %1198, %1215 in 2 : vector<1x8x8xf32>, vector<1x8x8xf32>, vector<1x8x8xf32>, vector<1x8x8xf32> -> vector<1x8x32xf32>
    %1217 = vector.shape_cast %1216 : vector<1x8x32xf32> to vector<8x32xf32>
    %c1_294 = arith.constant 1 : index
    %c0_295 = arith.constant 0 : index
    %c0_296 = arith.constant 0 : index
    %1218 = vector.load %arg16[%c1_294, %c0_295, %c0_296] : memref<2x32x32xf32, #tpu.memory_space<vmem>>, vector<1x32x32xf32>
    %1219 = vector.shape_cast %1218 : vector<1x32x32xf32> to vector<32x32xf32>
    %cst_297 = arith.constant dense<0.000000e+00> : vector<8x32xf32>
    %1220 = tpu.matmul %1217, %1219, %cst_297 {dimension_numbers = #tpu.dot_dimension_numbers<[1], [0], [0], [1], [0, 0, 1, 1], [], []>} : vector<8x32xf32>, vector<32x32xf32>, vector<8x32xf32> -> vector<8x32xf32>
    %c1_298 = arith.constant 1 : index
    %c0_299 = arith.constant 0 : index
    %c0_300 = arith.constant 0 : index
    %1221 = vector.load %arg17[%c1_298, %c0_299, %c0_300] : memref<2x1x32xf32, #tpu.memory_space<vmem>>, vector<1x1x32xf32>
    %1222 = vector.shape_cast %1221 : vector<1x1x32xf32> to vector<1x32xf32>
    %1223 = vector.broadcast %1222 : vector<1x32xf32> to vector<8x32xf32>
    %1224 = arith.addf %1220, %1223 : vector<8x32xf32>
    %1225 = arith.addf %1224, %1126 : vector<8x32xf32>
    %c1_301 = arith.constant 1 : index
    %c0_302 = arith.constant 0 : index
    %c0_303 = arith.constant 0 : index
    %1226 = vector.load %arg24[%c1_301, %c0_302, %c0_303] : memref<2x1x32xf32, #tpu.memory_space<vmem>>, vector<1x1x32xf32>
    %1227 = vector.shape_cast %1226 : vector<1x1x32xf32> to vector<1x32xf32>
    %c1_304 = arith.constant 1 : index
    %c0_305 = arith.constant 0 : index
    %c0_306 = arith.constant 0 : index
    %1228 = vector.load %arg25[%c1_304, %c0_305, %c0_306] : memref<2x1x32xf32, #tpu.memory_space<vmem>>, vector<1x1x32xf32>
    %1229 = vector.shape_cast %1228 : vector<1x1x32xf32> to vector<1x32xf32>
    %cst_307 = arith.constant dense<0.000000e+00> : vector<8xf32>
    %1230 = vector.multi_reduction <add>, %1225, %cst_307 [1] : vector<8x32xf32> to vector<8xf32>
    %1231 = vector.shape_cast %1230 : vector<8xf32> to vector<8x1xf32>
    %cst_308 = arith.constant 3.200000e+01 : f32
    %1232 = vector.broadcast %cst_308 : f32 to vector<8x1xf32>
    %1233 = arith.divf %1231, %1232 : vector<8x1xf32>
    %1234 = vector.broadcast %1233 : vector<8x1xf32> to vector<8x32xf32>
    %1235 = arith.subf %1225, %1234 : vector<8x32xf32>
    %1236 = arith.mulf %1235, %1235 : vector<8x32xf32>
    %cst_309 = arith.constant dense<0.000000e+00> : vector<8xf32>
    %1237 = vector.multi_reduction <add>, %1236, %cst_309 [1] : vector<8x32xf32> to vector<8xf32>
    %1238 = vector.shape_cast %1237 : vector<8xf32> to vector<8x1xf32>
    %cst_310 = arith.constant 3.200000e+01 : f32
    %1239 = vector.broadcast %cst_310 : f32 to vector<8x1xf32>
    %1240 = arith.divf %1238, %1239 : vector<8x1xf32>
    %1241 = vector.broadcast %1233 : vector<8x1xf32> to vector<8x32xf32>
    %1242 = arith.subf %1225, %1241 : vector<8x32xf32>
    %cst_311 = arith.constant 9.99999974E-6 : f32
    %1243 = vector.broadcast %cst_311 : f32 to vector<8x1xf32>
    %1244 = arith.addf %1240, %1243 : vector<8x1xf32>
    %1245 = math.rsqrt %1244 : vector<8x1xf32>
    %1246 = vector.broadcast %1245 : vector<8x1xf32> to vector<8x32xf32>
    %1247 = arith.mulf %1242, %1246 : vector<8x32xf32>
    %1248 = vector.broadcast %1227 : vector<1x32xf32> to vector<8x32xf32>
    %1249 = arith.mulf %1247, %1248 : vector<8x32xf32>
    %1250 = vector.broadcast %1229 : vector<1x32xf32> to vector<8x32xf32>
    %1251 = arith.addf %1249, %1250 : vector<8x32xf32>
    %c1_312 = arith.constant 1 : index
    %c0_313 = arith.constant 0 : index
    %c0_314 = arith.constant 0 : index
    %1252 = vector.load %arg18[%c1_312, %c0_313, %c0_314] : memref<2x32x64xf32, #tpu.memory_space<vmem>>, vector<1x32x64xf32>
    %1253 = vector.shape_cast %1252 : vector<1x32x64xf32> to vector<32x64xf32>
    %cst_315 = arith.constant dense<0.000000e+00> : vector<8x64xf32>
    %1254 = tpu.matmul %1251, %1253, %cst_315 {dimension_numbers = #tpu.dot_dimension_numbers<[1], [0], [0], [1], [0, 0, 1, 1], [], []>} : vector<8x32xf32>, vector<32x64xf32>, vector<8x64xf32> -> vector<8x64xf32>
    %c1_316 = arith.constant 1 : index
    %c0_317 = arith.constant 0 : index
    %c0_318 = arith.constant 0 : index
    %1255 = vector.load %arg19[%c1_316, %c0_317, %c0_318] : memref<2x1x64xf32, #tpu.memory_space<vmem>>, vector<1x1x64xf32>
    %1256 = vector.shape_cast %1255 : vector<1x1x64xf32> to vector<1x64xf32>
    %1257 = vector.broadcast %1256 : vector<1x64xf32> to vector<8x64xf32>
    %1258 = arith.addf %1254, %1257 : vector<8x64xf32>
    %cst_319 = arith.constant 0.000000e+00 : f32
    %1259 = vector.broadcast %cst_319 : f32 to vector<8x64xf32>
    %1260 = arith.maximumf %1258, %1259 : vector<8x64xf32>
    %c1_320 = arith.constant 1 : index
    %c0_321 = arith.constant 0 : index
    %c0_322 = arith.constant 0 : index
    %1261 = vector.load %arg20[%c1_320, %c0_321, %c0_322] : memref<2x64x32xf32, #tpu.memory_space<vmem>>, vector<1x64x32xf32>
    %1262 = vector.shape_cast %1261 : vector<1x64x32xf32> to vector<64x32xf32>
    %cst_323 = arith.constant dense<0.000000e+00> : vector<8x32xf32>
    %1263 = tpu.matmul %1260, %1262, %cst_323 {dimension_numbers = #tpu.dot_dimension_numbers<[1], [0], [0], [1], [0, 0, 1, 1], [], []>} : vector<8x64xf32>, vector<64x32xf32>, vector<8x32xf32> -> vector<8x32xf32>
    %c1_324 = arith.constant 1 : index
    %c0_325 = arith.constant 0 : index
    %c0_326 = arith.constant 0 : index
    %1264 = vector.load %arg21[%c1_324, %c0_325, %c0_326] : memref<2x1x32xf32, #tpu.memory_space<vmem>>, vector<1x1x32xf32>
    %1265 = vector.shape_cast %1264 : vector<1x1x32xf32> to vector<1x32xf32>
    %1266 = vector.broadcast %1265 : vector<1x32xf32> to vector<8x32xf32>
    %1267 = arith.addf %1263, %1266 : vector<8x32xf32>
    %1268 = arith.addf %1267, %1251 : vector<8x32xf32>
    %c1_327 = arith.constant 1 : index
    %c0_328 = arith.constant 0 : index
    %c0_329 = arith.constant 0 : index
    %1269 = vector.load %arg26[%c1_327, %c0_328, %c0_329] : memref<2x1x32xf32, #tpu.memory_space<vmem>>, vector<1x1x32xf32>
    %1270 = vector.shape_cast %1269 : vector<1x1x32xf32> to vector<1x32xf32>
    %c1_330 = arith.constant 1 : index
    %c0_331 = arith.constant 0 : index
    %c0_332 = arith.constant 0 : index
    %1271 = vector.load %arg27[%c1_330, %c0_331, %c0_332] : memref<2x1x32xf32, #tpu.memory_space<vmem>>, vector<1x1x32xf32>
    %1272 = vector.shape_cast %1271 : vector<1x1x32xf32> to vector<1x32xf32>
    %cst_333 = arith.constant dense<0.000000e+00> : vector<8xf32>
    %1273 = vector.multi_reduction <add>, %1268, %cst_333 [1] : vector<8x32xf32> to vector<8xf32>
    %1274 = vector.shape_cast %1273 : vector<8xf32> to vector<8x1xf32>
    %cst_334 = arith.constant 3.200000e+01 : f32
    %1275 = vector.broadcast %cst_334 : f32 to vector<8x1xf32>
    %1276 = arith.divf %1274, %1275 : vector<8x1xf32>
    %1277 = vector.broadcast %1276 : vector<8x1xf32> to vector<8x32xf32>
    %1278 = arith.subf %1268, %1277 : vector<8x32xf32>
    %1279 = arith.mulf %1278, %1278 : vector<8x32xf32>
    %cst_335 = arith.constant dense<0.000000e+00> : vector<8xf32>
    %1280 = vector.multi_reduction <add>, %1279, %cst_335 [1] : vector<8x32xf32> to vector<8xf32>
    %1281 = vector.shape_cast %1280 : vector<8xf32> to vector<8x1xf32>
    %cst_336 = arith.constant 3.200000e+01 : f32
    %1282 = vector.broadcast %cst_336 : f32 to vector<8x1xf32>
    %1283 = arith.divf %1281, %1282 : vector<8x1xf32>
    %1284 = vector.broadcast %1276 : vector<8x1xf32> to vector<8x32xf32>
    %1285 = arith.subf %1268, %1284 : vector<8x32xf32>
    %cst_337 = arith.constant 9.99999974E-6 : f32
    %1286 = vector.broadcast %cst_337 : f32 to vector<8x1xf32>
    %1287 = arith.addf %1283, %1286 : vector<8x1xf32>
    %1288 = math.rsqrt %1287 : vector<8x1xf32>
    %1289 = vector.broadcast %1288 : vector<8x1xf32> to vector<8x32xf32>
    %1290 = arith.mulf %1285, %1289 : vector<8x32xf32>
    %1291 = vector.broadcast %1270 : vector<1x32xf32> to vector<8x32xf32>
    %1292 = arith.mulf %1290, %1291 : vector<8x32xf32>
    %1293 = vector.broadcast %1272 : vector<1x32xf32> to vector<8x32xf32>
    %1294 = arith.addf %1292, %1293 : vector<8x32xf32>
    %1295 = vector.shape_cast %1294 : vector<8x32xf32> to vector<1x8x32xf32>
    %c0_338 = arith.constant 0 : index
    %c0_339 = arith.constant 0 : index
    %c0_340 = arith.constant 0 : index
    %1296 = vector.load %arg28[%c0_338, %c0_339, %c0_340] : memref<1x8x32xf32, #tpu.memory_space<vmem>>, vector<1x8x32xf32>
    tpu.vector_store %arg28[%c0_338, %c0_339, %c0_340], %1295 {strides = array<i32>} : memref<1x8x32xf32, #tpu.memory_space<vmem>>, vector<1x8x32xf32>,
    return
  }
  func.func @transform_0(%arg0: i32) -> (i32, i32, i32) {
    %c0_i32 = arith.constant 0 : i32
    %c0_i32_0 = arith.constant 0 : i32
    %c0_i32_1 = arith.constant 0 : i32
    return %arg0, %c0_i32, %c0_i32_0 : i32, i32, i32
  }
  func.func @transform_1(%arg0: i32) -> (i32, i32, i32) {
    %c0_i32 = arith.constant 0 : i32
    %c0_i32_0 = arith.constant 0 : i32
    %c0_i32_1 = arith.constant 0 : i32
    return %arg0, %c0_i32, %c0_i32_0 : i32, i32, i32
  }
  func.func @transform_2(%arg0: i32) -> (i32, i32, i32) {
    %c0_i32 = arith.constant 0 : i32
    %c0_i32_0 = arith.constant 0 : i32
    %c0_i32_1 = arith.constant 0 : i32
    return %arg0, %c0_i32, %c0_i32_0 : i32, i32, i32
  }
  func.func @transform_3(%arg0: i32) -> (i32, i32, i32) {
    %c0_i32 = arith.constant 0 : i32
    %c0_i32_0 = arith.constant 0 : i32
    %c0_i32_1 = arith.constant 0 : i32
    return %arg0, %c0_i32, %c0_i32_0 : i32, i32, i32
  }
  func.func @transform_4(%arg0: i32) -> (i32, i32) {
    %c0_i32 = arith.constant 0 : i32
    %c0_i32_0 = arith.constant 0 : i32
    %c0_i32_1 = arith.constant 0 : i32
    return %c0_i32, %c0_i32_0 : i32, i32
  }
  func.func @transform_5(%arg0: i32) -> (i32, i32) {
    %c0_i32 = arith.constant 0 : i32
    %c0_i32_0 = arith.constant 0 : i32
    %c0_i32_1 = arith.constant 0 : i32
    return %c0_i32, %c0_i32_0 : i32, i32
  }
  func.func @transform_6(%arg0: i32) -> (i32, i32, i32) {
    %c0_i32 = arith.constant 0 : i32
    %c0_i32_0 = arith.constant 0 : i32
    %c0_i32_1 = arith.constant 0 : i32
    %c0_i32_2 = arith.constant 0 : i32
    return %c0_i32, %c0_i32_0, %c0_i32_1 : i32, i32, i32
  }
  func.func @transform_7(%arg0: i32) -> (i32, i32, i32) {
    %c0_i32 = arith.constant 0 : i32
    %c0_i32_0 = arith.constant 0 : i32
    %c0_i32_1 = arith.constant 0 : i32
    %c0_i32_2 = arith.constant 0 : i32
    return %c0_i32, %c0_i32_0, %c0_i32_1 : i32, i32, i32
  }
  func.func @transform_8(%arg0: i32) -> (i32, i32, i32) {
    %c0_i32 = arith.constant 0 : i32
    %c0_i32_0 = arith.constant 0 : i32
    %c0_i32_1 = arith.constant 0 : i32
    %c0_i32_2 = arith.constant 0 : i32
    return %c0_i32, %c0_i32_0, %c0_i32_1 : i32, i32, i32
  }
  func.func @transform_9(%arg0: i32) -> (i32, i32, i32) {
    %c0_i32 = arith.constant 0 : i32
    %c0_i32_0 = arith.constant 0 : i32
    %c0_i32_1 = arith.constant 0 : i32
    %c0_i32_2 = arith.constant 0 : i32
    return %c0_i32, %c0_i32_0, %c0_i32_1 : i32, i32, i32
  }
  func.func @transform_10(%arg0: i32) -> (i32, i32, i32) {
    %c0_i32 = arith.constant 0 : i32
    %c0_i32_0 = arith.constant 0 : i32
    %c0_i32_1 = arith.constant 0 : i32
    %c0_i32_2 = arith.constant 0 : i32
    return %c0_i32, %c0_i32_0, %c0_i32_1 : i32, i32, i32
  }
  func.func @transform_11(%arg0: i32) -> (i32, i32, i32) {
    %c0_i32 = arith.constant 0 : i32
    %c0_i32_0 = arith.constant 0 : i32
    %c0_i32_1 = arith.constant 0 : i32
    %c0_i32_2 = arith.constant 0 : i32
    return %c0_i32, %c0_i32_0, %c0_i32_1 : i32, i32, i32
  }
  func.func @transform_12(%arg0: i32) -> (i32, i32, i32) {
    %c0_i32 = arith.constant 0 : i32
    %c0_i32_0 = arith.constant 0 : i32
    %c0_i32_1 = arith.constant 0 : i32
    %c0_i32_2 = arith.constant 0 : i32
    return %c0_i32, %c0_i32_0, %c0_i32_1 : i32, i32, i32
  }
  func.func @transform_13(%arg0: i32) -> (i32, i32, i32) {
    %c0_i32 = arith.constant 0 : i32
    %c0_i32_0 = arith.constant 0 : i32
    %c0_i32_1 = arith.constant 0 : i32
    %c0_i32_2 = arith.constant 0 : i32
    return %c0_i32, %c0_i32_0, %c0_i32_1 : i32, i32, i32
  }
  func.func @transform_14(%arg0: i32) -> (i32, i32, i32) {
    %c0_i32 = arith.constant 0 : i32
    %c0_i32_0 = arith.constant 0 : i32
    %c0_i32_1 = arith.constant 0 : i32
    %c0_i32_2 = arith.constant 0 : i32
    return %c0_i32, %c0_i32_0, %c0_i32_1 : i32, i32, i32
  }
  func.func @transform_15(%arg0: i32) -> (i32, i32, i32) {
    %c0_i32 = arith.constant 0 : i32
    %c0_i32_0 = arith.constant 0 : i32
    %c0_i32_1 = arith.constant 0 : i32
    %c0_i32_2 = arith.constant 0 : i32
    return %c0_i32, %c0_i32_0, %c0_i32_1 : i32, i32, i32
  }
  func.func @transform_16(%arg0: i32) -> (i32, i32, i32) {
    %c0_i32 = arith.constant 0 : i32
    %c0_i32_0 = arith.constant 0 : i32
    %c0_i32_1 = arith.constant 0 : i32
    %c0_i32_2 = arith.constant 0 : i32
    return %c0_i32, %c0_i32_0, %c0_i32_1 : i32, i32, i32
  }
  func.func @transform_17(%arg0: i32) -> (i32, i32, i32) {
    %c0_i32 = arith.constant 0 : i32
    %c0_i32_0 = arith.constant 0 : i32
    %c0_i32_1 = arith.constant 0 : i32
    %c0_i32_2 = arith.constant 0 : i32
    return %c0_i32, %c0_i32_0, %c0_i32_1 : i32, i32, i32
  }
  func.func @transform_18(%arg0: i32) -> (i32, i32, i32) {
    %c0_i32 = arith.constant 0 : i32
    %c0_i32_0 = arith.constant 0 : i32
    %c0_i32_1 = arith.constant 0 : i32
    %c0_i32_2 = arith.constant 0 : i32
    return %c0_i32, %c0_i32_0, %c0_i32_1 : i32, i32, i32
  }
  func.func @transform_19(%arg0: i32) -> (i32, i32, i32) {
    %c0_i32 = arith.constant 0 : i32
    %c0_i32_0 = arith.constant 0 : i32
    %c0_i32_1 = arith.constant 0 : i32
    %c0_i32_2 = arith.constant 0 : i32
    return %c0_i32, %c0_i32_0, %c0_i32_1 : i32, i32, i32
  }
  func.func @transform_20(%arg0: i32) -> (i32, i32, i32) {
    %c0_i32 = arith.constant 0 : i32
    %c0_i32_0 = arith.constant 0 : i32
    %c0_i32_1 = arith.constant 0 : i32
    %c0_i32_2 = arith.constant 0 : i32
    return %c0_i32, %c0_i32_0, %c0_i32_1 : i32, i32, i32
  }
  func.func @transform_21(%arg0: i32) -> (i32, i32, i32) {
    %c0_i32 = arith.constant 0 : i32
    %c0_i32_0 = arith.constant 0 : i32
    %c0_i32_1 = arith.constant 0 : i32
    %c0_i32_2 = arith.constant 0 : i32
    return %c0_i32, %c0_i32_0, %c0_i32_1 : i32, i32, i32
  }
  func.func @transform_22(%arg0: i32) -> (i32, i32, i32) {
    %c0_i32 = arith.constant 0 : i32
    %c0_i32_0 = arith.constant 0 : i32
    %c0_i32_1 = arith.constant 0 : i32
    %c0_i32_2 = arith.constant 0 : i32
    return %c0_i32, %c0_i32_0, %c0_i32_1 : i32, i32, i32
  }
  func.func @transform_23(%arg0: i32) -> (i32, i32, i32) {
    %c0_i32 = arith.constant 0 : i32
    %c0_i32_0 = arith.constant 0 : i32
    %c0_i32_1 = arith.constant 0 : i32
    %c0_i32_2 = arith.constant 0 : i32
    return %c0_i32, %c0_i32_0, %c0_i32_1 : i32, i32, i32
  }
  func.func @transform_24(%arg0: i32) -> (i32, i32, i32) {
    %c0_i32 = arith.constant 0 : i32
    %c0_i32_0 = arith.constant 0 : i32
    %c0_i32_1 = arith.constant 0 : i32
    %c0_i32_2 = arith.constant 0 : i32
    return %c0_i32, %c0_i32_0, %c0_i32_1 : i32, i32, i32
  }
  func.func @transform_25(%arg0: i32) -> (i32, i32, i32) {
    %c0_i32 = arith.constant 0 : i32
    %c0_i32_0 = arith.constant 0 : i32
    %c0_i32_1 = arith.constant 0 : i32
    %c0_i32_2 = arith.constant 0 : i32
    return %c0_i32, %c0_i32_0, %c0_i32_1 : i32, i32, i32
  }
  func.func @transform_26(%arg0: i32) -> (i32, i32, i32) {
    %c0_i32 = arith.constant 0 : i32
    %c0_i32_0 = arith.constant 0 : i32
    %c0_i32_1 = arith.constant 0 : i32
    %c0_i32_2 = arith.constant 0 : i32
    return %c0_i32, %c0_i32_0, %c0_i32_1 : i32, i32, i32
  }
  func.func @transform_27(%arg0: i32) -> (i32, i32, i32) {
    %c0_i32 = arith.constant 0 : i32
    %c0_i32_0 = arith.constant 0 : i32
    %c0_i32_1 = arith.constant 0 : i32
    return %arg0, %c0_i32, %c0_i32_0 : i32, i32, i32
  }
}

</mosaic_0001>

<bundles_post_ra>
// kernel: tpu_custom_call.1
= control target key start
LH: loop header
LB: loop body
LE: loop exit
PB: predicated region body
PF: predicated region fallthrough
CT: control target
= control target key end

     0   :  { %s6312_s0 = inlined_call_operand.vmem [shape: f32[2,8,32], index: 0, kind: input, shape index: {}]   ;;  %s6313_s1 = inlined_call_operand.vmem [shape: f32[2,8,32], index: 1, kind: input, shape index: {}]   ;;  %s6314_s2 = inlined_call_operand.hbm [shape: f32[2,1,8], index: 2, kind: input, shape index: {}]   ;;  %s6315_s3 = inlined_call_operand.hbm [shape: f32[2,1,8], index: 3, kind: input, shape index: {}]   ;;  %s6316_s4 = inlined_call_operand.hbm [shape: f32[8,9], index: 4, kind: input, shape index: {}]   ;;  %s6317_s5 = inlined_call_operand.vmem [shape: f32[9,8], index: 5, kind: input, shape index: {}]   ;;  %s6318_s6 = inlined_call_operand.vmem [shape: f32[9,8,8], index: 6, kind: input, shape index: {}]   ;;  %s6319_s7 = inlined_call_operand.vmem [shape: f32[2,32,96], index: 7, kind: input, shape index: {}]   ;;  %s6320_s8 = inlined_call_operand.vmem [shape: f32[2,1,96], index: 8, kind: input, shape index: {}]   ;;  %s6321_s9 = inlined_call_operand.vmem [shape: f32[2,32,32], index: 9, kind: input, shape index: {}]   ;;  %s6322_s10 = inlined_call_operand.vmem [shape: f32[2,1,32], index: 10, kind: input, shape index: {}]   ;;  %s6323_s11 = inlined_call_operand.vmem [shape: f32[2,32,32], index: 11, kind: input, shape index: {}]   ;;  %s6324_s12 = inlined_call_operand.vmem [shape: f32[2,1,32], index: 12, kind: input, shape index: {}]   ;;  %s6325_s13 = inlined_call_operand.vmem [shape: f32[2,32,64], index: 13, kind: input, shape index: {}]   ;;  %s6326_s14 = inlined_call_operand.vmem [shape: f32[2,1,64], index: 14, kind: input, shape index: {}]   ;;  %s6327_s15 = inlined_call_operand.hbm [shape: f32[2,32,32], index: 15, kind: input, shape index: {}]   ;;  %s6328_s16 = inlined_call_operand.vmem [shape: f32[2,1,32], index: 16, kind: input, shape index: {}]   ;;  %s6329_s17 = inlined_call_operand.hbm [shape: f32[2,32,64], index: 17, kind: input, shape index: {}]   ;;  %s6330_s18 = inlined_call_operand.vmem [shape: f32[2,1,64], index: 18, kind: input, shape index: {}]   ;;  %s6331_s19 = inlined_call_operand.vmem [shape: f32[2,64,32], index: 19, kind: input, shape index: {}]   ;;  %s6332_s20 = inlined_call_operand.vmem [shape: f32[2,1,32], index: 20, kind: input, shape index: {}]   ;;  %s6333_s21 = inlined_call_operand.vmem [shape: f32[2,1,32], index: 21, kind: input, shape index: {}]   ;;  %s6334_s22 = inlined_call_operand.vmem [shape: f32[2,1,32], index: 22, kind: input, shape index: {}]   ;;  %s6335_s23 = inlined_call_operand.hbm [shape: f32[2,1,32], index: 23, kind: input, shape index: {}]   ;;  %s6336_s24 = inlined_call_operand.vmem [shape: f32[2,1,32], index: 24, kind: input, shape index: {}]   ;;  %s6337_s25 = inlined_call_operand.vmem [shape: f32[2,1,32], index: 25, kind: input, shape index: {}]   ;;  %s6338_s26 = inlined_call_operand.hbm [shape: f32[2,1,32], index: 26, kind: input, shape index: {}]   ;;  %s6339_s27 = inlined_call_operand.hbm [shape: f32[2,8,32], index: 27, kind: output, shape index: {}]  }
   0x1   :  { %6393 = sst [smem:[#allocation30_spill]] %s6312_s0 }
   0x2   :  { %6394 = sst [smem:[#allocation31_spill]] %s6313_s1 }
   0x3   :  { %6395 = sst [smem:[#allocation32_spill]] %s6314_s2 }
   0x4   :  { %6396 = sst [smem:[#allocation33_spill]] %s6315_s3 }
   0x5   :  { %6397 = sst [smem:[#allocation34_spill]] %s6316_s4 }
   0x6   :  { %6398 = sst [smem:[#allocation35_spill]] %s6317_s5 }
   0x7   :  { %6399 = sst [smem:[#allocation36_spill]] %s6318_s6 }
   0x8   :  { %6400 = sst [smem:[#allocation37_spill]] %s6319_s7 }
   0x9   :  { %6401 = sst [smem:[#allocation38_spill]] %s6320_s8 }
   0xa   :  { %6402 = sst [smem:[#allocation39_spill]] %s6321_s9 }
   0xb   :  { %6403 = sst [smem:[#allocation40_spill]] %s6322_s10 }
   0xc   :  { %6404 = sst [smem:[#allocation41_spill]] %s6323_s11 }
   0xd   :  { %6405 = sst [smem:[#allocation42_spill]] %s6324_s12 }
   0xe   :  { %6406 = sst [smem:[#allocation43_spill]] %s6326_s14 }
   0xf   :  { %6407 = sst [smem:[#allocation44_spill]] %s6327_s15 }
  0x10   :  { %6408 = sst [smem:[#allocation45_spill]] %s6328_s16 }
  0x11   :  { %6409 = sst [smem:[#allocation46_spill]] %s6329_s17 }
  0x12   :  { %6410 = sst [smem:[#allocation47_spill]] %s6330_s18 }
  0x13   :  { %6411 = sst [smem:[#allocation48_spill]] %s6332_s20 }
  0x14   :  { %6412 = sst [smem:[#allocation49_spill]] %s6334_s22 }
  0x15   :  { %6413 = sst [smem:[#allocation50_spill]] %s6335_s23 }
  0x16   :  { %6414 = sst [smem:[#allocation51_spill]] %s6336_s24 }
  0x17   :  { %6415 = sst [smem:[#allocation52_spill]] %s6337_s25 }
  0x18   :  { %6416 = sst [smem:[#allocation53_spill]] %s6338_s26 }
  0x19   :  { %6417 = sst [smem:[#allocation54_spill]] %s6339_s27 }
  0x1a   :  { %32 = vsyncpa [#allocation3], 0 }
  0x1b   :  { %34 = vsyncpa [#allocation3 + $0x1], 0 }
  0x1c   :  { %35 = vsyncpa [#allocation6], 0 }
  0x1d   :  { %37 = vsyncpa [#allocation6 + $0x1], 0 }
  0x1e   :  { %38 = vsyncpa [#allocation9], 0 }
  0x1f   :  { %39 = vsyncpa [#allocation12], 0 }
  0x20   :  { %40 = vsyncpa [#allocation4], 0 }
  0x21   :  { %42 = vsyncpa [#allocation4 + $0x1], 0  ;;  %s5029_s7 = smov 0   ;;  %s5031_s4 = smov 0  }
  0x22   :  { %s5033_s8 = smov 0   ;;  %s5035_s30 = smov 0  }
  0x23 LB: > { %6418 = sst [smem:[#allocation21_spill]] %s4842_s7  ;;  %s5053_s10 = sadd.s32 4294967295, %s4854_s30   ;;  %s4854_s30 = sphi %s5035_s30, %s6490_s30   ;;  %s4850_s8 = sphi %s5033_s8, %s6493_s8   ;;  %s4846_s4 = sphi %s5031_s4, %s6492_s4   ;;  %s4842_s7 = sphi %s5029_s7, %s6491_s7  }
  0x24   : > { %6419 = sst [smem:[#allocation22_spill]] %s4846_s4  ;;  %p4096_p0 = scmp.ge.s32.totalorder %s4854_s30, 1 }
  0x25   : > { %6420 = sst [smem:[#allocation23_spill]] %s4850_s8  ;;  %p121_p1 = scmp.eq.s32.totalorder %s5053_s10, 0 }
  0x26   : > { %6421 = sst [smem:[#allocation24_spill]] %s4854_s30  ;;  %p666_p2 = scmp.lt.s32.totalorder %s4854_s30, 3 }
  0x27   : > { %s6422_s28 = sld [smem:[#allocation34_spill]]  ;;  %s4856_s1 = smov [#allocation7]  }
  0x28   : > { %6423 = sst [smem:[#allocation25_spill]] %s5053_s10  ;;  %p5058_p3 = pnand %p4096_p0, %p666_p2 }
  0x29   : > { %s680_s6 = sshll.u32 %s4856_s1, 4  ;;  %s6425_s15 = sld [smem:[#allocation44_spill]]  ;;  %s681_s6 = int_to_ptr.vmem [resolvable:$true] %s680_s6 }
  0x2a   : > { %p4263_p5 = pneg %p5058_p3  ;;  %s4857_s5 = smov [#allocation8]  }
  0x2b   : > { %s4858_s1 = smov 128   ;;  %s4859_s27 = smov 8  }
  0x2c   : > { %p5070_p6 = pnand %p4263_p5, %p121_p1  ;;  %s6427_s23 = sld [smem:[#allocation50_spill]] }
  0x2d   : > { %s678_s0 = sshll.u32 %s6422_s28, 4  ;;  %s721_s28 = sshll.u32 %s4857_s5, 4  ;;  %s679_s0 = int_to_ptr.hbm [resolvable:$true] %s678_s0  ;;  %s722_s28 = int_to_ptr.vmem [resolvable:$true] %s721_s28 }
  0x2e   : > { %4266 = dma.hbm_to_vmem [thread:$0]  (!%p5070_p6), %s679_s0, 128, %s681_s6, [#allocation6]  }
  0x2f   : > { %s719_s3 = sshll.u32 %s6425_s15, 4  ;;  %s4860_s25 = smov [#allocation11]   ;;  %s720_s3 = int_to_ptr.hbm [resolvable:$true] %s719_s3 }
  0x30   : > { %4269 = dma.hbm_to_vmem [thread:$0]  (!%p5070_p6), %s720_s3, 1024, %s722_s28, [#allocation9], %s4858_s1, %s4858_s1, %s4859_s27  }
  0x31   : > { %s767_s20 = sshll.u32 %s4860_s25, 4  ;;  %s6428_s17 = sld [smem:[#allocation46_spill]]  ;;  %s768_s20 = int_to_ptr.vmem [resolvable:$true] %s767_s20 }
  0x32   : > { %s765_s15 = sshll.u32 %s6427_s23, 4  ;;  %s4861_s0 = smov 16   ;;  %s766_s15 = int_to_ptr.hbm [resolvable:$true] %s765_s15 }
  0x33   : > { %s4862_s6 = smov 1   ;;  %s4863_s3 = smov [#allocation10]  }
  0x34   : > { %4275 = dma.hbm_to_vmem [thread:$0]  (!%p5070_p6), %s766_s15, 32, %s768_s20, [#allocation12], %s4861_s0, %s4861_s0, %s4862_s6  }
  0x35   : > { %s738_s25 = sshll.u32 %s4863_s3, 4  ;;  %s6429_s26 = sld [smem:[#allocation53_spill]]  ;;  %s739_s25 = int_to_ptr.vmem [resolvable:$true] %s738_s25 }
  0x36   : > { %s4864_s15 = smov [#allocation13]   ;;  %s4095_s24 = sadd.s32 4294967294, %s4854_s30  }
  0x37   : > { %s736_s5 = sshll.u32 %s6428_s17, 4  ;;  %s787_s20 = sshll.u32 %s4864_s15, 4  ;;  %s737_s5 = int_to_ptr.hbm [resolvable:$true] %s736_s5  ;;  %s788_s20 = int_to_ptr.vmem [resolvable:$true] %s787_s20 }
  0x38   : > { %4272 = dma.hbm_to_vmem [thread:$0]  (!%p5070_p6), %s737_s5, 1024, %s739_s25, [#allocation9], %s4858_s1, %s4858_s1, %s4859_s27  }
  0x39   : > { %s5095_s2 = sadd.s32 1, %s4854_s30   ;;  %s107_s3 = sadd.s32 1, %s4850_s8 }
  0x3a   : > { %6430 = sst [smem:[#allocation26_spill]] %s5095_s2  ;;  %s104_s28 = ssub.s32 %s4854_s30, %s5095_s2 }
  0x3b   : > { %s785_s18 = sshll.u32 %s6429_s26, 4  ;;  %p114_p7 = scmp.ne.s32.totalorder %s4850_s8, %s4846_s4  ;;  %s786_s18 = int_to_ptr.hbm [resolvable:$true] %s785_s18 }
  0x3c   : > { %4278 = dma.hbm_to_vmem [thread:$0]  (!%p5070_p6), %s786_s18, 32, %s788_s20, [#allocation12], %s4861_s0, %s4861_s0, %s4862_s6  }
  0x3d   : > { %p105_p8 = scmp.eq.s32.totalorder %s104_s28, 0  ;;  %p115_p9 = scmp.eq.s32.totalorder %s4854_s30, 0 }
  0x3e   : > { %p120_p10 = scmp.ne.s32.totalorder %s4846_s4, %s4842_s7  ;;  %p653_p11 = scmp.eq.s32.totalorder %s5053_s10, 1 }
  0x3f   : > { %s5107_s27 = scalar_select %p105_p8, %s4850_s8, %s107_s3  }
  0x40   : > { %p5109_p12 = por %p115_p9, %p114_p7  ;;  %p5115_p13 = por %p121_p1, %p120_p10 }
  0x41   : > { %6431 = sst [smem:[#allocation27_spill]] %s5107_s27  ;;  %p5119_p0 = por %p653_p11, %p114_p7 }
  0x42   : > { %p659_p2 = scmp.eq.s32.totalorder %s4095_s24, 1  ;;  %p4295_p5 = scmp.lt.s32.totalorder %s4854_s30, 2 }
  0x43   : > { %s6434_s5 = scalar_select %p5119_p0, 1, 0 }
  0x44   : > { %s815_s0 = sand.u32 1, %s4850_s8   ;;  %p5125_p6 = por %p659_p2, %p120_p10 }
  0x45   : > { %6435 = sst [smem:[#allocation28_spill]] %s6434_s5  ;;  %s818_s3 = scalar_lea.vmem [#allocation2], %s815_s0 }
  0x46   : > { %s6436_s6 = scalar_select %p5125_p6, 1, 0 }
  0x47   : > { %s6438_s18 = sld [smem:[#allocation32_spill]]  ;;  %s825_s28 = sshll.u32 %s818_s3, 4  ;;  %s826_s28 = int_to_ptr.vmem [resolvable:$true] %s825_s28 }
  0x48   : > { %6437 = sst [smem:[#allocation29_spill]] %s6436_s6  ;;  %p5135_p7 = pnand %p4295_p5, %p5109_p12 }
  0x49   : > { %s832_s24 = sand.u32 1, %s4854_s30   ;;  %s6440_s27 = sld [smem:[#allocation33_spill]] }
  0x4a   : > { %s816_s2 = scalar_lea.sflag [#allocation3], %s815_s0  ;;  %p4716_p9 = pneg %p5135_p7 }
  0x4d   : > { %s821_s15 = scalar_lea.hbm %s6438_s18, %s4854_s30  ;;  %s4719_s3 = scalar_lea.hbm %s6438_s18, 2 }
  0x4e   : > { %s823_s20 = sshll.u32 %s821_s15, 4  ;;  %s824_s20 = int_to_ptr.hbm [resolvable:$true] %s823_s20 }
  0x4f   : > { %s838_s8 = scalar_lea.hbm %s6440_s27, %s4854_s30  ;;  %s4712_s25 = sshra.s32 %s824_s20, 4  ;;  %s4713_s25 = int_to_ptr.hbm [resolvable:$true] %s4712_s25 }
  0x50   : > { %s4714_s11 = scalar_lea.hbm %s4713_s25, 1  ;;  %p4720_p12 = scmp.lt.s32.totalorder %s4713_s25, %s6438_s18 }
  0x51   : > { %p4715_p8 = scmp.ne.s32.totalorder %s4713_s25, %s4714_s11  ;;  %p4721_p2 = scmp.lt.s32.totalorder %s4719_s3, %s4714_s11 }
  0x53   : > { %p4717_p10 = pnand %p4716_p9, %p4715_p8  ;;  %p4722_p5 = por %p4721_p2, %p4720_p12 }
  0x55   : > { %p4718_p11 = pneg %p4717_p10 }
  0x57   : > { %p4723_p4 = pnand %p4722_p5, %p4718_p11 }
  0x59   : > { %4726 = shalt.err (!%p4723_p4)
}
  0x5a   : > { %4282 = dma.hbm_to_vmem [thread:$0]  (!%p5135_p7), %s824_s20, 16, %s826_s28, %s816_s2  }
  0x5b   : > { %s840_s23 = sshll.u32 %s838_s8, 4  ;;  %s835_s26 = scalar_lea.vmem [#allocation5], %s815_s0  ;;  %s841_s23 = int_to_ptr.hbm [resolvable:$true] %s840_s23 }
  0x5c   : > { %s842_s30 = sshll.u32 %s835_s26, 4  ;;  %s833_s5 = scalar_lea.sflag [#allocation6], %s832_s24  ;;  %s843_s30 = int_to_ptr.vmem [resolvable:$true] %s842_s30 }
  0x5d   : > { %s4742_s9 = sshra.s32 %s841_s23, 4  ;;  %s4749_s25 = scalar_lea.hbm %s6440_s27, 2  ;;  %s4743_s9 = int_to_ptr.hbm [resolvable:$true] %s4742_s9 }
  0x5e   : > { %s4744_s15 = scalar_lea.hbm %s4743_s9, 1  ;;  %p4750_p4 = scmp.lt.s32.totalorder %s4743_s9, %s6440_s27 }
  0x5f   : > { %p4745_p8 = scmp.ne.s32.totalorder %s4743_s9, %s4744_s15  ;;  %p4751_p11 = scmp.lt.s32.totalorder %s4749_s25, %s4744_s15 }
  0x61   : > { %p4747_p10 = pnand %p4745_p8, %p4716_p9  ;;  %p4752_p2 = por %p4751_p11, %p4750_p4 }
  0x63   : > { %p4748_p12 = pneg %p4747_p10 }
  0x65   : > { %p4753_p5 = pnand %p4752_p2, %p4748_p12 }
  0x67   : > { %4756 = shalt.err (!%p4753_p5)
}
  0x68   : > { %4285 = dma.hbm_to_vmem [thread:$0]  (!%p5135_p7), %s841_s23, 16, %s843_s30, %s833_s5  }
  0x69   : > { %851 = sbr.rel (%p5058_p3) target bundleno = 7264 (0x1c60), region = 128  ;;  %s5171_s8 = sand.u32 (!%p5058_p3), 1, %s4846_s4  }
  0x6a   : > { %s854_s0 = scalar_lea.sflag (!%p5058_p3), [#allocation3], %s5171_s8  ;;  %s6369_s20 = scalar_lea.vmem (!%p5058_p3), [#allocation2], %s5171_s8 }
  0x6e   : > { %4817 = dma.done.wait (%p5115_p13), %s854_s0, 16  }
  0x6f   : > { %4819 = vsyncadd (%p5115_p13), %s854_s0, 4294967280  ;;  %s862_s17 = sand.u32 1, %s5053_s10  }
  0x70   : > { %s863_s30 = scalar_lea.sflag [#allocation6], %s862_s17 }
  0x71   : > { %4821 = dma.done.wait (%p5115_p13), %s863_s30, 16  }
  0x72   : > { %4823 = vsyncadd (%p5115_p13), %s863_s30, 4294967280 }
  0x73   : > { %4825 = dma.done.wait (%p121_p1), [#allocation6], 128  }
  0x74   : > { %4827 = vsyncadd (%p121_p1), [#allocation6], 4294967168 }
  0x75   : > { %4829 = dma.done.wait (%p121_p1), [#allocation9], 2048  }
  0x76   : > { %4831 = vsyncadd (%p121_p1), [#allocation9], 4294965248 }
  0x77   : > { %4833 = dma.done.wait (%p121_p1), [#allocation12], 64  }
  0x78   : > { %4835 = vsyncadd (%p121_p1), [#allocation12], 4294967232  ;;  %p973_p3 = scmp.lt.s32.totalorder %s5053_s10, 1  ;;  %s6441_s3 = sld [smem:[#allocation37_spill]]  ;;  %vm1005_vm0 = vcmask 261120   ;;  %v985_v5 = vld [vmem:[#allocation7] sm:$0xff] }
  0x79   : > { %s6442_s7 = sld [smem:[#allocation30_spill]]  ;;  %1049 = vmatpush.msra.mxu1 %v985_v5  ;;  %vm1030_vm1 = vcmask 64512   ;;  %s6365_s24 = smov 88   ;;  %v4872_v11 = vmov 2   ;;  %v4873_v12 = vmov 1   ;;  %v4874_v13 = vmov 0  }
  0x7a   : > { %s5199_s1 = scalar_select %p973_p3, %s5053_s10, 1  ;;  %4369 = vset.pattern.permute.xlu0 %v4872_v11  ;;  %4368 = vset.pattern.permute.xlu2 %v4873_v12  ;;  %v4875_v20 = vmov 8   ;;  %v4876_v21 = vmov 4   ;;  %v4877_v22 = vmov 3   ;;  %v4878_v24 = vmov 5  }
  0x7b   : > { %s6443_s28 = sld [smem:[#allocation38_spill]]  ;;  %s6375_s23 = smov 96   ;;  %4367 = vset.pattern.permute.xlu1 %v4874_v13  ;;  %v4879_v25 = vmov 6   ;;  %v4880_v26 = vmov 7   ;;  %vm1203_vm2 = vcmask 1040384   ;;  %vm1184_vm3 = vcmask 7168  }
  0x7c   : > { %s4110_s5 = sshll.u32 %s5199_s1, 3  ;;  %s6377_s26 = smov 112   ;;  %vm1186_vm4 = vcmask 15360   ;;  %vm1188_vm5 = vcmask 23552   ;;  %vm1190_vm6 = vcmask 31744   ;;  %vm1192_vm7 = vcmask 39936  }
  0x7d   : > { %s6362_s9 = smov 80   ;;  %s6385_s15 = smov 120   ;;  %vm1194_vm8 = vcmask 48128   ;;  %vm1196_vm9 = vcmask 56320   ;;  %vm1199_vm10 = vcmask 72704   ;;  %vm1887_vm11 = vcmask 130048  }
  0x7e   : > { %v1000_v0 = vld [vmem:[%s6441_s3 + $0x18] sm:$0xff]  ;;  %v999_v1 = vld [vmem:[%s6441_s3 + $0x10] sm:$0xff]  ;;  %v998_v2 = vld [vmem:[%s6441_s3 + $0x8] sm:$0xff]  ;;  %s6373_s25 = smov 72   ;;  %s6444_s0 = sld [smem:[#allocation36_spill]]  ;;  %vm1889_vm12 = vcmask 195584  }
  0x7f   : > { %s5213_s6 = scalar_lea.vmem %s6442_s7, %s4110_s5  ;;  %1021 = vmatpush.msra.mxu0 %v1000_v0  ;;  %v997_v3 = vld [vmem:[%s6441_s3] sm:$0xff]  ;;  %s6381_s7 = smov 104  }
  0x80   : > { %v981_v4 = vld [vmem:[%s5213_s6] sm:$0xff]  ;;  %s6367_s17 = smov 48   ;;  %s6370_s30 = smov 64  }
  0x81   : > { %1022 = vmatpush.msra.mxu0 %v999_v1  ;;  %v4440_v6 = vld [vmem:[%s6443_s28] ss:$0 sm:$0xff]  ;;  %s6371_s11 = smov 8   ;;  %s6379_s2 = smov 16  }
  0x82   : > { %s6450_s18 = sld [smem:[#allocation41_spill]]  ;;  %s6460_s29 = smov 88  }
  0x83   : > { %1023 = vmatpush.msra.mxu0 %v998_v2  ;;  %s6451_s22 = sld [smem:[#allocation49_spill]]  ;;  %s6462_s1 = smov 8  }
  0x84   : > { %v5292_v36 = vld [vmem:[%s6444_s0] sm:$0xff]  ;;  %v5300_v38 = vld [vmem:[%s6444_s0 + $0x8] sm:$0xff]  ;;  %v5307_v42 = vld [vmem:[%s6444_s0 + $0x10] sm:$0xff]  ;;  %s6452_s14 = sld [smem:[#allocation43_spill]]  ;;  %s6471_s4 = scalar_lea.vmem [#allocation2], %s5171_s8 }
  0x85   : > { %1024 = vmatpush.msra.mxu0 %v997_v3  ;;  %v5314_v47 = vld [vmem:[%s6444_s0 + $0x18] sm:$0xff]  ;;  %v5323_v51 = vld [vmem:[%s6444_s0 + $0x20] sm:$0xff]  ;;  %v5329_v55 = vld [vmem:[%s6444_s0 + $0x28] sm:$0xff]  ;;  %s6456_s12 = sld [smem:[#allocation42_spill]]  ;;  %s4109_s10 = sshll.u32 %s5171_s8, 3 }
  0x86   : > { %4112 = vmatmul.msk.f32.vlgmr.msra.gmra.mxu0 %vm1005_vm0, %v981_v4  ;;  %v5334_v58 = vld [vmem:[%s6444_s0 + $0x30] sm:$0xff]  ;;  %v5340_v60 = vld [vmem:[%s6444_s0 + $0x38] sm:$0xff]  ;;  %s6465_s16 = sld [smem:[#allocation45_spill]] }
 0x103   : > { %v1026_v7 = vpop.f32.mrf.mxu0 }
 0x104   : > { %v5226_v8 = vadd.f32 %v4440_v6, %v1026_v7  ;;  %v5348_v6 = vld [vmem:[%s6444_s0 + $0x40] sm:$0xff] }
 0x106   : > { %1283 = vrot.lane.b32.xlu2 %v5226_v8, %s6365_s24  ;;  %1061 = vrot.lane.b32.xlu0 %v5226_v8, %s6375_s23  ;;  %v1029_v9 = vmul.f32 0.35355338, %v5226_v8  ;;  %s6445_s24 = sld [smem:[#allocation35_spill]] }
 0x107   : > { %s6448_s23 = sld [smem:[#allocation40_spill]] }
 0x108   : > { %1460 = vrot.lane.b32.xlu1 %v1029_v9, %s6377_s26  ;;  %4113 = vmatmul.msk.f32.vlgmr.msra.gmra.mxu1 %vm1030_vm1, %v1029_v9  ;;  %s6463_s26 = smov 24  }
 0x10e   : > { %1490 = vrot.lane.b32.xlu2 %v5226_v8, %s6362_s9  ;;  %1253 = vrot.lane.b32.xlu0 %v1029_v9, %s6385_s15  ;;  %s6364_s9 = smov 56   ;;  %s6469_s15 = sld [smem:[#allocation52_spill]] }
 0x110   : > { %1667 = vrot.lane.b32.xlu1 %v1029_v9, %s6381_s7  ;;  %s6454_s7 = smov 104  }
 0x116   : > { %1697 = vrot.lane.b32.xlu0 %v5226_v8, %s6373_s25  ;;  %s6455_s25 = smov 112  }
 0x160   : > { %v1284_v10 = vpop.permute.xlu2 %1283 }
 0x161   : > { %4120 = vmatpush.xpose.msk.msra.mxu3 %vm1030_vm1, %v1284_v10 }
 0x168   : > { %v1491_v14 = vpop.permute.xlu2 %1490 }
 0x169   : > { %4126 = vmatpush.xpose.msk.msrb.mxu3 %vm1030_vm1, %v1491_v14 }
 0x178   : > { %v1062_v15 = vpop.permute.xlu0 %1061 }
 0x179   : > { %4114 = vmatpush.xpose.msk.msra.mxu2 %vm1030_vm1, %v1062_v15 }
 0x17a   : > { %v1461_v18 = vpop.permute.xlu1 %1460 }
 0x17c   : > { %4115 = vmatmul.msk.f32.vlgmr.msra.gmra.mxu2 %vm1030_vm1, %v1029_v9 }
 0x17d   : > { %1272 = vmatpush.msrb.mxu2 %v985_v5 }
 0x17f   : > { %1479 = vmatpush.msra.mxu2 %v985_v5 }
 0x180   : > { %v1254_v16 = vpop.permute.xlu0 %1253 }
 0x181   : > { %4121 = vmatmul.msk.f32.vlgmr.msra.gmra.mxu3 %vm1030_vm1, %v1254_v16 }
 0x182   : > { %v1668_v23 = vpop.permute.xlu1 %1667 }
 0x184   : > { %4119 = vmatmul.msk.f32.vlgmr.msrb.gmra.mxu2 %vm1030_vm1, %v1254_v16 }
 0x185   : > { %v1051_v17 = vpop.f32.mrf.mxu1  ;;  %1686 = vmatpush.msrb.mxu2 %v985_v5 }
 0x186   : > { %1092 = vperm.xlu0 %4369, %v1051_v17   ;;  %1086 = vperm.xlu2 %4368, %v1051_v17  }
 0x187   : > { %1056 = vperm.xlu1 %4367, %v1051_v17  }
 0x188   : > { %v1698_v19 = vpop.permute.xlu0 %1697 }
 0x189   : > { %4127 = vmatmul.msk.f32.vlgmr.msrb.gmra.mxu3 %vm1030_vm1, %v1461_v18 }
 0x18a   : > { %4132 = vmatpush.xpose.msk.msra.mxu3 %vm1030_vm1, %v1698_v19  ;;  %v5354_v19 = vld [vmem:[%s6369_s20] ss:$0 sm:$0xff]  ;;  %s6459_s20 = smov 72  }
 0x18c   : > { %4125 = vmatmul.msk.f32.vlgmr.msra.gmra.mxu2 %vm1030_vm1, %v1461_v18 }
 0x18e   : > { %4375 = vset.pattern.permute.xlu0 %v4875_v20  ;;  %4371 = vset.pattern.permute.xlu2 %v4876_v21 }
 0x18f   : > { %4370 = vset.pattern.permute.xlu1 %v4877_v22  ;;  %1128 = vperm.xlu0 %4375, %v1051_v17  }
 0x190   : > { %1104 = vperm.xlu2 %4371, %v1051_v17   ;;  %1098 = vperm.xlu1 %4370, %v1051_v17  }
 0x191   : > { %4133 = vmatmul.msk.f32.vlgmr.msra.gmra.mxu3 %vm1030_vm1, %v1668_v23 }
 0x194   : > { %4131 = vmatmul.msk.f32.vlgmr.msrb.gmra.mxu2 %vm1030_vm1, %v1668_v23 }
 0x197   : > { %4377 = vset.pattern.permute.xlu0 %v4873_v12 }
 0x198   : > { %4372 = vset.pattern.permute.xlu2 %v4878_v24  ;;  %4373 = vset.pattern.permute.xlu1 %v4879_v25 }
 0x199   : > { %1110 = vperm.xlu2 %4372, %v1051_v17   ;;  %1116 = vperm.xlu1 %4373, %v1051_v17  }
 0x1a1   : > { %4374 = vset.pattern.permute.xlu1 %v4880_v26  ;;  %4378 = vset.pattern.permute.xlu2 %v4872_v11 }
 0x1a2   : > { %1122 = vperm.xlu1 %4374, %v1051_v17  }
 0x1aa   : > { %4376 = vset.pattern.permute.xlu1 %v4874_v13 }
 0x1e0   : > { %v1087_v31 = vpop.permute.xlu2 %1086 }
 0x1e1   : > { %v1089_v41 = vmul.f32 %v1087_v31, %v5300_v38 }
 0x1ea   : > { %v1105_v32 = vpop.permute.xlu2 %1104 }
 0x1eb   : > { %v1107_v54 = vmul.f32 %v1105_v32, %v5323_v51 }
 0x1f3   : > { %v1111_v34 = vpop.permute.xlu2 %1110 }
 0x1f4   : > { %v1113_v59 = vmul.f32 %v1111_v34, %v5329_v55 }
 0x1f8   : > { %v1093_v43 = vpop.permute.xlu0 %1092 }
 0x1f9   : > { %v1057_v33 = vpop.permute.xlu1 %1056  ;;  %v1095_v46 = vmul.f32 %v1093_v43, %v5307_v42 }
 0x1fa   : > { %v1059_v37 = vmul.f32 %v1057_v33, %v5292_v36 }
 0x1ff   : > { %v5264_v27 = vpop.f32.mrf.mxu2 }
 0x200   : > { %v1083_v40 = vadd.f32 %v5264_v27, %v1059_v37 }
 0x201   : > { %v1129_v56 = vpop.permute.xlu0 %1128 }
 0x202   : > { %v1099_v35 = vpop.permute.xlu1 %1098  ;;  %v1090_v45 = vadd.f32 %v1089_v41, %v1083_v40  ;;  %v1131_v14 = vmul.f32 %v1129_v56, %v5348_v6 }
 0x203   : > { %v1101_v50 = vmul.f32 %v1099_v35, %v5314_v47 }
 0x204   : > { %v1096_v48 = vadd.f32 %v1095_v46, %v1090_v45  ;;  %v1304_v3 = vpop.f32.mrf.mxu3 }
 0x206   : > { %v1102_v52 = vadd.f32 %v1101_v50, %v1096_v48 }
 0x207   : > { %v1274_v28 = vpop.f32.mrf.mxu2 }
 0x208   : > { %1308 = vperm.xlu0 %4377, %v1274_v28   ;;  %1314 = vperm.xlu2 %4378, %v1274_v28   ;;  %v1108_v57 = vadd.f32 %v1107_v54, %v1102_v52 }
 0x209   : > { %1279 = vperm.xlu1 %4376, %v1274_v28  }
 0x20a   : > { %v1114_v62 = vadd.f32 %v1113_v59, %v1108_v57 }
 0x20b   : > { %v1117_v44 = vpop.permute.xlu1 %1116 }
 0x20c   : > { %v1119_v63 = vmul.f32 %v1117_v44, %v5334_v58  ;;  %v1511_v57 = vpop.f32.mrf.mxu3 }
 0x20e   : > { %v1120_v4 = vadd.f32 %v1119_v63, %v1114_v62 }
 0x20f   : > { %v1481_v29 = vpop.f32.mrf.mxu2 }
 0x210   : > { %4382 = vset.pattern.permute.xlu0 %v4879_v25  ;;  %4379 = vset.pattern.permute.xlu2 %v4877_v22 }
 0x211   : > { %4380 = vset.pattern.permute.xlu1 %v4876_v21  ;;  %1338 = vperm.xlu0 %4382, %v1274_v28  }
 0x212   : > { %1320 = vperm.xlu2 %4379, %v1274_v28   ;;  %1326 = vperm.xlu1 %4380, %v1274_v28  }
 0x214   : > { %v1123_v53 = vpop.permute.xlu1 %1122 }
 0x215   : > { %v1125_v1 = vmul.f32 %v1123_v53, %v5340_v60 }
 0x217   : > { %v1688_v30 = vpop.f32.mrf.mxu2  ;;  %v1126_v9 = vadd.f32 %v1125_v1, %v1120_v4 }
 0x219   : > { %4389 = vset.pattern.permute.xlu0 %v4876_v21  ;;  %v1132_v18 = vadd.f32 %v1131_v14, %v1126_v9 }
 0x21a   : > { %4383 = vset.pattern.permute.xlu2 %v4880_v26  ;;  %4381 = vset.pattern.permute.xlu1 %v4878_v24 }
 0x21b   : > { %1533 = vperm.xlu0 %4389, %v1481_v29   ;;  %1344 = vperm.xlu2 %4383, %v1274_v28  }
 0x21c   : > { %1332 = vperm.xlu1 %4381, %v1274_v28  }
 0x223   : > { %4396 = vset.pattern.permute.xlu0 %v4872_v11  ;;  %4384 = vset.pattern.permute.xlu2 %v4875_v20 }
 0x224   : > { %4387 = vset.pattern.permute.xlu1 %v4872_v11  ;;  %1728 = vperm.xlu0 %4396, %v1688_v30  }
 0x225   : > { %1350 = vperm.xlu2 %4384, %v1274_v28   ;;  %1521 = vperm.xlu1 %4387, %v1481_v29   ;;  %v5358_v28 = vadd.f32 %v5354_v19, %v1132_v18 }
 0x227   : > { %v1137_v32 = vsel %vm1030_vm1, %v5358_v28, -inf }
 0x22c   : > { %4399 = vset.pattern.permute.xlu0 %v4878_v24 }
 0x22d   : > { %4385 = vset.pattern.permute.xlu2 %v4874_v13  ;;  %4388 = vset.pattern.permute.xlu1 %v4877_v22 }
 0x22e   : > { %1746 = vperm.xlu0 %4399, %v1688_v30   ;;  %1486 = vperm.xlu2 %4385, %v1481_v29  }
 0x22f   : > { %1527 = vperm.xlu1 %4388, %v1481_v29  }
 0x236   : > { %4386 = vset.pattern.permute.xlu2 %v4873_v12  ;;  %4405 = vset.pattern.permute.xlu0 %v4872_v11 }
 0x237   : > { %4392 = vset.pattern.permute.xlu1 %v4880_v26  ;;  %1515 = vperm.xlu2 %4386, %v1481_v29  }
 0x238   : > { %1551 = vperm.xlu1 %4392, %v1481_v29  }
 0x23f   : > { %4390 = vset.pattern.permute.xlu2 %v4878_v24 }
 0x240   : > { %4393 = vset.pattern.permute.xlu1 %v4875_v20  ;;  %1539 = vperm.xlu2 %4390, %v1481_v29  }
 0x241   : > { %1557 = vperm.xlu1 %4393, %v1481_v29  }
 0x248   : > { %4391 = vset.pattern.permute.xlu2 %v4879_v25 }
 0x249   : > { %4394 = vset.pattern.permute.xlu1 %v4874_v13  ;;  %1545 = vperm.xlu2 %4391, %v1481_v29  }
 0x24a   : > { %1693 = vperm.xlu1 %4394, %v1688_v30  }
 0x251   : > { %4397 = vset.pattern.permute.xlu2 %v4877_v22 }
 0x252   : > { %4395 = vset.pattern.permute.xlu1 %v4873_v12  ;;  %1734 = vperm.xlu2 %4397, %v1688_v30  }
 0x253   : > { %1722 = vperm.xlu1 %4395, %v1688_v30  }
 0x25a   : > { %4398 = vset.pattern.permute.xlu2 %v4876_v21 }
 0x25b   : > { %4400 = vset.pattern.permute.xlu1 %v4879_v25  ;;  %1740 = vperm.xlu2 %4398, %v1688_v30  }
 0x25c   : > { %1752 = vperm.xlu1 %4400, %v1688_v30  }
 0x262   : > { %v1315_v39 = vpop.permute.xlu2 %1314 }
 0x263   : > { %4401 = vset.pattern.permute.xlu2 %v4880_v26  ;;  %v1317_v23 = vmul.f32 %v1315_v39, %v5307_v42 }
 0x264   : > { %4402 = vset.pattern.permute.xlu1 %v4875_v20  ;;  %1758 = vperm.xlu2 %4401, %v1688_v30  }
 0x265   : > { %1764 = vperm.xlu1 %4402, %v1688_v30  }
 0x26c   : > { %4404 = vset.pattern.permute.xlu2 %v4873_v12  ;;  %v1321_v49 = vpop.permute.xlu2 %1320 }
 0x26d   : > { %1434 = vrot.lane.b32.xlu1 %v5226_v8, %s6364_s9  ;;  %v1323_v29 = vmul.f32 %v1321_v49, %v5314_v47  ;;  %s6383_s9 = smov 24  }
 0x26e   : > { %4403 = vset.pattern.permute.xlu1 %v4874_v13 }
 0x275   : > { %v1345_v61 = vpop.permute.xlu2 %1344 }
 0x276   : > { %v1347_v43 = vmul.f32 %v1345_v61, %v5340_v60 }
 0x27a   : > { %v1309_v5 = vpop.permute.xlu0 %1308 }
 0x27b   : > { %v1280_v0 = vpop.permute.xlu1 %1279  ;;  %v1311_v10 = vmul.f32 %v1309_v5, %v5300_v38 }
 0x27c   : > { %v1282_v2 = vmul.f32 %v1280_v0, %v5292_v36 }
 0x27e   : > { %v1305_v7 = vadd.f32 %v1304_v3, %v1282_v2 }
 0x27f   : > { %v1351_v16 = vpop.permute.xlu2 %1350 }
 0x280   : > { %v1312_v15 = vadd.f32 %v1311_v10, %v1305_v7  ;;  %v1353_v45 = vmul.f32 %v1351_v16, %v5348_v6 }
 0x282   : > { %v1318_v27 = vadd.f32 %v1317_v23, %v1312_v15 }
 0x283   : > { %v1339_v34 = vpop.permute.xlu0 %1338 }
 0x284   : > { %v1327_v17 = vpop.permute.xlu1 %1326  ;;  %v1324_v30 = vadd.f32 %v1323_v29, %v1318_v27  ;;  %v1341_v39 = vmul.f32 %v1339_v34, %v5334_v58 }
 0x285   : > { %v1329_v31 = vmul.f32 %v1327_v17, %v5323_v51 }
 0x287   : > { %v1330_v37 = vadd.f32 %v1329_v31, %v1324_v30 }
 0x288   : > { %v1487_v33 = vpop.permute.xlu2 %1486 }
 0x289   : > { %v1489_v53 = vmul.f32 %v1487_v33, %v5292_v36 }
 0x28b   : > { %v1512_v59 = vadd.f32 %v1511_v57, %v1489_v53 }
 0x28d   : > { %1138 = vmax.xlane.f32.xlu2 %v1137_v32  ;;  %v1534_v3 = vpop.permute.xlu0 %1533 }
 0x28e   : > { %v1333_v35 = vpop.permute.xlu1 %1332  ;;  %v1536_v5 = vmul.f32 %v1534_v3, %v5323_v51 }
 0x28f   : > { %v1335_v40 = vmul.f32 %v1333_v35, %v5329_v55 }
 0x291   : > { %v1336_v41 = vadd.f32 %v1335_v40, %v1330_v37  ;;  %v1516_v48 = vpop.permute.xlu2 %1515 }
 0x292   : > { %v1518_v56 = vmul.f32 %v1516_v48, %v5300_v38 }
 0x293   : > { %v1342_v44 = vadd.f32 %v1341_v39, %v1336_v41  ;;  %v1718_v41 = vpop.f32.mrf.mxu3 }
 0x294   : > { %v1519_v62 = vadd.f32 %v1518_v56, %v1512_v59 }
 0x295   : > { %v1348_v46 = vadd.f32 %v1347_v43, %v1342_v44 }
 0x296   : > { %v1729_v44 = vpop.permute.xlu0 %1728 }
 0x297   : > { %v1522_v49 = vpop.permute.xlu1 %1521  ;;  %v1354_v50 = vadd.f32 %v1353_v45, %v1348_v46  ;;  %v1731_v46 = vmul.f32 %v1729_v44, %v5307_v42 }
 0x298   : > { %v1524_v61 = vmul.f32 %v1522_v49, %v5307_v42 }
 0x299   : > { %v5369_v52 = vadd.f32 %v5354_v19, %v1354_v50 }
 0x29a   : > { %v1540_v63 = vpop.permute.xlu2 %1539  ;;  %v1525_v1 = vadd.f32 %v1524_v61, %v1519_v62 }
 0x29b   : > { %v1356_v54 = vsel %vm1030_vm1, %v5369_v52, -inf  ;;  %v1542_v9 = vmul.f32 %v1540_v63, %v5329_v55 }
 0x29c   : > { %1357 = vmax.xlane.f32.xlu0 %v1356_v54 }
 0x2a0   : > { %v1747_v57 = vpop.permute.xlu0 %1746 }
 0x2a1   : > { %v1528_v0 = vpop.permute.xlu1 %1527  ;;  %v1749_v61 = vmul.f32 %v1747_v57, %v5329_v55 }
 0x2a2   : > { %v1530_v2 = vmul.f32 %v1528_v0, %v5314_v47 }
 0x2a3   : > { %v1546_v14 = vpop.permute.xlu2 %1545 }
 0x2a4   : > { %v1531_v4 = vadd.f32 %v1530_v2, %v1525_v1  ;;  %v1548_v16 = vmul.f32 %v1546_v14, %v5334_v58 }
 0x2a5   : > { %1641 = vrot.lane.b32.xlu2 %v5226_v8, %s6367_s17  ;;  %s6368_s17 = smov 40  }
 0x2a6   : > { %v1537_v7 = vadd.f32 %v1536_v5, %v1531_v4 }
 0x2a8   : > { %v1543_v15 = vadd.f32 %v1542_v9, %v1537_v7 }
 0x2aa   : > { %v1552_v10 = vpop.permute.xlu1 %1551  ;;  %v1549_v17 = vadd.f32 %v1548_v16, %v1543_v15 }
 0x2ab   : > { %v1554_v18 = vmul.f32 %v1552_v10, %v5340_v60 }
 0x2ac   : > { %v1735_v34 = vpop.permute.xlu2 %1734 }
 0x2ad   : > { %v1555_v27 = vadd.f32 %v1554_v18, %v1549_v17  ;;  %v1737_v49 = vmul.f32 %v1735_v34, %v5314_v47 }
 0x2b0   : > { %1227 = vrot.lane.b32.xlu0 %v5226_v8, %s6370_s30  ;;  %s6446_s30 = sld [smem:[#allocation39_spill]] }
 0x2b3   : > { %v1558_v23 = vpop.permute.xlu1 %1557 }
 0x2b4   : > { %v1560_v29 = vmul.f32 %v1558_v23, %v5348_v6 }
 0x2b5   : > { %v1741_v40 = vpop.permute.xlu2 %1740 }
 0x2b6   : > { %v1561_v30 = vadd.f32 %v1560_v29, %v1555_v27  ;;  %v1743_v56 = vmul.f32 %v1741_v40, %v5323_v51 }
 0x2b8   : > { %v5387_v31 = vadd.f32 %v5354_v19, %v1561_v30 }
 0x2ba   : > { %v1563_v32 = vsel %vm1030_vm1, %v5387_v31, -inf }
 0x2bb   : > { %1564 = vmax.xlane.f32.xlu1 %v1563_v32 }
 0x2bc   : > { %v1694_v33 = vpop.permute.xlu1 %1693 }
 0x2bd   : > { %v1696_v37 = vmul.f32 %v1694_v33, %v5292_v36 }
 0x2be   : > { %v1759_v50 = vpop.permute.xlu2 %1758 }
 0x2bf   : > { %v1719_v43 = vadd.f32 %v1718_v41, %v1696_v37  ;;  %v1761_v5 = vmul.f32 %v1759_v50, %v5340_v60 }
 0x2c5   : > { %v1723_v35 = vpop.permute.xlu1 %1722 }
 0x2c6   : > { %v1725_v39 = vmul.f32 %v1723_v35, %v5300_v38 }
 0x2c8   : > { %v1726_v45 = vadd.f32 %v1725_v39, %v1719_v43 }
 0x2ca   : > { %v1732_v48 = vadd.f32 %v1731_v46, %v1726_v45 }
 0x2cc   : > { %v1738_v53 = vadd.f32 %v1737_v49, %v1732_v48 }
 0x2ce   : > { %v1753_v54 = vpop.permute.xlu1 %1752  ;;  %v1744_v59 = vadd.f32 %v1743_v56, %v1738_v53 }
 0x2cf   : > { %v1755_v1 = vmul.f32 %v1753_v54, %v5334_v58 }
 0x2d0   : > { %v1750_v0 = vadd.f32 %v1749_v61, %v1744_v59 }
 0x2d2   : > { %v1756_v4 = vadd.f32 %v1755_v1, %v1750_v0 }
 0x2d4   : > { %v1762_v9 = vadd.f32 %v1761_v5, %v1756_v4 }
 0x2d7   : > { %v1765_v3 = vpop.permute.xlu1 %1764 }
 0x2d8   : > { %v1767_v7 = vmul.f32 %v1765_v3, %v5348_v6 }
 0x2da   : > { %v1768_v14 = vadd.f32 %v1767_v7, %v1762_v9 }
 0x2dc   : > { %v1769_v17 = vadd.f32 %v5354_v19, %v1768_v14 }
 0x2de   : > { %v1770_v23 = vsel %vm1030_vm1, %v1769_v17, -inf }
 0x2df   : > { %v1435_v32 = vpop.permute.xlu1 %1434 }
 0x300   : > { %v1139_v62 = vpop.xlane.xlu2 %1138 }
 0x301   : > { %v1140_v63 = vsub.f32 %v5358_v28, %v1139_v62 }
 0x303   : > { %v1141_v2 = vmul.f32 1.442695, %v1140_v63 }
 0x305   : > { %4468 = vpow2.f32 %v1141_v2 }
 0x308   : > { %v1642_v33 = vpop.permute.xlu2 %1641 }
 0x30b   : > { %v4469_v10 = vpop.eup %4468 }
 0x30c   : > { %v1143_v15 = vsel %vm1030_vm1, %v4469_v10, 0.0 }
 0x30d   : > { %1144 = vadd.xlane.f32.xlu2 %v1143_v15 }
 0x30f   : > { %v1358_v16 = vpop.xlane.xlu0 %1357 }
 0x310   : > { %v1359_v28 = vsub.f32 %v5369_v52, %v1358_v16 }
 0x312   : > { %v1360_v18 = vmul.f32 1.442695, %v1359_v28 }
 0x314   : > { %4470 = vpow2.f32 %v1360_v18 }
 0x315   : > { %1771 = vmax.xlane.f32.xlu2 %v1770_v23 }
 0x31a   : > { %v4471_v27 = vpop.eup %4470 }
 0x31b   : > { %v1362_v29 = vsel %vm1030_vm1, %v4471_v27, 0.0 }
 0x31c   : > { %1363 = vadd.xlane.f32.xlu0 %v1362_v29 }
 0x322   : > { %v1228_v30 = vpop.permute.xlu0 %1227 }
 0x323   : > { %1248 = vmatpush.msrb.mxu1 %v1228_v30 }
 0x325   : > { %1455 = vmatpush.msra.mxu1 %v1435_v32 }
 0x32e   : > { %v1565_v45 = vpop.xlane.xlu1 %1564 }
 0x32f   : > { %v1566_v53 = vsub.f32 %v5387_v31, %v1565_v45 }
 0x331   : > { %v1567_v62 = vmul.f32 1.442695, %v1566_v53 }
 0x380   : > { %v1145_v34 = vpop.xlane.xlu2 %1144 }
 0x381   : > { %4472 = vrcp.f32 %v1145_v34 }
 0x387   : > { %v4473_v35 = vpop.eup %4472 }
 0x388   : > { %v1147_v52 = vmul.f32 %v4473_v35, %v4469_v10  ;;  %v1772_v49 = vpop.xlane.xlu2 %1771 }
 0x389   : > { %v1773_v54 = vsub.f32 %v1769_v17, %v1772_v49 }
 0x38a   : > { %4118 = vmatmul.msk.f32.vlgmr.msrb.gmra.mxu1 %vm1030_vm1, %v1147_v52  ;;  %v1148_v19 = vmul.f32 %v1147_v52, %v5292_v36  ;;  %v1152_v37 = vmul.f32 %v1147_v52, %v5300_v38  ;;  %v1156_v40 = vmul.f32 %v1147_v52, %v5307_v42  ;;  %v1160_v46 = vmul.f32 %v1147_v52, %v5314_v47 }
 0x38b   : > { %1662 = vmatpush.msrb.mxu1 %v1642_v33  ;;  %v1164_v48 = vmul.f32 %v1147_v52, %v5323_v51  ;;  %v1168_v50 = vmul.f32 %v1147_v52, %v5329_v55  ;;  %v1774_v0 = vmul.f32 1.442695, %v1773_v54  ;;  %v1172_v1 = vmul.f32 %v1147_v52, %v5334_v58 }
 0x38c   : > { %v1149_v39 = vsel %vm1030_vm1, %v1148_v19, 0.0  ;;  %v1153_v41 = vsel %vm1030_vm1, %v1152_v37, 0.0  ;;  %v1157_v43 = vsel %vm1030_vm1, %v1156_v40, 0.0  ;;  %v1161_v56 = vsel %vm1030_vm1, %v1160_v46, 0.0 }
 0x38d   : > { %1150 = vadd.xlane.f32.xlu0 %v1149_v39  ;;  %1154 = vadd.xlane.f32.xlu1 %v1153_v41  ;;  %v1165_v57 = vsel %vm1030_vm1, %v1164_v48, 0.0  ;;  %v1169_v59 = vsel %vm1030_vm1, %v1168_v50, 0.0  ;;  %v1176_v2 = vmul.f32 %v1147_v52, %v5340_v60  ;;  %v1180_v31 = vmul.f32 %v1147_v52, %v5348_v6  ;;  %v5456_v41 = vld [vmem:[%s6445_s24 + $0x8] sm:$0x1] }
 0x38e   : > { %1158 = vadd.xlane.f32.xlu2 %v1157_v43  ;;  %v1173_v3 = vsel %vm1030_vm1, %v1172_v1, 0.0  ;;  %v5461_v43 = vld [vmem:[%s6445_s24] sm:$0xff]  ;;  %4116 = vmatpush.msk.msrb.mxu0 %vm1203_vm2, %v5456_v41 }
 0x38f   : > { %v1364_v44 = vpop.xlane.xlu0 %1363  ;;  %v1177_v4 = vsel %vm1030_vm1, %v1176_v2, 0.0  ;;  %v1181_v5 = vsel %vm1030_vm1, %v1180_v31, 0.0 }
 0x390   : > { %4474 = vrcp.f32 %v1364_v44  ;;  %1222 = vmatpush.msrb.mxu0 %v5461_v43 }
 0x391   : > { %4476 = vpow2.f32 %v1567_v62 }
 0x392   : > { %4478 = vpow2.f32 %v1774_v0  ;;  %4122 = vmatpush.msk.msra.mxu0 %vm1203_vm2, %v5456_v41 }
 0x394   : > { %1429 = vmatpush.msra.mxu0 %v5461_v43 }
 0x395   : > { %1162 = vadd.xlane.f32.xlu0 %v1161_v56  ;;  %1166 = vadd.xlane.f32.xlu1 %v1165_v57 }
 0x396   : > { %v4475_v61 = vpop.eup %4474  ;;  %1170 = vadd.xlane.f32.xlu2 %v1169_v59 }
 0x397   : > { %v1366_v63 = vmul.f32 %v4475_v61, %v4471_v27  ;;  %v5428_v9 = vpop.eup %4476 }
 0x398   : > { %v5430_v10 = vpop.eup %4478  ;;  %v1569_v15 = vsel %vm1030_vm1, %v5428_v9, 0.0 }
 0x399   : > { %4124 = vmatmul.msk.f32.vlgmr.msra.gmra.mxu1 %vm1030_vm1, %v1366_v63  ;;  %v1387_v7 = vmul.f32 %v1366_v63, %v5329_v55  ;;  %v1776_v16 = vsel %vm1030_vm1, %v5430_v10, 0.0  ;;  %v1367_v28 = vmul.f32 %v1366_v63, %v5292_v36  ;;  %v1371_v17 = vmul.f32 %v1366_v63, %v5300_v38 }
 0x39a   : > { %v1375_v27 = vmul.f32 %v1366_v63, %v5307_v42  ;;  %v1379_v29 = vmul.f32 %v1366_v63, %v5314_v47  ;;  %v1383_v33 = vmul.f32 %v1366_v63, %v5323_v51  ;;  %v1391_v34 = vmul.f32 %v1366_v63, %v5334_v58 }
 0x39b   : > { %v1388_v14 = vsel %vm1030_vm1, %v1387_v7, 0.0  ;;  %v1368_v18 = vsel %vm1030_vm1, %v1367_v28, 0.0  ;;  %v1372_v23 = vsel %vm1030_vm1, %v1371_v17, 0.0  ;;  %v1395_v19 = vmul.f32 %v1366_v63, %v5340_v60 }
 0x39c   : > { %v1376_v30 = vsel %vm1030_vm1, %v1375_v27, 0.0  ;;  %v1380_v32 = vsel %vm1030_vm1, %v1379_v29, 0.0  ;;  %v1384_v35 = vsel %vm1030_vm1, %v1383_v33, 0.0  ;;  %v1392_v52 = vsel %vm1030_vm1, %v1391_v34, 0.0 }
 0x39d   : > { %1174 = vadd.xlane.f32.xlu0 %v1173_v3  ;;  %1178 = vadd.xlane.f32.xlu1 %v1177_v4  ;;  %v1399_v37 = vmul.f32 %v1366_v63, %v5348_v6  ;;  %v1396_v40 = vsel %vm1030_vm1, %v1395_v19, 0.0 }
 0x39e   : > { %1182 = vadd.xlane.f32.xlu2 %v1181_v5 }
 0x39f   : > { %v1400_v39 = vsel %vm1030_vm1, %v1399_v37, 0.0 }
 0x3a5   : > { %1389 = vadd.xlane.f32.xlu0 %v1388_v14  ;;  %1570 = vadd.xlane.f32.xlu1 %v1569_v15 }
 0x3a6   : > { %1777 = vadd.xlane.f32.xlu2 %v1776_v16 }
 0x3ad   : > { %1369 = vadd.xlane.f32.xlu1 %v1368_v18 }
 0x3ae   : > { %1373 = vadd.xlane.f32.xlu2 %v1372_v23 }
 0x3b5   : > { %1377 = vadd.xlane.f32.xlu1 %v1376_v30 }
 0x3b6   : > { %1381 = vadd.xlane.f32.xlu2 %v1380_v32 }
 0x3bd   : > { %1385 = vadd.xlane.f32.xlu1 %v1384_v35 }
 0x3be   : > { %1393 = vadd.xlane.f32.xlu2 %v1392_v52 }
 0x3c5   : > { %1397 = vadd.xlane.f32.xlu1 %v1396_v40 }
 0x3c6   : > { %1401 = vadd.xlane.f32.xlu2 %v1400_v39 }
 0x400   : > { %v1151_v44 = vpop.xlane.xlu0 %1150  ;;  %v1155_v45 = vpop.xlane.xlu1 %1154 }
 0x401   : > { %v1159_v46 = vpop.xlane.xlu2 %1158  ;;  %v1185_v48 = vsel %vm1184_vm3, %v1151_v44, %v1155_v45 }
 0x402   : > { %v1187_v53 = vsel %vm1186_vm4, %v1185_v48, %v1159_v46 }
 0x408   : > { %v1163_v49 = vpop.xlane.xlu0 %1162  ;;  %v1167_v50 = vpop.xlane.xlu1 %1166 }
 0x409   : > { %v1171_v54 = vpop.xlane.xlu2 %1170  ;;  %v1189_v56 = vsel %vm1188_vm5, %v1187_v53, %v1163_v49 }
 0x40a   : > { %v1191_v57 = vsel %vm1190_vm6, %v1189_v56, %v1167_v50 }
 0x40b   : > { %v1193_v61 = vsel %vm1192_vm7, %v1191_v57, %v1171_v54 }
 0x410   : > { %v1175_v59 = vpop.xlane.xlu0 %1174  ;;  %v1179_v62 = vpop.xlane.xlu1 %1178 }
 0x411   : > { %v1195_v63 = vsel %vm1194_vm8, %v1193_v61, %v1175_v59  ;;  %v1183_v0 = vpop.xlane.xlu2 %1182 }
 0x412   : > { %v1197_v1 = vsel %vm1196_vm9, %v1195_v63, %v1179_v62 }
 0x413   : > { %v1198_v2 = vsel %vm1030_vm1, %v1197_v1, %v1183_v0 }
 0x414   : > { %4117 = vmatmul.msk.f32.vlgmr.msrb.gmra.mxu0 %vm1199_vm10, %v1198_v2 }
 0x415   : > { %4128 = vmatpush.msk.msrb.mxu0 %vm1203_vm2, %v5456_v41 }
 0x417   : > { %1636 = vmatpush.msrb.mxu0 %v5461_v43 }
 0x418   : > { %v1571_v31 = vpop.xlane.xlu1 %1570  ;;  %v1390_v50 = vpop.xlane.xlu0 %1389 }
 0x419   : > { %v1778_v3 = vpop.xlane.xlu2 %1777  ;;  %4480 = vrcp.f32 %v1571_v31 }
 0x41a   : > { %4482 = vrcp.f32 %v1778_v3 }
 0x41f   : > { %v4481_v4 = vpop.eup %4480 }
 0x420   : > { %v1573_v5 = vmul.f32 %v4481_v4, %v5428_v9  ;;  %v1370_v7 = vpop.xlane.xlu1 %1369  ;;  %v4483_v14 = vpop.eup %4482 }
 0x421   : > { %v1374_v15 = vpop.xlane.xlu2 %1373  ;;  %v5487_v18 = vmul.f32 %v4483_v14, %v5430_v10 }
 0x422   : > { %4130 = vmatmul.msk.f32.vlgmr.msrb.gmra.mxu1 %vm1030_vm1, %v1573_v5  ;;  %v1590_v16 = vmul.f32 %v1573_v5, %v5323_v51  ;;  %v1586_v28 = vmul.f32 %v1573_v5, %v5314_v47  ;;  %v1574_v17 = vmul.f32 %v1573_v5, %v5292_v36  ;;  %v1598_v30 = vmul.f32 %v1573_v5, %v5334_v58 }
 0x423   : > { %v1789_v32 = vmul.f32 %v5487_v18, %v5307_v42  ;;  %v1578_v34 = vmul.f32 %v1573_v5, %v5300_v38  ;;  %v1403_v52 = vsel %vm1184_vm3, %v1370_v7, %v1374_v15  ;;  %v1606_v39 = vmul.f32 %v1573_v5, %v5348_v6 }
 0x424   : > { %v1591_v23 = vsel %vm1030_vm1, %v1590_v16, 0.0  ;;  %v1587_v27 = vsel %vm1030_vm1, %v1586_v28, 0.0  ;;  %v1575_v9 = vsel %vm1030_vm1, %v1574_v17, 0.0  ;;  %v1599_v10 = vsel %vm1030_vm1, %v1598_v30, 0.0 }
 0x425   : > { %1592 = vadd.xlane.f32.xlu0 %v1591_v23  ;;  %1588 = vadd.xlane.f32.xlu1 %v1587_v27  ;;  %v1790_v35 = vsel %vm1030_vm1, %v1789_v32, 0.0  ;;  %v1579_v19 = vsel %vm1030_vm1, %v1578_v34, 0.0  ;;  %v1801_v44 = vmul.f32 %v5487_v18, %v5329_v55  ;;  %v1582_v48 = vmul.f32 %v1573_v5, %v5307_v42  ;;  %v1250_v34 = vpop.f32.mrf.mxu1 }
 0x426   : > { %1576 = vadd.xlane.f32.xlu2 %v1575_v9  ;;  %v1607_v53 = vsel %vm1030_vm1, %v1606_v39, 0.0  ;;  %v1781_v42 = vmul.f32 %v5487_v18, %v5292_v36  ;;  %v1809_v62 = vmul.f32 %v5487_v18, %v5340_v60  ;;  %v1594_v1 = vmul.f32 %v1573_v5, %v5329_v55 }
 0x427   : > { %v1802_v54 = vsel %vm1030_vm1, %v1801_v44, 0.0  ;;  %v1583_v57 = vsel %vm1030_vm1, %v1582_v48, 0.0  ;;  %v1785_v55 = vmul.f32 %v5487_v18, %v5300_v38  ;;  %v1602_v4 = vmul.f32 %v1573_v5, %v5340_v60 }
 0x428   : > { %v1378_v29 = vpop.xlane.xlu1 %1377  ;;  %v1782_v31 = vsel %vm1030_vm1, %v1781_v42, 0.0  ;;  %v1810_v3 = vsel %vm1030_vm1, %v1809_v62, 0.0  ;;  %v1595_v36 = vsel %vm1030_vm1, %v1594_v1, 0.0  ;;  %v1793_v15 = vmul.f32 %v5487_v18, %v5314_v47 }
 0x429   : > { %v1382_v33 = vpop.xlane.xlu2 %1381  ;;  %v1404_v37 = vsel %vm1186_vm4, %v1403_v52, %v1378_v29  ;;  %v1786_v7 = vsel %vm1030_vm1, %v1785_v55, 0.0  ;;  %v1603_v14 = vsel %vm1030_vm1, %v1602_v4, 0.0  ;;  %v1797_v16 = vmul.f32 %v5487_v18, %v5323_v51 }
 0x42a   : > { %v1405_v46 = vsel %vm1188_vm5, %v1404_v37, %v1382_v33  ;;  %v1794_v28 = vsel %vm1030_vm1, %v1793_v15, 0.0  ;;  %v1805_v38 = vmul.f32 %v5487_v18, %v5334_v58  ;;  %v1813_v47 = vmul.f32 %v5487_v18, %v5348_v6 }
 0x42b   : > { %v1798_v17 = vsel %vm1030_vm1, %v1797_v16, 0.0  ;;  %v1894_v16 = vld [vmem:[%s6446_s30 + $0x18] sm:$0xff] }
 0x42c   : > { %v1806_v60 = vsel %vm1030_vm1, %v1805_v38, 0.0  ;;  %v1814_v51 = vsel %vm1030_vm1, %v1813_v47, 0.0  ;;  %1914 = vmatpush.msra.mxu2 %v1894_v16  ;;  %v4445_v16 = vld [vmem:[%s6452_s14] ss:$0 sm:$0xff]  ;;  %s6473_s14 = smov 48  }
 0x42d   : > { %1600 = vadd.xlane.f32.xlu0 %v1599_v10  ;;  %1791 = vadd.xlane.f32.xlu1 %v1790_v35  ;;  %v1457_v39 = vpop.f32.mrf.mxu1 }
 0x42e   : > { %1580 = vadd.xlane.f32.xlu2 %v1579_v19 }
 0x430   : > { %v1386_v40 = vpop.xlane.xlu1 %1385 }
 0x431   : > { %v1394_v45 = vpop.xlane.xlu2 %1393  ;;  %v1406_v49 = vsel %vm1190_vm6, %v1405_v46, %v1386_v40 }
 0x432   : > { %v1407_v56 = vsel %vm1192_vm7, %v1406_v49, %v1390_v50 }
 0x433   : > { %v1408_v59 = vsel %vm1194_vm8, %v1407_v56, %v1394_v45 }
 0x435   : > { %1608 = vadd.xlane.f32.xlu0 %v1607_v53  ;;  %1803 = vadd.xlane.f32.xlu1 %v1802_v54 }
 0x436   : > { %1584 = vadd.xlane.f32.xlu2 %v1583_v57 }
 0x438   : > { %v1398_v61 = vpop.xlane.xlu1 %1397 }
 0x439   : > { %v1402_v63 = vpop.xlane.xlu2 %1401  ;;  %v1409_v0 = vsel %vm1196_vm9, %v1408_v59, %v1398_v61 }
 0x43a   : > { %v1410_v2 = vsel %vm1030_vm1, %v1409_v0, %v1402_v63 }
 0x43b   : > { %4123 = vmatmul.msk.f32.vlgmr.msra.gmra.mxu0 %vm1199_vm10, %v1410_v2 }
 0x43c   : > { %4134 = vmatpush.msk.msra.mxu0 %vm1203_vm2, %v5456_v41 }
 0x43d   : > { %1783 = vadd.xlane.f32.xlu0 %v1782_v31  ;;  %1811 = vadd.xlane.f32.xlu1 %v1810_v3 }
 0x43e   : > { %1596 = vadd.xlane.f32.xlu2 %v1595_v36  ;;  %1843 = vmatpush.msra.mxu0 %v5461_v43 }
 0x445   : > { %1787 = vadd.xlane.f32.xlu0 %v1786_v7 }
 0x446   : > { %1604 = vadd.xlane.f32.xlu2 %v1603_v14 }
 0x44d   : > { %1795 = vadd.xlane.f32.xlu0 %v1794_v28 }
 0x44e   : > { %1799 = vadd.xlane.f32.xlu2 %v1798_v17 }
 0x455   : > { %1807 = vadd.xlane.f32.xlu0 %v1806_v60 }
 0x456   : > { %1848 = vrot.lane.b32.xlu1 %v5226_v8, %s6368_s17 }
 0x45d   : > { %1815 = vadd.xlane.f32.xlu0 %v1814_v51 }
 0x491   : > { %v1224_v8 = vpop.f32.mrf.mxu0 }
 0x492   : > { %v1251_v47 = vadd.f32 %v1250_v34, %v1224_v8 }
 0x498   : > { %v1593_v5 = vpop.xlane.xlu0 %1592  ;;  %v1589_v29 = vpop.xlane.xlu1 %1588 }
 0x499   : > { %v1577_v23 = vpop.xlane.xlu2 %1576 }
 0x49f   : > { %v1664_v55 = vpop.f32.mrf.mxu1 }
 0x4a0   : > { %v1601_v27 = vpop.xlane.xlu0 %1600  ;;  %v1792_v32 = vpop.xlane.xlu1 %1791 }
 0x4a1   : > { %v1581_v9 = vpop.xlane.xlu2 %1580 }
 0x4a2   : > { %v1610_v33 = vsel %vm1184_vm3, %v1577_v23, %v1581_v9 }
 0x4a8   : > { %v1609_v30 = vpop.xlane.xlu0 %1608  ;;  %v1804_v37 = vpop.xlane.xlu1 %1803 }
 0x4a9   : > { %v1585_v58 = vpop.xlane.xlu2 %1584 }
 0x4aa   : > { %v1611_v10 = vsel %vm1186_vm4, %v1610_v33, %v1585_v58 }
 0x4ab   : > { %v1612_v6 = vsel %vm1188_vm5, %v1611_v10, %v1589_v29  ;;  %v4442_v29 = vld [vmem:[%s6448_s23] ss:$0 sm:$0xff]  ;;  %v4888_v10 = vmov 32.0  }
 0x4ac   : > { %v1613_v19 = vsel %vm1190_vm6, %v1612_v6, %v1593_v5  ;;  %4484 = vrcp.f32 %v4888_v10 }
 0x4b0   : > { %v1784_v35 = vpop.xlane.xlu0 %1783  ;;  %v1812_v54 = vpop.xlane.xlu1 %1811 }
 0x4b1   : > { %v1597_v52 = vpop.xlane.xlu2 %1596 }
 0x4b2   : > { %v1614_v40 = vsel %vm1192_vm7, %v1613_v19, %v1597_v52  ;;  %v4485_v8 = vpop.eup %4484 }
 0x4b3   : > { %v1615_v48 = vsel %vm1194_vm8, %v1614_v40, %v1601_v27  ;;  %vm1933_vm13 = vweird.f32 %v4485_v8 }
 0x4b8   : > { %v1788_v44 = vpop.xlane.xlu0 %1787  ;;  %v1431_v45 = vpop.f32.mrf.mxu0 }
 0x4b9   : > { %v1605_v46 = vpop.xlane.xlu2 %1604  ;;  %v1458_v49 = vadd.f32 %v1457_v39, %v1431_v45  ;;  %v1817_v57 = vsel %vm1184_vm3, %v1784_v35, %v1788_v44  ;;  %v1929_v35 = vmul.f32 32.0, %v4485_v8 }
 0x4ba   : > { %v1616_v50 = vsel %vm1196_vm9, %v1615_v48, %v1605_v46  ;;  %v1818_v59 = vsel %vm1186_vm4, %v1817_v57, %v1792_v32  ;;  %v4546_v32 = vld [vmem:[%s5213_s6] sm:$0xff]  ;;  %v1996_v48 = vld [vmem:[%s6325_s13 + $0x18] sm:$0xff]  ;;  %s6461_s6 = smov 80  }
 0x4bb   : > { %v1617_v53 = vsel %vm1030_vm1, %v1616_v50, %v1609_v30  ;;  %1875 = vrot.lane.b32.xlu0 %v1458_v49, %s6371_s11  ;;  %s6447_s11 = smov %s6446_s30  ;;  %v1930_v52 = vsub.f32 1.0, %v1929_v35  ;;  %s6449_s30 = sld [smem:[#allocation31_spill]]  ;;  %v1995_v49 = vld [vmem:[%s6325_s13 + $0x10] sm:$0xff]  ;;  %v1994_v50 = vld [vmem:[%s6325_s13 + $0x8] sm:$0xff] }
 0x4bc   : > { %4129 = vmatmul.msk.f32.vlgmr.msrb.gmra.mxu0 %vm1199_vm10, %v1617_v53  ;;  %v1893_v28 = vld [vmem:[%s6447_s11 + $0x10] sm:$0xff]  ;;  %v1892_v17 = vld [vmem:[%s6447_s11 + $0x8] sm:$0xff]  ;;  %v1891_v38 = vld [vmem:[%s6447_s11] sm:$0xff] }
 0x4bd   : > { %1915 = vmatpush.msra.mxu2 %v1893_v28  ;;  %v1931_v6 = vmul.f32 %v4485_v8, %v1930_v52  ;;  %2016 = vmatpush.msrb.mxu0 %v1996_v48  ;;  %v1993_v53 = vld [vmem:[%s6325_s13] sm:$0xff] }
 0x4bf   : > { %1916 = vmatpush.msra.mxu2 %v1892_v17  ;;  %v1932_v19 = vadd.f32 %v4485_v8, %v1931_v6  ;;  %2017 = vmatpush.msrb.mxu0 %v1995_v49 }
 0x4c0   : > { %v1796_v56 = vpop.xlane.xlu0 %1795 }
 0x4c1   : > { %v1819_v61 = vsel %vm1188_vm5, %v1818_v59, %v1796_v56  ;;  %v1800_v42 = vpop.xlane.xlu2 %1799  ;;  %1917 = vmatpush.msra.mxu2 %v1891_v38  ;;  %s5601_s17 = scalar_lea.vmem %s6449_s30, %s4110_s5  ;;  %v1964_v56 = vld [vmem:[%s6450_s18 + $0x10] sm:$0xff]  ;;  %2018 = vmatpush.msrb.mxu0 %v1994_v50  ;;  %v1963_v59 = vld [vmem:[%s6450_s18 + $0x8] sm:$0xff]  ;;  %s6453_s5 = smov 120   ;;  %v4446_v38 = vld [vmem:[%s6456_s12] ss:$0 sm:$0xff] }
 0x4c2   : > { %v1820_v0 = vsel %vm1190_vm6, %v1819_v61, %v1800_v42  ;;  %v982_v57 = vld [vmem:[%s5601_s17] sm:$0xff]  ;;  %s6464_s30 = smov 16   ;;  %s6472_s12 = smov 56  }
 0x4c3   : > { %v1821_v1 = vsel %vm1192_vm7, %v1820_v0, %v1804_v37  ;;  %v5589_v37 = vsel %vm1933_vm13, %v4485_v8, %v1932_v19  ;;  %2019 = vmatpush.msrb.mxu0 %v1993_v53  ;;  %v1962_v61 = vld [vmem:[%s6450_s18] sm:$0xff] }
 0x4c8   : > { %v1808_v62 = vpop.xlane.xlu0 %1807  ;;  %v1849_v63 = vpop.permute.xlu1 %1848 }
 0x4c9   : > { %1869 = vmatpush.msra.mxu1 %v1849_v63  ;;  %v1822_v2 = vsel %vm1194_vm8, %v1821_v1, %v1808_v62 }
 0x4ca   : > { %4136 = vmatmul.msk.f32.vlgmr.msra.gmra.mxu1 %vm1030_vm1, %v5487_v18  ;;  %v1823_v3 = vsel %vm1196_vm9, %v1822_v2, %v1812_v54  ;;  %v1965_v54 = vld [vmem:[%s6450_s18 + $0x18] sm:$0xff] }
 0x4cb   : > { %1985 = vmatpush.msrb.mxu3 %v1965_v54 }
 0x4cd   : > { %1986 = vmatpush.msrb.mxu3 %v1964_v56 }
 0x4cf   : > { %1987 = vmatpush.msrb.mxu3 %v1963_v59 }
 0x4d0   : > { %v1816_v31 = vpop.xlane.xlu0 %1815 }
 0x4d1   : > { %v1824_v36 = vsel %vm1030_vm1, %v1823_v3, %v1816_v31  ;;  %1988 = vmatpush.msrb.mxu3 %v1962_v61 }
 0x4d2   : > { %4135 = vmatmul.msk.f32.vlgmr.msra.gmra.mxu0 %vm1199_vm10, %v1824_v36 }
 0x4da   : > { %4139 = vmatmul.msk.f32.vlgmr.msrb.gmra.mxu0 %vm1005_vm0, %v982_v57 }
 0x52d   : > { %v1876_v60 = vpop.permute.xlu0 %1875 }
 0x52e   : > { %v1886_v5 = vsel %vm1030_vm1, %v1251_v47, %v1876_v60 }
 0x539   : > { %v1638_v4 = vpop.f32.mrf.mxu0 }
 0x53a   : > { %v1665_v7 = vadd.f32 %v1664_v55, %v1638_v4  ;;  %v4443_v55 = vld [vmem:[%s6333_s21] ss:$0 sm:$0xff] }
 0x53c   : > { %1879 = vrot.lane.b32.xlu2 %v1665_v7, %s6379_s2  ;;  %s6458_s2 = smov 96  }
 0x547   : > { %v1871_v14 = vpop.f32.mrf.mxu1 }
 0x54f   : > { %v1845_v15 = vpop.f32.mrf.mxu0 }
 0x550   : > { %v1872_v18 = vadd.f32 %v1871_v14, %v1845_v15  ;;  %v4444_v14 = vld [vmem:[%s6451_s22] ss:$0 sm:$0xff]  ;;  %s6470_s22 = smov 64  }
 0x552   : > { %1883 = vrot.lane.b32.xlu0 %v1872_v18, %s6383_s9  ;;  %s6457_s9 = scalar_lea.vmem [#allocation5], %s5171_s8 }
 0x557   : > { %v2021_v28 = vpop.f32.mrf.mxu0 }
 0x558   : > { %v5640_v17 = vadd.f32 %v4445_v16, %v2021_v28 }
 0x55a   : > { %2093 = vrot.lane.b32.xlu2 %v5640_v17, %s6453_s5  ;;  %4140 = vmatpush.xpose.msk.msrb.mxu1 %vm1030_vm1, %v5640_v17 }
 0x562   : > { %2158 = vrot.lane.b32.xlu2 %v5640_v17, %s6455_s25 }
 0x596   : > { %v1880_v51 = vpop.permute.xlu2 %1879 }
 0x597   : > { %v1888_v23 = vsel %vm1887_vm11, %v1886_v5, %v1880_v51 }
 0x5b4   : > { %v2094_v5 = vpop.permute.xlu2 %2093 }
 0x5b5   : > { %4143 = vmatpush.xpose.msk.msra.mxu3 %vm1030_vm1, %v2094_v5 }
 0x5c4   : > { %v1884_v27 = vpop.permute.xlu0 %1883 }
 0x5c5   : > { %v1890_v9 = vsel %vm1889_vm12, %v1888_v23, %v1884_v27  ;;  %v2159_v23 = vpop.permute.xlu2 %2158 }
 0x5c6   : > { %4137 = vmatmul.msk.f32.vlgmr.msra.gmra.mxu2 %vm1005_vm0, %v1890_v9  ;;  %4146 = vmatpush.xpose.msk.msra.mxu1 %vm1030_vm1, %v2159_v23 }
 0x649   : > { %v1919_v30 = vpop.f32.mrf.mxu2 }
 0x64a   : > { %v1920_v58 = vadd.f32 %v4442_v29, %v1919_v30 }
 0x64c   : > { %v1922_v33 = vadd.f32 %v4546_v32, %v1920_v58  ;;  %v4447_v58 = vld [vmem:[%s6457_s9] ss:$0 sm:$0xff]  ;;  %s6468_s9 = sld [smem:[#allocation48_spill]] }
 0x64e   : > { %v1925_v34 = vsel %vm1005_vm0, %v1922_v33, 0.0 }
 0x64f   : > { %1926 = vadd.xlane.f32.xlu1 %v1925_v34 }
 0x668   : > { %2223 = vrot.lane.b32.xlu1 %v5640_v17, %s6454_s7 }
 0x6c2   : > { %v1927_v40 = vpop.xlane.xlu1 %1926 }
 0x6c3   : > { %v1935_v39 = vmul.f32 %v5589_v37, %v1927_v40 }
 0x6c5   : > { %v1936_v44 = vsub.f32 %v1922_v33, %v1935_v39 }
 0x6c7   : > { %v1937_v45 = vmul.f32 %v1936_v44, %v1936_v44 }
 0x6c9   : > { %v1938_v46 = vsel %vm1005_vm0, %v1937_v45, 0.0 }
 0x6ca   : > { %1939 = vadd.xlane.f32.xlu0 %v1938_v46 }
 0x6da   : > { %v2224_v27 = vpop.permute.xlu1 %2223 }
 0x73d   : > { %v1940_v42 = vpop.xlane.xlu0 %1939 }
 0x73e   : > { %v1941_v62 = vmul.f32 %v1940_v42, %v5589_v37 }
 0x740   : > { %v1942_v63 = vadd.f32 1e-05, %v1941_v62 }
 0x742   : > { %4486 = vrsqrt.f32 %v1942_v63  ;;  %vm1949_vm15 = vweird.f32 %v1942_v63 }
 0x748   : > { %v4487_v0 = vpop.eup %4486 }
 0x749   : > { %v1944_v1 = vmul.f32 %v4487_v0, %v1942_v63  ;;  %vm1950_vm14 = vweird.f32 %v4487_v0 }
 0x74a   : > { %vm1951_vm13 = vmor %vm1949_vm15, %vm1950_vm14 }
 0x74b   : > { %v1945_v2 = vmul.f32 %v4487_v0, %v1944_v1 }
 0x74d   : > { %v1946_v31 = vmul.f32 0.5, %v1945_v2 }
 0x74f   : > { %v1947_v3 = vsub.f32 1.5, %v1946_v31 }
 0x751   : > { %v1948_v36 = vmul.f32 %v4487_v0, %v1947_v3 }
 0x753   : > { %v1952_v4 = vsel %vm1951_vm13, %v4487_v0, %v1948_v36 }
 0x754   : > { %v1953_v7 = vmul.f32 %v1952_v4, %v1936_v44 }
 0x756   : > { %v1957_v15 = vmul.f32 %v4443_v55, %v1953_v7 }
 0x758   : > { %v5633_v18 = vadd.f32 %v4444_v14, %v1957_v15 }
 0x75a   : > { %4138 = vmatmul.msk.f32.vlgmr.msrb.gmra.mxu3 %vm1005_vm0, %v5633_v18 }
 0x75b   : > { %4149 = vmatpush.xpose.msk.msrb.mxu3 %vm1030_vm1, %v2224_v27 }
 0x7dd   : > { %v1990_v60 = vpop.f32.mrf.mxu3 }
 0x7de   : > { %v1991_v47 = vadd.f32 %v4446_v38, %v1990_v60 }
 0x7e0   : > { %v2024_v51 = vmul.f32 0.35355338, %v1991_v47 }
 0x7e2   : > { %2221 = vrot.lane.b32.xlu0 %v2024_v51, %s6454_s7  ;;  %2091 = vrot.lane.b32.xlu2 %v2024_v51, %s6453_s5 }
 0x7e3   : > { %4141 = vmatmul.msk.f32.vlgmr.msrb.gmra.mxu1 %vm1030_vm1, %v2024_v51 }
 0x7ea   : > { %2156 = vrot.lane.b32.xlu2 %v2024_v51, %s6455_s25 }
 0x83c   : > { %v2092_v9 = vpop.permute.xlu2 %2091 }
 0x83d   : > { %4144 = vmatmul.msk.f32.vlgmr.msra.gmra.mxu3 %vm1030_vm1, %v2092_v9 }
 0x844   : > { %v2157_v29 = vpop.permute.xlu2 %2156 }
 0x845   : > { %4147 = vmatmul.msk.f32.vlgmr.msra.gmra.mxu1 %vm1030_vm1, %v2157_v29 }
 0x854   : > { %v2222_v30 = vpop.permute.xlu0 %2221 }
 0x855   : > { %4150 = vmatmul.msk.f32.vlgmr.msrb.gmra.mxu3 %vm1030_vm1, %v2222_v30 }
 0x860   : > { %v2051_v32 = vpop.f32.mrf.mxu1 }
 0x861   : > { %v2052_v33 = vadd.f32 %v4447_v58, %v2051_v32 }
 0x863   : > { %v2054_v34 = vsel %vm1030_vm1, %v2052_v33, -inf }
 0x864   : > { %2055 = vmax.xlane.f32.xlu2 %v2054_v34  ;;  %v2303_v34 = vld [vmem:[#allocation8 + $0x10] sm:$0xff] }
 0x8c0   : > { %v2116_v10 = vpop.f32.mrf.mxu3 }
 0x8c1   : > { %v2117_v8 = vadd.f32 %v4447_v58, %v2116_v10  ;;  %v2302_v10 = vld [vmem:[#allocation8 + $0x8] sm:$0xff] }
 0x8c2   : > { %v2181_v35 = vpop.f32.mrf.mxu1 }
 0x8c3   : > { %v2182_v52 = vadd.f32 %v4447_v58, %v2181_v35  ;;  %v2119_v6 = vsel %vm1030_vm1, %v2117_v8, -inf  ;;  %v5688_v35 = vld [vmem:[#allocation7] sm:$0xff] }
 0x8c4   : > { %2120 = vmax.xlane.f32.xlu1 %v2119_v6 }
 0x8c5   : > { %v2184_v19 = vsel %vm1030_vm1, %v2182_v52, -inf }
 0x8c6   : > { %2185 = vmax.xlane.f32.xlu0 %v2184_v19 }
 0x8d7   : > { %v2056_v40 = vpop.xlane.xlu2 %2055 }
 0x8d8   : > { %v2057_v39 = vsub.f32 %v2052_v33, %v2056_v40  ;;  %v2246_v44 = vpop.f32.mrf.mxu3  ;;  %v2304_v33 = vld [vmem:[#allocation8 + $0x18] sm:$0xff] }
 0x8d9   : > { %v2247_v45 = vadd.f32 %v4447_v58, %v2246_v44  ;;  %2324 = vmatpush.msrb.mxu1 %v2304_v33  ;;  %v4452_v33 = vld [vmem:[%s6468_s9] ss:$0 sm:$0xff]  ;;  %s6475_s9 = sld [smem:[#allocation49_spill]] }
 0x8da   : > { %v2058_v46 = vmul.f32 1.442695, %v2057_v39  ;;  %2065 = vrot.lane.b32.xlu0 %v5640_v17, %s6458_s2 }
 0x8db   : > { %v2249_v48 = vsel %vm1030_vm1, %v2247_v45, -inf  ;;  %2325 = vmatpush.msrb.mxu1 %v2303_v34 }
 0x8dc   : > { %4488 = vpow2.f32 %v2058_v46  ;;  %2250 = vmax.xlane.f32.xlu2 %v2249_v48 }
 0x8dd   : > { %2326 = vmatpush.msrb.mxu1 %v2302_v10 }
 0x8e2   : > { %v4489_v49 = vpop.eup %4488  ;;  %2260 = vrot.lane.b32.xlu0 %v5640_v17, %s6459_s20 }
 0x8e3   : > { %v2060_v50 = vsel %vm1030_vm1, %v4489_v49, 0.0 }
 0x8e4   : > { %2061 = vadd.xlane.f32.xlu2 %v2060_v50 }
 0x937   : > { %v2121_v53 = vpop.xlane.xlu1 %2120 }
 0x938   : > { %v2122_v54 = vsub.f32 %v2117_v8, %v2121_v53  ;;  %v2301_v8 = vld [vmem:[#allocation8] sm:$0xff] }
 0x939   : > { %v2186_v56 = vpop.xlane.xlu0 %2185  ;;  %2327 = vmatpush.msrb.mxu1 %v2301_v8 }
 0x93a   : > { %v2123_v57 = vmul.f32 1.442695, %v2122_v54  ;;  %v2187_v59 = vsub.f32 %v2182_v52, %v2186_v56 }
 0x93b   : > { %2518 = vmatpush.msra.mxu1 %v5688_v35 }
 0x93c   : > { %4490 = vpow2.f32 %v2123_v57  ;;  %v2188_v61 = vmul.f32 1.442695, %v2187_v59 }
 0x93e   : > { %4492 = vpow2.f32 %v2188_v61  ;;  %v2368_v61 = vld [vmem:[#allocation10 + $0x18] sm:$0xff] }
 0x942   : > { %v4491_v42 = vpop.eup %4490 }
 0x943   : > { %v2125_v62 = vsel %vm1030_vm1, %v4491_v42, 0.0 }
 0x944   : > { %v4493_v63 = vpop.eup %4492  ;;  %2126 = vadd.xlane.f32.xlu1 %v2125_v62  ;;  %v2366_v62 = vld [vmem:[#allocation10 + $0x8] sm:$0xff] }
 0x945   : > { %v2190_v0 = vsel %vm1030_vm1, %v4493_v63, 0.0 }
 0x946   : > { %2191 = vadd.xlane.f32.xlu2 %v2190_v0  ;;  %v2403_v0 = vld [vmem:[%s6331_s19 + $0x30] sm:$0xff] }
 0x94c   : > { %v2066_v1 = vpop.permute.xlu0 %2065 }
 0x94d   : > { %2086 = vmatpush.msrb.mxu2 %v2066_v1  ;;  %v2402_v1 = vld [vmem:[%s6331_s19 + $0x28] sm:$0xff] }
 0x94f   : > { %v2251_v2 = vpop.xlane.xlu2 %2250 }
 0x950   : > { %v2252_v31 = vsub.f32 %v2247_v45, %v2251_v2  ;;  %v4448_v45 = vld [vmem:[%s6465_s16] ss:$0 sm:$0xff]  ;;  %s6466_s16 = sld [smem:[#allocation51_spill]] }
 0x952   : > { %v2253_v3 = vmul.f32 1.442695, %v2252_v31 }
 0x954   : > { %4494 = vpow2.f32 %v2253_v3  ;;  %v2261_v47 = vpop.permute.xlu0 %2260  ;;  %v2401_v3 = vld [vmem:[%s6331_s19 + $0x20] sm:$0xff] }
 0x957   : > { %v2062_v36 = vpop.xlane.xlu2 %2061 }
 0x958   : > { %4496 = vrcp.f32 %v2062_v36 }
 0x95a   : > { %v4495_v55 = vpop.eup %4494 }
 0x95b   : > { %v2255_v4 = vsel %vm1030_vm1, %v4495_v55, 0.0 }
 0x95c   : > { %2256 = vadd.xlane.f32.xlu1 %v2255_v4 }
 0x95e   : > { %v4497_v7 = vpop.eup %4496  ;;  %2130 = vrot.lane.b32.xlu2 %v5640_v17, %s6460_s29 }
 0x95f   : > { %v2064_v14 = vmul.f32 %v4497_v7, %v4489_v49 }
 0x961   : > { %4142 = vmatmul.msk.f32.vlgmr.msrb.gmra.mxu2 %vm1030_vm1, %v2064_v14 }
 0x975   : > { %2195 = vrot.lane.b32.xlu1 %v5640_v17, %s6461_s6 }
 0x9b7   : > { %v2127_v15 = vpop.xlane.xlu1 %2126 }
 0x9b8   : > { %4498 = vrcp.f32 %v2127_v15 }
 0x9b9   : > { %v2192_v16 = vpop.xlane.xlu2 %2191 }
 0x9be   : > { %v4499_v28 = vpop.eup %4498 }
 0x9bf   : > { %v2129_v38 = vmul.f32 %v4499_v28, %v4491_v42  ;;  %v2367_v42 = vld [vmem:[#allocation10 + $0x10] sm:$0xff] }
 0x9c1   : > { %v2131_v60 = vpop.permute.xlu2 %2130 }
 0x9c2   : > { %2151 = vmatpush.msra.mxu0 %v2131_v60 }
 0x9c3   : > { %4145 = vmatmul.msk.f32.vlgmr.msra.gmra.mxu0 %vm1030_vm1, %v2129_v38  ;;  %v4449_v38 = vld [vmem:[#allocation11] ss:$0 sm:$0xff] }
 0x9c4   : > { %2281 = vmatpush.msrb.mxu0 %v2261_v47 }
 0x9cf   : > { %v2257_v51 = vpop.xlane.xlu1 %2256 }
 0x9d0   : > { %4500 = vrcp.f32 %v2257_v51  ;;  %v4450_v51 = vld [vmem:[%s6466_s16] ss:$0 sm:$0xff]  ;;  %s6467_s16 = sld [smem:[#allocation47_spill]] }
 0x9d1   : > { %4502 = vrcp.f32 %v2192_v16 }
 0x9d6   : > { %v4501_v5 = vpop.eup %4500 }
 0x9d7   : > { %v2259_v23 = vmul.f32 %v4501_v5, %v4495_v55  ;;  %v4503_v27 = vpop.eup %4502  ;;  %v2400_v55 = vld [vmem:[%s6331_s19 + $0x18] sm:$0xff] }
 0x9d8   : > { %v2194_v17 = vmul.f32 %v4503_v27, %v4493_v63  ;;  %v2365_v63 = vld [vmem:[#allocation10] sm:$0xff] }
 0x9d9   : > { %4151 = vmatmul.msk.f32.vlgmr.msrb.gmra.mxu0 %vm1030_vm1, %v2259_v23  ;;  %v2399_v27 = vld [vmem:[%s6331_s19 + $0x10] sm:$0xff] }
 0x9e4   : > { %v2088_v58 = vpop.f32.mrf.mxu2 }
 0x9e7   : > { %v2196_v9 = vpop.permute.xlu1 %2195 }
 0x9e8   : > { %2216 = vmatpush.msra.mxu2 %v2196_v9  ;;  %v2397_v9 = vld [vmem:[%s6331_s19] sm:$0xff] }
 0x9e9   : > { %4148 = vmatmul.msk.f32.vlgmr.msra.gmra.mxu2 %vm1030_vm1, %v2194_v17  ;;  %v2398_v17 = vld [vmem:[%s6331_s19 + $0x8] sm:$0xff] }
 0x9ea   : > { %2388 = vmatpush.msrb.mxu2 %v2368_v61 }
 0x9ec   : > { %2389 = vmatpush.msrb.mxu2 %v2367_v42 }
 0x9ee   : > { %2390 = vmatpush.msrb.mxu2 %v2366_v62 }
 0x9f0   : > { %2391 = vmatpush.msrb.mxu2 %v2365_v63  ;;  %v4453_v63 = vld [vmem:[%s6469_s15] ss:$0 sm:$0xff] }
 0xa40   : > { %v2153_v29 = vpop.f32.mrf.mxu0 }
 0xa41   : > { %2287 = vrot.lane.b32.xlu0 %v2153_v29, %s6462_s1  ;;  %v4451_v29 = vld [vmem:[%s6467_s16] ss:$0 sm:$0xff] }
 0xa56   : > { %v2283_v30 = vpop.f32.mrf.mxu0 }
 0xa57   : > { %2295 = vrot.lane.b32.xlu0 %v2283_v30, %s6463_s26 }
 0xa6c   : > { %v2218_v32 = vpop.f32.mrf.mxu2 }
 0xa6d   : > { %2291 = vrot.lane.b32.xlu2 %v2218_v32, %s6464_s30 }
 0xab3   : > { %v2288_v52 = vpop.permute.xlu0 %2287 }
 0xab4   : > { %v2298_v6 = vsel %vm1030_vm1, %v2088_v58, %v2288_v52 }
 0xac7   : > { %v2292_v19 = vpop.permute.xlu2 %2291 }
 0xac8   : > { %v2299_v40 = vsel %vm1887_vm11, %v2298_v6, %v2292_v19 }
 0xac9   : > { %v2296_v39 = vpop.permute.xlu0 %2295 }
 0xaca   : > { %v2300_v44 = vsel %vm1889_vm12, %v2299_v40, %v2296_v39 }
 0xacb   : > { %4152 = vmatmul.msk.f32.vlgmr.msrb.gmra.mxu1 %vm1005_vm0, %v2300_v44 }
 0xb48   : > { %v2329_v46 = vpop.f32.mrf.mxu1 }
 0xb49   : > { %v2330_v48 = vadd.f32 %v4448_v45, %v2329_v46  ;;  %v4158_v45 = vld [vmem:[%s6441_s3 + $0x38] sm:$0xff]  ;;  %v4157_v46 = vld [vmem:[%s6441_s3 + $0x30] sm:$0xff] }
 0xb4a   : > { %2491 = vmatpush.msra.mxu0 %v4158_v45 }
 0xb4b   : > { %v2332_v49 = vadd.f32 %v2330_v48, %v5633_v18  ;;  %v2404_v18 = vld [vmem:[%s6331_s19 + $0x38] sm:$0xff]  ;;  %v4156_v48 = vld [vmem:[%s6441_s3 + $0x28] sm:$0xff] }
 0xb4c   : > { %2421 = vmatpush.msra.mxu3 %v2404_v18  ;;  %2492 = vmatpush.msra.mxu0 %v4157_v46 }
 0xb4d   : > { %v2335_v50 = vsel %vm1005_vm0, %v2332_v49, 0.0 }
 0xb4e   : > { %2336 = vadd.xlane.f32.xlu2 %v2335_v50  ;;  %2422 = vmatpush.msra.mxu3 %v2403_v0 }
 0xb4f   : > { %2493 = vmatpush.msra.mxu0 %v4156_v48  ;;  %v5876_v48 = vld [vmem:[%s6444_s0 + $0x30] sm:$0xff] }
 0xb50   : > { %2423 = vmatpush.msra.mxu3 %v2402_v1  ;;  %v4454_v1 = vld [vmem:[#allocation13] ss:$0 sm:$0xff] }
 0xb52   : > { %2424 = vmatpush.msra.mxu3 %v2401_v3  ;;  %v4455_v3 = vld [vmem:[%s6443_s28 + $0x1] ss:$0 sm:$0xff] }
 0xb54   : > { %2425 = vmatpush.msra.mxu3 %v2400_v55 }
 0xb56   : > { %2426 = vmatpush.msra.mxu3 %v2399_v27 }
 0xb58   : > { %2427 = vmatpush.msra.mxu3 %v2398_v17 }
 0xb5a   : > { %2428 = vmatpush.msra.mxu3 %v2397_v9  ;;  %v5841_v9 = vld [vmem:[%s6444_s0 + $0x8] sm:$0xff] }
 0xbc1   : > { %v2337_v53 = vpop.xlane.xlu2 %2336 }
 0xbc2   : > { %v2338_v54 = vmul.f32 %v2337_v53, %v5589_v37 }
 0xbc4   : > { %v2339_v56 = vsub.f32 %v2332_v49, %v2338_v54  ;;  %v4155_v49 = vld [vmem:[%s6441_s3 + $0x20] sm:$0xff] }
 0xbc5   : > { %2494 = vmatpush.msra.mxu0 %v4155_v49 }
 0xbc6   : > { %v2340_v57 = vmul.f32 %v2339_v56, %v2339_v56 }
 0xbc7   : > { %4164 = vmatpush.msk.msrb.mxu0 %vm1203_vm2, %v5456_v41 }
 0xbc8   : > { %v2341_v59 = vsel %vm1005_vm0, %v2340_v57, 0.0 }
 0xbc9   : > { %2342 = vadd.xlane.f32.xlu1 %v2341_v59  ;;  %2676 = vmatpush.msrb.mxu0 %v5461_v43 }
 0xc3c   : > { %v2343_v2 = vpop.xlane.xlu1 %2342 }
 0xc3d   : > { %v2344_v31 = vmul.f32 %v2343_v2, %v5589_v37 }
 0xc3f   : > { %v2345_v36 = vadd.f32 1e-05, %v2344_v31 }
 0xc41   : > { %4504 = vrsqrt.f32 %v2345_v36  ;;  %vm2352_vm15 = vweird.f32 %v2345_v36 }
 0xc47   : > { %v4505_v4 = vpop.eup %4504 }
 0xc48   : > { %v2347_v7 = vmul.f32 %v4505_v4, %v2345_v36  ;;  %vm2353_vm14 = vweird.f32 %v4505_v4 }
 0xc49   : > { %vm2354_vm13 = vmor %vm2352_vm15, %vm2353_vm14  ;;  %vm6391_vm14 = vcmask 523264  }
 0xc4a   : > { %v2348_v14 = vmul.f32 %v4505_v4, %v2347_v7 }
 0xc4c   : > { %v2349_v15 = vmul.f32 0.5, %v2348_v14 }
 0xc4e   : > { %v2350_v16 = vsub.f32 1.5, %v2349_v15 }
 0xc50   : > { %v2351_v28 = vmul.f32 %v4505_v4, %v2350_v16 }
 0xc52   : > { %v2355_v60 = vsel %vm2354_vm13, %v4505_v4, %v2351_v28 }
 0xc53   : > { %v2356_v47 = vmul.f32 %v2355_v60, %v2339_v56 }
 0xc55   : > { %v2360_v5 = vmul.f32 %v4449_v38, %v2356_v47 }
 0xc57   : > { %v2364_v23 = vadd.f32 %v4450_v51, %v2360_v5 }
 0xc59   : > { %4153 = vmatmul.msk.f32.vlgmr.msrb.gmra.mxu2 %vm1005_vm0, %v2364_v23 }
 0xcdc   : > { %v2393_v30 = vpop.f32.mrf.mxu2 }
 0xcdd   : > { %v2394_v58 = vadd.f32 %v4451_v29, %v2393_v30 }
 0xcdf   : > { %v2396_v32 = vmax.f32 %v2394_v58, 0.0 }
 0xce1   : > { %4154 = vmatmul.msk.f32.vlgmr.msra.gmra.mxu3 %vm6391_vm14, %v2396_v32 }
 0xd64   : > { %v2430_v34 = vpop.f32.mrf.mxu3 }
 0xd65   : > { %v2431_v10 = vadd.f32 %v4452_v33, %v2430_v34  ;;  %v5847_v33 = vld [vmem:[%s6444_s0 + $0x10] sm:$0xff] }
 0xd67   : > { %v2433_v8 = vadd.f32 %v2431_v10, %v2364_v23  ;;  %v5833_v23 = vld [vmem:[%s6444_s0] sm:$0xff] }
 0xd69   : > { %v2436_v52 = vsel %vm1005_vm0, %v2433_v8, 0.0 }
 0xd6a   : > { %2437 = vadd.xlane.f32.xlu0 %v2436_v52 }
 0xddd   : > { %v2438_v6 = vpop.xlane.xlu0 %2437 }
 0xdde   : > { %v2439_v19 = vmul.f32 %v2438_v6, %v5589_v37 }
 0xde0   : > { %v2440_v40 = vsub.f32 %v2433_v8, %v2439_v19  ;;  %v5856_v8 = vld [vmem:[%s6444_s0 + $0x18] sm:$0xff]  ;;  %v5862_v19 = vld [vmem:[%s6444_s0 + $0x20] sm:$0xff] }
 0xde2   : > { %v2441_v39 = vmul.f32 %v2440_v40, %v2440_v40 }
 0xde4   : > { %v2442_v44 = vsel %vm1005_vm0, %v2441_v39, 0.0  ;;  %v5870_v39 = vld [vmem:[%s6444_s0 + $0x28] sm:$0xff] }
 0xde5   : > { %2443 = vadd.xlane.f32.xlu2 %v2442_v44 }
 0xe58   : > { %v2444_v50 = vpop.xlane.xlu2 %2443 }
 0xe59   : > { %v2445_v53 = vmul.f32 %v2444_v50, %v5589_v37 }
 0xe5b   : > { %v2446_v54 = vadd.f32 1e-05, %v2445_v53 }
 0xe5d   : > { %4506 = vrsqrt.f32 %v2446_v54  ;;  %vm2453_vm13 = vweird.f32 %v2446_v54 }
 0xe63   : > { %v4507_v56 = vpop.eup %4506 }
 0xe64   : > { %v2448_v57 = vmul.f32 %v4507_v56, %v2446_v54  ;;  %vm2454_vm15 = vweird.f32 %v4507_v56 }
 0xe65   : > { %vm2455_vm14 = vmor %vm2453_vm13, %vm2454_vm15 }
 0xe66   : > { %v2449_v59 = vmul.f32 %v4507_v56, %v2448_v57 }
 0xe68   : > { %v2450_v61 = vmul.f32 0.5, %v2449_v59  ;;  %v5890_v59 = vld [vmem:[%s6444_s0 + $0x40] sm:$0xff] }
 0xe6a   : > { %v2451_v42 = vsub.f32 1.5, %v2450_v61 }
 0xe6c   : > { %v2452_v62 = vmul.f32 %v4507_v56, %v2451_v42 }
 0xe6e   : > { %v2456_v18 = vsel %vm2455_vm14, %v4507_v56, %v2452_v62  ;;  %v5897_v62 = vld [vmem:[%s6471_s4] ss:$0 sm:$0xff]  ;;  %s6474_s4 = smov 40  }
 0xe6f   : > { %v2457_v0 = vmul.f32 %v2456_v18, %v2440_v40 }
 0xe71   : > { %v2461_v2 = vmul.f32 %v4453_v63, %v2457_v0 }
 0xe73   : > { %v5760_v31 = vadd.f32 %v4454_v1, %v2461_v2 }
 0xe75   : > { %4160 = vmatmul.msk.f32.vlgmr.msra.gmra.mxu0 %vm1005_vm0, %v5760_v31 }
 0xe76   : > { %4170 = vmatpush.msk.msra.mxu0 %vm1203_vm2, %v5456_v41 }
 0xe78   : > { %2883 = vmatpush.msra.mxu0 %v5461_v43 }
 0xef2   : > { %v2496_v36 = vpop.f32.mrf.mxu0 }
 0xef3   : > { %v5770_v55 = vadd.f32 %v4455_v3, %v2496_v36 }
 0xef5   : > { %2530 = vrot.lane.b32.xlu1 %v5770_v55, %s6458_s2  ;;  %v2499_v4 = vmul.f32 0.35355338, %v5770_v55 }
 0xef7   : > { %2914 = vrot.lane.b32.xlu2 %v2499_v4, %s6455_s25  ;;  %2707 = vrot.lane.b32.xlu0 %v2499_v4, %s6453_s5 }
 0xef8   : > { %4161 = vmatmul.msk.f32.vlgmr.msra.gmra.mxu1 %vm1030_vm1, %v2499_v4 }
 0xefd   : > { %2737 = vrot.lane.b32.xlu1 %v5770_v55, %s6460_s29 }
 0xeff   : > { %2944 = vrot.lane.b32.xlu2 %v5770_v55, %s6461_s6  ;;  %3121 = vrot.lane.b32.xlu0 %v2499_v4, %s6454_s7 }
 0xf07   : > { %3151 = vrot.lane.b32.xlu0 %v5770_v55, %s6459_s20 }
 0xf51   : > { %v2915_v41 = vpop.permute.xlu2 %2914 }
 0xf59   : > { %v2945_v15 = vpop.permute.xlu2 %2944 }
 0xf67   : > { %v2531_v43 = vpop.permute.xlu1 %2530 }
 0xf68   : > { %4162 = vmatpush.xpose.msk.msra.mxu2 %vm1030_vm1, %v2531_v43 }
 0xf69   : > { %v2708_v7 = vpop.permute.xlu0 %2707 }
 0xf6b   : > { %4163 = vmatmul.msk.f32.vlgmr.msra.gmra.mxu2 %vm1030_vm1, %v2499_v4 }
 0xf6c   : > { %2726 = vmatpush.msrb.mxu2 %v5688_v35 }
 0xf6e   : > { %2933 = vmatpush.msra.mxu2 %v5688_v35 }
 0xf6f   : > { %v2738_v14 = vpop.permute.xlu1 %2737 }
 0xf70   : > { %4168 = vmatpush.xpose.msk.msrb.mxu3 %vm1030_vm1, %v2738_v14 }
 0xf71   : > { %v3122_v16 = vpop.permute.xlu0 %3121 }
 0xf73   : > { %4167 = vmatmul.msk.f32.vlgmr.msrb.gmra.mxu2 %vm1030_vm1, %v2708_v7  ;;  %4169 = vmatmul.msk.f32.vlgmr.msrb.gmra.mxu3 %vm1030_vm1, %v2708_v7 }
 0xf74   : > { %4174 = vmatpush.xpose.msk.msra.mxu3 %vm1030_vm1, %v2945_v15  ;;  %3140 = vmatpush.msrb.mxu2 %v5688_v35 }
 0xf75   : > { %v2520_v28 = vpop.f32.mrf.mxu1 }
 0xf76   : > { %2561 = vperm.xlu0 %4405, %v2520_v28   ;;  %2555 = vperm.xlu2 %4404, %v2520_v28  }
 0xf77   : > { %2525 = vperm.xlu1 %4403, %v2520_v28  }
 0xf79   : > { %v3152_v38 = vpop.permute.xlu0 %3151 }
 0xf7a   : > { %4180 = vmatpush.xpose.msk.msrb.mxu3 %vm1030_vm1, %v3152_v38 }
 0xf7b   : > { %4173 = vmatmul.msk.f32.vlgmr.msra.gmra.mxu2 %vm1030_vm1, %v2915_v41  ;;  %4175 = vmatmul.msk.f32.vlgmr.msra.gmra.mxu3 %vm1030_vm1, %v2915_v41 }
 0xf7e   : > { %4411 = vset.pattern.permute.xlu0 %v4875_v20  ;;  %4407 = vset.pattern.permute.xlu2 %v4876_v21 }
 0xf7f   : > { %4406 = vset.pattern.permute.xlu1 %v4877_v22  ;;  %2597 = vperm.xlu0 %4411, %v2520_v28  }
 0xf80   : > { %2573 = vperm.xlu2 %4407, %v2520_v28   ;;  %2567 = vperm.xlu1 %4406, %v2520_v28  }
 0xf83   : > { %4179 = vmatmul.msk.f32.vlgmr.msrb.gmra.mxu2 %vm1030_vm1, %v3122_v16  ;;  %4181 = vmatmul.msk.f32.vlgmr.msrb.gmra.mxu3 %vm1030_vm1, %v3122_v16 }
 0xf87   : > { %4413 = vset.pattern.permute.xlu0 %v4873_v12 }
 0xf88   : > { %4408 = vset.pattern.permute.xlu2 %v4878_v24  ;;  %4409 = vset.pattern.permute.xlu1 %v4879_v25 }
 0xf89   : > { %2579 = vperm.xlu2 %4408, %v2520_v28   ;;  %2585 = vperm.xlu1 %4409, %v2520_v28  }
 0xf91   : > { %4410 = vset.pattern.permute.xlu1 %v4880_v26  ;;  %4414 = vset.pattern.permute.xlu2 %v4872_v11 }
 0xf92   : > { %2591 = vperm.xlu1 %4410, %v2520_v28  }
 0xf9a   : > { %4412 = vset.pattern.permute.xlu1 %v4874_v13 }
 0xfd0   : > { %v2556_v5 = vpop.permute.xlu2 %2555 }
 0xfd1   : > { %v2558_v29 = vmul.f32 %v5841_v9, %v2556_v5 }
 0xfda   : > { %v2574_v32 = vpop.permute.xlu2 %2573 }
 0xfe8   : > { %v2562_v30 = vpop.permute.xlu0 %2561 }
 0xfee   : > { %v2551_v35 = vpop.f32.mrf.mxu2 }
 0xff1   : > { %v2598_v54 = vpop.permute.xlu0 %2597 }
 0xff2   : > { %v2600_v61 = vmul.f32 %v5890_v59, %v2598_v54 }
 0xff6   : > { %v2728_v60 = vpop.f32.mrf.mxu2  ;;  %v2758_v3 = vpop.f32.mrf.mxu3 }
 0xff7   : > { %2762 = vperm.xlu0 %4413, %v2728_v60   ;;  %2768 = vperm.xlu2 %4414, %v2728_v60  }
 0xff8   : > { %2733 = vperm.xlu1 %4412, %v2728_v60  }
 0xffe   : > { %v2935_v47 = vpop.f32.mrf.mxu2 }
 0xfff   : > { %4418 = vset.pattern.permute.xlu0 %v4879_v25  ;;  %4415 = vset.pattern.permute.xlu2 %v4877_v22 }
0x1000   : > { %4416 = vset.pattern.permute.xlu1 %v4876_v21  ;;  %2792 = vperm.xlu0 %4418, %v2728_v60  }
0x1001   : > { %2774 = vperm.xlu2 %4415, %v2728_v60   ;;  %2780 = vperm.xlu1 %4416, %v2728_v60  }
0x1006   : > { %v5814_v51 = vpop.f32.mrf.mxu2 }
0x1008   : > { %4425 = vset.pattern.permute.xlu0 %v4876_v21 }
0x1009   : > { %4419 = vset.pattern.permute.xlu2 %v4880_v26  ;;  %4417 = vset.pattern.permute.xlu1 %v4878_v24 }
0x100a   : > { %2987 = vperm.xlu0 %4425, %v2935_v47   ;;  %2798 = vperm.xlu2 %4419, %v2728_v60  }
0x100b   : > { %2786 = vperm.xlu1 %4417, %v2728_v60  }
0x1012   : > { %4432 = vset.pattern.permute.xlu0 %v4872_v11  ;;  %4420 = vset.pattern.permute.xlu2 %v4875_v20 }
0x1013   : > { %4423 = vset.pattern.permute.xlu1 %v4872_v11  ;;  %3182 = vperm.xlu0 %4432, %v5814_v51   ;;  %v2526_v11 = vpop.permute.xlu1 %2525 }
0x1014   : > { %2804 = vperm.xlu2 %4420, %v2728_v60   ;;  %2975 = vperm.xlu1 %4423, %v2935_v47   ;;  %v2528_v27 = vmul.f32 %v5833_v23, %v2526_v11 }
0x101b   : > { %4435 = vset.pattern.permute.xlu0 %v4878_v24  ;;  %v2568_v17 = vpop.permute.xlu1 %2567 }
0x101c   : > { %4421 = vset.pattern.permute.xlu2 %v4874_v13  ;;  %4424 = vset.pattern.permute.xlu1 %v4877_v22  ;;  %v2570_v52 = vmul.f32 %v5856_v8, %v2568_v17 }
0x101d   : > { %3200 = vperm.xlu0 %4435, %v5814_v51   ;;  %2940 = vperm.xlu2 %4421, %v2935_v47  }
0x101e   : > { %2981 = vperm.xlu1 %4424, %v2935_v47  }
0x1023   : > { %v2586_v10 = vpop.permute.xlu1 %2585 }
0x1024   : > { %v2588_v49 = vmul.f32 %v5876_v48, %v2586_v10 }
0x1025   : > { %4422 = vset.pattern.permute.xlu2 %v4873_v12  ;;  %4439 = vset.pattern.permute.xlu0 %v4875_v20 }
0x1026   : > { %4428 = vset.pattern.permute.xlu1 %v4880_v26  ;;  %2969 = vperm.xlu2 %4422, %v2935_v47  }
0x1027   : > { %3005 = vperm.xlu1 %4428, %v2935_v47  }
0x102b   : > { %v2592_v45 = vpop.permute.xlu1 %2591 }
0x102e   : > { %4426 = vset.pattern.permute.xlu2 %v4878_v24  ;;  %v2552_v24 = vadd.f32 %v2551_v35, %v2528_v27 }
0x102f   : > { %4429 = vset.pattern.permute.xlu1 %v4875_v20  ;;  %2993 = vperm.xlu2 %4426, %v2935_v47  }
0x1030   : > { %3011 = vperm.xlu1 %4429, %v2935_v47   ;;  %v2559_v58 = vadd.f32 %v2558_v29, %v2552_v24 }
0x1037   : > { %4427 = vset.pattern.permute.xlu2 %v4879_v25 }
0x1038   : > { %4430 = vset.pattern.permute.xlu1 %v4874_v13  ;;  %2999 = vperm.xlu2 %4427, %v2935_v47   ;;  %v2564_v13 = vmul.f32 %v5847_v33, %v2562_v30 }
0x1039   : > { %3147 = vperm.xlu1 %4430, %v5814_v51  }
0x103a   : > { %v2565_v34 = vadd.f32 %v2564_v13, %v2559_v58 }
0x103c   : > { %v2571_v6 = vadd.f32 %v2570_v52, %v2565_v34 }
0x1040   : > { %4433 = vset.pattern.permute.xlu2 %v4877_v22  ;;  %v2576_v22 = vmul.f32 %v5862_v19, %v2574_v32 }
0x1041   : > { %4431 = vset.pattern.permute.xlu1 %v4873_v12  ;;  %v2580_v12 = vpop.permute.xlu2 %2579 }
0x1042   : > { %3176 = vperm.xlu1 %4431, %v5814_v51   ;;  %v2577_v40 = vadd.f32 %v2576_v22, %v2571_v6  ;;  %v2582_v44 = vmul.f32 %v5870_v39, %v2580_v12  ;;  %v2965_v12 = vpop.f32.mrf.mxu3 }
0x1044   : > { %v2583_v46 = vadd.f32 %v2582_v44, %v2577_v40 }
0x1046   : > { %v2589_v53 = vadd.f32 %v2588_v49, %v2583_v46 }
0x104a   : > { %4436 = vset.pattern.permute.xlu1 %v4879_v25  ;;  %v5882_v25 = vld [vmem:[%s6444_s0 + $0x38] sm:$0xff]  ;;  %s6477_s0 = sld [smem:[#allocation42_spill]] }
0x104b   : > { %3206 = vperm.xlu1 %4436, %v5814_v51   ;;  %v2594_v50 = vmul.f32 %v5882_v25, %v2592_v45 }
0x104d   : > { %v2595_v56 = vadd.f32 %v2594_v50, %v2589_v53 }
0x104f   : > { %v2601_v42 = vadd.f32 %v2600_v61, %v2595_v56 }
0x1051   : > { %v2769_v57 = vpop.permute.xlu2 %2768 }
0x1052   : > { %v2771_v15 = vmul.f32 %v5847_v33, %v2769_v57 }
0x1053   : > { %4438 = vset.pattern.permute.xlu1 %v4875_v20  ;;  %v5900_v20 = vadd.f32 %v5897_v62, %v2601_v42 }
0x1054   : > { %3218 = vperm.xlu1 %4438, %v5814_v51  }
0x1055   : > { %v2603_v18 = vsel %vm1030_vm1, %v5900_v20, -inf }
0x105b   : > { %v2775_v63 = vpop.permute.xlu2 %2774 }
0x105c   : > { %2681 = vrot.lane.b32.xlu1 %v5770_v55, %s6470_s22  ;;  %v2777_v28 = vmul.f32 %v5856_v8, %v2775_v63 }
0x1061   : > { %2604 = vmax.xlane.f32.xlu2 %v2603_v18 }
0x1064   : > { %v2799_v0 = vpop.permute.xlu2 %2798 }
0x1065   : > { %v2801_v29 = vmul.f32 %v5882_v25, %v2799_v0 }
0x1069   : > { %v2763_v36 = vpop.permute.xlu0 %2762 }
0x106a   : > { %v2734_v1 = vpop.permute.xlu1 %2733  ;;  %v2765_v41 = vmul.f32 %v5841_v9, %v2763_v36 }
0x106b   : > { %v2736_v2 = vmul.f32 %v5833_v23, %v2734_v1 }
0x106d   : > { %v2759_v4 = vadd.f32 %v2758_v3, %v2736_v2 }
0x106e   : > { %v2805_v7 = vpop.permute.xlu2 %2804 }
0x106f   : > { %v2766_v43 = vadd.f32 %v2765_v41, %v2759_v4  ;;  %v2807_v58 = vmul.f32 %v5890_v59, %v2805_v7 }
0x1071   : > { %v2772_v16 = vadd.f32 %v2771_v15, %v2766_v43 }
0x1072   : > { %v2793_v47 = vpop.permute.xlu0 %2792 }
0x1073   : > { %v2781_v14 = vpop.permute.xlu1 %2780  ;;  %v2778_v38 = vadd.f32 %v2777_v28, %v2772_v16  ;;  %v2795_v17 = vmul.f32 %v5876_v48, %v2793_v47 }
0x1074   : > { %v2783_v35 = vmul.f32 %v5862_v19, %v2781_v14 }
0x1076   : > { %v2784_v5 = vadd.f32 %v2783_v35, %v2778_v38 }
0x1077   : > { %v2941_v60 = vpop.permute.xlu2 %2940 }
0x1078   : > { %v2943_v6 = vmul.f32 %v5833_v23, %v2941_v60 }
0x1079   : > { %3188 = vperm.xlu2 %4433, %v5814_v51  }
0x107a   : > { %v2966_v40 = vadd.f32 %v2965_v12, %v2943_v6 }
0x107c   : > { %v2988_v54 = vpop.permute.xlu0 %2987 }
0x107d   : > { %v2787_v11 = vpop.permute.xlu1 %2786  ;;  %v2990_v56 = vmul.f32 %v5862_v19, %v2988_v54 }
0x107e   : > { %v2789_v27 = vmul.f32 %v5870_v39, %v2787_v11 }
0x1080   : > { %v2790_v24 = vadd.f32 %v2789_v27, %v2784_v5  ;;  %v2970_v13 = vpop.permute.xlu2 %2969  ;;  %v3172_v27 = vpop.f32.mrf.mxu3 }
0x1081   : > { %4434 = vset.pattern.permute.xlu2 %v4876_v21  ;;  %v2972_v22 = vmul.f32 %v5841_v9, %v2970_v13 }
0x1082   : > { %v2796_v30 = vadd.f32 %v2795_v17, %v2790_v24  ;;  %3194 = vperm.xlu2 %4434, %v5814_v51  }
0x1083   : > { %v2973_v45 = vadd.f32 %v2972_v22, %v2966_v40 }
0x1084   : > { %v2802_v32 = vadd.f32 %v2801_v29, %v2796_v30 }
0x1085   : > { %v3183_v11 = vpop.permute.xlu0 %3182 }
0x1086   : > { %v2976_v34 = vpop.permute.xlu1 %2975  ;;  %v2808_v10 = vadd.f32 %v2807_v58, %v2802_v32  ;;  %v3185_v32 = vmul.f32 %v5847_v33, %v3183_v11 }
0x1087   : > { %v2978_v44 = vmul.f32 %v5847_v33, %v2976_v34 }
0x1088   : > { %v5917_v52 = vadd.f32 %v5897_v62, %v2808_v10 }
0x1089   : > { %v2994_v46 = vpop.permute.xlu2 %2993  ;;  %v2979_v50 = vadd.f32 %v2978_v44, %v2973_v45 }
0x108a   : > { %4437 = vset.pattern.permute.xlu2 %v4880_v26  ;;  %v2810_v21 = vsel %vm1030_vm1, %v5917_v52, -inf }
0x108b   : > { %3212 = vperm.xlu2 %4437, %v5814_v51   ;;  %2811 = vmax.xlane.f32.xlu0 %v2810_v21  ;;  %v2996_v51 = vmul.f32 %v5870_v39, %v2994_v46 }
0x108f   : > { %v3201_v34 = vpop.permute.xlu0 %3200 }
0x1090   : > { %v2982_v49 = vpop.permute.xlu1 %2981  ;;  %v3203_v22 = vmul.f32 %v5870_v39, %v3201_v34 }
0x1091   : > { %v2984_v53 = vmul.f32 %v5856_v8, %v2982_v49 }
0x1092   : > { %v3000_v42 = vpop.permute.xlu2 %2999 }
0x1093   : > { %v2985_v26 = vadd.f32 %v2984_v53, %v2979_v50  ;;  %2888 = vrot.lane.b32.xlu2 %v5770_v55, %s6472_s12  ;;  %v3002_v18 = vmul.f32 %v5876_v48, %v3000_v42  ;;  %s6476_s12 = sld [smem:[#allocation43_spill]] }
0x1095   : > { %v2991_v57 = vadd.f32 %v2990_v56, %v2985_v26 }
0x1097   : > { %v2997_v63 = vadd.f32 %v2996_v51, %v2991_v57 }
0x1099   : > { %v3006_v61 = vpop.permute.xlu1 %3005  ;;  %v3003_v0 = vadd.f32 %v3002_v18, %v2997_v63 }
0x109a   : > { %v3008_v1 = vmul.f32 %v5882_v25, %v3006_v61 }
0x109c   : > { %v3009_v3 = vadd.f32 %v3008_v1, %v3003_v0 }
0x10a2   : > { %v3012_v2 = vpop.permute.xlu1 %3011 }
0x10a3   : > { %v3014_v36 = vmul.f32 %v5890_v59, %v3012_v2 }
0x10a5   : > { %v3015_v4 = vadd.f32 %v3014_v36, %v3009_v3 }
0x10a7   : > { %v5935_v41 = vadd.f32 %v5897_v62, %v3015_v4 }
0x10a9   : > { %v3017_v43 = vsel %vm1030_vm1, %v5935_v41, -inf }
0x10aa   : > { %3018 = vmax.xlane.f32.xlu1 %v3017_v43 }
0x10ab   : > { %v3148_v7 = vpop.permute.xlu1 %3147 }
0x10ac   : > { %v3150_v47 = vmul.f32 %v5833_v23, %v3148_v7 }
0x10ae   : > { %v3173_v24 = vadd.f32 %v3172_v27, %v3150_v47 }
0x10b4   : > { %v3177_v14 = vpop.permute.xlu1 %3176 }
0x10b5   : > { %v3179_v5 = vmul.f32 %v5841_v9, %v3177_v14 }
0x10b7   : > { %v3180_v30 = vadd.f32 %v3179_v5, %v3173_v24 }
0x10bd   : > { %v3207_v15 = vpop.permute.xlu1 %3206 }
0x10be   : > { %v3209_v44 = vmul.f32 %v5876_v48, %v3207_v15 }
0x10c6   : > { %v3219_v16 = vpop.permute.xlu1 %3218 }
0x10c7   : > { %v3221_v50 = vmul.f32 %v5890_v59, %v3219_v16 }
0x10ce   : > { %v2682_v28 = vpop.permute.xlu1 %2681 }
0x10cf   : > { %2702 = vmatpush.msrb.mxu1 %v2682_v28 }
0x10d4   : > { %v2605_v38 = vpop.xlane.xlu2 %2604 }
0x10d5   : > { %v2606_v35 = vsub.f32 %v5900_v20, %v2605_v38  ;;  %v3186_v20 = vadd.f32 %v3185_v32, %v3180_v30 }
0x10d7   : > { %v2607_v60 = vmul.f32 1.442695, %v2606_v35 }
0x10d9   : > { %4508 = vpow2.f32 %v2607_v60 }
0x10dc   : > { %v3189_v17 = vpop.permute.xlu2 %3188 }
0x10dd   : > { %v3191_v13 = vmul.f32 %v5856_v8, %v3189_v17 }
0x10df   : > { %v4509_v29 = vpop.eup %4508  ;;  %v3192_v6 = vadd.f32 %v3191_v13, %v3186_v20 }
0x10e0   : > { %v2609_v58 = vsel %vm1030_vm1, %v4509_v29, 0.0 }
0x10e1   : > { %2610 = vadd.xlane.f32.xlu0 %v2609_v58 }
0x10e4   : > { %v3195_v10 = vpop.permute.xlu2 %3194 }
0x10e5   : > { %v3197_v21 = vmul.f32 %v5862_v19, %v3195_v10 }
0x10e7   : > { %v3198_v12 = vadd.f32 %v3197_v21, %v3192_v6 }
0x10e9   : > { %v3204_v40 = vadd.f32 %v3203_v22, %v3198_v12 }
0x10eb   : > { %v3210_v46 = vadd.f32 %v3209_v44, %v3204_v40 }
0x10ec   : > { %v3213_v45 = vpop.permute.xlu2 %3212 }
0x10ed   : > { %v3215_v49 = vmul.f32 %v5882_v25, %v3213_v45 }
0x10ef   : > { %v3216_v53 = vadd.f32 %v3215_v49, %v3210_v46 }
0x10f1   : > { %v3222_v54 = vadd.f32 %v3221_v50, %v3216_v53 }
0x10f3   : > { %v3223_v26 = vadd.f32 %v5897_v62, %v3222_v54 }
0x10f4   : > { %v2889_v56 = vpop.permute.xlu2 %2888 }
0x10f5   : > { %2909 = vmatpush.msra.mxu1 %v2889_v56  ;;  %v3224_v57 = vsel %vm1030_vm1, %v3223_v26, -inf }
0x10f6   : > { %3225 = vmax.xlane.f32.xlu2 %v3224_v57 }
0x10fe   : > { %v2812_v51 = vpop.xlane.xlu0 %2811 }
0x10ff   : > { %v2813_v61 = vsub.f32 %v5917_v52, %v2812_v51 }
0x1101   : > { %v2814_v42 = vmul.f32 1.442695, %v2813_v61 }
0x1103   : > { %4510 = vpow2.f32 %v2814_v42 }
0x1109   : > { %v4511_v63 = vpop.eup %4510 }
0x110a   : > { %v2816_v18 = vsel %vm1030_vm1, %v4511_v63, 0.0 }
0x110b   : > { %2817 = vadd.xlane.f32.xlu1 %v2816_v18 }
0x111d   : > { %v3019_v15 = vpop.xlane.xlu1 %3018 }
0x111e   : > { %v3020_v28 = vsub.f32 %v5935_v41, %v3019_v15 }
0x1120   : > { %v3021_v5 = vmul.f32 1.442695, %v3020_v28 }
0x1124   : > { %3095 = vrot.lane.b32.xlu1 %v5770_v55, %s6473_s14  ;;  %s6480_s14 = sld [smem:[#allocation51_spill]] }
0x1154   : > { %v2611_v0 = vpop.xlane.xlu0 %2610 }
0x1155   : > { %4512 = vrcp.f32 %v2611_v0 }
0x115b   : > { %v4513_v62 = vpop.eup %4512 }
0x115c   : > { %v2613_v1 = vmul.f32 %v4513_v62, %v4509_v29 }
0x115e   : > { %4166 = vmatmul.msk.f32.vlgmr.msrb.gmra.mxu1 %vm1030_vm1, %v2613_v1  ;;  %v2622_v2 = vmul.f32 %v5847_v33, %v2613_v1  ;;  %v2614_v3 = vmul.f32 %v5833_v23, %v2613_v1  ;;  %v2618_v52 = vmul.f32 %v5841_v9, %v2613_v1  ;;  %v2634_v7 = vmul.f32 %v5870_v39, %v2613_v1 }
0x115f   : > { %v2626_v14 = vmul.f32 %v5856_v8, %v2613_v1  ;;  %v2630_v16 = vmul.f32 %v5862_v19, %v2613_v1  ;;  %v2646_v17 = vmul.f32 %v5890_v59, %v2613_v1  ;;  %v2638_v24 = vmul.f32 %v5876_v48, %v2613_v1 }
0x1160   : > { %v2623_v36 = vsel %vm1030_vm1, %v2622_v2, 0.0  ;;  %v2615_v4 = vsel %vm1030_vm1, %v2614_v3, 0.0  ;;  %v2619_v43 = vsel %vm1030_vm1, %v2618_v52, 0.0  ;;  %v2635_v38 = vsel %vm1030_vm1, %v2634_v7, 0.0 }
0x1161   : > { %2624 = vadd.xlane.f32.xlu0 %v2623_v36  ;;  %2616 = vadd.xlane.f32.xlu1 %v2615_v4  ;;  %v2627_v35 = vsel %vm1030_vm1, %v2626_v14, 0.0  ;;  %v2631_v60 = vsel %vm1030_vm1, %v2630_v16, 0.0  ;;  %v2642_v29 = vmul.f32 %v5882_v25, %v2613_v1  ;;  %v2647_v41 = vsel %vm1030_vm1, %v2646_v17, 0.0 }
0x1162   : > { %2620 = vadd.xlane.f32.xlu2 %v2619_v43  ;;  %v2639_v30 = vsel %vm1030_vm1, %v2638_v24, 0.0 }
0x1163   : > { %v2643_v58 = vsel %vm1030_vm1, %v2642_v29, 0.0 }
0x1169   : > { %2636 = vadd.xlane.f32.xlu0 %v2635_v38  ;;  %2628 = vadd.xlane.f32.xlu1 %v2627_v35  ;;  %v3226_v47 = vpop.xlane.xlu2 %3225 }
0x116a   : > { %2632 = vadd.xlane.f32.xlu2 %v2631_v60  ;;  %v3227_v11 = vsub.f32 %v3223_v26, %v3226_v47 }
0x116c   : > { %v3228_v27 = vmul.f32 1.442695, %v3227_v11  ;;  %v6015_v11 = vld [vmem:[%s6445_s24 + $0x8] sm:$0x1] }
0x116e   : > { %4514 = vpow2.f32 %v3228_v27 }
0x116f   : > { %4516 = vpow2.f32 %v3021_v5  ;;  %v6022_v5 = vld [vmem:[%s6445_s24] sm:$0xff] }
0x1171   : > { %2648 = vadd.xlane.f32.xlu0 %v2647_v41  ;;  %2640 = vadd.xlane.f32.xlu1 %v2639_v30 }
0x1172   : > { %2644 = vadd.xlane.f32.xlu2 %v2643_v58 }
0x1174   : > { %v5976_v32 = vpop.eup %4514 }
0x1175   : > { %v5978_v13 = vpop.eup %4516  ;;  %v3230_v20 = vsel %vm1030_vm1, %v5976_v32, 0.0 }
0x1176   : > { %v3023_v34 = vsel %vm1030_vm1, %v5978_v13, 0.0 }
0x1179   : > { %3231 = vadd.xlane.f32.xlu0 %v3230_v20 }
0x117a   : > { %3024 = vadd.xlane.f32.xlu2 %v3023_v34 }
0x117e   : > { %v2818_v10 = vpop.xlane.xlu1 %2817 }
0x117f   : > { %4518 = vrcp.f32 %v2818_v10 }
0x1185   : > { %v4519_v6 = vpop.eup %4518 }
0x1186   : > { %v2820_v21 = vmul.f32 %v4519_v6, %v4511_v63 }
0x1188   : > { %4172 = vmatmul.msk.f32.vlgmr.msra.gmra.mxu1 %vm1030_vm1, %v2820_v21  ;;  %v2845_v22 = vmul.f32 %v5876_v48, %v2820_v21  ;;  %v2825_v12 = vmul.f32 %v5841_v9, %v2820_v21  ;;  %v2821_v40 = vmul.f32 %v5833_v23, %v2820_v21  ;;  %v2833_v49 = vmul.f32 %v5856_v8, %v2820_v21 }
0x1189   : > { %v2829_v50 = vmul.f32 %v5847_v33, %v2820_v21  ;;  %v2841_v56 = vmul.f32 %v5870_v39, %v2820_v21  ;;  %v2837_v57 = vmul.f32 %v5862_v19, %v2820_v21  ;;  %v2853_v42 = vmul.f32 %v5890_v59, %v2820_v21 }
0x118a   : > { %v2846_v44 = vsel %vm1030_vm1, %v2845_v22, 0.0  ;;  %v2826_v45 = vsel %vm1030_vm1, %v2825_v12, 0.0  ;;  %v2822_v46 = vsel %vm1030_vm1, %v2821_v40, 0.0  ;;  %v2834_v53 = vsel %vm1030_vm1, %v2833_v49, 0.0 }
0x118b   : > { %2847 = vadd.xlane.f32.xlu1 %v2846_v44  ;;  %2827 = vadd.xlane.f32.xlu0 %v2826_v45  ;;  %v2830_v54 = vsel %vm1030_vm1, %v2829_v50, 0.0  ;;  %v2842_v51 = vsel %vm1030_vm1, %v2841_v56, 0.0  ;;  %v2838_v61 = vsel %vm1030_vm1, %v2837_v57, 0.0  ;;  %v2849_v63 = vmul.f32 %v5882_v25, %v2820_v21 }
0x118c   : > { %2823 = vadd.xlane.f32.xlu2 %v2822_v46  ;;  %v2854_v18 = vsel %vm1030_vm1, %v2853_v42, 0.0 }
0x118d   : > { %v2850_v0 = vsel %vm1030_vm1, %v2849_v63, 0.0 }
0x1193   : > { %2835 = vadd.xlane.f32.xlu0 %v2834_v53 }
0x1194   : > { %2831 = vadd.xlane.f32.xlu2 %v2830_v54 }
0x1196   : > { %v3096_v26 = vpop.permute.xlu1 %3095 }
0x1197   : > { %3116 = vmatpush.msrb.mxu1 %v3096_v26 }
0x119b   : > { %2843 = vadd.xlane.f32.xlu0 %v2842_v51 }
0x119c   : > { %2839 = vadd.xlane.f32.xlu2 %v2838_v61 }
0x11a3   : > { %2855 = vadd.xlane.f32.xlu0 %v2854_v18 }
0x11a4   : > { %2851 = vadd.xlane.f32.xlu2 %v2850_v0 }
0x11d4   : > { %v2625_v62 = vpop.xlane.xlu0 %2624  ;;  %v2617_v1 = vpop.xlane.xlu1 %2616 }
0x11d5   : > { %v2621_v2 = vpop.xlane.xlu2 %2620 }
0x11d6   : > { %v2650_v3 = vsel %vm1184_vm3, %v2617_v1, %v2621_v2 }
0x11d7   : > { %v2651_v43 = vsel %vm1186_vm4, %v2650_v3, %v2625_v62 }
0x11dc   : > { %v2637_v52 = vpop.xlane.xlu0 %2636  ;;  %v2629_v36 = vpop.xlane.xlu1 %2628 }
0x11dd   : > { %v2633_v4 = vpop.xlane.xlu2 %2632  ;;  %v2652_v7 = vsel %vm1188_vm5, %v2651_v43, %v2629_v36 }
0x11de   : > { %v2653_v14 = vsel %vm1190_vm6, %v2652_v7, %v2633_v4 }
0x11df   : > { %v2654_v16 = vsel %vm1192_vm7, %v2653_v14, %v2637_v52 }
0x11e4   : > { %v2649_v15 = vpop.xlane.xlu0 %2648  ;;  %v2641_v28 = vpop.xlane.xlu1 %2640 }
0x11e5   : > { %v2645_v38 = vpop.xlane.xlu2 %2644  ;;  %v2655_v35 = vsel %vm1194_vm8, %v2654_v16, %v2641_v28 }
0x11e6   : > { %v2656_v60 = vsel %vm1196_vm9, %v2655_v35, %v2645_v38 }
0x11e7   : > { %v2657_v47 = vsel %vm1030_vm1, %v2656_v60, %v2649_v15 }
0x11e8   : > { %4165 = vmatmul.msk.f32.vlgmr.msrb.gmra.mxu0 %vm1199_vm10, %v2657_v47 }
0x11e9   : > { %4176 = vmatpush.msk.msrb.mxu0 %vm1203_vm2, %v6015_v11 }
0x11eb   : > { %3090 = vmatpush.msrb.mxu0 %v6022_v5 }
0x11ec   : > { %v3232_v17 = vpop.xlane.xlu0 %3231 }
0x11ed   : > { %v3025_v27 = vpop.xlane.xlu2 %3024 }
0x11ee   : > { %4520 = vrcp.f32 %v3025_v27 }
0x11ef   : > { %4522 = vrcp.f32 %v3232_v17 }
0x11f4   : > { %v4521_v24 = vpop.eup %4520 }
0x11f5   : > { %v3027_v29 = vmul.f32 %v4521_v24, %v5978_v13  ;;  %v4523_v41 = vpop.eup %4522 }
0x11f6   : > { %v6034_v21 = vmul.f32 %v4523_v41, %v5976_v32 }
0x11f7   : > { %4178 = vmatmul.msk.f32.vlgmr.msrb.gmra.mxu1 %vm1030_vm1, %v3027_v29  ;;  %v3048_v30 = vmul.f32 %v5870_v39, %v3027_v29  ;;  %v3028_v58 = vmul.f32 %v5833_v23, %v3027_v29  ;;  %v3040_v20 = vmul.f32 %v5856_v8, %v3027_v29  ;;  %v3056_v13 = vmul.f32 %v5882_v25, %v3027_v29 }
0x11f8   : > { %v3032_v22 = vmul.f32 %v5841_v9, %v3027_v29  ;;  %v3243_v40 = vmul.f32 %v5847_v33, %v6034_v21  ;;  %v3251_v49 = vmul.f32 %v5862_v19, %v6034_v21  ;;  %v3036_v50 = vmul.f32 %v5847_v33, %v3027_v29 }
0x11f9   : > { %v3049_v34 = vsel %vm1030_vm1, %v3048_v30, 0.0  ;;  %v3029_v10 = vsel %vm1030_vm1, %v3028_v58, 0.0  ;;  %v3041_v6 = vsel %vm1030_vm1, %v3040_v20, 0.0  ;;  %v3057_v45 = vsel %vm1030_vm1, %v3056_v13, 0.0 }
0x11fa   : > { %3050 = vadd.xlane.f32.xlu1 %v3049_v34  ;;  %3030 = vadd.xlane.f32.xlu0 %v3029_v10  ;;  %v3033_v46 = vsel %vm1030_vm1, %v3032_v22, 0.0  ;;  %v3244_v32 = vsel %vm1030_vm1, %v3243_v40, 0.0  ;;  %v3255_v54 = vmul.f32 %v5870_v39, %v6034_v21  ;;  %v3252_v56 = vsel %vm1030_vm1, %v3251_v49, 0.0  ;;  %v2704_v22 = vpop.f32.mrf.mxu1 }
0x11fb   : > { %3042 = vadd.xlane.f32.xlu2 %v3041_v6  ;;  %v3037_v57 = vsel %vm1030_vm1, %v3036_v50, 0.0  ;;  %v3044_v33 = vmul.f32 %v5862_v19, %v3027_v29  ;;  %v3263_v39 = vmul.f32 %v5882_v25, %v6034_v21  ;;  %v3052_v52 = vmul.f32 %v5876_v48, %v3027_v29 }
0x11fc   : > { %v3256_v51 = vsel %vm1030_vm1, %v3255_v54, 0.0  ;;  %v3060_v15 = vmul.f32 %v5890_v59, %v3027_v29  ;;  %v3235_v28 = vmul.f32 %v5833_v23, %v6034_v21  ;;  %v3239_v35 = vmul.f32 %v5841_v9, %v6034_v21 }
0x11fd   : > { %v3045_v1 = vsel %vm1030_vm1, %v3044_v33, 0.0  ;;  %v3264_v2 = vsel %vm1030_vm1, %v3263_v39, 0.0  ;;  %v3053_v14 = vsel %vm1030_vm1, %v3052_v52, 0.0  ;;  %v3247_v47 = vmul.f32 %v5856_v8, %v6034_v21 }
0x11fe   : > { %v2828_v12 = vpop.xlane.xlu0 %2827  ;;  %v2848_v19 = vpop.xlane.xlu1 %2847  ;;  %v3061_v16 = vsel %vm1030_vm1, %v3060_v15, 0.0  ;;  %v3236_v38 = vsel %vm1030_vm1, %v3235_v28, 0.0  ;;  %v3240_v60 = vsel %vm1030_vm1, %v3239_v35, 0.0  ;;  %v3259_v23 = vmul.f32 %v5876_v48, %v6034_v21 }
0x11ff   : > { %v2824_v44 = vpop.xlane.xlu2 %2823 }
0x1200   : > { %v2857_v61 = vsel %vm1184_vm3, %v2824_v44, %v2828_v12 }
0x1202   : > { %3058 = vadd.xlane.f32.xlu1 %v3057_v45  ;;  %3034 = vadd.xlane.f32.xlu0 %v3033_v46 }
0x1203   : > { %3245 = vadd.xlane.f32.xlu2 %v3244_v32 }
0x1205   : > { %v2911_v50 = vpop.f32.mrf.mxu1 }
0x1206   : > { %v2836_v53 = vpop.xlane.xlu0 %2835 }
0x1207   : > { %v2832_v26 = vpop.xlane.xlu2 %2831 }
0x1208   : > { %v2858_v42 = vsel %vm1186_vm4, %v2857_v61, %v2832_v26 }
0x1209   : > { %v2859_v0 = vsel %vm1188_vm5, %v2858_v42, %v2836_v53 }
0x120a   : > { %3253 = vadd.xlane.f32.xlu1 %v3252_v56  ;;  %3038 = vadd.xlane.f32.xlu0 %v3037_v57 }
0x120b   : > { %3257 = vadd.xlane.f32.xlu2 %v3256_v51 }
0x120e   : > { %v2844_v63 = vpop.xlane.xlu0 %2843 }
0x120f   : > { %v2840_v18 = vpop.xlane.xlu2 %2839 }
0x1210   : > { %v2860_v62 = vsel %vm1190_vm6, %v2859_v0, %v2840_v18 }
0x1211   : > { %v2861_v3 = vsel %vm1192_vm7, %v2860_v62, %v2844_v63 }
0x1212   : > { %3046 = vadd.xlane.f32.xlu0 %v3045_v1  ;;  %v2862_v25 = vsel %vm1194_vm8, %v2861_v3, %v2848_v19 }
0x1213   : > { %3265 = vadd.xlane.f32.xlu2 %v3264_v2 }
0x1216   : > { %v2856_v36 = vpop.xlane.xlu0 %2855 }
0x1217   : > { %v2852_v4 = vpop.xlane.xlu2 %2851 }
0x1218   : > { %v2863_v43 = vsel %vm1196_vm9, %v2862_v25, %v2852_v4  ;;  %v4188_v25 = vld [vmem:[%s6447_s11 + $0x38] sm:$0xff] }
0x1219   : > { %v2864_v7 = vsel %vm1030_vm1, %v2863_v43, %v2856_v36  ;;  %v4187_v43 = vld [vmem:[%s6447_s11 + $0x30] sm:$0xff]  ;;  %3368 = vmatpush.msra.mxu2 %v4188_v25 }
0x121a   : > { %3054 = vadd.xlane.f32.xlu0 %v3053_v14  ;;  %4171 = vmatmul.msk.f32.vlgmr.msra.gmra.mxu0 %vm1199_vm10, %v2864_v7  ;;  %v4186_v7 = vld [vmem:[%s6447_s11 + $0x28] sm:$0xff]  ;;  %v4185_v14 = vld [vmem:[%s6447_s11 + $0x20] sm:$0xff] }
0x121b   : > { %4182 = vmatpush.msk.msra.mxu0 %vm1203_vm2, %v6015_v11  ;;  %v3248_v11 = vsel %vm1030_vm1, %v3247_v47, 0.0  ;;  %3369 = vmatpush.msra.mxu2 %v4187_v43 }
0x121d   : > { %3297 = vmatpush.msra.mxu0 %v6022_v5  ;;  %v3260_v5 = vsel %vm1030_vm1, %v3259_v23, 0.0  ;;  %3370 = vmatpush.msra.mxu2 %v4186_v7 }
0x121f   : > { %3371 = vmatpush.msra.mxu2 %v4185_v14 }
0x1222   : > { %3062 = vadd.xlane.f32.xlu0 %v3061_v16 }
0x122a   : > { %3237 = vadd.xlane.f32.xlu0 %v3236_v38 }
0x122b   : > { %3302 = vrot.lane.b32.xlu2 %v5770_v55, %s6474_s4  ;;  %v3267_v55 = vmul.f32 %v5890_v59, %v6034_v21 }
0x122d   : > { %v3268_v9 = vsel %vm1030_vm1, %v3267_v55, 0.0 }
0x1232   : > { %3241 = vadd.xlane.f32.xlu0 %v3240_v60 }
0x123a   : > { %3249 = vadd.xlane.f32.xlu0 %v3248_v11  ;;  %v4456_v11 = vld [vmem:[%s6448_s23 + $0x1] ss:$0 sm:$0xff] }
0x1242   : > { %3261 = vadd.xlane.f32.xlu0 %v3260_v5 }
0x124a   : > { %3269 = vadd.xlane.f32.xlu0 %v3268_v9 }
0x1265   : > { %v2678_v12 = vpop.f32.mrf.mxu0 }
0x1266   : > { %v2705_v16 = vadd.f32 %v2704_v22, %v2678_v12 }
0x126d   : > { %v3031_v27 = vpop.xlane.xlu0 %3030  ;;  %v3051_v48 = vpop.xlane.xlu1 %3050 }
0x126e   : > { %v3043_v17 = vpop.xlane.xlu2 %3042 }
0x1274   : > { %v3118_v2 = vpop.f32.mrf.mxu1 }
0x1275   : > { %v3035_v24 = vpop.xlane.xlu0 %3034  ;;  %v3059_v45 = vpop.xlane.xlu1 %3058 }
0x1276   : > { %v3246_v29 = vpop.xlane.xlu2 %3245  ;;  %v3064_v20 = vsel %vm1184_vm3, %v3031_v27, %v3035_v24 }
0x127d   : > { %v3039_v8 = vpop.xlane.xlu0 %3038  ;;  %v3254_v42 = vpop.xlane.xlu1 %3253 }
0x127e   : > { %v3258_v41 = vpop.xlane.xlu2 %3257  ;;  %v3065_v34 = vsel %vm1186_vm4, %v3064_v20, %v3039_v8  ;;  %v4560_v20 = vld [vmem:[%s5601_s17] sm:$0xff] }
0x127f   : > { %v3066_v10 = vsel %vm1188_vm5, %v3065_v34, %v3043_v17  ;;  %v4195_v34 = vld [vmem:[%s6450_s18 + $0x30] sm:$0xff] }
0x1285   : > { %v3047_v30 = vpop.xlane.xlu0 %3046 }
0x1286   : > { %v3266_v58 = vpop.xlane.xlu2 %3265  ;;  %v3067_v59 = vsel %vm1190_vm6, %v3066_v10, %v3047_v30  ;;  %v4200_v30 = vld [vmem:[%s6325_s13 + $0x28] sm:$0xff] }
0x1287   : > { %v3068_v40 = vsel %vm1192_vm7, %v3067_v59, %v3051_v48  ;;  %v4196_v48 = vld [vmem:[%s6450_s18 + $0x38] sm:$0xff]  ;;  %v4194_v10 = vld [vmem:[%s6450_s18 + $0x28] sm:$0xff] }
0x1288   : > { %3436 = vmatpush.msra.mxu3 %v4196_v48 }
0x128a   : > { %3437 = vmatpush.msra.mxu3 %v4195_v34 }
0x128c   : > { %3438 = vmatpush.msra.mxu3 %v4194_v10 }
0x128d   : > { %v3055_v6 = vpop.xlane.xlu0 %3054 }
0x128e   : > { %v3303_v13 = vpop.permute.xlu2 %3302  ;;  %v3069_v44 = vsel %vm1194_vm8, %v3068_v40, %v3055_v6  ;;  %v4193_v6 = vld [vmem:[%s6450_s18 + $0x20] sm:$0xff] }
0x128f   : > { %3323 = vmatpush.msra.mxu1 %v3303_v13  ;;  %v3070_v32 = vsel %vm1196_vm9, %v3069_v44, %v3059_v45  ;;  %3439 = vmatpush.msra.mxu3 %v4193_v6 }
0x1290   : > { %4184 = vmatmul.msk.f32.vlgmr.msra.gmra.mxu1 %vm1030_vm1, %v6034_v21 }
0x1295   : > { %v3063_v46 = vpop.xlane.xlu0 %3062 }
0x1296   : > { %v3071_v49 = vsel %vm1030_vm1, %v3070_v32, %v3063_v46 }
0x1297   : > { %v2885_v53 = vpop.f32.mrf.mxu0  ;;  %4177 = vmatmul.msk.f32.vlgmr.msrb.gmra.mxu0 %vm1199_vm10, %v3071_v49  ;;  %v4457_v49 = vld [vmem:[%s6333_s21 + $0x1] ss:$0 sm:$0xff] }
0x1298   : > { %v2912_v54 = vadd.f32 %v2911_v50, %v2885_v53 }
0x129a   : > { %3329 = vrot.lane.b32.xlu0 %v2912_v54, %s6462_s1  ;;  %v4458_v54 = vld [vmem:[%s6475_s9 + $0x1] ss:$0 sm:$0xff] }
0x129d   : > { %v3238_v26 = vpop.xlane.xlu0 %3237 }
0x12a5   : > { %v3242_v56 = vpop.xlane.xlu0 %3241 }
0x12a6   : > { %v3271_v57 = vsel %vm1184_vm3, %v3238_v26, %v3242_v56 }
0x12a7   : > { %v3272_v51 = vsel %vm1186_vm4, %v3271_v57, %v3246_v29 }
0x12ad   : > { %v3250_v21 = vpop.xlane.xlu0 %3249 }
0x12ae   : > { %v3273_v61 = vsel %vm1188_vm5, %v3272_v51, %v3250_v21  ;;  %v4459_v21 = vld [vmem:[%s6476_s12 + $0x1] ss:$0 sm:$0xff] }
0x12af   : > { %v3274_v63 = vsel %vm1190_vm6, %v3273_v61, %v3254_v42  ;;  %v4460_v61 = vld [vmem:[%s6477_s0 + $0x1] ss:$0 sm:$0xff] }
0x12b0   : > { %v3275_v39 = vsel %vm1192_vm7, %v3274_v63, %v3258_v41  ;;  %v4202_v41 = vld [vmem:[%s6325_s13 + $0x38] sm:$0xff]  ;;  %vm6481_vm7 = vcmask 523264  }
0x12b1   : > { %3466 = vmatpush.msrb.mxu0 %v4202_v41 }
0x12b5   : > { %v3262_v33 = vpop.xlane.xlu0 %3261 }
0x12b6   : > { %v3276_v18 = vsel %vm1194_vm8, %v3275_v39, %v3262_v33 }
0x12b7   : > { %v3277_v62 = vsel %vm1196_vm9, %v3276_v18, %v3266_v58  ;;  %v4199_v58 = vld [vmem:[%s6325_s13 + $0x20] sm:$0xff] }
0x12bd   : > { %v3270_v0 = vpop.xlane.xlu0 %3269 }
0x12be   : > { %v3278_v1 = vsel %vm1030_vm1, %v3277_v62, %v3270_v0 }
0x12bf   : > { %4183 = vmatmul.msk.f32.vlgmr.msra.gmra.mxu0 %vm1199_vm10, %v3278_v1 }
0x130c   : > { %v3330_v15 = vpop.permute.xlu0 %3329 }
0x130d   : > { %v3325_v19 = vpop.f32.mrf.mxu1  ;;  %v3340_v38 = vsel %vm1030_vm1, %v2705_v16, %v3330_v15 }
0x1314   : > { %v3092_v3 = vpop.f32.mrf.mxu0 }
0x1315   : > { %v3119_v52 = vadd.f32 %v3118_v2, %v3092_v3 }
0x1317   : > { %3333 = vrot.lane.b32.xlu0 %v3119_v52, %s6464_s30 }
0x133c   : > { %v3299_v36 = vpop.f32.mrf.mxu0 }
0x133d   : > { %v3326_v4 = vadd.f32 %v3325_v19, %v3299_v36 }
0x133f   : > { %3337 = vrot.lane.b32.xlu2 %v3326_v4, %s6463_s26 }
0x1389   : > { %v3334_v28 = vpop.permute.xlu0 %3333 }
0x138a   : > { %v3341_v35 = vsel %vm1887_vm11, %v3340_v38, %v3334_v28 }
0x1399   : > { %v3338_v60 = vpop.permute.xlu2 %3337 }
0x139a   : > { %v3342_v47 = vsel %vm1889_vm12, %v3341_v35, %v3338_v60 }
0x139b   : > { %4190 = vmatmul.msk.f32.vlgmr.msra.gmra.mxu2 %vm1005_vm0, %v3342_v47 }
0x141e   : > { %v3373_v23 = vpop.f32.mrf.mxu2 }
0x141f   : > { %v3374_v5 = vadd.f32 %v4456_v11, %v3373_v23 }
0x1421   : > { %v3376_v55 = vadd.f32 %v3374_v5, %v5760_v31  ;;  %v4201_v31 = vld [vmem:[%s6325_s13 + $0x30] sm:$0xff] }
0x1422   : > { %3467 = vmatpush.msrb.mxu0 %v4201_v31 }
0x1423   : > { %v3381_v9 = vsel %vm1005_vm0, %v3376_v55, 0.0 }
0x1424   : > { %3382 = vadd.xlane.f32.xlu1 %v3381_v9  ;;  %3468 = vmatpush.msrb.mxu0 %v4200_v30 }
0x1426   : > { %3469 = vmatpush.msrb.mxu0 %v4199_v58 }
0x1427   : > { %4204 = vmatmul.msk.f32.vlgmr.msrb.gmra.mxu0 %vm1005_vm0, %v4560_v20 }
0x1497   : > { %v3383_v27 = vpop.xlane.xlu1 %3382 }
0x1498   : > { %v3384_v17 = vmul.f32 %v3383_v27, %v5589_v37 }
0x149a   : > { %v3385_v24 = vsub.f32 %v3376_v55, %v3384_v17 }
0x149c   : > { %v3386_v29 = vmul.f32 %v3385_v24, %v3385_v24 }
0x149e   : > { %v3387_v8 = vsel %vm1005_vm0, %v3386_v29, 0.0 }
0x149f   : > { %3388 = vadd.xlane.f32.xlu0 %v3387_v8 }
0x14a4   : > { %v3471_v57 = vpop.f32.mrf.mxu0 }
0x14a5   : > { %v6175_v51 = vadd.f32 %v4459_v21, %v3471_v57 }
0x14a7   : > { %3540 = vrot.lane.b32.xlu2 %v6175_v51, %s6453_s5  ;;  %4205 = vmatpush.xpose.msk.msrb.mxu1 %vm1030_vm1, %v6175_v51 }
0x14af   : > { %3605 = vrot.lane.b32.xlu2 %v6175_v51, %s6455_s25 }
0x14b7   : > { %3670 = vrot.lane.b32.xlu2 %v6175_v51, %s6454_s7 }
0x1501   : > { %v3541_v39 = vpop.permute.xlu2 %3540 }
0x1502   : > { %4208 = vmatpush.xpose.msk.msrb.mxu3 %vm1030_vm1, %v3541_v39  ;;  %v3749_v39 = vld [vmem:[#allocation8 + $0x20] sm:$0xff] }
0x1509   : > { %v3606_v18 = vpop.permute.xlu2 %3605 }
0x150a   : > { %4211 = vmatpush.xpose.msk.msra.mxu1 %vm1030_vm1, %v3606_v18 }
0x1511   : > { %v3671_v0 = vpop.permute.xlu2 %3670 }
0x1512   : > { %v3389_v59 = vpop.xlane.xlu0 %3388 }
0x1513   : > { %v3390_v13 = vmul.f32 %v3389_v59, %v5589_v37 }
0x1515   : > { %v3391_v22 = vadd.f32 1e-05, %v3390_v13 }
0x1517   : > { %4524 = vrsqrt.f32 %v3391_v22  ;;  %vm3398_vm3 = vweird.f32 %v3391_v22 }
0x151d   : > { %v4525_v12 = vpop.eup %4524 }
0x151e   : > { %v3393_v40 = vmul.f32 %v4525_v12, %v3391_v22  ;;  %vm3399_vm2 = vweird.f32 %v4525_v12 }
0x151f   : > { %vm3400_vm4 = vmor %vm3398_vm3, %vm3399_vm2 }
0x1520   : > { %v3394_v44 = vmul.f32 %v4525_v12, %v3393_v40 }
0x1522   : > { %v3395_v45 = vmul.f32 0.5, %v3394_v44 }
0x1524   : > { %v3396_v46 = vsub.f32 1.5, %v3395_v45 }
0x1526   : > { %v3397_v32 = vmul.f32 %v4525_v12, %v3396_v46 }
0x1528   : > { %v3401_v50 = vsel %vm3400_vm4, %v4525_v12, %v3397_v32 }
0x1529   : > { %v3402_v53 = vmul.f32 %v3401_v50, %v3385_v24 }
0x152b   : > { %v3406_v26 = vmul.f32 %v4457_v49, %v3402_v53 }
0x152d   : > { %v6168_v56 = vadd.f32 %v4458_v54, %v3406_v26 }
0x152f   : > { %4198 = vmatmul.msk.f32.vlgmr.msra.gmra.mxu3 %vm1005_vm0, %v6168_v56 }
0x1530   : > { %4214 = vmatpush.xpose.msk.msra.mxu3 %vm1030_vm1, %v3671_v0 }
0x15b2   : > { %v3441_v42 = vpop.f32.mrf.mxu3 }
0x15b3   : > { %v3442_v33 = vadd.f32 %v4460_v61, %v3441_v42  ;;  %v3752_v42 = vld [vmem:[#allocation8 + $0x38] sm:$0xff] }
0x15b5   : > { %v3474_v63 = vmul.f32 0.35355338, %v3442_v33  ;;  %v3751_v33 = vld [vmem:[#allocation8 + $0x30] sm:$0xff] }
0x15b7   : > { %3603 = vrot.lane.b32.xlu2 %v3474_v63, %s6455_s25  ;;  %3538 = vrot.lane.b32.xlu1 %v3474_v63, %s6453_s5  ;;  %s6478_s5 = scalar_lea.vmem [#allocation5], %s5171_s8 }
0x15b8   : > { %4206 = vmatmul.msk.f32.vlgmr.msrb.gmra.mxu1 %vm1030_vm1, %v3474_v63  ;;  %v4561_v52 = vld [vmem:[%s6478_s5] ss:$0 sm:$0xff]  ;;  %s972_s5 = scalar_lea.vmem [#allocation14], %s4109_s10 }
0x15b9   : > { %3773 = vmatpush.msrb.mxu1 %v3752_v42 }
0x15bb   : > { %3774 = vmatpush.msrb.mxu1 %v3751_v33 }
0x15bf   : > { %3668 = vrot.lane.b32.xlu1 %v3474_v63, %s6454_s7  ;;  %v3750_v63 = vld [vmem:[#allocation8 + $0x28] sm:$0xff]  ;;  %s3936_s7 = sshll.u32 %s972_s5, 4  ;;  %s3937_s7 = int_to_ptr.vmem [resolvable:$true] %s3936_s7 }
0x15c0   : > { %3775 = vmatpush.msrb.mxu1 %v3750_v63 }
0x15c2   : > { %3776 = vmatpush.msrb.mxu1 %v3749_v39 }
0x1611   : > { %v3604_v62 = vpop.permute.xlu2 %3603 }
0x1612   : > { %4212 = vmatmul.msk.f32.vlgmr.msra.gmra.mxu1 %vm1030_vm1, %v3604_v62 }
0x1629   : > { %v3539_v1 = vpop.permute.xlu1 %3538 }
0x162a   : > { %4209 = vmatmul.msk.f32.vlgmr.msrb.gmra.mxu3 %vm1030_vm1, %v3539_v1 }
0x1631   : > { %v3669_v2 = vpop.permute.xlu1 %3668 }
0x1632   : > { %4215 = vmatmul.msk.f32.vlgmr.msra.gmra.mxu3 %vm1030_vm1, %v3669_v2 }
0x1635   : > { %v3498_v3 = vpop.f32.mrf.mxu1 }
0x1636   : > { %v3499_v19 = vadd.f32 %v4561_v52, %v3498_v3 }
0x1638   : > { %v3501_v36 = vsel %vm1030_vm1, %v3499_v19, -inf }
0x1639   : > { %3502 = vmax.xlane.f32.xlu2 %v3501_v36 }
0x1651   : > { %3512 = vrot.lane.b32.xlu2 %v6175_v51, %s6458_s2  ;;  %s6479_s2 = sld [smem:[#allocation45_spill]] }
0x1659   : > { %3707 = vrot.lane.b32.xlu2 %v6175_v51, %s6459_s20 }
0x168f   : > { %v3628_v4 = vpop.f32.mrf.mxu1 }
0x1690   : > { %v3629_v25 = vadd.f32 %v4561_v52, %v3628_v4 }
0x1692   : > { %v3631_v43 = vsel %vm1030_vm1, %v3629_v25, -inf }
0x1693   : > { %3632 = vmax.xlane.f32.xlu0 %v3631_v43 }
0x16ac   : > { %v3503_v7 = vpop.xlane.xlu2 %3502 }
0x16ad   : > { %v3504_v14 = vsub.f32 %v3499_v19, %v3503_v7  ;;  %v3563_v15 = vpop.f32.mrf.mxu3 }
0x16ae   : > { %v3564_v16 = vadd.f32 %v4561_v52, %v3563_v15 }
0x16af   : > { %v3505_v28 = vmul.f32 1.442695, %v3504_v14 }
0x16b0   : > { %v3566_v38 = vsel %vm1030_vm1, %v3564_v16, -inf }
0x16b1   : > { %4526 = vpow2.f32 %v3505_v28  ;;  %3567 = vmax.xlane.f32.xlu1 %v3566_v38  ;;  %v3820_v28 = vld [vmem:[#allocation10 + $0x38] sm:$0xff]  ;;  %v3819_v38 = vld [vmem:[#allocation10 + $0x30] sm:$0xff] }
0x16b4   : > { %v3513_v35 = vpop.permute.xlu2 %3512 }
0x16b5   : > { %3533 = vmatpush.msrb.mxu2 %v3513_v35  ;;  %v3693_v11 = vpop.f32.mrf.mxu3  ;;  %v3818_v35 = vld [vmem:[#allocation10 + $0x28] sm:$0xff] }
0x16b6   : > { %v3694_v23 = vadd.f32 %v4561_v52, %v3693_v11  ;;  %v4461_v52 = vld [vmem:[%s6479_s2 + $0x1] ss:$0 sm:$0xff]  ;;  %v4227_v11 = vld [vmem:[%s6331_s19 + $0x68] sm:$0xff]  ;;  %s3924_s2 = scalar_lea.sflag [#allocation4], %s5171_s8 }
0x16b7   : > { %v4527_v60 = vpop.eup %4526 }
0x16b8   : > { %v3507_v47 = vsel %vm1030_vm1, %v4527_v60, 0.0  ;;  %v3696_v5 = vsel %vm1030_vm1, %v3694_v23, -inf }
0x16b9   : > { %3508 = vadd.xlane.f32.xlu0 %v3507_v47  ;;  %v4228_v47 = vld [vmem:[%s6331_s19 + $0x70] sm:$0xff] }
0x16bc   : > { %v3708_v32 = vpop.permute.xlu2 %3707 }
0x16c1   : > { %3697 = vmax.xlane.f32.xlu0 %v3696_v5 }
0x1706   : > { %v3633_v55 = vpop.xlane.xlu0 %3632 }
0x1707   : > { %v3634_v9 = vsub.f32 %v3629_v25, %v3633_v55  ;;  %v4226_v55 = vld [vmem:[%s6331_s19 + $0x60] sm:$0xff] }
0x1709   : > { %v3635_v27 = vmul.f32 1.442695, %v3634_v9 }
0x170b   : > { %4528 = vpow2.f32 %v3635_v27  ;;  %v4225_v27 = vld [vmem:[%s6331_s19 + $0x58] sm:$0xff] }
0x1711   : > { %v4529_v17 = vpop.eup %4528 }
0x1712   : > { %v3637_v24 = vsel %vm1030_vm1, %v4529_v17, 0.0 }
0x1713   : > { %3638 = vadd.xlane.f32.xlu0 %v3637_v24 }
0x1724   : > { %v3568_v29 = vpop.xlane.xlu1 %3567 }
0x1725   : > { %v3569_v8 = vsub.f32 %v3564_v16, %v3568_v29 }
0x1727   : > { %v3570_v41 = vmul.f32 1.442695, %v3569_v8 }
0x1729   : > { %4530 = vpow2.f32 %v3570_v41 }
0x172c   : > { %v3509_v31 = vpop.xlane.xlu0 %3508 }
0x172d   : > { %4532 = vrcp.f32 %v3509_v31 }
0x172f   : > { %v4531_v30 = vpop.eup %4530 }
0x1730   : > { %v3572_v58 = vsel %vm1030_vm1, %v4531_v30, 0.0 }
0x1731   : > { %3573 = vadd.xlane.f32.xlu0 %v3572_v58 }
0x1733   : > { %v4533_v20 = vpop.eup %4532 }
0x1734   : > { %v3511_v48 = vmul.f32 %v4533_v20, %v4527_v60  ;;  %v3698_v34 = vpop.xlane.xlu0 %3697  ;;  %v3817_v60 = vld [vmem:[#allocation10 + $0x20] sm:$0xff] }
0x1735   : > { %v3699_v10 = vsub.f32 %v3694_v23, %v3698_v34 }
0x1736   : > { %4207 = vmatmul.msk.f32.vlgmr.msrb.gmra.mxu2 %vm1030_vm1, %v3511_v48  ;;  %v4463_v48 = vld [vmem:[%s6480_s14 + $0x1] ss:$0 sm:$0xff]  ;;  %s6484_s14 = sld [smem:[#allocation54_spill]] }
0x1737   : > { %v3700_v6 = vmul.f32 1.442695, %v3699_v10 }
0x1739   : > { %4534 = vpow2.f32 %v3700_v6  ;;  %v4224_v6 = vld [vmem:[%s6331_s19 + $0x50] sm:$0xff] }
0x173f   : > { %v4535_v59 = vpop.eup %4534 }
0x1740   : > { %v3702_v13 = vsel %vm1030_vm1, %v4535_v59, 0.0 }
0x1741   : > { %3703 = vadd.xlane.f32.xlu1 %v3702_v13  ;;  %v4222_v13 = vld [vmem:[%s6331_s19 + $0x40] sm:$0xff] }
0x1745   : > { %3577 = vrot.lane.b32.xlu0 %v6175_v51, %s6460_s29 }
0x175a   : > { %3642 = vrot.lane.b32.xlu1 %v6175_v51, %s6461_s6 }
0x1786   : > { %v3639_v22 = vpop.xlane.xlu0 %3638 }
0x17a4   : > { %v3574_v12 = vpop.xlane.xlu0 %3573 }
0x17a5   : > { %4536 = vrcp.f32 %v3574_v12 }
0x17ab   : > { %v4537_v40 = vpop.eup %4536 }
0x17ac   : > { %v3576_v45 = vmul.f32 %v4537_v40, %v4531_v30  ;;  %v4462_v30 = vld [vmem:[#allocation11 + $0x1] ss:$0 sm:$0xff] }
0x17b4   : > { %v3704_v44 = vpop.xlane.xlu1 %3703 }
0x17b5   : > { %4538 = vrcp.f32 %v3704_v44 }
0x17b6   : > { %4540 = vrcp.f32 %v3639_v22  ;;  %v4464_v22 = vld [vmem:[%s6467_s16 + $0x1] ss:$0 sm:$0xff] }
0x17b7   : > { %v3578_v46 = vpop.permute.xlu0 %3577 }
0x17b8   : > { %3598 = vmatpush.msra.mxu0 %v3578_v46 }
0x17b9   : > { %4210 = vmatmul.msk.f32.vlgmr.msra.gmra.mxu0 %vm1030_vm1, %v3576_v45  ;;  %v3535_v51 = vpop.f32.mrf.mxu2 }
0x17ba   : > { %3728 = vmatpush.msrb.mxu0 %v3708_v32 }
0x17bb   : > { %v4539_v49 = vpop.eup %4538 }
0x17bc   : > { %v3706_v50 = vmul.f32 %v4539_v49, %v4535_v59  ;;  %v4541_v53 = vpop.eup %4540  ;;  %v4223_v59 = vld [vmem:[%s6331_s19 + $0x48] sm:$0xff] }
0x17bd   : > { %v3641_v54 = vmul.f32 %v4541_v53, %v4529_v17 }
0x17c1   : > { %4216 = vmatmul.msk.f32.vlgmr.msrb.gmra.mxu0 %vm1030_vm1, %v3706_v50 }
0x17cc   : > { %v3643_v26 = vpop.permute.xlu1 %3642 }
0x17cd   : > { %3663 = vmatpush.msra.mxu2 %v3643_v26 }
0x17ce   : > { %4213 = vmatmul.msk.f32.vlgmr.msra.gmra.mxu2 %vm1030_vm1, %v3641_v54 }
0x17cf   : > { %3841 = vmatpush.msrb.mxu2 %v3820_v28 }
0x17d1   : > { %3842 = vmatpush.msrb.mxu2 %v3819_v38 }
0x17d3   : > { %3843 = vmatpush.msrb.mxu2 %v3818_v35 }
0x17d5   : > { %3844 = vmatpush.msrb.mxu2 %v3817_v60 }
0x1836   : > { %v3600_v21 = vpop.f32.mrf.mxu0 }
0x1837   : > { %3734 = vrot.lane.b32.xlu0 %v3600_v21, %s6462_s1 }
0x183e   : > { %v3730_v57 = vpop.f32.mrf.mxu0 }
0x183f   : > { %3742 = vrot.lane.b32.xlu0 %v3730_v57, %s6463_s26  ;;  %s6482_s26 = sld [smem:[#allocation48_spill]] }
0x1845   : > { %v4465_v45 = vld [vmem:[%s6482_s26 + $0x1] ss:$0 sm:$0xff]  ;;  %s4792_s26 = scalar_lea.hbm %s6484_s14, 16 }
0x1851   : > { %v3665_v61 = vpop.f32.mrf.mxu2 }
0x1852   : > { %3738 = vrot.lane.b32.xlu2 %v3665_v61, %s6464_s30  ;;  %s6483_s30 = sld [smem:[#allocation25_spill]] }
0x1858   : > { %s4234_s27 = sshll.u32 %s6483_s30, 3 }
0x1859   : > { %s3934_s17 = scalar_lea.hbm %s6484_s14, %s4234_s27 }
0x185a   : > { %s3938_s25 = sshll.u32 %s3934_s17, 4  ;;  %s3939_s25 = int_to_ptr.hbm [resolvable:$true] %s3938_s25 }
0x185b   : > { %s4786_s20 = sshra.s32 %s3939_s25, 4  ;;  %s4787_s20 = int_to_ptr.hbm [resolvable:$true] %s4786_s20 }
0x185c   : > { %s4788_s29 = scalar_lea.hbm %s4787_s20, 8  ;;  %p4793_p9 = scmp.lt.s32.totalorder %s4787_s20, %s6484_s14 }
0x185d   : > { %p4789_p1 = scmp.ne.s32.totalorder %s4787_s20, %s4788_s29  ;;  %p4794_p8 = scmp.lt.s32.totalorder %s4792_s26, %s4788_s29 }
0x185f   : > { %p4790_p13 = pnand %p4789_p1, %p5119_p0  ;;  %p4795_p10 = por %p4794_p8, %p4793_p9 }
0x1861   : > { %p4791_p7 = pneg %p4790_p13 }
0x1863   : > { %p4796_p12 = pnand %p4795_p10, %p4791_p7 }
0x18a9   : > { %v3735_v18 = vpop.permute.xlu0 %3734 }
0x18aa   : > { %v3745_v0 = vsel %vm1030_vm1, %v3535_v51, %v3735_v18 }
0x18ac   : > { %v3739_v62 = vpop.permute.xlu2 %3738 }
0x18ad   : > { %v3746_v1 = vsel %vm1887_vm11, %v3745_v0, %v3739_v62 }
0x18b1   : > { %v3743_v2 = vpop.permute.xlu0 %3742 }
0x18b2   : > { %v3747_v3 = vsel %vm1889_vm12, %v3746_v1, %v3743_v2  ;;  %v4466_v1 = vld [vmem:[%s6469_s15 + $0x1] ss:$0 sm:$0xff] }
0x18b3   : > { %4218 = vmatmul.msk.f32.vlgmr.msrb.gmra.mxu1 %vm1005_vm0, %v3747_v3  ;;  %v4467_v3 = vld [vmem:[#allocation13 + $0x1] ss:$0 sm:$0xff] }
0x1930   : > { %v3778_v19 = vpop.f32.mrf.mxu1 }
0x1931   : > { %v3779_v36 = vadd.f32 %v4461_v52, %v3778_v19 }
0x1933   : > { %v3781_v4 = vadd.f32 %v3779_v36, %v6168_v56  ;;  %v4229_v56 = vld [vmem:[%s6331_s19 + $0x78] sm:$0xff] }
0x1934   : > { %3875 = vmatpush.msrb.mxu3 %v4229_v56 }
0x1935   : > { %v3786_v25 = vsel %vm1005_vm0, %v3781_v4, 0.0 }
0x1936   : > { %3787 = vadd.xlane.f32.xlu1 %v3786_v25  ;;  %3876 = vmatpush.msrb.mxu3 %v4228_v47 }
0x1938   : > { %3877 = vmatpush.msrb.mxu3 %v4227_v11 }
0x193a   : > { %3878 = vmatpush.msrb.mxu3 %v4226_v55 }
0x193c   : > { %3879 = vmatpush.msrb.mxu3 %v4225_v27 }
0x193e   : > { %3880 = vmatpush.msrb.mxu3 %v4224_v6 }
0x1940   : > { %3881 = vmatpush.msrb.mxu3 %v4223_v59 }
0x1942   : > { %3882 = vmatpush.msrb.mxu3 %v4222_v13 }
0x19a9   : > { %v3788_v43 = vpop.xlane.xlu1 %3787 }
0x19aa   : > { %v3789_v7 = vmul.f32 %v3788_v43, %v5589_v37 }
0x19ac   : > { %v3790_v14 = vsub.f32 %v3781_v4, %v3789_v7 }
0x19ae   : > { %v3791_v15 = vmul.f32 %v3790_v14, %v3790_v14 }
0x19b0   : > { %v3792_v16 = vsel %vm1005_vm0, %v3791_v15, 0.0 }
0x19b1   : > { %3793 = vadd.xlane.f32.xlu2 %v3792_v16 }
0x1a24   : > { %v3794_v23 = vpop.xlane.xlu2 %3793 }
0x1a25   : > { %v3795_v5 = vmul.f32 %v3794_v23, %v5589_v37 }
0x1a27   : > { %v3796_v9 = vadd.f32 1e-05, %v3795_v5 }
0x1a29   : > { %4542 = vrsqrt.f32 %v3796_v9  ;;  %vm3803_vm5 = vweird.f32 %v3796_v9 }
0x1a2f   : > { %v4543_v17 = vpop.eup %4542 }
0x1a30   : > { %v3798_v24 = vmul.f32 %v4543_v17, %v3796_v9  ;;  %vm3804_vm1 = vweird.f32 %v4543_v17 }
0x1a31   : > { %vm3805_vm6 = vmor %vm3803_vm5, %vm3804_vm1 }
0x1a32   : > { %v3799_v29 = vmul.f32 %v4543_v17, %v3798_v24 }
0x1a34   : > { %v3800_v8 = vmul.f32 0.5, %v3799_v29 }
0x1a36   : > { %v3801_v41 = vsub.f32 1.5, %v3800_v8 }
0x1a38   : > { %v3802_v31 = vmul.f32 %v4543_v17, %v3801_v41 }
0x1a3a   : > { %v3806_v58 = vsel %vm3805_vm6, %v4543_v17, %v3802_v31 }
0x1a3b   : > { %v3807_v20 = vmul.f32 %v3806_v58, %v3790_v14 }
0x1a3d   : > { %v3811_v34 = vmul.f32 %v4462_v30, %v3807_v20 }
0x1a3f   : > { %v3815_v10 = vadd.f32 %v4463_v48, %v3811_v34 }
0x1a41   : > { %4221 = vmatmul.msk.f32.vlgmr.msrb.gmra.mxu2 %vm1005_vm0, %v3815_v10 }
0x1ac4   : > { %v3846_v12 = vpop.f32.mrf.mxu2 }
0x1ac5   : > { %v3847_v40 = vadd.f32 %v4464_v22, %v3846_v12 }
0x1ac7   : > { %v3849_v44 = vmax.f32 %v3847_v40, 0.0 }
0x1ac9   : > { %4231 = vmatmul.msk.f32.vlgmr.msrb.gmra.mxu3 %vm6481_vm7, %v3849_v44 }
0x1b4c   : > { %v3884_v46 = vpop.f32.mrf.mxu3 }
0x1b4d   : > { %v3885_v32 = vadd.f32 %v4465_v45, %v3884_v46 }
0x1b4f   : > { %v3887_v49 = vadd.f32 %v3885_v32, %v3815_v10 }
0x1b51   : > { %v3892_v50 = vsel %vm1005_vm0, %v3887_v49, 0.0 }
0x1b52   : > { %3893 = vadd.xlane.f32.xlu0 %v3892_v50 }
0x1bc5   : > { %v3894_v53 = vpop.xlane.xlu0 %3893 }
0x1bc6   : > { %v3895_v54 = vmul.f32 %v3894_v53, %v5589_v37 }
0x1bc8   : > { %v3896_v26 = vsub.f32 %v3887_v49, %v3895_v54 }
0x1bca   : > { %v3897_v21 = vmul.f32 %v3896_v26, %v3896_v26 }
0x1bcc   : > { %v3898_v57 = vsel %vm1005_vm0, %v3897_v21, 0.0 }
0x1bcd   : > { %3899 = vadd.xlane.f32.xlu1 %v3898_v57 }
0x1c40   : > { %v3900_v51 = vpop.xlane.xlu1 %3899 }
0x1c41   : > { %v3901_v61 = vmul.f32 %v3900_v51, %v5589_v37 }
0x1c43   : > { %v3902_v42 = vadd.f32 1e-05, %v3901_v61 }
0x1c45   : > { %4544 = vrsqrt.f32 %v3902_v42  ;;  %vm3909_vm9 = vweird.f32 %v3902_v42 }
0x1c4b   : > { %v4545_v33 = vpop.eup %4544 }
0x1c4c   : > { %v3904_v63 = vmul.f32 %v4545_v33, %v3902_v42  ;;  %vm3910_vm8 = vweird.f32 %v4545_v33 }
0x1c4d   : > { %vm3911_vm10 = vmor %vm3909_vm9, %vm3910_vm8 }
0x1c4e   : > { %v3905_v39 = vmul.f32 %v4545_v33, %v3904_v63 }
0x1c50   : > { %v3906_v18 = vmul.f32 0.5, %v3905_v39 }
0x1c52   : > { %v3907_v0 = vsub.f32 1.5, %v3906_v18 }
0x1c54   : > { %v3908_v62 = vmul.f32 %v4545_v33, %v3907_v0 }
0x1c56   : > { %v3912_v37 = vsel %vm3911_vm10, %v4545_v33, %v3908_v62 }
0x1c57   : > { %v3913_v2 = vmul.f32 %v3912_v37, %v3896_v26 }
0x1c59   : > { %v3917_v52 = vmul.f32 %v4466_v1, %v3913_v2 }
0x1c5b   : > { %v3921_v19 = vadd.f32 %v4467_v3, %v3917_v52 }
0x1c5d   : > { %3922 = vst.msk [vmem:[%s972_s5] sm:$0xff] %vm1005_vm0, %v3921_v19 }
0x1c5e   : > { %4799 = shalt.err (!%p4796_p12)
}
0x1c5f   : > { %4261 = dma.vmem_to_hbm [thread:$0]  (%p5119_p0), %s3937_s7, 128, %s3939_s25, %s3924_s2  }
0x1c60 PF: > { %s6486_s8 = sld [smem:[#allocation21_spill]] }
0x1c61   : > { %s6488_s9 = sld [smem:[#allocation24_spill]] }
0x1c66   : > { %s3950_s22 = sand.u32 1, %s6486_s8  }
0x1c67   : > { %p6489_p4 = scmp.ge.s32.totalorder %s6488_s9, 2  ;;  %s3951_s4 = scalar_lea.sflag [#allocation4], %s3950_s22 }
0x1c69   : > { %p4287_p11 = pnand %p6489_p4, %p5125_p6 }
0x1c6b   : > { %p4288_p2 = pneg %p4287_p11 }
0x1c6d   : > { %4837 = dma.done.wait (%p4288_p2), %s3951_s4, 128  }
0x1c6e   : > { %4839 = vsyncadd (%p4288_p2), %s3951_s4, 4294967168  ;;  %s6490_s30 = sld [smem:[#allocation26_spill]] }
0x1c6f   : > { %s6491_s7 = sld [smem:[#allocation22_spill]] }
0x1c70   : > { %s6492_s4 = sld [smem:[#allocation23_spill]] }
0x1c71   : > { %s6493_s8 = sld [smem:[#allocation27_spill]] }
0x1c74   : > { %p45_p5 = scmp.ge.s32.totalorder %s6490_s30, 4  }
0x1c76   :  { %47 = sbr.rel (!%p45_p5) target bundleno = 35 (0x23), region = 232 }
0x1c7b   :  { %3957 = vsyncpa [#allocation3], 1 }
0x1c7c   :  { %3959 = vsyncpa [#allocation3 + $0x1], 1 }
0x1c7d   :  { %3960 = vsyncpa [#allocation6], 1 }
0x1c7e   :  { %3962 = vsyncpa [#allocation6 + $0x1], 1 }
0x1c7f   :  { %3963 = vsyncpa [#allocation9], 1 }
0x1c80   :  { %3964 = vsyncpa [#allocation12], 1 }
0x1c81   :  { %3965 = vsyncpa [#allocation4], 1 }
0x1c82   :  { %3967 = vsyncpa [#allocation4 + $0x1], 1 }

</bundles_post_ra>
